<compile_context>
chip_gen: v6e
topology: v6e:2x2x1
jax: 0.10.0
libtpu: 0.0.40
codegen_flags: <defaults>
</compile_context>

<pallas_src>
import functools

import jax
import jax.numpy as jnp
import numpy as np
from jax.experimental import pallas as pl
from jax.experimental.pallas import tpu as pltpu

_K = 4
_BN_EPS = 1e-5
_LAYER_CFG = [(1, 0)] + [(2, 1)] * 5          # (stride, pad) per ConvTranspose2d
# kernel-tap table: _KHM[r, d] = 4x4 kernel index used by output phase r, tap d
_KHM = np.array([[3, 1], [2, 0]], dtype=np.int32)


# --------------------------------------------------------------------------
# Host-side precompute (runs ONCE, outside jit)
# --------------------------------------------------------------------------
def _build_deconv_matrix(w, W, *, channel_major_out=False):
    """ConvTranspose2d(4, stride 2, pad 1) weight -> block-Toeplitz matrix.

    w: (IC, OC, 4, 4) PyTorch layout.  Returns T of shape (3*W*IC, 4*W*OC):
    if LHS row i = concat of input rows (i-1, i, i+1) (each W*IC lanes,
    lane = iw*IC+ic, out-of-range rows = 0), then LHS @ T gives output rows
    (2i, 2i+1).  Output lane order:
      default              : rh*(2W*OC) + ow*OC + oc   (row phase, col, chan)
      channel_major_out    : oc*(4W) + rh*(2W) + ow    (direct NCHW store)
    """
    w = np.asarray(w, np.float32)
    IC, OC = w.shape[0], w.shape[1]
    T = np.zeros((3, W, IC, 2, 2 * W, OC), np.float32)   # d, iw, ic, rh, ow, oc
    for rh in range(2):
        for dh in range(2):
            d, kh = rh + dh, int(_KHM[rh, dh])
            for rw in range(2):
                for dw in range(2):
                    kw = int(_KHM[rw, dw])
                    for j in range(W):
                        iw = j + rw + dw - 1
                        if 0 <= iw < W:                   # zero-pad taps dropped
                            T[d, iw, :, rh, 2 * j + rw, :] += w[:, :, kh, kw]
    if channel_major_out:
        T = T.transpose(0, 1, 2, 5, 3, 4)                 # d, iw, ic, oc, rh, ow
        return T.reshape(3 * W * IC, OC * 4 * W)
    return T.reshape(3 * W * IC, 4 * W * OC)


def prepare_params(params):
    """Rearrange weights once per weight update; returns only device arrays."""
    prep = {}
    w0 = np.asarray(params["w0"], np.float32)             # (nz, C0, 4, 4)
    nz, C0 = w0.shape[0], w0.shape[1]
    prep["w0m"] = jnp.asarray(w0.transpose(0, 2, 3, 1).reshape(nz, 16 * C0),
                              jnp.float32)
    W = 4
    for idx in range(1, 6):
        T = _build_deconv_matrix(params[f"w{idx}"], W,
                                 channel_major_out=(idx == 5))
        prep[f"t{idx}"] = jnp.asarray(T, jnp.bfloat16)
        W *= 2
    for i in range(5):
        prep[f"gamma{i}"] = jnp.asarray(params[f"gamma{i}"], jnp.float32)
        prep[f"beta{i}"] = jnp.asarray(params[f"beta{i}"], jnp.float32)
    return prep


# --------------------------------------------------------------------------
# Pallas kernels
# --------------------------------------------------------------------------
def _mm_stats_kernel(a_ref, b_ref, y_ref, s_ref, q_ref):
    """Layer 0: 1x1-input ConvTranspose == GEMM, with fused per-column stats."""
    y = jnp.dot(a_ref[...], b_ref[...], preferred_element_type=jnp.float32)
    y_ref[...] = y
    s_ref[...] = jnp.sum(y, axis=0, keepdims=True)
    q_ref[...] = jnp.sum(y * y, axis=0, keepdims=True)


def matmul_stats(a, b):
    M, K = a.shape
    N = b.shape[1]
    return pl.pallas_call(
        _mm_stats_kernel,
        out_shape=(jax.ShapeDtypeStruct((M, N), jnp.float32),
                   jax.ShapeDtypeStruct((1, N), jnp.float32),
                   jax.ShapeDtypeStruct((1, N), jnp.float32)),
        grid=(1,),
        in_specs=[pl.BlockSpec((M, K), lambda i: (0, 0)),
                  pl.BlockSpec((K, N), lambda i: (0, 0))],
        out_specs=(pl.BlockSpec((M, N), lambda i: (0, 0)),
                   pl.BlockSpec((1, N), lambda i: (0, 0)),
                   pl.BlockSpec((1, N), lambda i: (0, 0))),
    )(a, b)


def _deconv_kernel(x_ref, sc_ref, sh_ref, t_ref, *refs, H, W, IC, OC, act):
    """One batch element of: [prev-layer BN affine + ReLU]  ->
    ConvTranspose2d(4, stride 2, pad 1)  ->  {tanh | per-batch BN stats}."""
    if act == "tanh":
        y_ref, lhs_ref = refs
    else:
        y_ref, s_ref, q_ref, lhs_ref = refs
    Kw = W * IC

    # Fused prologue: BN affine + ReLU on the previous layer's raw output.
    a = x_ref[0].astype(jnp.float32) * sc_ref[...] + sh_ref[...]
    a = jnp.maximum(a, 0.0)                               # (H, W*IC) f32

    # Block-Toeplitz LHS in VMEM scratch: row i = [row i-1 | row i | row i+1],
    # out-of-range rows stay zero.  All lane offsets are multiples of 128.
    lhs_ref[...] = jnp.zeros_like(lhs_ref)
    lhs_ref[:, Kw:2 * Kw] = a                             # tap d=1 : input row i
    lhs_ref[1:H, 0:Kw] = a[:H - 1]                        # tap d=0 : input row i-1
    lhs_ref[:H - 1, 2 * Kw:3 * Kw] = a[1:]                # tap d=2 : input row i+1

    # One MXU matmul -> both output-row phases of every row pair (N=512..768).
    acc = jnp.dot(lhs_ref[...].astype(jnp.bfloat16), t_ref[...],
                  preferred_element_type=jnp.float32)     # (H, Nout) f32

    if act == "tanh":
        acc = jnp.tanh(acc)
        F = 4 * W                                          # lanes per channel
        for oc in range(OC):                               # direct NCHW store
            y_ref[0, oc] = acc[:, oc * F:(oc + 1) * F]
    else:
        y_ref[0] = acc
        s_ref[0] = jnp.sum(acc, axis=0, keepdims=True)     # per-batch partials
        q_ref[0] = jnp.sum(acc * acc, axis=0, keepdims=True)


def conv_transpose_fused(x, scale_row, shift_row, t, *, W, IC, OC, act=None):
    """x: (B, H, W*IC) raw previous-layer output; scale/shift: (1, W*IC);
    t: (3*W*IC, 4*W*OC) block-Toeplitz weight (bf16)."""
    B, H, WIC = x.shape
    assert WIC == W * IC
    Nout = t.shape[1]
    assert Nout == 4 * W * OC
    kernel = functools.partial(_deconv_kernel, H=H, W=W, IC=IC, OC=OC, act=act)
    in_specs = [pl.BlockSpec((1, H, W * IC), lambda b: (b, 0, 0)),
                pl.BlockSpec((1, W * IC), lambda b: (0, 0)),
                pl.BlockSpec((1, W * IC), lambda b: (0, 0)),
                pl.BlockSpec((3 * W * IC, Nout), lambda b: (0, 0))]
    if act == "tanh":
        out_shape = jax.ShapeDtypeStruct((B, OC, H, 4 * W), jnp.float32)
        out_specs = pl.BlockSpec((1, OC, H, 4 * W), lambda b: (b, 0, 0, 0))
    else:
        out_shape = (jax.ShapeDtypeStruct((B, H, Nout), jnp.float32),
                     jax.ShapeDtypeStruct((B, 1, Nout), jnp.float32),
                     jax.ShapeDtypeStruct((B, 1, Nout), jnp.float32))
        out_specs = (pl.BlockSpec((1, H, Nout), lambda b: (b, 0, 0)),
                     pl.BlockSpec((1, 1, Nout), lambda b: (b, 0, 0)),
                     pl.BlockSpec((1, 1, Nout), lambda b: (b, 0, 0)))
    return pl.pallas_call(
        kernel,
        out_shape=out_shape,
        grid=(B,),
        in_specs=in_specs,
        out_specs=out_specs,
        scratch_shapes=[pltpu.VMEM((H, 3 * W * IC), jnp.float32)],
        compiler_params=pltpu.CompilerParams(
            dimension_semantics=("parallel",)),     # batch splits across TCs
    )(x, scale_row, shift_row, t)


# --------------------------------------------------------------------------
# Tiny host-side BN scalar math (between kernels)
# --------------------------------------------------------------------------
def _bn_scale_shift(colsum, colssq, count, gamma, beta):
    C = gamma.shape[0]
    s = colsum.reshape(-1, C).sum(axis=0)
    q = colssq.reshape(-1, C).sum(axis=0)
    mean = s / count
    var = jnp.maximum(q / count - mean * mean, 0.0)        # clamp fp roundoff
    inv = gamma * jax.lax.rsqrt(var + _BN_EPS)
    return inv, beta - mean * inv


# --------------------------------------------------------------------------
# Decoder forward (NCHW in / NCHW out, training-mode BatchNorm)
# --------------------------------------------------------------------------
def decoder_forward(z_nchw, prep):
    B, nz = z_nchw.shape[0], z_nchw.shape[1]

    # layer 0: ConvTranspose(nz, C0, 4, 1, 0) on a 1x1 input == plain matmul
    w0m = prep["w0m"]
    C0 = w0m.shape[1] // 16
    Mp = ((B + 7) // 8) * 8
    a = jnp.pad(z_nchw.reshape(B, nz).astype(jnp.float32), ((0, Mp - B), (0, 0)))
    y0, s0, q0 = matmul_stats(a, w0m)
    sc, sh = _bn_scale_shift(s0, q0, B * 16, prep["gamma0"], prep["beta0"])
    x = y0[:B].reshape(B, 4, 4 * C0)                        # (B, H, W*IC)
    H = W = 4
    IC = C0

    out = None
    for idx in range(1, 6):
        t = prep[f"t{idx}"]
        OC = t.shape[1] // (4 * W)
        last = idx == 5
        scale_row = jnp.tile(sc, W).reshape(1, W * IC)
        shift_row = jnp.tile(sh, W).reshape(1, W * IC)
        res = conv_transpose_fused(x, scale_row, shift_row, t,
                                   W=W, IC=IC, OC=OC,
                                   act="tanh" if last else None)
        if last:
            out = res.reshape(B, OC, 2 * H, 2 * W)          # already NCHW
        else:
            y, s, q = res
            sc, sh = _bn_scale_shift(s, q, B * (2 * H) * (2 * W),
                                     prep[f"gamma{idx}"], prep[f"beta{idx}"])
            x = y.reshape(B, 2 * H, 2 * W * OC)             # free reshape
            H, W, IC = 2 * H, 2 * W, OC
    return out


# --------------------------------------------------------------------------
# Pure-JAX reference (f32)
# --------------------------------------------------------------------------
def ref_forward(z_nchw, params):
    x = z_nchw
    for idx, (stride, pad) in enumerate(_LAYER_CFG):
        w = params[f"w{idx}"]                                    # (IC, OC, 4, 4)
        wconv = jnp.transpose(w[:, :, ::-1, ::-1], (1, 0, 2, 3))  # OIHW
        x = jax.lax.conv_general_dilated(
            x, wconv, window_strides=(1, 1),
            padding=[(_K - 1 - pad, _K - 1 - pad)] * 2,
            lhs_dilation=(stride, stride),
            dimension_numbers=("NCHW", "OIHW", "NCHW"))
        if idx < 5:
            mean = x.mean(axis=(0, 2, 3), keepdims=True)
            var = x.var(axis=(0, 2, 3), keepdims=True)
            g = params[f"gamma{idx}"].reshape(1, -1, 1, 1)
            b = params[f"beta{idx}"].reshape(1, -1, 1, 1)
            x = (x - mean) / jnp.sqrt(var + _BN_EPS) * g + b
            x = jnp.maximum(x, 0.0)
        else:
            x = jnp.tanh(x)
    return x


# --------------------------------------------------------------------------
# Params / main
# --------------------------------------------------------------------------
def init_params(key, nz, nfd, nc):
    chans = [nz, nfd * 16, nfd * 8, nfd * 4, nfd * 2, nfd, nc]
    params = {}
    for i in range(6):
        key, sub = jax.random.split(key)
        params[f"w{i}"] = 0.02 * jax.random.normal(
            sub, (chans[i], chans[i + 1], _K, _K), jnp.float32)
    for i in range(5):  # PyTorch BatchNorm2d default init: weight=1, bias=0
        params[f"gamma{i}"] = jnp.ones((chans[i + 1],), jnp.float32)
        params[f"beta{i}"] = jnp.zeros((chans[i + 1],), jnp.float32)
    return params


if __name__ == "__main__":
    nz, nfd, nc, batch = 16, 4, 3, 2
    key = jax.random.PRNGKey(0)
    key, kz = jax.random.split(key)
    x = jax.random.normal(kz, (batch, nz, 1, 1), jnp.float32)
    params = init_params(key, nz, nfd, nc)

    prep = prepare_params(params)            # host precompute, outside jit
    fwd = jax.jit(decoder_forward)
    out = jax.block_until_ready(fwd(x, prep))
    assert out.shape == (batch, nc, 128, 128), out.shape

    ref = jax.block_until_ready(ref_forward(x, params))
    out_np, ref_np = np.asarray(out), np.asarray(ref)
    assert np.isfinite(out_np).all()
    err = float(np.max(np.abs(out_np - ref_np)))
    assert err < 5e-2, f"max abs err {err}"

    print("KERNEL_OK")
</pallas_src>

<mosaic_0001>
module attributes {stable_mosaic.version = 11 : i64} {
  func.func @_mm_stats_kernel(%arg0: i32, %arg1: memref<8x16xf32, #tpu.memory_space<vmem>>, %arg2: memref<16x1024xf32, #tpu.memory_space<vmem>>, %arg3: memref<8x1024xf32, #tpu.memory_space<vmem>>, %arg4: memref<1x1024xf32, #tpu.memory_space<vmem>>, %arg5: memref<1x1024xf32, #tpu.memory_space<vmem>>) attributes {dimension_semantics = [#tpu.dimension_semantics<arbitrary>], iteration_bounds = array<i64: 1>, scalar_prefetch = 0 : i64, scratch_operands = 0 : i64, tpu.core_type = #tpu.core_type<tc>, window_params = [{pipeline_mode = #tpu.pipeline_mode<synchronous>, transform_indices = @transform_0, window_bounds = array<i64: 8, 16>}, {pipeline_mode = #tpu.pipeline_mode<synchronous>, transform_indices = @transform_1, window_bounds = array<i64: 16, 1024>}, {pipeline_mode = #tpu.pipeline_mode<synchronous>, transform_indices = @transform_2, window_bounds = array<i64: 8, 1024>}, {pipeline_mode = #tpu.pipeline_mode<synchronous>, transform_indices = @transform_3, window_bounds = array<i64: 1, 1024>}, {pipeline_mode = #tpu.pipeline_mode<synchronous>, transform_indices = @transform_4, window_bounds = array<i64: 1, 1024>}]} {
    %c0 = arith.constant 0 : index
    %c0_0 = arith.constant 0 : index
    %0 = vector.load %arg1[%c0, %c0_0] : memref<8x16xf32, #tpu.memory_space<vmem>>, vector<8x16xf32>
    %c0_1 = arith.constant 0 : index
    %c0_2 = arith.constant 0 : index
    %1 = vector.load %arg2[%c0_1, %c0_2] : memref<16x1024xf32, #tpu.memory_space<vmem>>, vector<16x1024xf32>
    %cst = arith.constant dense<0.000000e+00> : vector<8x1024xf32>
    %2 = tpu.matmul %0, %1, %cst {dimension_numbers = #tpu.dot_dimension_numbers<[1], [0], [0], [1], [0, 0, 1, 1], [], []>} : vector<8x16xf32>, vector<16x1024xf32>, vector<8x1024xf32> -> vector<8x1024xf32>
    %c0_3 = arith.constant 0 : index
    %c0_4 = arith.constant 0 : index
    %3 = vector.load %arg3[%c0_3, %c0_4] : memref<8x1024xf32, #tpu.memory_space<vmem>>, vector<8x1024xf32>
    tpu.vector_store %arg3[%c0_3, %c0_4], %2 {strides = array<i32>} : memref<8x1024xf32, #tpu.memory_space<vmem>>, vector<8x1024xf32>,
    %cst_5 = arith.constant dense<0.000000e+00> : vector<1024xf32>
    %4 = vector.multi_reduction <add>, %2, %cst_5 [0] : vector<8x1024xf32> to vector<1024xf32>
    %5 = vector.shape_cast %4 : vector<1024xf32> to vector<1x1024xf32>
    %c0_6 = arith.constant 0 : index
    %c0_7 = arith.constant 0 : index
    %6 = vector.load %arg4[%c0_6, %c0_7] : memref<1x1024xf32, #tpu.memory_space<vmem>>, vector<1x1024xf32>
    tpu.vector_store %arg4[%c0_6, %c0_7], %5 {strides = array<i32>} : memref<1x1024xf32, #tpu.memory_space<vmem>>, vector<1x1024xf32>,
    %7 = arith.mulf %2, %2 : vector<8x1024xf32>
    %cst_8 = arith.constant dense<0.000000e+00> : vector<1024xf32>
    %8 = vector.multi_reduction <add>, %7, %cst_8 [0] : vector<8x1024xf32> to vector<1024xf32>
    %9 = vector.shape_cast %8 : vector<1024xf32> to vector<1x1024xf32>
    %c0_9 = arith.constant 0 : index
    %c0_10 = arith.constant 0 : index
    %10 = vector.load %arg5[%c0_9, %c0_10] : memref<1x1024xf32, #tpu.memory_space<vmem>>, vector<1x1024xf32>
    tpu.vector_store %arg5[%c0_9, %c0_10], %9 {strides = array<i32>} : memref<1x1024xf32, #tpu.memory_space<vmem>>, vector<1x1024xf32>,
    return
  }
  func.func @transform_0(%arg0: i32) -> (i32, i32) {
    %c0_i32 = arith.constant 0 : i32
    %c0_i32_0 = arith.constant 0 : i32
    %c0_i32_1 = arith.constant 0 : i32
    return %c0_i32, %c0_i32_0 : i32, i32
  }
  func.func @transform_1(%arg0: i32) -> (i32, i32) {
    %c0_i32 = arith.constant 0 : i32
    %c0_i32_0 = arith.constant 0 : i32
    %c0_i32_1 = arith.constant 0 : i32
    return %c0_i32, %c0_i32_0 : i32, i32
  }
  func.func @transform_2(%arg0: i32) -> (i32, i32) {
    %c0_i32 = arith.constant 0 : i32
    %c0_i32_0 = arith.constant 0 : i32
    %c0_i32_1 = arith.constant 0 : i32
    return %c0_i32, %c0_i32_0 : i32, i32
  }
  func.func @transform_3(%arg0: i32) -> (i32, i32) {
    %c0_i32 = arith.constant 0 : i32
    %c0_i32_0 = arith.constant 0 : i32
    %c0_i32_1 = arith.constant 0 : i32
    return %c0_i32, %c0_i32_0 : i32, i32
  }
  func.func @transform_4(%arg0: i32) -> (i32, i32) {
    %c0_i32 = arith.constant 0 : i32
    %c0_i32_0 = arith.constant 0 : i32
    %c0_i32_1 = arith.constant 0 : i32
    return %c0_i32, %c0_i32_0 : i32, i32
  }
}

module attributes {stable_mosaic.version = 11 : i64} {
  func.func @_deconv_kernel(%arg0: i32, %arg1: memref<1x4x256xf32, #tpu.memory_space<vmem>>, %arg2: memref<1x256xf32, #tpu.memory_space<vmem>>, %arg3: memref<1x256xf32, #tpu.memory_space<vmem>>, %arg4: memref<768x512xbf16, #tpu.memory_space<vmem>>, %arg5: memref<1x4x512xf32, #tpu.memory_space<vmem>>, %arg6: memref<1x1x512xf32, #tpu.memory_space<vmem>>, %arg7: memref<1x1x512xf32, #tpu.memory_space<vmem>>, %arg8: memref<4x768xf32, #tpu.memory_space<vmem>>) attributes {dimension_semantics = [#tpu.dimension_semantics<parallel>], iteration_bounds = array<i64: 2>, scalar_prefetch = 0 : i64, scratch_operands = 1 : i64, tpu.core_type = #tpu.core_type<tc>, window_params = [{transform_indices = @transform_0, window_bounds = array<i64: 1, 4, 256>}, {pipeline_mode = #tpu.pipeline_mode<synchronous>, transform_indices = @transform_1, window_bounds = array<i64: 1, 256>}, {pipeline_mode = #tpu.pipeline_mode<synchronous>, transform_indices = @transform_2, window_bounds = array<i64: 1, 256>}, {pipeline_mode = #tpu.pipeline_mode<synchronous>, transform_indices = @transform_3, window_bounds = array<i64: 768, 512>}, {transform_indices = @transform_4, window_bounds = array<i64: 1, 4, 512>}, {transform_indices = @transform_5, window_bounds = array<i64: 1, 1, 512>}, {transform_indices = @transform_6, window_bounds = array<i64: 1, 1, 512>}]} {
    %c0 = arith.constant 0 : index
    %c0_0 = arith.constant 0 : index
    %c0_1 = arith.constant 0 : index
    %0 = vector.load %arg1[%c0, %c0_0, %c0_1] : memref<1x4x256xf32, #tpu.memory_space<vmem>>, vector<1x4x256xf32>
    %1 = vector.shape_cast %0 : vector<1x4x256xf32> to vector<4x256xf32>
    %c0_2 = arith.constant 0 : index
    %c0_3 = arith.constant 0 : index
    %2 = vector.load %arg2[%c0_2, %c0_3] : memref<1x256xf32, #tpu.memory_space<vmem>>, vector<1x256xf32>
    %3 = vector.broadcast %2 : vector<1x256xf32> to vector<4x256xf32>
    %4 = arith.mulf %1, %3 : vector<4x256xf32>
    %c0_4 = arith.constant 0 : index
    %c0_5 = arith.constant 0 : index
    %5 = vector.load %arg3[%c0_4, %c0_5] : memref<1x256xf32, #tpu.memory_space<vmem>>, vector<1x256xf32>
    %6 = vector.broadcast %5 : vector<1x256xf32> to vector<4x256xf32>
    %7 = arith.addf %4, %6 : vector<4x256xf32>
    %cst = arith.constant 0.000000e+00 : f32
    %8 = vector.broadcast %cst : f32 to vector<4x256xf32>
    %9 = arith.maximumf %7, %8 : vector<4x256xf32>
    %cst_6 = arith.constant 0.000000e+00 : f32
    %10 = vector.broadcast %cst_6 : f32 to vector<4x768xf32>
    %c0_7 = arith.constant 0 : index
    %c0_8 = arith.constant 0 : index
    %11 = vector.load %arg8[%c0_7, %c0_8] : memref<4x768xf32, #tpu.memory_space<vmem>>, vector<4x768xf32>
    tpu.vector_store %arg8[%c0_7, %c0_8], %10 {strides = array<i32>} : memref<4x768xf32, #tpu.memory_space<vmem>>, vector<4x768xf32>,
    %c0_9 = arith.constant 0 : index
    %c256 = arith.constant 256 : index
    %12 = vector.load %arg8[%c0_9, %c256] : memref<4x768xf32, #tpu.memory_space<vmem>>, vector<4x256xf32>
    tpu.vector_store %arg8[%c0_9, %c256], %9 {strides = array<i32>} : memref<4x768xf32, #tpu.memory_space<vmem>>, vector<4x256xf32>,
    %13 = vector.extract_strided_slice %9 {offsets = [0, 0], sizes = [3, 256], strides = [1, 1]} : vector<4x256xf32> to vector<3x256xf32>
    %c1 = arith.constant 1 : index
    %c0_10 = arith.constant 0 : index
    %14 = vector.load %arg8[%c1, %c0_10] : memref<4x768xf32, #tpu.memory_space<vmem>>, vector<3x256xf32>
    tpu.vector_store %arg8[%c1, %c0_10], %13 {strides = array<i32>} : memref<4x768xf32, #tpu.memory_space<vmem>>, vector<3x256xf32>,
    %15 = vector.extract_strided_slice %9 {offsets = [1, 0], sizes = [3, 256], strides = [1, 1]} : vector<4x256xf32> to vector<3x256xf32>
    %c0_11 = arith.constant 0 : index
    %c512 = arith.constant 512 : index
    %16 = vector.load %arg8[%c0_11, %c512] : memref<4x768xf32, #tpu.memory_space<vmem>>, vector<3x256xf32>
    tpu.vector_store %arg8[%c0_11, %c512], %15 {strides = array<i32>} : memref<4x768xf32, #tpu.memory_space<vmem>>, vector<3x256xf32>,
    %c0_12 = arith.constant 0 : index
    %c0_13 = arith.constant 0 : index
    %17 = vector.load %arg8[%c0_12, %c0_13] : memref<4x768xf32, #tpu.memory_space<vmem>>, vector<4x768xf32>
    %18 = arith.truncf %17 : vector<4x768xf32> to vector<4x768xbf16>
    %c0_14 = arith.constant 0 : index
    %c0_15 = arith.constant 0 : index
    %19 = vector.load %arg4[%c0_14, %c0_15] : memref<768x512xbf16, #tpu.memory_space<vmem>>, vector<768x512xbf16>
    %cst_16 = arith.constant dense<0.000000e+00> : vector<4x512xf32>
    %20 = tpu.matmul %18, %19, %cst_16 {dimension_numbers = #tpu.dot_dimension_numbers<[1], [0], [0], [1], [0, 0, 1, 1], [], []>} : vector<4x768xbf16>, vector<768x512xbf16>, vector<4x512xf32> -> vector<4x512xf32>
    %c0_17 = arith.constant 0 : index
    %c0_18 = arith.constant 0 : index
    %c0_19 = arith.constant 0 : index
    %21 = vector.load %arg5[%c0_17, %c0_18, %c0_19] : memref<1x4x512xf32, #tpu.memory_space<vmem>>, vector<1x4x512xf32>
    %22 = vector.shape_cast %21 : vector<1x4x512xf32> to vector<4x512xf32>
    %23 = vector.shape_cast %20 : vector<4x512xf32> to vector<1x4x512xf32>
    tpu.vector_store %arg5[%c0_17, %c0_18, %c0_19], %23 {strides = array<i32>} : memref<1x4x512xf32, #tpu.memory_space<vmem>>, vector<1x4x512xf32>,
    %cst_20 = arith.constant dense<0.000000e+00> : vector<512xf32>
    %24 = vector.multi_reduction <add>, %20, %cst_20 [0] : vector<4x512xf32> to vector<512xf32>
    %25 = vector.shape_cast %24 : vector<512xf32> to vector<1x512xf32>
    %c0_21 = arith.constant 0 : index
    %c0_22 = arith.constant 0 : index
    %c0_23 = arith.constant 0 : index
    %26 = vector.load %arg6[%c0_21, %c0_22, %c0_23] : memref<1x1x512xf32, #tpu.memory_space<vmem>>, vector<1x1x512xf32>
    %27 = vector.shape_cast %26 : vector<1x1x512xf32> to vector<1x512xf32>
    %28 = vector.shape_cast %25 : vector<1x512xf32> to vector<1x1x512xf32>
    tpu.vector_store %arg6[%c0_21, %c0_22, %c0_23], %28 {strides = array<i32>} : memref<1x1x512xf32, #tpu.memory_space<vmem>>, vector<1x1x512xf32>,
    %29 = arith.mulf %20, %20 : vector<4x512xf32>
    %cst_24 = arith.constant dense<0.000000e+00> : vector<512xf32>
    %30 = vector.multi_reduction <add>, %29, %cst_24 [0] : vector<4x512xf32> to vector<512xf32>
    %31 = vector.shape_cast %30 : vector<512xf32> to vector<1x512xf32>
    %c0_25 = arith.constant 0 : index
    %c0_26 = arith.constant 0 : index
    %c0_27 = arith.constant 0 : index
    %32 = vector.load %arg7[%c0_25, %c0_26, %c0_27] : memref<1x1x512xf32, #tpu.memory_space<vmem>>, vector<1x1x512xf32>
    %33 = vector.shape_cast %32 : vector<1x1x512xf32> to vector<1x512xf32>
    %34 = vector.shape_cast %31 : vector<1x512xf32> to vector<1x1x512xf32>
    tpu.vector_store %arg7[%c0_25, %c0_26, %c0_27], %34 {strides = array<i32>} : memref<1x1x512xf32, #tpu.memory_space<vmem>>, vector<1x1x512xf32>,
    return
  }
  func.func @transform_0(%arg0: i32) -> (i32, i32, i32) {
    %c0_i32 = arith.constant 0 : i32
    %c0_i32_0 = arith.constant 0 : i32
    %c0_i32_1 = arith.constant 0 : i32
    return %arg0, %c0_i32, %c0_i32_0 : i32, i32, i32
  }
  func.func @transform_1(%arg0: i32) -> (i32, i32) {
    %c0_i32 = arith.constant 0 : i32
    %c0_i32_0 = arith.constant 0 : i32
    %c0_i32_1 = arith.constant 0 : i32
    return %c0_i32, %c0_i32_0 : i32, i32
  }
  func.func @transform_2(%arg0: i32) -> (i32, i32) {
    %c0_i32 = arith.constant 0 : i32
    %c0_i32_0 = arith.constant 0 : i32
    %c0_i32_1 = arith.constant 0 : i32
    return %c0_i32, %c0_i32_0 : i32, i32
  }
  func.func @transform_3(%arg0: i32) -> (i32, i32) {
    %c0_i32 = arith.constant 0 : i32
    %c0_i32_0 = arith.constant 0 : i32
    %c0_i32_1 = arith.constant 0 : i32
    return %c0_i32, %c0_i32_0 : i32, i32
  }
  func.func @transform_4(%arg0: i32) -> (i32, i32, i32) {
    %c0_i32 = arith.constant 0 : i32
    %c0_i32_0 = arith.constant 0 : i32
    %c0_i32_1 = arith.constant 0 : i32
    return %arg0, %c0_i32, %c0_i32_0 : i32, i32, i32
  }
  func.func @transform_5(%arg0: i32) -> (i32, i32, i32) {
    %c0_i32 = arith.constant 0 : i32
    %c0_i32_0 = arith.constant 0 : i32
    %c0_i32_1 = arith.constant 0 : i32
    return %arg0, %c0_i32, %c0_i32_0 : i32, i32, i32
  }
  func.func @transform_6(%arg0: i32) -> (i32, i32, i32) {
    %c0_i32 = arith.constant 0 : i32
    %c0_i32_0 = arith.constant 0 : i32
    %c0_i32_1 = arith.constant 0 : i32
    return %arg0, %c0_i32, %c0_i32_0 : i32, i32, i32
  }
}

module attributes {stable_mosaic.version = 11 : i64} {
  func.func @_deconv_kernel(%arg0: i32, %arg1: memref<1x8x256xf32, #tpu.memory_space<vmem>>, %arg2: memref<1x256xf32, #tpu.memory_space<vmem>>, %arg3: memref<1x256xf32, #tpu.memory_space<vmem>>, %arg4: memref<768x512xbf16, #tpu.memory_space<vmem>>, %arg5: memref<1x8x512xf32, #tpu.memory_space<vmem>>, %arg6: memref<1x1x512xf32, #tpu.memory_space<vmem>>, %arg7: memref<1x1x512xf32, #tpu.memory_space<vmem>>, %arg8: memref<8x768xf32, #tpu.memory_space<vmem>>) attributes {dimension_semantics = [#tpu.dimension_semantics<parallel>], iteration_bounds = array<i64: 2>, scalar_prefetch = 0 : i64, scratch_operands = 1 : i64, tpu.core_type = #tpu.core_type<tc>, window_params = [{transform_indices = @transform_0, window_bounds = array<i64: 1, 8, 256>}, {pipeline_mode = #tpu.pipeline_mode<synchronous>, transform_indices = @transform_1, window_bounds = array<i64: 1, 256>}, {pipeline_mode = #tpu.pipeline_mode<synchronous>, transform_indices = @transform_2, window_bounds = array<i64: 1, 256>}, {pipeline_mode = #tpu.pipeline_mode<synchronous>, transform_indices = @transform_3, window_bounds = array<i64: 768, 512>}, {transform_indices = @transform_4, window_bounds = array<i64: 1, 8, 512>}, {transform_indices = @transform_5, window_bounds = array<i64: 1, 1, 512>}, {transform_indices = @transform_6, window_bounds = array<i64: 1, 1, 512>}]} {
    %c0 = arith.constant 0 : index
    %c0_0 = arith.constant 0 : index
    %c0_1 = arith.constant 0 : index
    %0 = vector.load %arg1[%c0, %c0_0, %c0_1] : memref<1x8x256xf32, #tpu.memory_space<vmem>>, vector<1x8x256xf32>
    %1 = vector.shape_cast %0 : vector<1x8x256xf32> to vector<8x256xf32>
    %c0_2 = arith.constant 0 : index
    %c0_3 = arith.constant 0 : index
    %2 = vector.load %arg2[%c0_2, %c0_3] : memref<1x256xf32, #tpu.memory_space<vmem>>, vector<1x256xf32>
    %3 = vector.broadcast %2 : vector<1x256xf32> to vector<8x256xf32>
    %4 = arith.mulf %1, %3 : vector<8x256xf32>
    %c0_4 = arith.constant 0 : index
    %c0_5 = arith.constant 0 : index
    %5 = vector.load %arg3[%c0_4, %c0_5] : memref<1x256xf32, #tpu.memory_space<vmem>>, vector<1x256xf32>
    %6 = vector.broadcast %5 : vector<1x256xf32> to vector<8x256xf32>
    %7 = arith.addf %4, %6 : vector<8x256xf32>
    %cst = arith.constant 0.000000e+00 : f32
    %8 = vector.broadcast %cst : f32 to vector<8x256xf32>
    %9 = arith.maximumf %7, %8 : vector<8x256xf32>
    %cst_6 = arith.constant 0.000000e+00 : f32
    %10 = vector.broadcast %cst_6 : f32 to vector<8x768xf32>
    %c0_7 = arith.constant 0 : index
    %c0_8 = arith.constant 0 : index
    %11 = vector.load %arg8[%c0_7, %c0_8] : memref<8x768xf32, #tpu.memory_space<vmem>>, vector<8x768xf32>
    tpu.vector_store %arg8[%c0_7, %c0_8], %10 {strides = array<i32>} : memref<8x768xf32, #tpu.memory_space<vmem>>, vector<8x768xf32>,
    %c0_9 = arith.constant 0 : index
    %c256 = arith.constant 256 : index
    %12 = vector.load %arg8[%c0_9, %c256] : memref<8x768xf32, #tpu.memory_space<vmem>>, vector<8x256xf32>
    tpu.vector_store %arg8[%c0_9, %c256], %9 {strides = array<i32>} : memref<8x768xf32, #tpu.memory_space<vmem>>, vector<8x256xf32>,
    %13 = vector.extract_strided_slice %9 {offsets = [0, 0], sizes = [7, 256], strides = [1, 1]} : vector<8x256xf32> to vector<7x256xf32>
    %c1 = arith.constant 1 : index
    %c0_10 = arith.constant 0 : index
    %14 = vector.load %arg8[%c1, %c0_10] : memref<8x768xf32, #tpu.memory_space<vmem>>, vector<7x256xf32>
    tpu.vector_store %arg8[%c1, %c0_10], %13 {strides = array<i32>} : memref<8x768xf32, #tpu.memory_space<vmem>>, vector<7x256xf32>,
    %15 = vector.extract_strided_slice %9 {offsets = [1, 0], sizes = [7, 256], strides = [1, 1]} : vector<8x256xf32> to vector<7x256xf32>
    %c0_11 = arith.constant 0 : index
    %c512 = arith.constant 512 : index
    %16 = vector.load %arg8[%c0_11, %c512] : memref<8x768xf32, #tpu.memory_space<vmem>>, vector<7x256xf32>
    tpu.vector_store %arg8[%c0_11, %c512], %15 {strides = array<i32>} : memref<8x768xf32, #tpu.memory_space<vmem>>, vector<7x256xf32>,
    %c0_12 = arith.constant 0 : index
    %c0_13 = arith.constant 0 : index
    %17 = vector.load %arg8[%c0_12, %c0_13] : memref<8x768xf32, #tpu.memory_space<vmem>>, vector<8x768xf32>
    %18 = arith.truncf %17 : vector<8x768xf32> to vector<8x768xbf16>
    %c0_14 = arith.constant 0 : index
    %c0_15 = arith.constant 0 : index
    %19 = vector.load %arg4[%c0_14, %c0_15] : memref<768x512xbf16, #tpu.memory_space<vmem>>, vector<768x512xbf16>
    %cst_16 = arith.constant dense<0.000000e+00> : vector<8x512xf32>
    %20 = tpu.matmul %18, %19, %cst_16 {dimension_numbers = #tpu.dot_dimension_numbers<[1], [0], [0], [1], [0, 0, 1, 1], [], []>} : vector<8x768xbf16>, vector<768x512xbf16>, vector<8x512xf32> -> vector<8x512xf32>
    %c0_17 = arith.constant 0 : index
    %c0_18 = arith.constant 0 : index
    %c0_19 = arith.constant 0 : index
    %21 = vector.load %arg5[%c0_17, %c0_18, %c0_19] : memref<1x8x512xf32, #tpu.memory_space<vmem>>, vector<1x8x512xf32>
    %22 = vector.shape_cast %21 : vector<1x8x512xf32> to vector<8x512xf32>
    %23 = vector.shape_cast %20 : vector<8x512xf32> to vector<1x8x512xf32>
    tpu.vector_store %arg5[%c0_17, %c0_18, %c0_19], %23 {strides = array<i32>} : memref<1x8x512xf32, #tpu.memory_space<vmem>>, vector<1x8x512xf32>,
    %cst_20 = arith.constant dense<0.000000e+00> : vector<512xf32>
    %24 = vector.multi_reduction <add>, %20, %cst_20 [0] : vector<8x512xf32> to vector<512xf32>
    %25 = vector.shape_cast %24 : vector<512xf32> to vector<1x512xf32>
    %c0_21 = arith.constant 0 : index
    %c0_22 = arith.constant 0 : index
    %c0_23 = arith.constant 0 : index
    %26 = vector.load %arg6[%c0_21, %c0_22, %c0_23] : memref<1x1x512xf32, #tpu.memory_space<vmem>>, vector<1x1x512xf32>
    %27 = vector.shape_cast %26 : vector<1x1x512xf32> to vector<1x512xf32>
    %28 = vector.shape_cast %25 : vector<1x512xf32> to vector<1x1x512xf32>
    tpu.vector_store %arg6[%c0_21, %c0_22, %c0_23], %28 {strides = array<i32>} : memref<1x1x512xf32, #tpu.memory_space<vmem>>, vector<1x1x512xf32>,
    %29 = arith.mulf %20, %20 : vector<8x512xf32>
    %cst_24 = arith.constant dense<0.000000e+00> : vector<512xf32>
    %30 = vector.multi_reduction <add>, %29, %cst_24 [0] : vector<8x512xf32> to vector<512xf32>
    %31 = vector.shape_cast %30 : vector<512xf32> to vector<1x512xf32>
    %c0_25 = arith.constant 0 : index
    %c0_26 = arith.constant 0 : index
    %c0_27 = arith.constant 0 : index
    %32 = vector.load %arg7[%c0_25, %c0_26, %c0_27] : memref<1x1x512xf32, #tpu.memory_space<vmem>>, vector<1x1x512xf32>
    %33 = vector.shape_cast %32 : vector<1x1x512xf32> to vector<1x512xf32>
    %34 = vector.shape_cast %31 : vector<1x512xf32> to vector<1x1x512xf32>
    tpu.vector_store %arg7[%c0_25, %c0_26, %c0_27], %34 {strides = array<i32>} : memref<1x1x512xf32, #tpu.memory_space<vmem>>, vector<1x1x512xf32>,
    return
  }
  func.func @transform_0(%arg0: i32) -> (i32, i32, i32) {
    %c0_i32 = arith.constant 0 : i32
    %c0_i32_0 = arith.constant 0 : i32
    %c0_i32_1 = arith.constant 0 : i32
    return %arg0, %c0_i32, %c0_i32_0 : i32, i32, i32
  }
  func.func @transform_1(%arg0: i32) -> (i32, i32) {
    %c0_i32 = arith.constant 0 : i32
    %c0_i32_0 = arith.constant 0 : i32
    %c0_i32_1 = arith.constant 0 : i32
    return %c0_i32, %c0_i32_0 : i32, i32
  }
  func.func @transform_2(%arg0: i32) -> (i32, i32) {
    %c0_i32 = arith.constant 0 : i32
    %c0_i32_0 = arith.constant 0 : i32
    %c0_i32_1 = arith.constant 0 : i32
    return %c0_i32, %c0_i32_0 : i32, i32
  }
  func.func @transform_3(%arg0: i32) -> (i32, i32) {
    %c0_i32 = arith.constant 0 : i32
    %c0_i32_0 = arith.constant 0 : i32
    %c0_i32_1 = arith.constant 0 : i32
    return %c0_i32, %c0_i32_0 : i32, i32
  }
  func.func @transform_4(%arg0: i32) -> (i32, i32, i32) {
    %c0_i32 = arith.constant 0 : i32
    %c0_i32_0 = arith.constant 0 : i32
    %c0_i32_1 = arith.constant 0 : i32
    return %arg0, %c0_i32, %c0_i32_0 : i32, i32, i32
  }
  func.func @transform_5(%arg0: i32) -> (i32, i32, i32) {
    %c0_i32 = arith.constant 0 : i32
    %c0_i32_0 = arith.constant 0 : i32
    %c0_i32_1 = arith.constant 0 : i32
    return %arg0, %c0_i32, %c0_i32_0 : i32, i32, i32
  }
  func.func @transform_6(%arg0: i32) -> (i32, i32, i32) {
    %c0_i32 = arith.constant 0 : i32
    %c0_i32_0 = arith.constant 0 : i32
    %c0_i32_1 = arith.constant 0 : i32
    return %arg0, %c0_i32, %c0_i32_0 : i32, i32, i32
  }
}

module attributes {stable_mosaic.version = 11 : i64} {
  func.func @_deconv_kernel(%arg0: i32, %arg1: memref<1x16x256xf32, #tpu.memory_space<vmem>>, %arg2: memref<1x256xf32, #tpu.memory_space<vmem>>, %arg3: memref<1x256xf32, #tpu.memory_space<vmem>>, %arg4: memref<768x512xbf16, #tpu.memory_space<vmem>>, %arg5: memref<1x16x512xf32, #tpu.memory_space<vmem>>, %arg6: memref<1x1x512xf32, #tpu.memory_space<vmem>>, %arg7: memref<1x1x512xf32, #tpu.memory_space<vmem>>, %arg8: memref<16x768xf32, #tpu.memory_space<vmem>>) attributes {dimension_semantics = [#tpu.dimension_semantics<parallel>], iteration_bounds = array<i64: 2>, scalar_prefetch = 0 : i64, scratch_operands = 1 : i64, tpu.core_type = #tpu.core_type<tc>, window_params = [{transform_indices = @transform_0, window_bounds = array<i64: 1, 16, 256>}, {pipeline_mode = #tpu.pipeline_mode<synchronous>, transform_indices = @transform_1, window_bounds = array<i64: 1, 256>}, {pipeline_mode = #tpu.pipeline_mode<synchronous>, transform_indices = @transform_2, window_bounds = array<i64: 1, 256>}, {pipeline_mode = #tpu.pipeline_mode<synchronous>, transform_indices = @transform_3, window_bounds = array<i64: 768, 512>}, {transform_indices = @transform_4, window_bounds = array<i64: 1, 16, 512>}, {transform_indices = @transform_5, window_bounds = array<i64: 1, 1, 512>}, {transform_indices = @transform_6, window_bounds = array<i64: 1, 1, 512>}]} {
    %c0 = arith.constant 0 : index
    %c0_0 = arith.constant 0 : index
    %c0_1 = arith.constant 0 : index
    %0 = vector.load %arg1[%c0, %c0_0, %c0_1] : memref<1x16x256xf32, #tpu.memory_space<vmem>>, vector<1x16x256xf32>
    %1 = vector.shape_cast %0 : vector<1x16x256xf32> to vector<16x256xf32>
    %c0_2 = arith.constant 0 : index
    %c0_3 = arith.constant 0 : index
    %2 = vector.load %arg2[%c0_2, %c0_3] : memref<1x256xf32, #tpu.memory_space<vmem>>, vector<1x256xf32>
    %3 = vector.broadcast %2 : vector<1x256xf32> to vector<16x256xf32>
    %4 = arith.mulf %1, %3 : vector<16x256xf32>
    %c0_4 = arith.constant 0 : index
    %c0_5 = arith.constant 0 : index
    %5 = vector.load %arg3[%c0_4, %c0_5] : memref<1x256xf32, #tpu.memory_space<vmem>>, vector<1x256xf32>
    %6 = vector.broadcast %5 : vector<1x256xf32> to vector<16x256xf32>
    %7 = arith.addf %4, %6 : vector<16x256xf32>
    %cst = arith.constant 0.000000e+00 : f32
    %8 = vector.broadcast %cst : f32 to vector<16x256xf32>
    %9 = arith.maximumf %7, %8 : vector<16x256xf32>
    %cst_6 = arith.constant 0.000000e+00 : f32
    %10 = vector.broadcast %cst_6 : f32 to vector<16x768xf32>
    %c0_7 = arith.constant 0 : index
    %c0_8 = arith.constant 0 : index
    %11 = vector.load %arg8[%c0_7, %c0_8] : memref<16x768xf32, #tpu.memory_space<vmem>>, vector<16x768xf32>
    tpu.vector_store %arg8[%c0_7, %c0_8], %10 {strides = array<i32>} : memref<16x768xf32, #tpu.memory_space<vmem>>, vector<16x768xf32>,
    %c0_9 = arith.constant 0 : index
    %c256 = arith.constant 256 : index
    %12 = vector.load %arg8[%c0_9, %c256] : memref<16x768xf32, #tpu.memory_space<vmem>>, vector<16x256xf32>
    tpu.vector_store %arg8[%c0_9, %c256], %9 {strides = array<i32>} : memref<16x768xf32, #tpu.memory_space<vmem>>, vector<16x256xf32>,
    %13 = vector.extract_strided_slice %9 {offsets = [0, 0], sizes = [15, 256], strides = [1, 1]} : vector<16x256xf32> to vector<15x256xf32>
    %c1 = arith.constant 1 : index
    %c0_10 = arith.constant 0 : index
    %14 = vector.load %arg8[%c1, %c0_10] : memref<16x768xf32, #tpu.memory_space<vmem>>, vector<15x256xf32>
    tpu.vector_store %arg8[%c1, %c0_10], %13 {strides = array<i32>} : memref<16x768xf32, #tpu.memory_space<vmem>>, vector<15x256xf32>,
    %15 = vector.extract_strided_slice %9 {offsets = [1, 0], sizes = [15, 256], strides = [1, 1]} : vector<16x256xf32> to vector<15x256xf32>
    %c0_11 = arith.constant 0 : index
    %c512 = arith.constant 512 : index
    %16 = vector.load %arg8[%c0_11, %c512] : memref<16x768xf32, #tpu.memory_space<vmem>>, vector<15x256xf32>
    tpu.vector_store %arg8[%c0_11, %c512], %15 {strides = array<i32>} : memref<16x768xf32, #tpu.memory_space<vmem>>, vector<15x256xf32>,
    %c0_12 = arith.constant 0 : index
    %c0_13 = arith.constant 0 : index
    %17 = vector.load %arg8[%c0_12, %c0_13] : memref<16x768xf32, #tpu.memory_space<vmem>>, vector<16x768xf32>
    %18 = arith.truncf %17 : vector<16x768xf32> to vector<16x768xbf16>
    %c0_14 = arith.constant 0 : index
    %c0_15 = arith.constant 0 : index
    %19 = vector.load %arg4[%c0_14, %c0_15] : memref<768x512xbf16, #tpu.memory_space<vmem>>, vector<768x512xbf16>
    %cst_16 = arith.constant dense<0.000000e+00> : vector<16x512xf32>
    %20 = tpu.matmul %18, %19, %cst_16 {dimension_numbers = #tpu.dot_dimension_numbers<[1], [0], [0], [1], [0, 0, 1, 1], [], []>} : vector<16x768xbf16>, vector<768x512xbf16>, vector<16x512xf32> -> vector<16x512xf32>
    %c0_17 = arith.constant 0 : index
    %c0_18 = arith.constant 0 : index
    %c0_19 = arith.constant 0 : index
    %21 = vector.load %arg5[%c0_17, %c0_18, %c0_19] : memref<1x16x512xf32, #tpu.memory_space<vmem>>, vector<1x16x512xf32>
    %22 = vector.shape_cast %21 : vector<1x16x512xf32> to vector<16x512xf32>
    %23 = vector.shape_cast %20 : vector<16x512xf32> to vector<1x16x512xf32>
    tpu.vector_store %arg5[%c0_17, %c0_18, %c0_19], %23 {strides = array<i32>} : memref<1x16x512xf32, #tpu.memory_space<vmem>>, vector<1x16x512xf32>,
    %cst_20 = arith.constant dense<0.000000e+00> : vector<512xf32>
    %24 = vector.multi_reduction <add>, %20, %cst_20 [0] : vector<16x512xf32> to vector<512xf32>
    %25 = vector.shape_cast %24 : vector<512xf32> to vector<1x512xf32>
    %c0_21 = arith.constant 0 : index
    %c0_22 = arith.constant 0 : index
    %c0_23 = arith.constant 0 : index
    %26 = vector.load %arg6[%c0_21, %c0_22, %c0_23] : memref<1x1x512xf32, #tpu.memory_space<vmem>>, vector<1x1x512xf32>
    %27 = vector.shape_cast %26 : vector<1x1x512xf32> to vector<1x512xf32>
    %28 = vector.shape_cast %25 : vector<1x512xf32> to vector<1x1x512xf32>
    tpu.vector_store %arg6[%c0_21, %c0_22, %c0_23], %28 {strides = array<i32>} : memref<1x1x512xf32, #tpu.memory_space<vmem>>, vector<1x1x512xf32>,
    %29 = arith.mulf %20, %20 : vector<16x512xf32>
    %cst_24 = arith.constant dense<0.000000e+00> : vector<512xf32>
    %30 = vector.multi_reduction <add>, %29, %cst_24 [0] : vector<16x512xf32> to vector<512xf32>
    %31 = vector.shape_cast %30 : vector<512xf32> to vector<1x512xf32>
    %c0_25 = arith.constant 0 : index
    %c0_26 = arith.constant 0 : index
    %c0_27 = arith.constant 0 : index
    %32 = vector.load %arg7[%c0_25, %c0_26, %c0_27] : memref<1x1x512xf32, #tpu.memory_space<vmem>>, vector<1x1x512xf32>
    %33 = vector.shape_cast %32 : vector<1x1x512xf32> to vector<1x512xf32>
    %34 = vector.shape_cast %31 : vector<1x512xf32> to vector<1x1x512xf32>
    tpu.vector_store %arg7[%c0_25, %c0_26, %c0_27], %34 {strides = array<i32>} : memref<1x1x512xf32, #tpu.memory_space<vmem>>, vector<1x1x512xf32>,
    return
  }
  func.func @transform_0(%arg0: i32) -> (i32, i32, i32) {
    %c0_i32 = arith.constant 0 : i32
    %c0_i32_0 = arith.constant 0 : i32
    %c0_i32_1 = arith.constant 0 : i32
    return %arg0, %c0_i32, %c0_i32_0 : i32, i32, i32
  }
  func.func @transform_1(%arg0: i32) -> (i32, i32) {
    %c0_i32 = arith.constant 0 : i32
    %c0_i32_0 = arith.constant 0 : i32
    %c0_i32_1 = arith.constant 0 : i32
    return %c0_i32, %c0_i32_0 : i32, i32
  }
  func.func @transform_2(%arg0: i32) -> (i32, i32) {
    %c0_i32 = arith.constant 0 : i32
    %c0_i32_0 = arith.constant 0 : i32
    %c0_i32_1 = arith.constant 0 : i32
    return %c0_i32, %c0_i32_0 : i32, i32
  }
  func.func @transform_3(%arg0: i32) -> (i32, i32) {
    %c0_i32 = arith.constant 0 : i32
    %c0_i32_0 = arith.constant 0 : i32
    %c0_i32_1 = arith.constant 0 : i32
    return %c0_i32, %c0_i32_0 : i32, i32
  }
  func.func @transform_4(%arg0: i32) -> (i32, i32, i32) {
    %c0_i32 = arith.constant 0 : i32
    %c0_i32_0 = arith.constant 0 : i32
    %c0_i32_1 = arith.constant 0 : i32
    return %arg0, %c0_i32, %c0_i32_0 : i32, i32, i32
  }
  func.func @transform_5(%arg0: i32) -> (i32, i32, i32) {
    %c0_i32 = arith.constant 0 : i32
    %c0_i32_0 = arith.constant 0 : i32
    %c0_i32_1 = arith.constant 0 : i32
    return %arg0, %c0_i32, %c0_i32_0 : i32, i32, i32
  }
  func.func @transform_6(%arg0: i32) -> (i32, i32, i32) {
    %c0_i32 = arith.constant 0 : i32
    %c0_i32_0 = arith.constant 0 : i32
    %c0_i32_1 = arith.constant 0 : i32
    return %arg0, %c0_i32, %c0_i32_0 : i32, i32, i32
  }
}

module attributes {stable_mosaic.version = 11 : i64} {
  func.func @_deconv_kernel(%arg0: i32, %arg1: memref<1x32x256xf32, #tpu.memory_space<vmem>>, %arg2: memref<1x256xf32, #tpu.memory_space<vmem>>, %arg3: memref<1x256xf32, #tpu.memory_space<vmem>>, %arg4: memref<768x512xbf16, #tpu.memory_space<vmem>>, %arg5: memref<1x32x512xf32, #tpu.memory_space<vmem>>, %arg6: memref<1x1x512xf32, #tpu.memory_space<vmem>>, %arg7: memref<1x1x512xf32, #tpu.memory_space<vmem>>, %arg8: memref<32x768xf32, #tpu.memory_space<vmem>>) attributes {dimension_semantics = [#tpu.dimension_semantics<parallel>], iteration_bounds = array<i64: 2>, scalar_prefetch = 0 : i64, scratch_operands = 1 : i64, tpu.core_type = #tpu.core_type<tc>, window_params = [{transform_indices = @transform_0, window_bounds = array<i64: 1, 32, 256>}, {pipeline_mode = #tpu.pipeline_mode<synchronous>, transform_indices = @transform_1, window_bounds = array<i64: 1, 256>}, {pipeline_mode = #tpu.pipeline_mode<synchronous>, transform_indices = @transform_2, window_bounds = array<i64: 1, 256>}, {pipeline_mode = #tpu.pipeline_mode<synchronous>, transform_indices = @transform_3, window_bounds = array<i64: 768, 512>}, {transform_indices = @transform_4, window_bounds = array<i64: 1, 32, 512>}, {transform_indices = @transform_5, window_bounds = array<i64: 1, 1, 512>}, {transform_indices = @transform_6, window_bounds = array<i64: 1, 1, 512>}]} {
    %c0 = arith.constant 0 : index
    %c0_0 = arith.constant 0 : index
    %c0_1 = arith.constant 0 : index
    %0 = vector.load %arg1[%c0, %c0_0, %c0_1] : memref<1x32x256xf32, #tpu.memory_space<vmem>>, vector<1x32x256xf32>
    %1 = vector.shape_cast %0 : vector<1x32x256xf32> to vector<32x256xf32>
    %c0_2 = arith.constant 0 : index
    %c0_3 = arith.constant 0 : index
    %2 = vector.load %arg2[%c0_2, %c0_3] : memref<1x256xf32, #tpu.memory_space<vmem>>, vector<1x256xf32>
    %3 = vector.broadcast %2 : vector<1x256xf32> to vector<32x256xf32>
    %4 = arith.mulf %1, %3 : vector<32x256xf32>
    %c0_4 = arith.constant 0 : index
    %c0_5 = arith.constant 0 : index
    %5 = vector.load %arg3[%c0_4, %c0_5] : memref<1x256xf32, #tpu.memory_space<vmem>>, vector<1x256xf32>
    %6 = vector.broadcast %5 : vector<1x256xf32> to vector<32x256xf32>
    %7 = arith.addf %4, %6 : vector<32x256xf32>
    %cst = arith.constant 0.000000e+00 : f32
    %8 = vector.broadcast %cst : f32 to vector<32x256xf32>
    %9 = arith.maximumf %7, %8 : vector<32x256xf32>
    %cst_6 = arith.constant 0.000000e+00 : f32
    %10 = vector.broadcast %cst_6 : f32 to vector<32x768xf32>
    %c0_7 = arith.constant 0 : index
    %c0_8 = arith.constant 0 : index
    %11 = vector.load %arg8[%c0_7, %c0_8] : memref<32x768xf32, #tpu.memory_space<vmem>>, vector<32x768xf32>
    tpu.vector_store %arg8[%c0_7, %c0_8], %10 {strides = array<i32>} : memref<32x768xf32, #tpu.memory_space<vmem>>, vector<32x768xf32>,
    %c0_9 = arith.constant 0 : index
    %c256 = arith.constant 256 : index
    %12 = vector.load %arg8[%c0_9, %c256] : memref<32x768xf32, #tpu.memory_space<vmem>>, vector<32x256xf32>
    tpu.vector_store %arg8[%c0_9, %c256], %9 {strides = array<i32>} : memref<32x768xf32, #tpu.memory_space<vmem>>, vector<32x256xf32>,
    %13 = vector.extract_strided_slice %9 {offsets = [0, 0], sizes = [31, 256], strides = [1, 1]} : vector<32x256xf32> to vector<31x256xf32>
    %c1 = arith.constant 1 : index
    %c0_10 = arith.constant 0 : index
    %14 = vector.load %arg8[%c1, %c0_10] : memref<32x768xf32, #tpu.memory_space<vmem>>, vector<31x256xf32>
    tpu.vector_store %arg8[%c1, %c0_10], %13 {strides = array<i32>} : memref<32x768xf32, #tpu.memory_space<vmem>>, vector<31x256xf32>,
    %15 = vector.extract_strided_slice %9 {offsets = [1, 0], sizes = [31, 256], strides = [1, 1]} : vector<32x256xf32> to vector<31x256xf32>
    %c0_11 = arith.constant 0 : index
    %c512 = arith.constant 512 : index
    %16 = vector.load %arg8[%c0_11, %c512] : memref<32x768xf32, #tpu.memory_space<vmem>>, vector<31x256xf32>
    tpu.vector_store %arg8[%c0_11, %c512], %15 {strides = array<i32>} : memref<32x768xf32, #tpu.memory_space<vmem>>, vector<31x256xf32>,
    %c0_12 = arith.constant 0 : index
    %c0_13 = arith.constant 0 : index
    %17 = vector.load %arg8[%c0_12, %c0_13] : memref<32x768xf32, #tpu.memory_space<vmem>>, vector<32x768xf32>
    %18 = arith.truncf %17 : vector<32x768xf32> to vector<32x768xbf16>
    %c0_14 = arith.constant 0 : index
    %c0_15 = arith.constant 0 : index
    %19 = vector.load %arg4[%c0_14, %c0_15] : memref<768x512xbf16, #tpu.memory_space<vmem>>, vector<768x512xbf16>
    %cst_16 = arith.constant dense<0.000000e+00> : vector<32x512xf32>
    %20 = tpu.matmul %18, %19, %cst_16 {dimension_numbers = #tpu.dot_dimension_numbers<[1], [0], [0], [1], [0, 0, 1, 1], [], []>} : vector<32x768xbf16>, vector<768x512xbf16>, vector<32x512xf32> -> vector<32x512xf32>
    %c0_17 = arith.constant 0 : index
    %c0_18 = arith.constant 0 : index
    %c0_19 = arith.constant 0 : index
    %21 = vector.load %arg5[%c0_17, %c0_18, %c0_19] : memref<1x32x512xf32, #tpu.memory_space<vmem>>, vector<1x32x512xf32>
    %22 = vector.shape_cast %21 : vector<1x32x512xf32> to vector<32x512xf32>
    %23 = vector.shape_cast %20 : vector<32x512xf32> to vector<1x32x512xf32>
    tpu.vector_store %arg5[%c0_17, %c0_18, %c0_19], %23 {strides = array<i32>} : memref<1x32x512xf32, #tpu.memory_space<vmem>>, vector<1x32x512xf32>,
    %cst_20 = arith.constant dense<0.000000e+00> : vector<512xf32>
    %24 = vector.multi_reduction <add>, %20, %cst_20 [0] : vector<32x512xf32> to vector<512xf32>
    %25 = vector.shape_cast %24 : vector<512xf32> to vector<1x512xf32>
    %c0_21 = arith.constant 0 : index
    %c0_22 = arith.constant 0 : index
    %c0_23 = arith.constant 0 : index
    %26 = vector.load %arg6[%c0_21, %c0_22, %c0_23] : memref<1x1x512xf32, #tpu.memory_space<vmem>>, vector<1x1x512xf32>
    %27 = vector.shape_cast %26 : vector<1x1x512xf32> to vector<1x512xf32>
    %28 = vector.shape_cast %25 : vector<1x512xf32> to vector<1x1x512xf32>
    tpu.vector_store %arg6[%c0_21, %c0_22, %c0_23], %28 {strides = array<i32>} : memref<1x1x512xf32, #tpu.memory_space<vmem>>, vector<1x1x512xf32>,
    %29 = arith.mulf %20, %20 : vector<32x512xf32>
    %cst_24 = arith.constant dense<0.000000e+00> : vector<512xf32>
    %30 = vector.multi_reduction <add>, %29, %cst_24 [0] : vector<32x512xf32> to vector<512xf32>
    %31 = vector.shape_cast %30 : vector<512xf32> to vector<1x512xf32>
    %c0_25 = arith.constant 0 : index
    %c0_26 = arith.constant 0 : index
    %c0_27 = arith.constant 0 : index
    %32 = vector.load %arg7[%c0_25, %c0_26, %c0_27] : memref<1x1x512xf32, #tpu.memory_space<vmem>>, vector<1x1x512xf32>
    %33 = vector.shape_cast %32 : vector<1x1x512xf32> to vector<1x512xf32>
    %34 = vector.shape_cast %31 : vector<1x512xf32> to vector<1x1x512xf32>
    tpu.vector_store %arg7[%c0_25, %c0_26, %c0_27], %34 {strides = array<i32>} : memref<1x1x512xf32, #tpu.memory_space<vmem>>, vector<1x1x512xf32>,
    return
  }
  func.func @transform_0(%arg0: i32) -> (i32, i32, i32) {
    %c0_i32 = arith.constant 0 : i32
    %c0_i32_0 = arith.constant 0 : i32
    %c0_i32_1 = arith.constant 0 : i32
    return %arg0, %c0_i32, %c0_i32_0 : i32, i32, i32
  }
  func.func @transform_1(%arg0: i32) -> (i32, i32) {
    %c0_i32 = arith.constant 0 : i32
    %c0_i32_0 = arith.constant 0 : i32
    %c0_i32_1 = arith.constant 0 : i32
    return %c0_i32, %c0_i32_0 : i32, i32
  }
  func.func @transform_2(%arg0: i32) -> (i32, i32) {
    %c0_i32 = arith.constant 0 : i32
    %c0_i32_0 = arith.constant 0 : i32
    %c0_i32_1 = arith.constant 0 : i32
    return %c0_i32, %c0_i32_0 : i32, i32
  }
  func.func @transform_3(%arg0: i32) -> (i32, i32) {
    %c0_i32 = arith.constant 0 : i32
    %c0_i32_0 = arith.constant 0 : i32
    %c0_i32_1 = arith.constant 0 : i32
    return %c0_i32, %c0_i32_0 : i32, i32
  }
  func.func @transform_4(%arg0: i32) -> (i32, i32, i32) {
    %c0_i32 = arith.constant 0 : i32
    %c0_i32_0 = arith.constant 0 : i32
    %c0_i32_1 = arith.constant 0 : i32
    return %arg0, %c0_i32, %c0_i32_0 : i32, i32, i32
  }
  func.func @transform_5(%arg0: i32) -> (i32, i32, i32) {
    %c0_i32 = arith.constant 0 : i32
    %c0_i32_0 = arith.constant 0 : i32
    %c0_i32_1 = arith.constant 0 : i32
    return %arg0, %c0_i32, %c0_i32_0 : i32, i32, i32
  }
  func.func @transform_6(%arg0: i32) -> (i32, i32, i32) {
    %c0_i32 = arith.constant 0 : i32
    %c0_i32_0 = arith.constant 0 : i32
    %c0_i32_1 = arith.constant 0 : i32
    return %arg0, %c0_i32, %c0_i32_0 : i32, i32, i32
  }
}

module attributes {stable_mosaic.version = 11 : i64} {
  func.func @_deconv_kernel(%arg0: i32, %arg1: memref<1x64x256xf32, #tpu.memory_space<vmem>>, %arg2: memref<1x256xf32, #tpu.memory_space<vmem>>, %arg3: memref<1x256xf32, #tpu.memory_space<vmem>>, %arg4: memref<768x768xbf16, #tpu.memory_space<vmem>>, %arg5: memref<1x3x64x256xf32, #tpu.memory_space<vmem>>, %arg6: memref<64x768xf32, #tpu.memory_space<vmem>>) attributes {dimension_semantics = [#tpu.dimension_semantics<parallel>], iteration_bounds = array<i64: 2>, scalar_prefetch = 0 : i64, scratch_operands = 1 : i64, tpu.core_type = #tpu.core_type<tc>, window_params = [{transform_indices = @transform_0, window_bounds = array<i64: 1, 64, 256>}, {pipeline_mode = #tpu.pipeline_mode<synchronous>, transform_indices = @transform_1, window_bounds = array<i64: 1, 256>}, {pipeline_mode = #tpu.pipeline_mode<synchronous>, transform_indices = @transform_2, window_bounds = array<i64: 1, 256>}, {pipeline_mode = #tpu.pipeline_mode<synchronous>, transform_indices = @transform_3, window_bounds = array<i64: 768, 768>}, {transform_indices = @transform_4, window_bounds = array<i64: 1, 3, 64, 256>}]} {
    %c0 = arith.constant 0 : index
    %c0_0 = arith.constant 0 : index
    %c0_1 = arith.constant 0 : index
    %0 = vector.load %arg1[%c0, %c0_0, %c0_1] : memref<1x64x256xf32, #tpu.memory_space<vmem>>, vector<1x64x256xf32>
    %1 = vector.shape_cast %0 : vector<1x64x256xf32> to vector<64x256xf32>
    %c0_2 = arith.constant 0 : index
    %c0_3 = arith.constant 0 : index
    %2 = vector.load %arg2[%c0_2, %c0_3] : memref<1x256xf32, #tpu.memory_space<vmem>>, vector<1x256xf32>
    %3 = vector.broadcast %2 : vector<1x256xf32> to vector<64x256xf32>
    %4 = arith.mulf %1, %3 : vector<64x256xf32>
    %c0_4 = arith.constant 0 : index
    %c0_5 = arith.constant 0 : index
    %5 = vector.load %arg3[%c0_4, %c0_5] : memref<1x256xf32, #tpu.memory_space<vmem>>, vector<1x256xf32>
    %6 = vector.broadcast %5 : vector<1x256xf32> to vector<64x256xf32>
    %7 = arith.addf %4, %6 : vector<64x256xf32>
    %cst = arith.constant 0.000000e+00 : f32
    %8 = vector.broadcast %cst : f32 to vector<64x256xf32>
    %9 = arith.maximumf %7, %8 : vector<64x256xf32>
    %cst_6 = arith.constant 0.000000e+00 : f32
    %10 = vector.broadcast %cst_6 : f32 to vector<64x768xf32>
    %c0_7 = arith.constant 0 : index
    %c0_8 = arith.constant 0 : index
    %11 = vector.load %arg6[%c0_7, %c0_8] : memref<64x768xf32, #tpu.memory_space<vmem>>, vector<64x768xf32>
    tpu.vector_store %arg6[%c0_7, %c0_8], %10 {strides = array<i32>} : memref<64x768xf32, #tpu.memory_space<vmem>>, vector<64x768xf32>,
    %c0_9 = arith.constant 0 : index
    %c256 = arith.constant 256 : index
    %12 = vector.load %arg6[%c0_9, %c256] : memref<64x768xf32, #tpu.memory_space<vmem>>, vector<64x256xf32>
    tpu.vector_store %arg6[%c0_9, %c256], %9 {strides = array<i32>} : memref<64x768xf32, #tpu.memory_space<vmem>>, vector<64x256xf32>,
    %13 = vector.extract_strided_slice %9 {offsets = [0, 0], sizes = [63, 256], strides = [1, 1]} : vector<64x256xf32> to vector<63x256xf32>
    %c1 = arith.constant 1 : index
    %c0_10 = arith.constant 0 : index
    %14 = vector.load %arg6[%c1, %c0_10] : memref<64x768xf32, #tpu.memory_space<vmem>>, vector<63x256xf32>
    tpu.vector_store %arg6[%c1, %c0_10], %13 {strides = array<i32>} : memref<64x768xf32, #tpu.memory_space<vmem>>, vector<63x256xf32>,
    %15 = vector.extract_strided_slice %9 {offsets = [1, 0], sizes = [63, 256], strides = [1, 1]} : vector<64x256xf32> to vector<63x256xf32>
    %c0_11 = arith.constant 0 : index
    %c512 = arith.constant 512 : index
    %16 = vector.load %arg6[%c0_11, %c512] : memref<64x768xf32, #tpu.memory_space<vmem>>, vector<63x256xf32>
    tpu.vector_store %arg6[%c0_11, %c512], %15 {strides = array<i32>} : memref<64x768xf32, #tpu.memory_space<vmem>>, vector<63x256xf32>,
    %c0_12 = arith.constant 0 : index
    %c0_13 = arith.constant 0 : index
    %17 = vector.load %arg6[%c0_12, %c0_13] : memref<64x768xf32, #tpu.memory_space<vmem>>, vector<64x768xf32>
    %18 = arith.truncf %17 : vector<64x768xf32> to vector<64x768xbf16>
    %c0_14 = arith.constant 0 : index
    %c0_15 = arith.constant 0 : index
    %19 = vector.load %arg4[%c0_14, %c0_15] : memref<768x768xbf16, #tpu.memory_space<vmem>>, vector<768x768xbf16>
    %cst_16 = arith.constant dense<0.000000e+00> : vector<64x768xf32>
    %20 = tpu.matmul %18, %19, %cst_16 {dimension_numbers = #tpu.dot_dimension_numbers<[1], [0], [0], [1], [0, 0, 1, 1], [], []>} : vector<64x768xbf16>, vector<768x768xbf16>, vector<64x768xf32> -> vector<64x768xf32>
    %21 = math.tanh %20 : vector<64x768xf32>
    %22 = vector.extract_strided_slice %21 {offsets = [0, 0], sizes = [64, 256], strides = [1, 1]} : vector<64x768xf32> to vector<64x256xf32>
    %c0_17 = arith.constant 0 : index
    %c0_18 = arith.constant 0 : index
    %c0_19 = arith.constant 0 : index
    %c0_20 = arith.constant 0 : index
    %23 = vector.load %arg5[%c0_17, %c0_18, %c0_19, %c0_20] : memref<1x3x64x256xf32, #tpu.memory_space<vmem>>, vector<1x1x64x256xf32>
    %24 = vector.shape_cast %23 : vector<1x1x64x256xf32> to vector<64x256xf32>
    %25 = vector.shape_cast %22 : vector<64x256xf32> to vector<1x1x64x256xf32>
    tpu.vector_store %arg5[%c0_17, %c0_18, %c0_19, %c0_20], %25 {strides = array<i32>} : memref<1x3x64x256xf32, #tpu.memory_space<vmem>>, vector<1x1x64x256xf32>,
    %26 = vector.extract_strided_slice %21 {offsets = [0, 256], sizes = [64, 256], strides = [1, 1]} : vector<64x768xf32> to vector<64x256xf32>
    %c0_21 = arith.constant 0 : index
    %c1_22 = arith.constant 1 : index
    %c0_23 = arith.constant 0 : index
    %c0_24 = arith.constant 0 : index
    %27 = vector.load %arg5[%c0_21, %c1_22, %c0_23, %c0_24] : memref<1x3x64x256xf32, #tpu.memory_space<vmem>>, vector<1x1x64x256xf32>
    %28 = vector.shape_cast %27 : vector<1x1x64x256xf32> to vector<64x256xf32>
    %29 = vector.shape_cast %26 : vector<64x256xf32> to vector<1x1x64x256xf32>
    tpu.vector_store %arg5[%c0_21, %c1_22, %c0_23, %c0_24], %29 {strides = array<i32>} : memref<1x3x64x256xf32, #tpu.memory_space<vmem>>, vector<1x1x64x256xf32>,
    %30 = vector.extract_strided_slice %21 {offsets = [0, 512], sizes = [64, 256], strides = [1, 1]} : vector<64x768xf32> to vector<64x256xf32>
    %c0_25 = arith.constant 0 : index
    %c2 = arith.constant 2 : index
    %c0_26 = arith.constant 0 : index
    %c0_27 = arith.constant 0 : index
    %31 = vector.load %arg5[%c0_25, %c2, %c0_26, %c0_27] : memref<1x3x64x256xf32, #tpu.memory_space<vmem>>, vector<1x1x64x256xf32>
    %32 = vector.shape_cast %31 : vector<1x1x64x256xf32> to vector<64x256xf32>
    %33 = vector.shape_cast %30 : vector<64x256xf32> to vector<1x1x64x256xf32>
    tpu.vector_store %arg5[%c0_25, %c2, %c0_26, %c0_27], %33 {strides = array<i32>} : memref<1x3x64x256xf32, #tpu.memory_space<vmem>>, vector<1x1x64x256xf32>,
    return
  }
  func.func @transform_0(%arg0: i32) -> (i32, i32, i32) {
    %c0_i32 = arith.constant 0 : i32
    %c0_i32_0 = arith.constant 0 : i32
    %c0_i32_1 = arith.constant 0 : i32
    return %arg0, %c0_i32, %c0_i32_0 : i32, i32, i32
  }
  func.func @transform_1(%arg0: i32) -> (i32, i32) {
    %c0_i32 = arith.constant 0 : i32
    %c0_i32_0 = arith.constant 0 : i32
    %c0_i32_1 = arith.constant 0 : i32
    return %c0_i32, %c0_i32_0 : i32, i32
  }
  func.func @transform_2(%arg0: i32) -> (i32, i32) {
    %c0_i32 = arith.constant 0 : i32
    %c0_i32_0 = arith.constant 0 : i32
    %c0_i32_1 = arith.constant 0 : i32
    return %c0_i32, %c0_i32_0 : i32, i32
  }
  func.func @transform_3(%arg0: i32) -> (i32, i32) {
    %c0_i32 = arith.constant 0 : i32
    %c0_i32_0 = arith.constant 0 : i32
    %c0_i32_1 = arith.constant 0 : i32
    return %c0_i32, %c0_i32_0 : i32, i32
  }
  func.func @transform_4(%arg0: i32) -> (i32, i32, i32, i32) {
    %c0_i32 = arith.constant 0 : i32
    %c0_i32_0 = arith.constant 0 : i32
    %c0_i32_1 = arith.constant 0 : i32
    %c0_i32_2 = arith.constant 0 : i32
    return %arg0, %c0_i32, %c0_i32_0, %c0_i32_1 : i32, i32, i32, i32
  }
}

</mosaic_0001>

<bundles_post_ra>
// kernel: tile.58
= control target key start
LH: loop header
LB: loop body
LE: loop exit
PB: predicated region body
PF: predicated region fallthrough
CT: control target
= control target key end

     0   :  { %s22_s0 = inlined_call_operand.vmem [shape: f32[64], index: 0, kind: input, shape index: {}]   ;;  %s23_s1 = inlined_call_operand.vmem [shape: f32[4,64], index: 1, kind: output, shape index: {}]  }
   0x1   :  { %v4_v0 = vld [vmem:[%s22_s0] ss:$0 sm:$0xff] }
   0x2   :  { %5 = vst [vmem:[%s23_s1] sm:$0xf] %v4_v0 }

// kernel: tile.59
= control target key start
LH: loop header
LB: loop body
LE: loop exit
PB: predicated region body
PF: predicated region fallthrough
CT: control target
= control target key end

     0   :  { %s7_s8 = smov 3  ;;  %vm9_vm0 = vcmask 523264   ;;  %s34_s9 = smov 64   ;;  %vm16_vm1 = vcmask 1048064   ;;  %s54_s0 = inlined_call_operand.vmem [shape: f32[4,64], index: 0, kind: input, shape index: {}]   ;;  %s55_s1 = inlined_call_operand.vmem [shape: f32[1,256], index: 1, kind: output, shape index: {}]  }
   0x1   :  { %v5_v0 = vld [vmem:[%s54_s0] sm:$0xf]  ;;  %s12_s0 = smov 3 }
   0x2   :  { %6 = vst [vmem:[#allocation1] sm:$0xf] %v5_v0 }
   0x9   :  { %v13_v1 = vld [vmem:[#allocation1 + $0x1] ss:$2 sm:%s12_s0]   ;;  %v8_v2 = vld [vmem:[#allocation1] ss:$2 sm:%s7_s8]  }
   0xa   :  { %14 = vrot.lane.b32.xlu0 %v13_v1, %s34_s9  ;;  %10 = vst.msk [vmem:[#allocation0] ss:$8 sm:$0x3] %vm9_vm0, %v8_v2  }
  0x7c   :  { %v15_v3 = vpop.permute.xlu0 %14  }
  0x7d   :  { %17 = vst.msk [vmem:[#allocation0] ss:$8 sm:$0x3] %vm16_vm1, %v15_v3  }
  0x84   :  { %v22_v4 = vld [vmem:[#allocation0] sm:$0x1]  ;;  %v27_v5 = vld [vmem:[#allocation0 + $0x8] sm:$0x1] }
  0x85   :  { %25 = vst [vmem:[%s55_s1] sm:$0x1] %v22_v4  ;;  %32 = vst [vmem:[%s55_s1 + $0x1] sm:$0x1] %v27_v5 }

// kernel: tile.68
= control target key start
LH: loop header
LB: loop body
LE: loop exit
PB: predicated region body
PF: predicated region fallthrough
CT: control target
= control target key end

     0   :  { %s22_s0 = inlined_call_operand.vmem [shape: f32[32], index: 0, kind: input, shape index: {}]   ;;  %s23_s1 = inlined_call_operand.vmem [shape: f32[8,32], index: 1, kind: output, shape index: {}]  }
   0x1   :  { %v4_v0 = vld [vmem:[%s22_s0] ss:$0 sm:$0xff] }
   0x2   :  { %5 = vst [vmem:[%s23_s1] sm:$0xff] %v4_v0 }

// kernel: tile.69
= control target key start
LH: loop header
LB: loop body
LE: loop exit
PB: predicated region body
PF: predicated region fallthrough
CT: control target
= control target key end

     0   :  { %s7_s6 = smov 3  ;;  %s14_s9 = smov 3  ;;  %vm4_vm0 = vcmask 261120   ;;  %vm11_vm1 = vcmask 1048320   ;;  %vm18_vm2 = vcmask 785920   ;;  %vm25_vm3 = vcmask 523520   ;;  %s79_s0 = inlined_call_operand.vmem [shape: f32[8,32], index: 0, kind: input, shape index: {}]   ;;  %s80_s1 = inlined_call_operand.vmem [shape: f32[1,256], index: 1, kind: output, shape index: {}]  }
   0x1   :  { %v41_v0 = vld [vmem:[%s79_s0 + $0x3] ss:$4 sm:%s7_s6]   ;;  %s48_s10 = smov 96   ;;  %s21_s11 = smov 3  ;;  %v42_v1 = vld [vmem:[%s79_s0 + $0x2] ss:$4 sm:%s14_s9]  }
   0x2   :  { %9 = vrot.lane.b32.xlu0 %v41_v0, %s48_s10  ;;  %v43_v2 = vld [vmem:[%s79_s0 + $0x1] ss:$4 sm:%s21_s11]   ;;  %s2_s16 = smov 3  ;;  %s49_s17 = smov 32  }
   0x3   :  { %23 = vrot.lane.b32.xlu1 %v43_v2, %s49_s17  ;;  %v3_v3 = vld [vmem:[%s79_s0] ss:$4 sm:%s2_s16]   ;;  %s50_s0 = smov 64  }
   0x4   :  { %5 = vst.msk [vmem:[#allocation0] ss:$8 sm:$0x3] %vm4_vm0, %v3_v3  }
   0x6   :  { %16 = vrot.lane.b32.xlu0 %v42_v1, %s50_s0 }
  0x74   :  { %v10_v4 = vpop.permute.xlu0 %9  }
  0x75   :  { %12 = vst.msk [vmem:[#allocation0] ss:$8 sm:$0x3] %vm11_vm1, %v10_v4   ;;  %v24_v5 = vpop.permute.xlu1 %23  }
  0x78   :  { %v17_v6 = vpop.permute.xlu0 %16  }
  0x79   :  { %19 = vst.msk [vmem:[#allocation0] ss:$8 sm:$0x3] %vm18_vm2, %v17_v6  }
  0x7a   :  { %26 = vst.msk [vmem:[#allocation0] ss:$8 sm:$0x3] %vm25_vm3, %v24_v5  }
  0x81   :  { %v31_v7 = vld [vmem:[#allocation0] sm:$0x1]  ;;  %v36_v8 = vld [vmem:[#allocation0 + $0x8] sm:$0x1] }
  0x82   :  { %34 = vst [vmem:[%s80_s1] sm:$0x1] %v31_v7  ;;  %44 = vst [vmem:[%s80_s1 + $0x1] sm:$0x1] %v36_v8 }

// kernel: tile.78
= control target key start
LH: loop header
LB: loop body
LE: loop exit
PB: predicated region body
PF: predicated region fallthrough
CT: control target
= control target key end

     0   :  { %s28_s0 = inlined_call_operand.vmem [shape: f32[16], index: 0, kind: input, shape index: {}]   ;;  %s29_s1 = inlined_call_operand.vmem [shape: f32[16,16], index: 1, kind: output, shape index: {}]  }
   0x1   :  { %v4_v0 = vld [vmem:[%s28_s0] ss:$0 sm:$0xff] }
   0x2   :  { %5 = vst [vmem:[%s29_s1] sm:$0xff] %v4_v0  ;;  %8 = vst [vmem:[%s29_s1 + $0x8] sm:$0xff] %v4_v0 }

// kernel: tile.79
= control target key start
LH: loop header
LB: loop body
LE: loop exit
PB: predicated region body
PF: predicated region fallthrough
CT: control target
= control target key end

     0   :  { %s7_s6 = smov 3  ;;  %s21_s9 = smov 3  ;;  %vm4_vm0 = vcmask 130048   ;;  %vm11_vm1 = vcmask 1048448   ;;  %vm18_vm2 = vcmask 917248   ;;  %vm25_vm3 = vcmask 786048   ;;  %s131_s0 = inlined_call_operand.vmem [shape: f32[16,16], index: 0, kind: input, shape index: {}]   ;;  %s132_s1 = inlined_call_operand.vmem [shape: f32[1,256], index: 1, kind: output, shape index: {}]  }
   0x1   :  { %v69_v0 = vld [vmem:[%s131_s0 + $0x7] ss:$8 sm:%s7_s6]   ;;  %s84_s10 = smov 112   ;;  %v71_v1 = vld [vmem:[%s131_s0 + $0x5] ss:$8 sm:%s21_s9]   ;;  %s14_s13 = smov 3 }
   0x2   :  { %9 = vrot.lane.b32.xlu0 %v69_v0, %s84_s10  ;;  %s85_s14 = smov 80   ;;  %v70_v2 = vld [vmem:[%s131_s0 + $0x6] ss:$8 sm:%s14_s13]   ;;  %s28_s17 = smov 3  ;;  %vm32_vm4 = vcmask 654848   ;;  %vm39_vm5 = vcmask 523648  }
   0x3   :  { %23 = vrot.lane.b32.xlu1 %v71_v1, %s85_s14  ;;  %v72_v3 = vld [vmem:[%s131_s0 + $0x4] ss:$8 sm:%s28_s17]   ;;  %s35_s20 = smov 3  ;;  %s42_s21 = smov 3  ;;  %vm46_vm6 = vcmask 392448   ;;  %vm53_vm7 = vcmask 261248  }
   0x4   :  { %s86_s22 = smov 96   ;;  %s87_s23 = smov 64   ;;  %v73_v4 = vld [vmem:[%s131_s0 + $0x3] ss:$8 sm:%s35_s20]   ;;  %v74_v5 = vld [vmem:[%s131_s0 + $0x2] ss:$8 sm:%s42_s21]  }
   0x5   :  { %s2_s26 = smov 3  ;;  %s49_s29 = smov 3 }
   0x6   :  { %16 = vrot.lane.b32.xlu0 %v70_v2, %s86_s22  ;;  %v3_v6 = vld [vmem:[%s131_s0] ss:$8 sm:%s2_s26]   ;;  %s88_s3 = smov 48   ;;  %s89_s4 = smov 32  }
   0x7   :  { %30 = vrot.lane.b32.xlu1 %v72_v3, %s87_s23  ;;  %5 = vst.msk [vmem:[#allocation0] ss:$8 sm:$0x3] %vm4_vm0, %v3_v6   ;;  %v75_v7 = vld [vmem:[%s131_s0 + $0x1] ss:$8 sm:%s49_s29]   ;;  %s90_s0 = smov 16  }
   0xa   :  { %37 = vrot.lane.b32.xlu0 %v73_v4, %s88_s3 }
   0xb   :  { %44 = vrot.lane.b32.xlu1 %v74_v5, %s89_s4 }
   0xe   :  { %51 = vrot.lane.b32.xlu0 %v75_v7, %s90_s0 }
  0x74   :  { %v10_v8 = vpop.permute.xlu0 %9  }
  0x75   :  { %12 = vst.msk [vmem:[#allocation0] ss:$8 sm:$0x3] %vm11_vm1, %v10_v8   ;;  %v24_v9 = vpop.permute.xlu1 %23  }
  0x78   :  { %v17_v10 = vpop.permute.xlu0 %16  }
  0x79   :  { %19 = vst.msk [vmem:[#allocation0] ss:$8 sm:$0x3] %vm18_vm2, %v17_v10   ;;  %v31_v11 = vpop.permute.xlu1 %30  }
  0x7a   :  { %26 = vst.msk [vmem:[#allocation0] ss:$8 sm:$0x3] %vm25_vm3, %v24_v9  }
  0x7b   :  { %33 = vst.msk [vmem:[#allocation0] ss:$8 sm:$0x3] %vm32_vm4, %v31_v11  }
  0x7c   :  { %v38_v12 = vpop.permute.xlu0 %37  }
  0x7d   :  { %40 = vst.msk [vmem:[#allocation0] ss:$8 sm:$0x3] %vm39_vm5, %v38_v12   ;;  %v45_v13 = vpop.permute.xlu1 %44  }
  0x7e   :  { %47 = vst.msk [vmem:[#allocation0] ss:$8 sm:$0x3] %vm46_vm6, %v45_v13  }
  0x80   :  { %v52_v14 = vpop.permute.xlu0 %51  }
  0x81   :  { %54 = vst.msk [vmem:[#allocation0] ss:$8 sm:$0x3] %vm53_vm7, %v52_v14  }
  0x88   :  { %v59_v15 = vld [vmem:[#allocation0] sm:$0x1]  ;;  %v64_v16 = vld [vmem:[#allocation0 + $0x8] sm:$0x1] }
  0x89   :  { %62 = vst [vmem:[%s132_s1] sm:$0x1] %v59_v15  ;;  %76 = vst [vmem:[%s132_s1 + $0x1] sm:$0x1] %v64_v16 }

// kernel: decoder_forward.6
= control target key start
LH: loop header
LB: loop body
LE: loop exit
PB: predicated region body
PF: predicated region fallthrough
CT: control target
= control target key end

     0   :  { %10 = vsyncpa [#allocation3], 0  ;;  %s607_s15 = smov [#allocation2]   ;;  %s698_s0 = inlined_call_operand.vmem [shape: f32[8,16], index: 0, kind: input, shape index: {}]   ;;  %s699_s1 = inlined_call_operand.hbm [shape: f32[16,1024], index: 1, kind: input, shape index: {}]   ;;  %s700_s2 = inlined_call_operand.vmem [shape: f32[8,1024], index: 2, kind: output, shape index: {0}]   ;;  %s701_s3 = inlined_call_operand.vmem [shape: f32[1,1024], index: 3, kind: output, shape index: {1}]   ;;  %s702_s4 = inlined_call_operand.vmem [shape: f32[1,1024], index: 4, kind: output, shape index: {2}]  }
   0x1   :  { %s18_s16 = sshll.u32 %s607_s15, 4  ;;  %s19_s16 = int_to_ptr.vmem [resolvable:$true] %s18_s16 }
   0x2   :  { %s593_s17 = scalar_lea.vmem %s19_s16, 2048  ;;  %p598_p1 = scmp.lt.s32.totalorder %s19_s16, %s19_s16 }
   0x3   :  { %p594_p0 = scmp.ne.s32.totalorder %s19_s16, %s593_s17  ;;  %p599_p2 = scmp.lt.s32.totalorder %s593_s17, %s593_s17 }
   0x5   :  { %p600_p3 = por %p599_p2, %p598_p1 }
   0x7   :  { %p601_p4 = pnand %p600_p3, %p594_p0 }
   0x9   :  { %604 = shalt.err (!%p601_p4)
}
   0xa   :  { %s608_s18 = smov 1024   ;;  %s609_s19 = smov 64  }
   0xb   :  { %24 = dma.hbm_to_vmem [thread:$0]  %s699_s1, 2048, %s19_s16, [#allocation3], %s608_s18, %s608_s18, %s609_s19  }
   0xc   :  { %605 = dma.done.wait [#allocation3], 2048  }
   0xd   :  { %606 = vsyncadd [#allocation3], 4294965248  ;;  %v610_v0 = vmov 0.0   ;;  %v38_v1 = vld [vmem:[#allocation2 + $0x48] sm:$0xff]  ;;  %v40_v2 = vld [vmem:[#allocation2 + $0x58] sm:$0xff]  ;;  %vm45_vm0 = vcmask 130048   ;;  %v404_v53 = vlaneseq }
   0xe   :  { %113 = vmatprep.mubr.f32.mxu0 %v610_v0  ;;  %184 = vmatprep.mubr.f32.mxu1 %v610_v0  ;;  %v37_v3 = vld [vmem:[#allocation2 + $0x40] sm:$0xff]  ;;  %v39_v4 = vld [vmem:[#allocation2 + $0x50] sm:$0xff]  ;;  %v30_v5 = vld [vmem:[#allocation2 + $0x8] sm:$0xff]  ;;  %v611_v51 = vmov 1966171168  }
   0xf   :  { %77 = vmatprep.subr.mxu0 %v38_v1  ;;  %148 = vmatprep.subr.mxu1 %v40_v2  ;;  %v32_v6 = vld [vmem:[#allocation2 + $0x18] sm:$0xff]  ;;  %v29_v7 = vld [vmem:[#allocation2] sm:$0xff]  ;;  %v31_v8 = vld [vmem:[#allocation2 + $0x10] sm:$0xff]  ;;  %v402_v52 = vunpack.c.l.s4 %v611_v51 }
  0x10   :  { %78 = vmatpush1.msra.mxu0 %v37_v3  ;;  %149 = vmatpush1.msra.mxu1 %v39_v4  ;;  %v28_v9 = vld [vmem:[%s698_s0] sm:$0xff]  ;;  %v42_v10 = vld [vmem:[#allocation2 + $0x68] sm:$0xff]  ;;  %v44_v11 = vld [vmem:[#allocation2 + $0x78] sm:$0xff] }
  0x11   :  { %79 = vmatprep.subr.mxu0 %v30_v5  ;;  %150 = vmatprep.subr.mxu1 %v32_v6  ;;  %v41_v12 = vld [vmem:[#allocation2 + $0x60] sm:$0xff]  ;;  %v43_v13 = vld [vmem:[#allocation2 + $0x70] sm:$0xff]  ;;  %v34_v14 = vld [vmem:[#allocation2 + $0x28] sm:$0xff]  ;;  %v403_v4 = vunpack.c.0.s8 %v402_v52  ;;  %v405_v5 = vshrl.u32 %v404_v53, 7 }
  0x12   :  { %80 = vmatpush1.msra.mxu0 %v29_v7  ;;  %151 = vmatpush1.msra.mxu1 %v31_v8  ;;  %v36_v15 = vld [vmem:[#allocation2 + $0x38] sm:$0xff]  ;;  %v33_v16 = vld [vmem:[#allocation2 + $0x20] sm:$0xff]  ;;  %v35_v17 = vld [vmem:[#allocation2 + $0x30] sm:$0xff] }
  0x13   :  { %576 = vmatmul.mubr.msk.f32.vlgmr.msra.gmra.mxu0 %vm45_vm0, %v28_v9  ;;  %577 = vmatmul.mubr.msk.f32.vlgmr.msra.gmra.mxu1 %vm45_vm0, %v28_v9 }
  0x14   :  { %219 = vmatprep.subr.mxu0 %v42_v10  ;;  %290 = vmatprep.subr.mxu1 %v44_v11 }
  0x15   :  { %220 = vmatpush1.msra.mxu0 %v41_v12  ;;  %291 = vmatpush1.msra.mxu1 %v43_v13 }
  0x16   :  { %221 = vmatprep.subr.mxu0 %v34_v14  ;;  %292 = vmatprep.subr.mxu1 %v36_v15 }
  0x17   :  { %222 = vmatpush1.msra.mxu0 %v33_v16  ;;  %255 = vmatprep.mubr.f32.mxu0 %v610_v0 }
  0x18   :  { %293 = vmatpush1.msra.mxu1 %v35_v17  ;;  %326 = vmatprep.mubr.f32.mxu1 %v610_v0 }
  0x19   :  { %578 = vmatmul.mubr.msk.f32.vlgmr.msra.gmra.mxu0 %vm45_vm0, %v28_v9  ;;  %579 = vmatmul.mubr.msk.f32.vlgmr.msra.gmra.mxu1 %vm45_vm0, %v28_v9 }
  0xd3   :  { %v115_v18 = vpop.f32.mrf.mxu0  ;;  %v186_v19 = vpop.f32.mrf.mxu1 }
  0xd4   :  { %333 = vst [vmem:[%s700_s2] sm:$0xff] %v115_v18  ;;  %v341_v20 = vrot.slane %v115_v18, 4  ;;  %v448_v21 = vmul.f32 %v115_v18, %v115_v18  ;;  %335 = vst [vmem:[%s700_s2 + $0x10] sm:$0xff] %v186_v19  ;;  %v353_v22 = vrot.slane %v186_v19, 4  ;;  %v450_v23 = vmul.f32 %v186_v19, %v186_v19 }
  0xd5   :  { %v117_v24 = vpop.f32.mrf.mxu0  ;;  %v188_v25 = vpop.f32.mrf.mxu1 }
  0xd6   :  { %v342_v26 = vadd.f32 %v341_v20, %v115_v18  ;;  %v456_v27 = vrot.slane %v448_v21, 4  ;;  %334 = vst [vmem:[%s700_s2 + $0x8] sm:$0xff] %v117_v24  ;;  %336 = vst [vmem:[%s700_s2 + $0x18] sm:$0xff] %v188_v25  ;;  %v347_v28 = vrot.slane %v117_v24, 4  ;;  %v449_v29 = vmul.f32 %v117_v24, %v117_v24 }
  0xd7   :  { %v359_v30 = vrot.slane %v188_v25, 4  ;;  %v451_v31 = vmul.f32 %v188_v25, %v188_v25  ;;  %v354_v32 = vadd.f32 %v353_v22, %v186_v19  ;;  %v468_v33 = vrot.slane %v450_v23, 4 }
  0xd8   :  { %v457_v34 = vadd.f32 %v456_v27, %v448_v21  ;;  %v348_v35 = vadd.f32 %v347_v28, %v117_v24  ;;  %v462_v36 = vrot.slane %v449_v29, 4  ;;  %v343_v40 = vrot.slane %v342_v26, 2 }
  0xd9   :  { %v360_v37 = vadd.f32 %v359_v30, %v188_v25  ;;  %v257_v38 = vpop.f32.mrf.mxu0  ;;  %v328_v39 = vpop.f32.mrf.mxu1  ;;  %v474_v41 = vrot.slane %v451_v31, 4  ;;  %v355_v44 = vrot.slane %v354_v32, 2  ;;  %v469_v45 = vadd.f32 %v468_v33, %v450_v23 }
  0xda   :  { %337 = vst [vmem:[%s700_s2 + $0x20] sm:$0xff] %v257_v38  ;;  %339 = vst [vmem:[%s700_s2 + $0x30] sm:$0xff] %v328_v39  ;;  %v458_v46 = vrot.slane %v457_v34, 2  ;;  %v349_v47 = vrot.slane %v348_v35, 2  ;;  %v463_v48 = vadd.f32 %v462_v36, %v449_v29  ;;  %v344_v50 = vadd.f32 %v343_v40, %v342_v26 }
  0xdb   :  { %v259_v42 = vpop.f32.mrf.mxu0  ;;  %v665_v43 = vpop.f32.mrf.mxu1  ;;  %v361_v49 = vrot.slane %v360_v37, 2  ;;  %v475_v54 = vadd.f32 %v474_v41, %v451_v31  ;;  %v356_v55 = vadd.f32 %v355_v44, %v354_v32  ;;  %v470_v56 = vrot.slane %v469_v45, 2 }
  0xdc   :  { %338 = vst [vmem:[%s700_s2 + $0x28] sm:$0xff] %v259_v42  ;;  %340 = vst [vmem:[%s700_s2 + $0x38] sm:$0xff] %v665_v43  ;;  %v365_v57 = vrot.slane %v257_v38, 4  ;;  %v452_v58 = vmul.f32 %v257_v38, %v257_v38  ;;  %v459_v59 = vadd.f32 %v458_v46, %v457_v34  ;;  %v350_v60 = vadd.f32 %v349_v47, %v348_v35 }
  0xdd   :  { %v464_v61 = vrot.slane %v463_v48, 2  ;;  %v362_v62 = vadd.f32 %v361_v49, %v360_v37  ;;  %v377_v1 = vrot.slane %v328_v39, 4  ;;  %v454_v2 = vmul.f32 %v328_v39, %v328_v39 }
  0xde   :  { %v366_v63 = vadd.f32 %v365_v57, %v257_v38  ;;  %v480_v0 = vrot.slane %v452_v58, 4  ;;  %v345_v3 = vrot.slane %v344_v50, 1  ;;  %v476_v6 = vrot.slane %v475_v54, 2 }
  0xdf   :  { %v357_v7 = vrot.slane %v356_v55, 1  ;;  %v492_v10 = vrot.slane %v454_v2, 4  ;;  %v471_v11 = vadd.f32 %v470_v56, %v469_v45  ;;  %v378_v12 = vadd.f32 %v377_v1, %v328_v39 }
  0xe0   :  { %v367_v8 = vrot.slane %v366_v63, 2  ;;  %v481_v9 = vadd.f32 %v480_v0, %v452_v58  ;;  %v460_v13 = vrot.slane %v459_v59, 1  ;;  %v351_v14 = vrot.slane %v350_v60, 1 }
  0xe1   :  { %v465_v15 = vadd.f32 %v464_v61, %v463_v48  ;;  %v363_v16 = vrot.slane %v362_v62, 1  ;;  %v346_v17 = vadd.f32 %v345_v3, %v344_v50  ;;  %v674_v18 = vsub.s32 %v403_v4, %v405_v5 }
  0xe2   :  { %v477_v19 = vadd.f32 %v476_v6, %v475_v54  ;;  %v371_v20 = vrot.slane %v259_v42, 4  ;;  %v358_v21 = vadd.f32 %v357_v7, %v356_v55  ;;  %v368_v22 = vadd.f32 %v367_v8, %v366_v63 }
  0xe3   :  { %v482_v23 = vrot.slane %v481_v9, 2  ;;  %v493_v24 = vadd.f32 %v492_v10, %v454_v2  ;;  %v472_v25 = vrot.slane %v471_v11, 1  ;;  %v379_v26 = vrot.slane %v378_v12, 2 }
  0xe4   :  { %v372_v27 = vadd.f32 %v371_v20, %v259_v42  ;;  %v453_v28 = vmul.f32 %v259_v42, %v259_v42  ;;  %v461_v29 = vadd.f32 %v460_v13, %v459_v59  ;;  %v352_v30 = vadd.f32 %v351_v14, %v350_v60 }
  0xe5   :  { %v466_v31 = vrot.slane %v465_v15, 1  ;;  %v364_v32 = vadd.f32 %v363_v16, %v362_v62  ;;  %v478_v33 = vrot.slane %v477_v19, 1  ;;  %v383_v36 = vrot.slane %v665_v43, 4 }
  0xe6   :  { %v373_v34 = vrot.slane %v372_v27, 2  ;;  %v486_v35 = vrot.slane %v453_v28, 4  ;;  %v369_v37 = vrot.slane %v368_v22, 1  ;;  %v483_v38 = vadd.f32 %v482_v23, %v481_v9 }
  0xe7   :  { %v494_v39 = vrot.slane %v493_v24, 2  ;;  %v455_v40 = vmul.f32 %v665_v43, %v665_v43  ;;  %v380_v41 = vadd.f32 %v379_v26, %v378_v12  ;;  %v384_v42 = vadd.f32 %v383_v36, %v665_v43 }
  0xe8   :  { %v374_v44 = vadd.f32 %v373_v34, %v372_v27  ;;  %v487_v45 = vadd.f32 %v486_v35, %v453_v28  ;;  %v397_v46 = vcombine.low %v346_v17, %v352_v30  ;;  %v467_v47 = vadd.f32 %v466_v31, %v465_v15 }
  0xe9   :  { %v398_v48 = vcombine.low %v358_v21, %v364_v32  ;;  %v498_v49 = vrot.slane %v455_v40, 4  ;;  %v479_v50 = vadd.f32 %v478_v33, %v477_v19  ;;  %v385_v53 = vrot.slane %v384_v42, 2 }
  0xea   :  { %v375_v51 = vrot.slane %v374_v44, 1  ;;  %v488_v52 = vrot.slane %v487_v45, 2  ;;  %v370_v54 = vadd.f32 %v369_v37, %v368_v22  ;;  %v484_v55 = vrot.slane %v483_v38, 1 }
  0xeb   :  { %v495_v56 = vadd.f32 %v494_v39, %v493_v24  ;;  %v499_v57 = vadd.f32 %v498_v49, %v455_v40  ;;  %v381_v58 = vrot.slane %v380_v41, 1  ;;  %v386_v61 = vadd.f32 %v385_v53, %v384_v42 }
  0xec   :  { %v376_v59 = vadd.f32 %v375_v51, %v374_v44  ;;  %v489_v60 = vadd.f32 %v488_v52, %v487_v45  ;;  %v473_v62 = vadd.f32 %v472_v25, %v471_v11  ;;  %v407_v63 = vrot.slane %v397_v46, %v674_v18 }
  0xed   :  { %v500_v43 = vrot.slane %v499_v57, 2  ;;  %v512_v0 = vcombine.low %v461_v29, %v467_v47  ;;  %v387_v3 = vrot.slane %v386_v61, 1  ;;  %v414_v4 = vrot.slane %v398_v48, %v674_v18 }
  0xee   :  { %v399_v1 = vcombine.low %v370_v54, %v376_v59  ;;  %v490_v2 = vrot.slane %v489_v60, 1  ;;  %v513_v5 = vcombine.low %v473_v62, %v479_v50  ;;  %v496_v6 = vrot.slane %v495_v56, 1 }
  0xef   :  { %v501_v7 = vadd.f32 %v500_v43, %v499_v57  ;;  %v485_v8 = vadd.f32 %v484_v55, %v483_v38  ;;  %v382_v9 = vadd.f32 %v381_v58, %v380_v41  ;;  %v388_v12 = vadd.f32 %v387_v3, %v386_v61 }
  0xf0   :  { %v491_v10 = vadd.f32 %v490_v2, %v489_v60  ;;  %v421_v14 = vrot.slane %v399_v1, %v674_v18  ;;  %v522_v16 = vrot.slane %v512_v0, %v674_v18  ;;  %v529_v17 = vrot.slane %v513_v5, %v674_v18 }
  0xf1   :  { %v502_v13 = vrot.slane %v501_v7, 1  ;;  %v400_v15 = vcombine.low %v382_v9, %v388_v12  ;;  %v497_v19 = vadd.f32 %v496_v6, %v495_v56  ;;  %v429_v21 = vcombine.low %v407_v63, %v414_v4 }
  0xf2   :  { %v514_v11 = vcombine.low %v485_v8, %v491_v10  ;;  %v544_v26 = vcombine.low %v522_v16, %v529_v17 }
  0xf3   :  { %v503_v20 = vadd.f32 %v502_v13, %v501_v7  ;;  %v428_v22 = vrot.slane %v400_v15, %v674_v18  ;;  %v437_v28 = vrot.slane %v429_v21, %v674_v18 }
  0xf4   :  { %v536_v23 = vrot.slane %v514_v11, %v674_v18  ;;  %v552_v32 = vrot.slane %v544_v26, %v674_v18 }
  0xf5   :  { %v515_v24 = vcombine.low %v497_v19, %v503_v20  ;;  %v430_v25 = vcombine.low %v421_v14, %v428_v22 }
  0xf7   :  { %v543_v27 = vrot.slane %v515_v24, %v674_v18  ;;  %v444_v29 = vrot.slane %v430_v25, %v674_v18 }
  0xf9   :  { %v545_v30 = vcombine.low %v536_v23, %v543_v27  ;;  %v445_v31 = vcombine.low %v437_v28, %v444_v29 }
  0xfb   :  { %v559_v33 = vrot.slane %v545_v30, %v674_v18  ;;  %447 = vst [vmem:[%s701_s3] sm:$0xff] %v445_v31 }
  0xfd   :  { %v560_v34 = vcombine.low %v552_v32, %v559_v33 }
  0xff   :  { %562 = vst [vmem:[%s702_s4] sm:$0xff] %v560_v34 }
 0x100   :  { %575 = vsyncpa [#allocation3], 1 }

// kernel: tile.88
= control target key start
LH: loop header
LB: loop body
LE: loop exit
PB: predicated region body
PF: predicated region fallthrough
CT: control target
= control target key end

     0   :  { %s40_s0 = inlined_call_operand.vmem [shape: f32[8], index: 0, kind: input, shape index: {}]   ;;  %s41_s1 = inlined_call_operand.vmem [shape: f32[32,8], index: 1, kind: output, shape index: {}]  }
   0x1   :  { %v4_v0 = vld [vmem:[%s40_s0] ss:$0 sm:$0xff] }
   0x2   :  { %5 = vst [vmem:[%s41_s1] sm:$0xff] %v4_v0  ;;  %12 = vst [vmem:[%s41_s1 + $0x8] sm:$0xff] %v4_v0 }
   0x3   :  { %13 = vst [vmem:[%s41_s1 + $0x10] sm:$0xff] %v4_v0  ;;  %14 = vst [vmem:[%s41_s1 + $0x18] sm:$0xff] %v4_v0 }

// kernel: decoder_forward.8
= control target key start
LH: loop header
LB: loop body
LE: loop exit
PB: predicated region body
PF: predicated region fallthrough
CT: control target
= control target key end

     0   :  { %s2524_s21 = smov 0   ;;  %s3171_s0 = inlined_call_operand.vmem [shape: f32[2,8,256], index: 0, kind: input, shape index: {}]   ;;  %s3172_s1 = inlined_call_operand.vmem [shape: f32[1,256], index: 1, kind: input, shape index: {}]   ;;  %s3173_s2 = inlined_call_operand.vmem [shape: f32[1,256], index: 2, kind: input, shape index: {}]   ;;  %s3174_s3 = inlined_call_operand.vmem [shape: bf16[768,512], index: 3, kind: input, shape index: {}]   ;;  %s3175_s4 = inlined_call_operand.vmem [shape: f32[2,8,512], index: 4, kind: output, shape index: {0}]   ;;  %s3176_s5 = inlined_call_operand.vmem [shape: f32[2,1,512], index: 5, kind: output, shape index: {1}]   ;;  %s3177_s6 = inlined_call_operand.vmem [shape: f32[2,1,512], index: 6, kind: output, shape index: {2}]  }
   0x1 LB: > { %s1974_s22 = sadd.s32 4294967295, %s2485_s21   ;;  %p1978_p0 = scmp.ge.s32.totalorder %s2485_s21, 1  ;;  %s2485_s21 = sphi %s2524_s21, %s17_s21  }
   0x2   : > { %p217_p1 = scmp.lt.s32.totalorder %s2485_s21, 3 }
   0x4   : > { %p218_p2 = pnand %p1978_p0, %p217_p1 }
   0x5   : > { %p255_p3 = scmp.lt.s32.totalorder (!%p218_p2), %s1974_s22, 1 }
   0x6   : > { %221 = sbr.rel (%p218_p2) target bundleno = 426 (0x1aa), region = 36 }
   0xb   : > { %v2191_v0 = vld [vmem:[%s3174_s3 + $0xe4] ss:$16 sps:$4 sm:$0xff]   ;;  %v2487_v2 = vmov 0.0   ;;  %v2195_v3 = vld [vmem:[%s3174_s3 + $0xe0] ss:$16 sps:$4 sm:$0xff]   ;;  %v277_v37 = vlaneseq  ;;  %s3179_s22 = smov (!%p255_p3, %s1974_s22), 1 }
   0xc   : > { %v2193_v1 = vld [vmem:[%s3174_s3 + $0x2e4] ss:$16 sps:$4 sm:$0xff]   ;;  %306 = vst [vmem:[#allocation2 + $0x10] sm:$0xff] %v2487_v2  ;;  %305 = vst [vmem:[#allocation2 + $0x28] sm:$0xff] %v2487_v2  ;;  %1491 = vmatprep.subr.bf16.mxu0 %v2191_v0  ;;  %v2196_v4 = vld [vmem:[%s3174_s3 + $0x2e0] ss:$16 sps:$4 sm:$0xff]  }
   0xd   : > { %309 = vst [vmem:[#allocation2 + $0x18] sm:$0xff] %v2487_v2  ;;  %310 = vst [vmem:[#allocation2 + $0x20] sm:$0xff] %v2487_v2  ;;  %1532 = vmatprep.subr.bf16.mxu1 %v2193_v1  ;;  %v2197_v5 = vld [vmem:[%s3174_s3 + $0xc4] ss:$16 sps:$4 sm:$0xff]   ;;  %1492 = vmatpush1.bf16.msra.mxu0 %v2195_v3  ;;  %v2201_v7 = vld [vmem:[%s3174_s3 + $0xc0] ss:$16 sps:$4 sm:$0xff]  }
   0xe   : > { %1533 = vmatpush1.bf16.msra.mxu1 %v2196_v4  ;;  %v2199_v6 = vld [vmem:[%s3174_s3 + $0x2c4] ss:$16 sps:$4 sm:$0xff]   ;;  %1493 = vmatprep.subr.bf16.mxu0 %v2197_v5  ;;  %v2202_v8 = vld [vmem:[%s3174_s3 + $0x2c0] ss:$16 sps:$4 sm:$0xff]   ;;  %v2656_v41 = vshrl.u32 %v277_v37, 7  ;;  %s2179_s15 = sshll.u32 %s3179_s22, 4 }
   0xf   : > { %1534 = vmatprep.subr.bf16.mxu1 %v2199_v6  ;;  %v2203_v9 = vld [vmem:[%s3174_s3 + $0xa4] ss:$16 sps:$4 sm:$0xff]   ;;  %v2207_v11 = vld [vmem:[%s3174_s3 + $0xa0] ss:$16 sps:$4 sm:$0xff]   ;;  %s259_s26 = scalar_lea.vmem %s3171_s0, %s2179_s15  ;;  %s2180_s17 = sshll.u32 %s3179_s22, 5  ;;  %vm1796_vm0 = vcmp.lt.s32.totalorder %v277_v37, 512 }
  0x10   : > { %v2205_v10 = vld [vmem:[%s3174_s3 + $0x2a4] ss:$16 sps:$4 sm:$0xff]   ;;  %v2208_v12 = vld [vmem:[%s3174_s3 + $0x2a0] ss:$16 sps:$4 sm:$0xff]   ;;  %v279_v48 = vsub.s32 0, %v2656_v41  ;;  %v283_v49 = vsub.s32 1, %v2656_v41  ;;  %s3153_s20 = scalar_lea.vmem %s3175_s4, %s2180_s17 }
  0x11   : > { %1494 = vmatpush1.bf16.msra.mxu0 %v2201_v7  ;;  %v2209_v13 = vld [vmem:[%s3174_s3 + $0x84] ss:$16 sps:$4 sm:$0xff]   ;;  %v2213_v15 = vld [vmem:[%s3174_s3 + $0x80] ss:$16 sps:$4 sm:$0xff]   ;;  %v274_v54 = vld [vmem:[%s259_s26 + $0x8] sm:$0xff]  ;;  %s1983_s23 = sshll.u32 %s3179_s22, 2 }
  0x12   : > { %1535 = vmatpush1.bf16.msra.mxu1 %v2202_v8  ;;  %1495 = vmatprep.subr.bf16.mxu0 %v2203_v9  ;;  %v2211_v14 = vld [vmem:[%s3174_s3 + $0x284] ss:$16 sps:$4 sm:$0xff]   ;;  %v2214_v16 = vld [vmem:[%s3174_s3 + $0x280] ss:$16 sps:$4 sm:$0xff]   ;;  %s272_s29 = scalar_lea.vmem %s3177_s6, %s1983_s23 }
  0x13   : > { %1536 = vmatprep.subr.bf16.mxu1 %v2205_v10  ;;  %v2215_v17 = vld [vmem:[%s3174_s3 + $0x64] ss:$16 sps:$4 sm:$0xff]   ;;  %v2219_v19 = vld [vmem:[%s3174_s3 + $0x60] ss:$16 sps:$4 sm:$0xff]  }
  0x14   : > { %v2217_v18 = vld [vmem:[%s3174_s3 + $0x264] ss:$16 sps:$4 sm:$0xff]   ;;  %v2220_v20 = vld [vmem:[%s3174_s3 + $0x260] ss:$16 sps:$4 sm:$0xff]  }
  0x15   : > { %1496 = vmatpush1.bf16.msra.mxu0 %v2207_v11  ;;  %v2221_v21 = vld [vmem:[%s3174_s3 + $0x44] ss:$16 sps:$4 sm:$0xff]   ;;  %v2225_v23 = vld [vmem:[%s3174_s3 + $0x40] ss:$16 sps:$4 sm:$0xff]  }
  0x16   : > { %1537 = vmatpush1.bf16.msra.mxu1 %v2208_v12  ;;  %1497 = vmatprep.subr.bf16.mxu0 %v2209_v13  ;;  %v2223_v22 = vld [vmem:[%s3174_s3 + $0x244] ss:$16 sps:$4 sm:$0xff]   ;;  %v2226_v24 = vld [vmem:[%s3174_s3 + $0x240] ss:$16 sps:$4 sm:$0xff]  }
  0x17   : > { %1538 = vmatprep.subr.bf16.mxu1 %v2211_v14  ;;  %v2227_v25 = vld [vmem:[%s3174_s3 + $0x24] ss:$16 sps:$4 sm:$0xff]   ;;  %v2231_v27 = vld [vmem:[%s3174_s3 + $0x20] ss:$16 sps:$4 sm:$0xff]  }
  0x18   : > { %v2229_v26 = vld [vmem:[%s3174_s3 + $0x224] ss:$16 sps:$4 sm:$0xff]   ;;  %v2232_v28 = vld [vmem:[%s3174_s3 + $0x220] ss:$16 sps:$4 sm:$0xff]  }
  0x19   : > { %1498 = vmatpush1.bf16.msra.mxu0 %v2213_v15  ;;  %v2233_v29 = vld [vmem:[%s3174_s3 + $0x4] ss:$16 sps:$4 sm:$0xff]   ;;  %v2237_v31 = vld [vmem:[%s3174_s3] ss:$16 sps:$4 sm:$0xff]  }
  0x1a   : > { %1539 = vmatpush1.bf16.msra.mxu1 %v2214_v16  ;;  %1499 = vmatprep.subr.bf16.mxu0 %v2215_v17  ;;  %v2235_v30 = vld [vmem:[%s3174_s3 + $0x204] ss:$16 sps:$4 sm:$0xff]   ;;  %v2238_v32 = vld [vmem:[%s3174_s3 + $0x200] ss:$16 sps:$4 sm:$0xff]  }
  0x1b   : > { %1540 = vmatprep.subr.bf16.mxu1 %v2217_v18  ;;  %v2239_v33 = vld [vmem:[%s3174_s3 + $0x1e4] ss:$16 sps:$4 sm:$0xff]   ;;  %v2243_v35 = vld [vmem:[%s3174_s3 + $0x1e0] ss:$16 sps:$4 sm:$0xff]  }
  0x1c   : > { %v2241_v34 = vld [vmem:[%s3174_s3 + $0x3e4] ss:$16 sps:$4 sm:$0xff]   ;;  %v2244_v36 = vld [vmem:[%s3174_s3 + $0x3e0] ss:$16 sps:$4 sm:$0xff]  }
  0x1d   : > { %1500 = vmatpush1.bf16.msra.mxu0 %v2219_v19  ;;  %v2245_v38 = vld [vmem:[%s3174_s3 + $0x1c4] ss:$16 sps:$4 sm:$0xff]   ;;  %v2249_v40 = vld [vmem:[%s3174_s3 + $0x1c0] ss:$16 sps:$4 sm:$0xff]  }
  0x1e   : > { %1541 = vmatpush1.bf16.msra.mxu1 %v2220_v20  ;;  %1501 = vmatprep.subr.bf16.mxu0 %v2221_v21  ;;  %v2247_v39 = vld [vmem:[%s3174_s3 + $0x3c4] ss:$16 sps:$4 sm:$0xff]   ;;  %v2250_v42 = vld [vmem:[%s3174_s3 + $0x3c0] ss:$16 sps:$4 sm:$0xff]  }
  0x1f   : > { %1542 = vmatprep.subr.bf16.mxu1 %v2223_v22  ;;  %v2251_v43 = vld [vmem:[%s3174_s3 + $0x1a4] ss:$16 sps:$4 sm:$0xff]   ;;  %v2255_v45 = vld [vmem:[%s3174_s3 + $0x1a0] ss:$16 sps:$4 sm:$0xff]  }
  0x20   : > { %v2253_v44 = vld [vmem:[%s3174_s3 + $0x3a4] ss:$16 sps:$4 sm:$0xff]   ;;  %v2256_v46 = vld [vmem:[%s3174_s3 + $0x3a0] ss:$16 sps:$4 sm:$0xff]  }
  0x21   : > { %1502 = vmatpush1.bf16.msra.mxu0 %v2225_v23  ;;  %v2257_v47 = vld [vmem:[%s3174_s3 + $0x184] ss:$16 sps:$4 sm:$0xff]   ;;  %v2261_v51 = vld [vmem:[%s3174_s3 + $0x180] ss:$16 sps:$4 sm:$0xff]  }
  0x22   : > { %1543 = vmatpush1.bf16.msra.mxu1 %v2226_v24  ;;  %1503 = vmatprep.subr.bf16.mxu0 %v2227_v25  ;;  %v2259_v50 = vld [vmem:[%s3174_s3 + $0x384] ss:$16 sps:$4 sm:$0xff]   ;;  %v2262_v52 = vld [vmem:[%s3174_s3 + $0x380] ss:$16 sps:$4 sm:$0xff]  }
  0x23   : > { %1544 = vmatprep.subr.bf16.mxu1 %v2229_v26  ;;  %v273_v53 = vld [vmem:[%s259_s26] sm:$0xff]  ;;  %s268_s26 = scalar_lea.vmem %s3176_s5, %s1983_s23 }
  0x24   : > { %v275_v55 = vld [vmem:[%s3172_s1] sm:$0x3]  ;;  %v2263_v57 = vld [vmem:[%s3174_s3 + $0x164] ss:$16 sps:$4 sm:$0xff]  }
  0x25   : > { %1504 = vmatpush1.bf16.msra.mxu0 %v2231_v27  ;;  %v289_v56 = vld [vmem:[%s3173_s2] sm:$0x3]  ;;  %v280_v58 = vrot.slane %v275_v55, %v279_v48  ;;  %v284_v59 = vrot.slane %v275_v55, %v283_v49  ;;  %v2265_v61 = vld [vmem:[%s3174_s3 + $0x364] ss:$16 sps:$4 sm:$0xff]  }
  0x26   : > { %1545 = vmatpush1.bf16.msra.mxu1 %v2232_v28  ;;  %1505 = vmatprep.subr.bf16.mxu0 %v2233_v29  ;;  %v294_v60 = vrot.slane %v289_v56, %v279_v48  ;;  %v298_v62 = vrot.slane %v289_v56, %v283_v49  ;;  %v2267_v1 = vld [vmem:[%s3174_s3 + $0x160] ss:$16 sps:$4 sm:$0xff]   ;;  %v2269_v3 = vld [vmem:[%s3174_s3 + $0x144] ss:$16 sps:$4 sm:$0xff]   ;;  %v2292_v28 = vld [vmem:[%s3174_s3 + $0xec] ss:$16 sps:$4 sm:$0xff]  }
  0x27   : > { %1546 = vmatprep.subr.bf16.mxu1 %v2235_v30  ;;  %v288_v63 = vmul.f32 %v284_v59, %v274_v54  ;;  %v287_v0 = vmul.f32 %v280_v58, %v273_v53  ;;  %v2268_v2 = vld [vmem:[%s3174_s3 + $0x360] ss:$16 sps:$4 sm:$0xff]   ;;  %v2271_v6 = vld [vmem:[%s3174_s3 + $0x344] ss:$16 sps:$4 sm:$0xff]   ;;  %v2316_v48 = vld [vmem:[%s3174_s3 + $0x6c] ss:$16 sps:$4 sm:$0xff]  }
  0x28   : > { %v2273_v9 = vld [vmem:[%s3174_s3 + $0x140] ss:$16 sps:$4 sm:$0xff]   ;;  %v2275_v14 = vld [vmem:[%s3174_s3 + $0x124] ss:$16 sps:$4 sm:$0xff]   ;;  %v2320_v54 = vld [vmem:[%s3174_s3 + $0x48] ss:$16 sps:$4 sm:$0xff]  }
  0x29   : > { %1506 = vmatpush1.bf16.msra.mxu0 %v2237_v31  ;;  %v302_v4 = vadd.f32 %v298_v62, %v288_v63  ;;  %v301_v5 = vadd.f32 %v294_v60, %v287_v0  ;;  %v2274_v10 = vld [vmem:[%s3174_s3 + $0x340] ss:$16 sps:$4 sm:$0xff]   ;;  %v2277_v15 = vld [vmem:[%s3174_s3 + $0x324] ss:$16 sps:$4 sm:$0xff]   ;;  %v2328_v56 = vld [vmem:[%s3174_s3 + $0x2c] ss:$16 sps:$4 sm:$0xff]  }
  0x2a   : > { %1547 = vmatpush1.bf16.msra.mxu1 %v2238_v32  ;;  %1507 = vmatprep.subr.bf16.mxu0 %v2239_v33  ;;  %v2279_v18 = vld [vmem:[%s3174_s3 + $0x120] ss:$16 sps:$4 sm:$0xff]   ;;  %v2281_v20 = vld [vmem:[%s3174_s3 + $0x104] ss:$16 sps:$4 sm:$0xff]   ;;  %v2290_v32 = vld [vmem:[%s3174_s3 + $0xe8] ss:$16 sps:$4 sm:$0xff]  }
  0x2b   : > { %1548 = vmatprep.subr.bf16.mxu1 %v2241_v34  ;;  %v304_v7 = vmax.f32 %v302_v4, 0.0  ;;  %v303_v8 = vmax.f32 %v301_v5, 0.0  ;;  %v2280_v19 = vld [vmem:[%s3174_s3 + $0x320] ss:$16 sps:$4 sm:$0xff]   ;;  %v2283_v21 = vld [vmem:[%s3174_s3 + $0x304] ss:$16 sps:$4 sm:$0xff]  }
  0x2c   : > { %v2285_v22 = vld [vmem:[%s3174_s3 + $0x100] ss:$16 sps:$4 sm:$0xff]   ;;  %v2289_v26 = vld [vmem:[%s3174_s3 + $0x4e4] ss:$16 sps:$4 sm:$0xff]   ;;  %v2298_v34 = vld [vmem:[%s3174_s3 + $0xcc] ss:$16 sps:$4 sm:$0xff]  }
  0x2d   : > { %1508 = vmatpush2.bf16.msra.mxu0 %v2243_v35  ;;  %v316_v11 = vrot.slane %v304_v7, 7  ;;  %v2721_v12 = vpack.c.bf16 %v304_v7, %v304_v7  ;;  %v315_v13 = vrot.slane %v303_v8, 7  ;;  %v322_v16 = vrot.slane %v304_v7, 1  ;;  %v2286_v23 = vld [vmem:[%s3174_s3 + $0x300] ss:$16 sps:$4 sm:$0xff]  }
  0x2e   : > { %1549 = vmatpush2.bf16.msra.mxu1 %v2244_v36  ;;  %1509 = vmatprep.subr.bf16.mxu0 %v2245_v38  ;;  %v321_v17 = vrot.slane %v303_v8, 1  ;;  %v2756_v30 = vpack.c.bf16 %v303_v8, %v303_v8  ;;  %v2287_v31 = vld [vmem:[%s3174_s3 + $0x4e0] ss:$16 sps:$4 sm:$0xff]   ;;  %v2295_v33 = vld [vmem:[%s3174_s3 + $0x4c4] ss:$16 sps:$4 sm:$0xff]  }
  0x2f   : > { %1550 = vmatprep.subr.bf16.mxu1 %v2247_v39  ;;  %320 = vst [vmem:[#allocation2 + $0x10] sm:$0xfe] %v316_v11  ;;  %1564 = vmatprep.mubr.bf16.mxu1 %v2721_v12  ;;  %319 = vst [vmem:[#allocation2 + $0x28] sm:$0xfe] %v315_v13  ;;  %v2293_v35 = vld [vmem:[%s3174_s3 + $0x4c0] ss:$16 sps:$4 sm:$0xff]  }
  0x30   : > { %326 = vst [vmem:[#allocation2 + $0x20] sm:$0x7f] %v322_v16  ;;  %325 = vst [vmem:[#allocation2 + $0x18] sm:$0x7f] %v321_v17  ;;  %v2296_v36 = vld [vmem:[%s3174_s3 + $0xc8] ss:$16 sps:$4 sm:$0xff]  }
  0x31   : > { %1510 = vmatpush2.bf16.msra.mxu0 %v2249_v40  ;;  %v2301_v38 = vld [vmem:[%s3174_s3 + $0x4a4] ss:$16 sps:$4 sm:$0xff]   ;;  %v2304_v39 = vld [vmem:[%s3174_s3 + $0xac] ss:$16 sps:$4 sm:$0xff]   ;;  %v2299_v40 = vld [vmem:[%s3174_s3 + $0x4a0] ss:$16 sps:$4 sm:$0xff]  }
  0x32   : > { %1551 = vmatpush2.bf16.msra.mxu1 %v2250_v42  ;;  %1511 = vmatprep.subr.bf16.mxu0 %v2251_v43  ;;  %v2302_v42 = vld [vmem:[%s3174_s3 + $0xa8] ss:$16 sps:$4 sm:$0xff]   ;;  %v2307_v43 = vld [vmem:[%s3174_s3 + $0x484] ss:$16 sps:$4 sm:$0xff]   ;;  %v2311_v49 = vld [vmem:[%s3174_s3 + $0x460] ss:$16 sps:$4 sm:$0xff]  }
  0x33   : > { %1552 = vmatprep.subr.bf16.mxu1 %v2253_v44  ;;  %v2310_v44 = vld [vmem:[%s3174_s3 + $0x8c] ss:$16 sps:$4 sm:$0xff]   ;;  %v2317_v53 = vld [vmem:[%s3174_s3 + $0x440] ss:$16 sps:$4 sm:$0xff]   ;;  %v2325_v55 = vld [vmem:[%s3174_s3 + $0x424] ss:$16 sps:$4 sm:$0xff]  }
  0x34   : > { %v2326_v59 = vld [vmem:[%s3174_s3 + $0x28] ss:$16 sps:$4 sm:$0xff]   ;;  %v2334_v62 = vld [vmem:[%s3174_s3 + $0xc] ss:$16 sps:$4 sm:$0xff]   ;;  %v2329_v63 = vld [vmem:[%s3174_s3 + $0x400] ss:$16 sps:$4 sm:$0xff]  }
  0x35   : > { %1512 = vmatpush2.bf16.msra.mxu0 %v2255_v45  ;;  %v2305_v45 = vld [vmem:[%s3174_s3 + $0x480] ss:$16 sps:$4 sm:$0xff]   ;;  %v2332_v0 = vld [vmem:[%s3174_s3 + $0x8] ss:$16 sps:$4 sm:$0xff]   ;;  %v2343_v5 = vld [vmem:[%s3174_s3 + $0x5c4] ss:$16 sps:$4 sm:$0xff]  }
  0x36   : > { %1553 = vmatpush2.bf16.msra.mxu1 %v2256_v46  ;;  %1513 = vmatprep.subr.bf16.mxu0 %v2257_v47  ;;  %v328_v24 = vld [vmem:[#allocation2 + $0x10] sm:$0xff]  ;;  %v327_v25 = vld [vmem:[#allocation2 + $0x28] sm:$0xff] }
  0x37   : > { %1554 = vmatprep.subr.bf16.mxu1 %v2259_v50  ;;  %v334_v27 = vpack.c.bf16 %v328_v24, %v328_v24  ;;  %v2754_v29 = vpack.c.bf16 %v327_v25, %v327_v25  ;;  %v2308_v46 = vld [vmem:[%s3174_s3 + $0x88] ss:$16 sps:$4 sm:$0xff]   ;;  %v2313_v47 = vld [vmem:[%s3174_s3 + $0x464] ss:$16 sps:$4 sm:$0xff]   ;;  %v2341_v7 = vld [vmem:[%s3174_s3 + $0x5c0] ss:$16 sps:$4 sm:$0xff]  }
  0x38   : > { %v2314_v50 = vld [vmem:[%s3174_s3 + $0x68] ss:$16 sps:$4 sm:$0xff]   ;;  %v332_v58 = vld [vmem:[#allocation2 + $0x20] sm:$0xff] }
  0x39   : > { %1514 = vmatpush2.bf16.msra.mxu0 %v2261_v51  ;;  %1523 = vmatprep.mubr.bf16.mxu0 %v334_v27  ;;  %v2319_v51 = vld [vmem:[%s3174_s3 + $0x444] ss:$16 sps:$4 sm:$0xff]   ;;  %v2838_v60 = vpack.c.bf16 %v332_v58, %v332_v58  ;;  %v2338_v4 = vld [vmem:[%s3174_s3 + $0x1e8] ss:$16 sps:$4 sm:$0xff]   ;;  %v2347_v11 = vld [vmem:[%s3174_s3 + $0x5a0] ss:$16 sps:$4 sm:$0xff]  }
  0x3a   : > { %1555 = vmatpush2.bf16.msra.mxu1 %v2262_v52  ;;  %1515 = vmatprep.subr.bf16.mxu0 %v2263_v57  ;;  %v2322_v52 = vld [vmem:[%s3174_s3 + $0x4c] ss:$16 sps:$4 sm:$0xff]   ;;  %v2323_v57 = vld [vmem:[%s3174_s3 + $0x420] ss:$16 sps:$4 sm:$0xff]   ;;  %v2344_v8 = vld [vmem:[%s3174_s3 + $0x1c8] ss:$16 sps:$4 sm:$0xff]  }
  0x3b   : > { %1556 = vmatprep.subr.bf16.mxu1 %v2265_v61  ;;  %v2331_v61 = vld [vmem:[%s3174_s3 + $0x404] ss:$16 sps:$4 sm:$0xff]   ;;  %v2350_v13 = vld [vmem:[%s3174_s3 + $0x1a8] ss:$16 sps:$4 sm:$0xff]   ;;  %v2353_v16 = vld [vmem:[%s3174_s3 + $0x580] ss:$16 sps:$4 sm:$0xff]  }
  0x3c   : > { %v2356_v17 = vld [vmem:[%s3174_s3 + $0x188] ss:$16 sps:$4 sm:$0xff]   ;;  %v2365_v24 = vld [vmem:[%s3174_s3 + $0x540] ss:$16 sps:$4 sm:$0xff]   ;;  %v2415_v58 = vld [vmem:[%s3174_s3 + $0x24c] ss:$16 sps:$4 sm:$0xff]  }
  0x3d   : > { %1516 = vmatpush2.bf16.msra.mxu0 %v2267_v1  ;;  %v2337_v1 = vld [vmem:[%s3174_s3 + $0x5e4] ss:$16 sps:$4 sm:$0xff]   ;;  %v2368_v25 = vld [vmem:[%s3174_s3 + $0x148] ss:$16 sps:$4 sm:$0xff]  }
  0x3e   : > { %1557 = vmatpush2.bf16.msra.mxu1 %v2268_v2  ;;  %1517 = vmatprep.subr.bf16.mxu0 %v2269_v3  ;;  %v2340_v2 = vld [vmem:[%s3174_s3 + $0x1ec] ss:$16 sps:$4 sm:$0xff]   ;;  %v2335_v3 = vld [vmem:[%s3174_s3 + $0x5e0] ss:$16 sps:$4 sm:$0xff]  }
  0x3f   : > { %1558 = vmatprep.subr.bf16.mxu1 %v2271_v6  ;;  %v2346_v6 = vld [vmem:[%s3174_s3 + $0x1cc] ss:$16 sps:$4 sm:$0xff]  }
  0x41   : > { %1518 = vmatpush2.bf16.msra.mxu0 %v2273_v9  ;;  %v2349_v9 = vld [vmem:[%s3174_s3 + $0x5a4] ss:$16 sps:$4 sm:$0xff]  }
  0x42   : > { %1559 = vmatpush2.bf16.msra.mxu1 %v2274_v10  ;;  %1519 = vmatprep.subr.bf16.mxu0 %v2275_v14  ;;  %v2352_v10 = vld [vmem:[%s3174_s3 + $0x1ac] ss:$16 sps:$4 sm:$0xff]   ;;  %v2355_v14 = vld [vmem:[%s3174_s3 + $0x584] ss:$16 sps:$4 sm:$0xff]  }
  0x43   : > { %1560 = vmatprep.subr.bf16.mxu1 %v2277_v15  ;;  %v2358_v15 = vld [vmem:[%s3174_s3 + $0x18c] ss:$16 sps:$4 sm:$0xff]  }
  0x45   : > { %1520 = vmatpush2.bf16.msra.mxu0 %v2279_v18  ;;  %v2361_v18 = vld [vmem:[%s3174_s3 + $0x564] ss:$16 sps:$4 sm:$0xff]  }
  0x46   : > { %1561 = vmatpush2.bf16.msra.mxu1 %v2280_v19  ;;  %1521 = vmatprep.subr.bf16.mxu0 %v2281_v20  ;;  %v2364_v19 = vld [vmem:[%s3174_s3 + $0x16c] ss:$16 sps:$4 sm:$0xff]   ;;  %v2359_v20 = vld [vmem:[%s3174_s3 + $0x560] ss:$16 sps:$4 sm:$0xff]  }
  0x47   : > { %1562 = vmatprep.subr.bf16.mxu1 %v2283_v21  ;;  %v2362_v21 = vld [vmem:[%s3174_s3 + $0x168] ss:$16 sps:$4 sm:$0xff]  }
  0x49   : > { %1522 = vmatpush2.bf16.msra.mxu0 %v2285_v22  ;;  %v2367_v22 = vld [vmem:[%s3174_s3 + $0x544] ss:$16 sps:$4 sm:$0xff]  }
  0x4a   : > { %1563 = vmatpush2.bf16.msra.mxu1 %v2286_v23  ;;  %1573 = vmatprep.subr.bf16.mxu0 %v2289_v26  ;;  %v2370_v23 = vld [vmem:[%s3174_s3 + $0x14c] ss:$16 sps:$4 sm:$0xff]   ;;  %v2373_v26 = vld [vmem:[%s3174_s3 + $0x524] ss:$16 sps:$4 sm:$0xff]  }
  0x4b   : > { %1614 = vmatprep.subr.bf16.mxu1 %v2292_v28  ;;  %v2371_v28 = vld [vmem:[%s3174_s3 + $0x520] ss:$16 sps:$4 sm:$0xff]  }
  0x4c   : > { %1524 = vmatmul.mubr.bf16.vlgmr.msra.gmra.mxu0 %v2754_v29 }
  0x4d   : > { %1565 = vmatmul.mubr.bf16.vlgmr.msra.gmra.mxu1 %v2756_v30  ;;  %1574 = vmatpush1.bf16.msra.mxu0 %v2287_v31  ;;  %v2374_v31 = vld [vmem:[%s3174_s3 + $0x128] ss:$16 sps:$4 sm:$0xff]  }
  0x4e   : > { %1615 = vmatpush1.bf16.msra.mxu1 %v2290_v32  ;;  %1575 = vmatprep.subr.bf16.mxu0 %v2295_v33  ;;  %v2379_v32 = vld [vmem:[%s3174_s3 + $0x504] ss:$16 sps:$4 sm:$0xff]   ;;  %v2382_v33 = vld [vmem:[%s3174_s3 + $0x10c] ss:$16 sps:$4 sm:$0xff]  }
  0x4f   : > { %1616 = vmatprep.subr.bf16.mxu1 %v2298_v34  ;;  %1646 = vmatprep.mubr.bf16.mxu1 %v334_v27  ;;  %v2376_v27 = vld [vmem:[%s3174_s3 + $0x12c] ss:$16 sps:$4 sm:$0xff]   ;;  %v2377_v34 = vld [vmem:[%s3174_s3 + $0x500] ss:$16 sps:$4 sm:$0xff]  }
  0x50   : > { %1605 = vmatprep.mubr.bf16.mxu0 %v2838_v60 }
  0x51   : > { %1576 = vmatpush1.bf16.msra.mxu0 %v2293_v35  ;;  %v2380_v35 = vld [vmem:[%s3174_s3 + $0x108] ss:$16 sps:$4 sm:$0xff]  }
  0x52   : > { %1617 = vmatpush1.bf16.msra.mxu1 %v2296_v36  ;;  %1577 = vmatprep.subr.bf16.mxu0 %v2301_v38  ;;  %v331_v36 = vld [vmem:[#allocation2 + $0x18] sm:$0xff] }
  0x53   : > { %1618 = vmatprep.subr.bf16.mxu1 %v2304_v39  ;;  %v2385_v38 = vld [vmem:[%s3174_s3 + $0x2ec] ss:$16 sps:$4 sm:$0xff]  }
  0x54   : > { %v2388_v39 = vld [vmem:[%s3174_s3 + $0x4ec] ss:$16 sps:$4 sm:$0xff]  }
  0x55   : > { %1578 = vmatpush1.bf16.msra.mxu0 %v2299_v40  ;;  %v2955_v40 = vpack.c.bf16 %v331_v36, %v331_v36  ;;  %v2470_v36 = vld [vmem:[%s3174_s3 + $0x528] ss:$16 sps:$4 sm:$0xff]  }
  0x56   : > { %1619 = vmatpush1.bf16.msra.mxu1 %v2302_v42  ;;  %1579 = vmatprep.subr.bf16.mxu0 %v2307_v43  ;;  %v2383_v42 = vld [vmem:[%s3174_s3 + $0x2e8] ss:$16 sps:$4 sm:$0xff]  }
  0x57   : > { %1620 = vmatprep.subr.bf16.mxu1 %v2310_v44  ;;  %v2386_v43 = vld [vmem:[%s3174_s3 + $0x4e8] ss:$16 sps:$4 sm:$0xff]   ;;  %v2391_v44 = vld [vmem:[%s3174_s3 + $0x2cc] ss:$16 sps:$4 sm:$0xff]  }
  0x59   : > { %1580 = vmatpush1.bf16.msra.mxu0 %v2305_v45  ;;  %v2394_v45 = vld [vmem:[%s3174_s3 + $0x4cc] ss:$16 sps:$4 sm:$0xff]  }
  0x5a   : > { %1621 = vmatpush1.bf16.msra.mxu1 %v2308_v46  ;;  %1581 = vmatprep.subr.bf16.mxu0 %v2313_v47  ;;  %v2389_v46 = vld [vmem:[%s3174_s3 + $0x2c8] ss:$16 sps:$4 sm:$0xff]  }
  0x5b   : > { %1622 = vmatprep.subr.bf16.mxu1 %v2316_v48  ;;  %v2392_v47 = vld [vmem:[%s3174_s3 + $0x4c8] ss:$16 sps:$4 sm:$0xff]   ;;  %v2397_v48 = vld [vmem:[%s3174_s3 + $0x2ac] ss:$16 sps:$4 sm:$0xff]  }
  0x5d   : > { %1582 = vmatpush1.bf16.msra.mxu0 %v2311_v49  ;;  %v2395_v49 = vld [vmem:[%s3174_s3 + $0x2a8] ss:$16 sps:$4 sm:$0xff]  }
  0x5e   : > { %1623 = vmatpush1.bf16.msra.mxu1 %v2314_v50  ;;  %1583 = vmatprep.subr.bf16.mxu0 %v2319_v51  ;;  %v2398_v50 = vld [vmem:[%s3174_s3 + $0x4a8] ss:$16 sps:$4 sm:$0xff]   ;;  %v2403_v51 = vld [vmem:[%s3174_s3 + $0x28c] ss:$16 sps:$4 sm:$0xff]  }
  0x5f   : > { %1624 = vmatprep.subr.bf16.mxu1 %v2322_v52  ;;  %v2401_v52 = vld [vmem:[%s3174_s3 + $0x288] ss:$16 sps:$4 sm:$0xff]  }
  0x61   : > { %1584 = vmatpush1.bf16.msra.mxu0 %v2317_v53  ;;  %v2404_v53 = vld [vmem:[%s3174_s3 + $0x488] ss:$16 sps:$4 sm:$0xff]  }
  0x62   : > { %1625 = vmatpush1.bf16.msra.mxu1 %v2320_v54  ;;  %1585 = vmatprep.subr.bf16.mxu0 %v2325_v55  ;;  %v2409_v54 = vld [vmem:[%s3174_s3 + $0x26c] ss:$16 sps:$4 sm:$0xff]  }
  0x63   : > { %1626 = vmatprep.subr.bf16.mxu1 %v2328_v56  ;;  %v2412_v55 = vld [vmem:[%s3174_s3 + $0x46c] ss:$16 sps:$4 sm:$0xff]   ;;  %v2407_v56 = vld [vmem:[%s3174_s3 + $0x268] ss:$16 sps:$4 sm:$0xff]  }
  0x65   : > { %1586 = vmatpush1.bf16.msra.mxu0 %v2323_v57  ;;  %v2410_v57 = vld [vmem:[%s3174_s3 + $0x468] ss:$16 sps:$4 sm:$0xff]  }
  0x66   : > { %1627 = vmatpush1.bf16.msra.mxu1 %v2326_v59  ;;  %1587 = vmatprep.subr.bf16.mxu0 %v2331_v61  ;;  %v2418_v59 = vld [vmem:[%s3174_s3 + $0x44c] ss:$16 sps:$4 sm:$0xff]   ;;  %v2416_v61 = vld [vmem:[%s3174_s3 + $0x448] ss:$16 sps:$4 sm:$0xff]  }
  0x67   : > { %1628 = vmatprep.subr.bf16.mxu1 %v2334_v62  ;;  %v2421_v62 = vld [vmem:[%s3174_s3 + $0x22c] ss:$16 sps:$4 sm:$0xff]  }
  0x69   : > { %1588 = vmatpush1.bf16.msra.mxu0 %v2329_v63  ;;  %v2424_v63 = vld [vmem:[%s3174_s3 + $0x42c] ss:$16 sps:$4 sm:$0xff]  }
  0x6a   : > { %1629 = vmatpush1.bf16.msra.mxu1 %v2332_v0  ;;  %1589 = vmatprep.subr.bf16.mxu0 %v2337_v1  ;;  %v2419_v0 = vld [vmem:[%s3174_s3 + $0x228] ss:$16 sps:$4 sm:$0xff]  }
  0x6b   : > { %1630 = vmatprep.subr.bf16.mxu1 %v2340_v2  ;;  %v2422_v1 = vld [vmem:[%s3174_s3 + $0x428] ss:$16 sps:$4 sm:$0xff]   ;;  %v2427_v2 = vld [vmem:[%s3174_s3 + $0x20c] ss:$16 sps:$4 sm:$0xff]  }
  0x6d   : > { %1590 = vmatpush2.bf16.msra.mxu0 %v2335_v3  ;;  %v2430_v3 = vld [vmem:[%s3174_s3 + $0x40c] ss:$16 sps:$4 sm:$0xff]  }
  0x6e   : > { %1631 = vmatpush2.bf16.msra.mxu1 %v2338_v4  ;;  %1591 = vmatprep.subr.bf16.mxu0 %v2343_v5  ;;  %v2425_v4 = vld [vmem:[%s3174_s3 + $0x208] ss:$16 sps:$4 sm:$0xff]  }
  0x6f   : > { %1632 = vmatprep.subr.bf16.mxu1 %v2346_v6  ;;  %v2428_v5 = vld [vmem:[%s3174_s3 + $0x408] ss:$16 sps:$4 sm:$0xff]   ;;  %v2433_v6 = vld [vmem:[%s3174_s3 + $0x3ec] ss:$16 sps:$4 sm:$0xff]  }
  0x71   : > { %1592 = vmatpush2.bf16.msra.mxu0 %v2341_v7  ;;  %v2436_v7 = vld [vmem:[%s3174_s3 + $0x5ec] ss:$16 sps:$4 sm:$0xff]  }
  0x72   : > { %1633 = vmatpush2.bf16.msra.mxu1 %v2344_v8  ;;  %1593 = vmatprep.subr.bf16.mxu0 %v2349_v9  ;;  %v2431_v8 = vld [vmem:[%s3174_s3 + $0x3e8] ss:$16 sps:$4 sm:$0xff]  }
  0x73   : > { %1634 = vmatprep.subr.bf16.mxu1 %v2352_v10  ;;  %v2434_v9 = vld [vmem:[%s3174_s3 + $0x5e8] ss:$16 sps:$4 sm:$0xff]   ;;  %v2439_v10 = vld [vmem:[%s3174_s3 + $0x3cc] ss:$16 sps:$4 sm:$0xff]  }
  0x75   : > { %1594 = vmatpush2.bf16.msra.mxu0 %v2347_v11  ;;  %v2442_v11 = vld [vmem:[%s3174_s3 + $0x5cc] ss:$16 sps:$4 sm:$0xff]  }
  0x76   : > { %1635 = vmatpush2.bf16.msra.mxu1 %v2350_v13  ;;  %1595 = vmatprep.subr.bf16.mxu0 %v2355_v14  ;;  %v2437_v13 = vld [vmem:[%s3174_s3 + $0x3c8] ss:$16 sps:$4 sm:$0xff]  }
  0x77   : > { %1636 = vmatprep.subr.bf16.mxu1 %v2358_v15  ;;  %v2440_v14 = vld [vmem:[%s3174_s3 + $0x5c8] ss:$16 sps:$4 sm:$0xff]   ;;  %v2445_v15 = vld [vmem:[%s3174_s3 + $0x3ac] ss:$16 sps:$4 sm:$0xff]  }
  0x79   : > { %1596 = vmatpush2.bf16.msra.mxu0 %v2353_v16  ;;  %v2448_v16 = vld [vmem:[%s3174_s3 + $0x5ac] ss:$16 sps:$4 sm:$0xff]  }
  0x7a   : > { %1637 = vmatpush2.bf16.msra.mxu1 %v2356_v17  ;;  %1597 = vmatprep.subr.bf16.mxu0 %v2361_v18  ;;  %v2443_v17 = vld [vmem:[%s3174_s3 + $0x3a8] ss:$16 sps:$4 sm:$0xff]  }
  0x7b   : > { %1638 = vmatprep.subr.bf16.mxu1 %v2364_v19  ;;  %v2446_v18 = vld [vmem:[%s3174_s3 + $0x5a8] ss:$16 sps:$4 sm:$0xff]   ;;  %v2451_v19 = vld [vmem:[%s3174_s3 + $0x38c] ss:$16 sps:$4 sm:$0xff]  }
  0x7d   : > { %1598 = vmatpush2.bf16.msra.mxu0 %v2359_v20  ;;  %v2454_v20 = vld [vmem:[%s3174_s3 + $0x58c] ss:$16 sps:$4 sm:$0xff]  }
  0x7e   : > { %1639 = vmatpush2.bf16.msra.mxu1 %v2362_v21  ;;  %1599 = vmatprep.subr.bf16.mxu0 %v2367_v22  ;;  %v2449_v21 = vld [vmem:[%s3174_s3 + $0x388] ss:$16 sps:$4 sm:$0xff]  }
  0x7f   : > { %1640 = vmatprep.subr.bf16.mxu1 %v2370_v23  ;;  %v2452_v22 = vld [vmem:[%s3174_s3 + $0x588] ss:$16 sps:$4 sm:$0xff]   ;;  %v2457_v23 = vld [vmem:[%s3174_s3 + $0x36c] ss:$16 sps:$4 sm:$0xff]  }
  0x81   : > { %1600 = vmatpush2.bf16.msra.mxu0 %v2365_v24  ;;  %v2460_v24 = vld [vmem:[%s3174_s3 + $0x56c] ss:$16 sps:$4 sm:$0xff]  }
  0x82   : > { %1641 = vmatpush2.bf16.msra.mxu1 %v2368_v25  ;;  %1601 = vmatprep.subr.bf16.mxu0 %v2373_v26  ;;  %v2455_v25 = vld [vmem:[%s3174_s3 + $0x368] ss:$16 sps:$4 sm:$0xff]  }
  0x83   : > { %1642 = vmatprep.subr.bf16.mxu1 %v2376_v27  ;;  %v2458_v26 = vld [vmem:[%s3174_s3 + $0x568] ss:$16 sps:$4 sm:$0xff]   ;;  %v2463_v27 = vld [vmem:[%s3174_s3 + $0x34c] ss:$16 sps:$4 sm:$0xff]  }
  0x85   : > { %1602 = vmatpush2.bf16.msra.mxu0 %v2371_v28  ;;  %v2466_v28 = vld [vmem:[%s3174_s3 + $0x54c] ss:$16 sps:$4 sm:$0xff]  }
  0x86   : > { %1643 = vmatpush2.bf16.msra.mxu1 %v2374_v31  ;;  %1603 = vmatprep.subr.bf16.mxu0 %v2379_v32  ;;  %v2461_v31 = vld [vmem:[%s3174_s3 + $0x348] ss:$16 sps:$4 sm:$0xff]  }
  0x87   : > { %1644 = vmatprep.subr.bf16.mxu1 %v2382_v33  ;;  %v2464_v32 = vld [vmem:[%s3174_s3 + $0x548] ss:$16 sps:$4 sm:$0xff]   ;;  %v2469_v33 = vld [vmem:[%s3174_s3 + $0x32c] ss:$16 sps:$4 sm:$0xff]  }
  0x89   : > { %1604 = vmatpush2.bf16.msra.mxu0 %v2377_v34  ;;  %v2472_v34 = vld [vmem:[%s3174_s3 + $0x52c] ss:$16 sps:$4 sm:$0xff]  }
  0x8a   : > { %1645 = vmatpush2.bf16.msra.mxu1 %v2380_v35  ;;  %1655 = vmatprep.subr.bf16.mxu0 %v2385_v38  ;;  %v2467_v35 = vld [vmem:[%s3174_s3 + $0x328] ss:$16 sps:$4 sm:$0xff]   ;;  %v2475_v38 = vld [vmem:[%s3174_s3 + $0x30c] ss:$16 sps:$4 sm:$0xff]  }
  0x8b   : > { %1696 = vmatprep.subr.bf16.mxu1 %v2388_v39  ;;  %v2478_v39 = vld [vmem:[%s3174_s3 + $0x50c] ss:$16 sps:$4 sm:$0xff]  }
  0x8c   : > { %1606 = vmatmul.mubr.bf16.vlgmr.msra.gmra.mxu0 %v2955_v40 }
  0x8d   : > { %1647 = vmatmul.mubr.bf16.vlgmr.msra.gmra.mxu1 %v2754_v29  ;;  %1656 = vmatpush1.bf16.msra.mxu0 %v2383_v42  ;;  %v2400_v29 = vld [vmem:[%s3174_s3 + $0x4ac] ss:$16 sps:$4 sm:$0xff]   ;;  %v2473_v42 = vld [vmem:[%s3174_s3 + $0x308] ss:$16 sps:$4 sm:$0xff]  }
  0x8e   : > { %1697 = vmatpush1.bf16.msra.mxu1 %v2386_v43  ;;  %1657 = vmatprep.subr.bf16.mxu0 %v2391_v44  ;;  %v2476_v43 = vld [vmem:[%s3174_s3 + $0x508] ss:$16 sps:$4 sm:$0xff]  }
  0x8f   : > { %1698 = vmatprep.subr.bf16.mxu1 %v2394_v45  ;;  %1687 = vmatprep.mubr.bf16.mxu0 %v2721_v12  ;;  %v2406_v12 = vld [vmem:[%s3174_s3 + $0x48c] ss:$16 sps:$4 sm:$0xff]  }
  0x90   : > { %1728 = vmatprep.mubr.bf16.mxu1 %v2838_v60  ;;  %v2413_v60 = vld [vmem:[%s3174_s3 + $0x248] ss:$16 sps:$4 sm:$0xff]  }
  0x91   : > { %1658 = vmatpush1.bf16.msra.mxu0 %v2389_v46 }
  0x92   : > { %1699 = vmatpush1.bf16.msra.mxu1 %v2392_v47  ;;  %1659 = vmatprep.subr.bf16.mxu0 %v2397_v48 }
  0x93   : > { %1700 = vmatprep.subr.bf16.mxu1 %v2400_v29 }
  0x95   : > { %1660 = vmatpush1.bf16.msra.mxu0 %v2395_v49 }
  0x96   : > { %1701 = vmatpush1.bf16.msra.mxu1 %v2398_v50  ;;  %1661 = vmatprep.subr.bf16.mxu0 %v2403_v51 }
  0x97   : > { %1702 = vmatprep.subr.bf16.mxu1 %v2406_v12 }
  0x99   : > { %1662 = vmatpush1.bf16.msra.mxu0 %v2401_v52 }
  0x9a   : > { %1703 = vmatpush1.bf16.msra.mxu1 %v2404_v53  ;;  %1663 = vmatprep.subr.bf16.mxu0 %v2409_v54 }
  0x9b   : > { %1704 = vmatprep.subr.bf16.mxu1 %v2412_v55 }
  0x9d   : > { %1664 = vmatpush1.bf16.msra.mxu0 %v2407_v56 }
  0x9e   : > { %1705 = vmatpush1.bf16.msra.mxu1 %v2410_v57  ;;  %1665 = vmatprep.subr.bf16.mxu0 %v2415_v58 }
  0x9f   : > { %1706 = vmatprep.subr.bf16.mxu1 %v2418_v59 }
  0xa1   : > { %1666 = vmatpush1.bf16.msra.mxu0 %v2413_v60 }
  0xa2   : > { %1707 = vmatpush1.bf16.msra.mxu1 %v2416_v61  ;;  %1667 = vmatprep.subr.bf16.mxu0 %v2421_v62 }
  0xa3   : > { %1708 = vmatprep.subr.bf16.mxu1 %v2424_v63 }
  0xa5   : > { %1668 = vmatpush1.bf16.msra.mxu0 %v2419_v0 }
  0xa6   : > { %1709 = vmatpush1.bf16.msra.mxu1 %v2422_v1  ;;  %1669 = vmatprep.subr.bf16.mxu0 %v2427_v2 }
  0xa7   : > { %1710 = vmatprep.subr.bf16.mxu1 %v2430_v3 }
  0xa9   : > { %1670 = vmatpush1.bf16.msra.mxu0 %v2425_v4 }
  0xaa   : > { %1711 = vmatpush1.bf16.msra.mxu1 %v2428_v5  ;;  %1671 = vmatprep.subr.bf16.mxu0 %v2433_v6 }
  0xab   : > { %1712 = vmatprep.subr.bf16.mxu1 %v2436_v7 }
  0xad   : > { %1672 = vmatpush2.bf16.msra.mxu0 %v2431_v8 }
  0xae   : > { %1713 = vmatpush2.bf16.msra.mxu1 %v2434_v9  ;;  %1673 = vmatprep.subr.bf16.mxu0 %v2439_v10 }
  0xaf   : > { %1714 = vmatprep.subr.bf16.mxu1 %v2442_v11 }
  0xb1   : > { %1674 = vmatpush2.bf16.msra.mxu0 %v2437_v13 }
  0xb2   : > { %1715 = vmatpush2.bf16.msra.mxu1 %v2440_v14  ;;  %1675 = vmatprep.subr.bf16.mxu0 %v2445_v15 }
  0xb3   : > { %1716 = vmatprep.subr.bf16.mxu1 %v2448_v16 }
  0xb5   : > { %1676 = vmatpush2.bf16.msra.mxu0 %v2443_v17 }
  0xb6   : > { %1717 = vmatpush2.bf16.msra.mxu1 %v2446_v18  ;;  %1677 = vmatprep.subr.bf16.mxu0 %v2451_v19 }
  0xb7   : > { %1718 = vmatprep.subr.bf16.mxu1 %v2454_v20 }
  0xb9   : > { %1678 = vmatpush2.bf16.msra.mxu0 %v2449_v21 }
  0xba   : > { %1719 = vmatpush2.bf16.msra.mxu1 %v2452_v22  ;;  %1679 = vmatprep.subr.bf16.mxu0 %v2457_v23 }
  0xbb   : > { %1720 = vmatprep.subr.bf16.mxu1 %v2460_v24 }
  0xbd   : > { %1680 = vmatpush2.bf16.msra.mxu0 %v2455_v25 }
  0xbe   : > { %1721 = vmatpush2.bf16.msra.mxu1 %v2458_v26  ;;  %1681 = vmatprep.subr.bf16.mxu0 %v2463_v27 }
  0xbf   : > { %1722 = vmatprep.subr.bf16.mxu1 %v2466_v28 }
  0xc1   : > { %1682 = vmatpush2.bf16.msra.mxu0 %v2461_v31 }
  0xc2   : > { %1723 = vmatpush2.bf16.msra.mxu1 %v2464_v32  ;;  %1683 = vmatprep.subr.bf16.mxu0 %v2469_v33 }
  0xc3   : > { %1724 = vmatprep.subr.bf16.mxu1 %v2472_v34 }
  0xc5   : > { %1684 = vmatpush2.bf16.msra.mxu0 %v2467_v35 }
  0xc6   : > { %1725 = vmatpush2.bf16.msra.mxu1 %v2470_v36  ;;  %1685 = vmatprep.subr.bf16.mxu0 %v2475_v38 }
  0xc7   : > { %1726 = vmatprep.subr.bf16.mxu1 %v2478_v39 }
  0xc9   : > { %1686 = vmatpush2.bf16.msra.mxu0 %v2473_v42 }
  0xca   : > { %1727 = vmatpush2.bf16.msra.mxu1 %v2476_v43 }
  0xcc   : > { %1688 = vmatmul.mubr.bf16.vlgmr.msra.gmra.mxu0 %v2756_v30 }
  0xcd   : > { %1729 = vmatmul.mubr.bf16.vlgmr.msra.gmra.mxu1 %v2955_v40 }
 0x10c   : > { %v1525_v44 = vpop.f32.mrf.mxu0 }
 0x10d   : > { %v1566_v45 = vpop.f32.mrf.mxu1 }
 0x10e   : > { %v1527_v46 = vpop.f32.mrf.mxu0  ;;  %v1567_v51 = vadd.f32 %v1566_v45, %v1525_v44 }
 0x10f   : > { %v1568_v47 = vpop.f32.mrf.mxu1 }
 0x110   : > { %v1529_v48 = vpop.f32.mrf.mxu0  ;;  %v1569_v40 = vadd.f32 %v1568_v47, %v1527_v46 }
 0x111   : > { %v1570_v29 = vpop.f32.mrf.mxu1  ;;  %v2488_v48 = vmov 1966171168  }
 0x112   : > { %v1530_v49 = vpop.f32.mrf.mxu0  ;;  %v1772_v29 = vunpack.c.l.s4 %v2488_v48 }
 0x113   : > { %v1571_v50 = vpop.f32.mrf.mxu1 }
 0x14c   : > { %v1607_v30 = vpop.f32.mrf.mxu0 }
 0x14d   : > { %v1648_v12 = vpop.f32.mrf.mxu1  ;;  %v1608_v52 = vadd.f32 %v1607_v30, %v1567_v51 }
 0x14e   : > { %v1609_v53 = vpop.f32.mrf.mxu0 }
 0x14f   : > { %v1650_v54 = vpop.f32.mrf.mxu1  ;;  %1737 = vst [vmem:[%s3153_s20] sm:$0xff] %v1608_v52  ;;  %v1741_v55 = vrot.slane %v1608_v52, 4  ;;  %v1799_v56 = vmul.f32 %v1608_v52, %v1608_v52  ;;  %v1610_v57 = vadd.f32 %v1609_v53, %v1569_v40 }
 0x150   : > { %v1611_v58 = vpop.f32.mrf.mxu0 }
 0x151   : > { %v1652_v59 = vpop.f32.mrf.mxu1  ;;  %v1742_v60 = vadd.f32 %v1741_v55, %v1608_v52  ;;  %v1803_v61 = vrot.slane %v1799_v56, 4  ;;  %1738 = vst [vmem:[%s3153_s20 + $0x8] sm:$0xff] %v1610_v57  ;;  %v1747_v62 = vrot.slane %v1610_v57, 4  ;;  %v1800_v63 = vmul.f32 %v1610_v57, %v1610_v57 }
 0x152   : > { %v1612_v0 = vpop.f32.mrf.mxu0 }
 0x153   : > { %v1653_v1 = vpop.f32.mrf.mxu1  ;;  %v1743_v2 = vrot.slane %v1742_v60, 2  ;;  %v1804_v3 = vadd.f32 %v1803_v61, %v1799_v56  ;;  %v1748_v4 = vadd.f32 %v1747_v62, %v1610_v57  ;;  %v1809_v5 = vrot.slane %v1800_v63, 4 }
 0x155   : > { %v1744_v6 = vadd.f32 %v1743_v2, %v1742_v60  ;;  %v1805_v7 = vrot.slane %v1804_v3, 2  ;;  %v1749_v8 = vrot.slane %v1748_v4, 2  ;;  %v1810_v9 = vadd.f32 %v1809_v5, %v1800_v63 }
 0x157   : > { %v1745_v10 = vrot.slane %v1744_v6, 1  ;;  %v1806_v11 = vadd.f32 %v1805_v7, %v1804_v3  ;;  %v1750_v13 = vadd.f32 %v1749_v8, %v1748_v4  ;;  %v1811_v14 = vrot.slane %v1810_v9, 2 }
 0x159   : > { %v1807_v15 = vrot.slane %v1806_v11, 1  ;;  %v1751_v16 = vrot.slane %v1750_v13, 1  ;;  %v1812_v17 = vadd.f32 %v1811_v14, %v1810_v9  ;;  %v1746_v18 = vadd.f32 %v1745_v10, %v1744_v6 }
 0x15b   : > { %v1752_v19 = vadd.f32 %v1751_v16, %v1750_v13  ;;  %v1813_v20 = vrot.slane %v1812_v17, 1  ;;  %v1808_v21 = vadd.f32 %v1807_v15, %v1806_v11 }
 0x15d   : > { %v1769_v22 = vcombine.low %v1746_v18, %v1752_v19  ;;  %v1814_v23 = vadd.f32 %v1813_v20, %v1812_v17 }
 0x15f   : > { %v1831_v24 = vcombine.low %v1808_v21, %v1814_v23 }
 0x18c   : > { %v1689_v25 = vpop.f32.mrf.mxu0 }
 0x18d   : > { %v1730_v26 = vpop.f32.mrf.mxu1  ;;  %v1690_v27 = vadd.f32 %v1689_v25, %v1648_v12 }
 0x18e   : > { %v1691_v28 = vpop.f32.mrf.mxu0 }
 0x18f   : > { %v1732_v31 = vpop.f32.mrf.mxu1  ;;  %v1731_v32 = vadd.f32 %v1730_v26, %v1690_v27  ;;  %v1692_v33 = vadd.f32 %v1691_v28, %v1650_v54  ;;  %v1773_v54 = vunpack.c.0.s8 %v1772_v29 }
 0x190   : > { %v1693_v34 = vpop.f32.mrf.mxu0 }
 0x191   : > { %v1734_v35 = vpop.f32.mrf.mxu1  ;;  %1739 = vst [vmem:[%s3153_s20 + $0x10] sm:$0xff] %v1731_v32  ;;  %v1753_v36 = vrot.slane %v1731_v32, 4  ;;  %v1801_v38 = vmul.f32 %v1731_v32, %v1731_v32  ;;  %v1733_v39 = vadd.f32 %v1732_v31, %v1692_v33  ;;  %v1776_v62 = vsub.s32 %v1773_v54, %v2656_v41 }
 0x192   : > { %v1694_v42 = vpop.f32.mrf.mxu0 }
 0x193   : > { %v1735_v43 = vpop.f32.mrf.mxu1  ;;  %v1754_v44 = vadd.f32 %v1753_v36, %v1731_v32  ;;  %v1815_v45 = vrot.slane %v1801_v38, 4  ;;  %1740 = vst [vmem:[%s3153_s20 + $0x18] sm:$0xff] %v1733_v39  ;;  %v1759_v46 = vrot.slane %v1733_v39, 4  ;;  %v1802_v47 = vmul.f32 %v1733_v39, %v1733_v39 }
 0x194   : > { %v1777_v5 = vrot.slane %v1769_v22, %v1776_v62  ;;  %v1839_v8 = vrot.slane %v1831_v24, %v1776_v62 }
 0x195   : > { %v1755_v49 = vrot.slane %v1754_v44, 2  ;;  %v1816_v50 = vadd.f32 %v1815_v45, %v1801_v38  ;;  %v1760_v51 = vadd.f32 %v1759_v46, %v1733_v39  ;;  %v1821_v30 = vrot.slane %v1802_v47, 4 }
 0x197   : > { %v1756_v12 = vadd.f32 %v1755_v49, %v1754_v44  ;;  %v1817_v40 = vrot.slane %v1816_v50, 2  ;;  %v1761_v52 = vrot.slane %v1760_v51, 2  ;;  %v1822_v53 = vadd.f32 %v1821_v30, %v1802_v47 }
 0x199   : > { %v1757_v55 = vrot.slane %v1756_v12, 1  ;;  %v1818_v56 = vadd.f32 %v1817_v40, %v1816_v50  ;;  %v1762_v57 = vadd.f32 %v1761_v52, %v1760_v51  ;;  %v1823_v58 = vrot.slane %v1822_v53, 2 }
 0x19b   : > { %v1819_v59 = vrot.slane %v1818_v56, 1  ;;  %v1763_v60 = vrot.slane %v1762_v57, 1  ;;  %v1824_v61 = vadd.f32 %v1823_v58, %v1822_v53  ;;  %v1758_v63 = vadd.f32 %v1757_v55, %v1756_v12 }
 0x19d   : > { %v1764_v0 = vadd.f32 %v1763_v60, %v1762_v57  ;;  %v1825_v1 = vrot.slane %v1824_v61, 1  ;;  %v1820_v2 = vadd.f32 %v1819_v59, %v1818_v56 }
 0x19f   : > { %v1770_v3 = vcombine.low %v1758_v63, %v1764_v0  ;;  %v1826_v4 = vadd.f32 %v1825_v1, %v1824_v61 }
 0x1a1   : > { %v1784_v6 = vrot.slane %v1770_v3, %v1776_v62  ;;  %v1832_v7 = vcombine.low %v1820_v2, %v1826_v4 }
 0x1a3   : > { %v1785_v9 = vcombine.low %v1777_v5, %v1784_v6  ;;  %v1846_v10 = vrot.slane %v1832_v7, %v1776_v62 }
 0x1a5   : > { %v1792_v41 = vrot.slane %v1785_v9, %v1776_v62  ;;  %v1847_v11 = vcombine.low %v1839_v8, %v1846_v10 }
 0x1a7   : > { %1798 = vst.msk [vmem:[%s268_s26] sm:$0xf] %vm1796_vm0, %v1792_v41  ;;  %v1854_v13 = vrot.slane %v1847_v11, %v1776_v62 }
 0x1a9   : > { %1856 = vst.msk [vmem:[%s272_s29] sm:$0xf] %vm1796_vm0, %v1854_v13 }
 0x1aa PF: > { %s17_s21 = sadd.s32 1, %s2485_s21  }
 0x1ab   : > { %p14_p4 = scmp.ge.s32.totalorder %s17_s21, 4  }
 0x1ad   :  { %16 = sbr.rel (!%p14_p4) target bundleno = 1 (0x1), region = 90 }

// kernel: decoder_forward.7
= control target key start
LH: loop header
LB: loop body
LE: loop exit
PB: predicated region body
PF: predicated region fallthrough
CT: control target
= control target key end

     0   :  { %12 = vsyncpa [#allocation4], 0  ;;  %s2609_s21 = smov 0   ;;  %s2710_s0 = inlined_call_operand.vmem [shape: f32[2,4,256], index: 0, kind: input, shape index: {}]   ;;  %s2711_s1 = inlined_call_operand.vmem [shape: f32[1,256], index: 1, kind: input, shape index: {}]   ;;  %s2712_s2 = inlined_call_operand.vmem [shape: f32[1,256], index: 2, kind: input, shape index: {}]   ;;  %s2713_s3 = inlined_call_operand.hbm [shape: bf16[768,512], index: 3, kind: input, shape index: {}]   ;;  %s2714_s4 = inlined_call_operand.vmem [shape: f32[2,4,512], index: 4, kind: output, shape index: {0}]   ;;  %s2715_s5 = inlined_call_operand.vmem [shape: f32[2,1,512], index: 5, kind: output, shape index: {1}]   ;;  %s2716_s6 = inlined_call_operand.vmem [shape: f32[2,1,512], index: 6, kind: output, shape index: {2}]  }
   0x1 LB: > { %s2615_s22 = sadd.s32 4294967295, %s2567_s21   ;;  %p2010_p0 = scmp.ge.s32.totalorder %s2567_s21, 1  ;;  %s2567_s21 = sphi %s2609_s21, %s18_s21  }
   0x2   : > { %p190_p1 = scmp.lt.s32.totalorder %s2567_s21, 3  ;;  %s2569_s23 = smov [#allocation3]  }
   0x3   : > { %s208_s24 = sshll.u32 %s2569_s23, 4  ;;  %p2226_p3 = scmp.eq.s32.totalorder %s2615_s22, 0  ;;  %s209_s24 = int_to_ptr.vmem [resolvable:$true] %s208_s24 }
   0x4   : > { %p2619_p2 = pnand %p2010_p0, %p190_p1  ;;  %s2542_s26 = scalar_lea.vmem %s209_s24, 24576 }
   0x5   : > { %p2543_p7 = scmp.ne.s32.totalorder %s209_s24, %s2542_s26  ;;  %p2550_p10 = scmp.lt.s32.totalorder %s209_s24, %s209_s24 }
   0x6   : > { %p2222_p4 = pneg %p2619_p2  ;;  %p2551_p11 = scmp.lt.s32.totalorder %s2542_s26, %s2542_s26 }
   0x8   : > { %p2223_p5 = pnand %p2226_p3, %p2222_p4  ;;  %p2552_p12 = por %p2551_p11, %p2550_p10 }
   0xa   : > { %p2533_p6 = pneg %p2223_p5 }
   0xc   : > { %p2545_p8 = pnand %p2543_p7, %p2533_p6 }
   0xe   : > { %p2546_p9 = pneg %p2545_p8 }
  0x10   : > { %p2553_p13 = pnand %p2552_p12, %p2546_p9 }
  0x12   : > { %2556 = shalt.err (!%p2553_p13)
}
  0x13   : > { %s2570_s27 = smov 256   ;;  %s2571_s28 = smov 16  }
  0x14   : > { %2225 = dma.hbm_to_vmem [thread:$0]  (!%p2223_p5), %s2713_s3, 24576, %s209_s24, [#allocation4], %s2570_s27, %s2570_s27, %s2571_s28  }
  0x15   : > { %232 = sbr.rel (%p2619_p2) target bundleno = 443 (0x1bb), region = 36 }
  0x1a   : > { %2562 = dma.done.wait (%p2226_p3), [#allocation4], 24576  }
  0x1b   : > { %2564 = vsyncadd (%p2226_p3), [#allocation4], 4294942720  ;;  %v2572_v0 = vmov 0.0   ;;  %v2241_v1 = vld [vmem:[#allocation3 + $0xe4] ss:$16 sps:$4 sm:$0xff]   ;;  %p270_p0 = scmp.lt.s32.totalorder %s2615_s22, 1  ;;  %v291_v38 = vlaneseq }
  0x1c   : > { %316 = vst [vmem:[#allocation2 + $0x10] sm:$0xff] %v2572_v0  ;;  %318 = vst [vmem:[#allocation2 + $0x8] sm:$0xff] %v2572_v0  ;;  %v2243_v2 = vld [vmem:[#allocation3 + $0x2e4] ss:$16 sps:$4 sm:$0xff]   ;;  %1498 = vmatprep.subr.bf16.mxu0 %v2241_v1  ;;  %v2245_v3 = vld [vmem:[#allocation3 + $0xe0] ss:$16 sps:$4 sm:$0xff]  }
  0x1d   : > { %v2246_v4 = vld [vmem:[#allocation3 + $0x2e0] ss:$16 sps:$4 sm:$0xff]   ;;  %1539 = vmatprep.subr.bf16.mxu1 %v2243_v2  ;;  %v2247_v5 = vld [vmem:[#allocation3 + $0xc4] ss:$16 sps:$4 sm:$0xff]   ;;  %1499 = vmatpush1.bf16.msra.mxu0 %v2245_v3  ;;  %s2719_s22 = smov (!%p270_p0, %s2615_s22), 1  ;;  %v2642_v43 = vshrl.u32 %v291_v38, 7 }
  0x1e   : > { %1540 = vmatpush1.bf16.msra.mxu1 %v2246_v4  ;;  %v2249_v6 = vld [vmem:[#allocation3 + $0x2c4] ss:$16 sps:$4 sm:$0xff]   ;;  %v2251_v7 = vld [vmem:[#allocation3 + $0xc0] ss:$16 sps:$4 sm:$0xff]   ;;  %1500 = vmatprep.subr.bf16.mxu0 %v2247_v5  ;;  %s2216_s7 = sshll.u32 %s2719_s22, 3  ;;  %vm1754_vm0 = vcmask 1043456  }
  0x1f   : > { %v2252_v8 = vld [vmem:[#allocation3 + $0x2c0] ss:$16 sps:$4 sm:$0xff]   ;;  %1541 = vmatprep.subr.bf16.mxu1 %v2249_v6  ;;  %v2253_v9 = vld [vmem:[#allocation3 + $0xa4] ss:$16 sps:$4 sm:$0xff]   ;;  %v293_v48 = vsub.s32 0, %v2642_v43  ;;  %v297_v49 = vsub.s32 1, %v2642_v43  ;;  %s274_s10 = scalar_lea.vmem %s2710_s0, %s2216_s7 }
  0x20   : > { %v2255_v10 = vld [vmem:[#allocation3 + $0x2a4] ss:$16 sps:$4 sm:$0xff]   ;;  %v2257_v11 = vld [vmem:[#allocation3 + $0xa0] ss:$16 sps:$4 sm:$0xff]   ;;  %v289_v53 = vld [vmem:[%s2711_s1] sm:$0x3] }
  0x21   : > { %v2258_v12 = vld [vmem:[#allocation3 + $0x2a0] ss:$16 sps:$4 sm:$0xff]   ;;  %1501 = vmatpush1.bf16.msra.mxu0 %v2251_v7  ;;  %v2259_v13 = vld [vmem:[#allocation3 + $0x84] ss:$16 sps:$4 sm:$0xff]   ;;  %v302_v54 = vld [vmem:[%s2712_s2] sm:$0x3]  ;;  %v294_v57 = vrot.slane %v289_v53, %v293_v48  ;;  %v298_v58 = vrot.slane %v289_v53, %v297_v49 }
  0x22   : > { %1542 = vmatpush1.bf16.msra.mxu1 %v2252_v8  ;;  %1502 = vmatprep.subr.bf16.mxu0 %v2253_v9  ;;  %v2261_v14 = vld [vmem:[#allocation3 + $0x284] ss:$16 sps:$4 sm:$0xff]   ;;  %v2263_v15 = vld [vmem:[#allocation3 + $0x80] ss:$16 sps:$4 sm:$0xff]   ;;  %v307_v59 = vrot.slane %v302_v54, %v293_v48  ;;  %v288_v60 = vld [vmem:[%s274_s10] sm:$0xff]  ;;  %v311_v61 = vrot.slane %v302_v54, %v297_v49  ;;  %s2217_s15 = sshll.u32 %s2719_s22, 4 }
  0x23   : > { %1543 = vmatprep.subr.bf16.mxu1 %v2255_v10  ;;  %v2264_v16 = vld [vmem:[#allocation3 + $0x280] ss:$16 sps:$4 sm:$0xff]   ;;  %v2265_v17 = vld [vmem:[#allocation3 + $0x64] ss:$16 sps:$4 sm:$0xff]   ;;  %v299_v62 = vcombine.low %v294_v57, %v298_v58  ;;  %v2385_v57 = vld [vmem:[#allocation3 + $0xc] ss:$16 sps:$4 sm:$0xff]   ;;  %s2687_s18 = scalar_lea.vmem %s2714_s4, %s2217_s15 }
  0x24   : > { %v2267_v18 = vld [vmem:[#allocation3 + $0x264] ss:$16 sps:$4 sm:$0xff]   ;;  %v2269_v19 = vld [vmem:[#allocation3 + $0x60] ss:$16 sps:$4 sm:$0xff]   ;;  %v312_v0 = vcombine.low %v307_v59, %v311_v61  ;;  %v2383_v61 = vld [vmem:[#allocation3 + $0x8] ss:$16 sps:$4 sm:$0xff]  }
  0x25   : > { %1503 = vmatpush1.bf16.msra.mxu0 %v2257_v11  ;;  %v2270_v20 = vld [vmem:[#allocation3 + $0x260] ss:$16 sps:$4 sm:$0xff]   ;;  %v2271_v21 = vld [vmem:[#allocation3 + $0x44] ss:$16 sps:$4 sm:$0xff]   ;;  %v301_v3 = vmul.f32 %v299_v62, %v288_v60  ;;  %v2391_v62 = vld [vmem:[#allocation3 + $0x1ec] ss:$16 sps:$4 sm:$0xff]  }
  0x26   : > { %1544 = vmatpush1.bf16.msra.mxu1 %v2258_v12  ;;  %1504 = vmatprep.subr.bf16.mxu0 %v2259_v13  ;;  %v2273_v22 = vld [vmem:[#allocation3 + $0x244] ss:$16 sps:$4 sm:$0xff]   ;;  %v2275_v23 = vld [vmem:[#allocation3 + $0x40] ss:$16 sps:$4 sm:$0xff]   ;;  %s2019_s19 = sshll.u32 %s2719_s22, 2  ;;  %vm1814_vm1 = vcmp.lt.s32.totalorder %v291_v38, 512 }
  0x27   : > { %1545 = vmatprep.subr.bf16.mxu1 %v2261_v14  ;;  %v2276_v24 = vld [vmem:[#allocation3 + $0x240] ss:$16 sps:$4 sm:$0xff]   ;;  %v2277_v25 = vld [vmem:[#allocation3 + $0x24] ss:$16 sps:$4 sm:$0xff]   ;;  %v314_v5 = vadd.f32 %v312_v0, %v301_v3  ;;  %s283_s24 = scalar_lea.vmem %s2715_s5, %s2019_s19  ;;  %s287_s27 = scalar_lea.vmem %s2716_s6, %s2019_s19 }
  0x28   : > { %v2279_v26 = vld [vmem:[#allocation3 + $0x224] ss:$16 sps:$4 sm:$0xff]   ;;  %v2281_v27 = vld [vmem:[#allocation3 + $0x20] ss:$16 sps:$4 sm:$0xff]  }
  0x29   : > { %1505 = vmatpush1.bf16.msra.mxu0 %v2263_v15  ;;  %v2282_v28 = vld [vmem:[#allocation3 + $0x220] ss:$16 sps:$4 sm:$0xff]   ;;  %v2283_v29 = vld [vmem:[#allocation3 + $0x4] ss:$16 sps:$4 sm:$0xff]   ;;  %v315_v9 = vmax.f32 %v314_v5, 0.0 }
  0x2a   : > { %1546 = vmatpush1.bf16.msra.mxu1 %v2264_v16  ;;  %1506 = vmatprep.subr.bf16.mxu0 %v2265_v17  ;;  %v2285_v30 = vld [vmem:[#allocation3 + $0x204] ss:$16 sps:$4 sm:$0xff]   ;;  %v2287_v31 = vld [vmem:[#allocation3] ss:$16 sps:$4 sm:$0xff]   ;;  %v2395_v5 = vld [vmem:[#allocation3 + $0x1c8] ss:$16 sps:$4 sm:$0xff]  }
  0x2b   : > { %1547 = vmatprep.subr.bf16.mxu1 %v2267_v18  ;;  %v2288_v32 = vld [vmem:[#allocation3 + $0x200] ss:$16 sps:$4 sm:$0xff]   ;;  %v2289_v33 = vld [vmem:[#allocation3 + $0x1e4] ss:$16 sps:$4 sm:$0xff]   ;;  %v321_v11 = vrot.slane %v315_v9, 7  ;;  %v335_v12 = vcombine.high %v315_v9, %v315_v9  ;;  %v2021_v13 = vrot.slane %v315_v9, 9 }
  0x2c   : > { %v2291_v34 = vld [vmem:[#allocation3 + $0x3e4] ss:$16 sps:$4 sm:$0xff]   ;;  %v2293_v35 = vld [vmem:[#allocation3 + $0x1e0] ss:$16 sps:$4 sm:$0xff]  }
  0x2d   : > { %1507 = vmatpush1.bf16.msra.mxu0 %v2269_v19  ;;  %v2294_v36 = vld [vmem:[#allocation3 + $0x3e0] ss:$16 sps:$4 sm:$0xff]   ;;  %v2295_v37 = vld [vmem:[#allocation3 + $0x1c4] ss:$16 sps:$4 sm:$0xff]   ;;  %323 = vst [vmem:[#allocation2 + $0x10] sm:$0xee] %v321_v11  ;;  %v2656_v17 = vpack.c.bf16 %v335_v12, %v335_v12 }
  0x2e   : > { %1548 = vmatpush1.bf16.msra.mxu1 %v2270_v20  ;;  %1508 = vmatprep.subr.bf16.mxu0 %v2271_v21  ;;  %v2297_v39 = vld [vmem:[#allocation3 + $0x3c4] ss:$16 sps:$4 sm:$0xff]   ;;  %v2299_v40 = vld [vmem:[#allocation3 + $0x1c0] ss:$16 sps:$4 sm:$0xff]   ;;  %327 = vst [vmem:[#allocation2 + $0x8] sm:$0x77] %v2021_v13 }
  0x2f   : > { %1549 = vmatprep.subr.bf16.mxu1 %v2273_v22  ;;  %v2300_v41 = vld [vmem:[#allocation3 + $0x3c0] ss:$16 sps:$4 sm:$0xff]   ;;  %v2301_v42 = vld [vmem:[#allocation3 + $0x1a4] ss:$16 sps:$4 sm:$0xff]   ;;  %1571 = vmatprep.mubr.bf16.mxu1 %v2656_v17  ;;  %v2343_v22 = vld [vmem:[#allocation3 + $0xec] ss:$16 sps:$4 sm:$0xff]  }
  0x30   : > { %v2303_v44 = vld [vmem:[#allocation3 + $0x3a4] ss:$16 sps:$4 sm:$0xff]   ;;  %v2305_v45 = vld [vmem:[#allocation3 + $0x1a0] ss:$16 sps:$4 sm:$0xff]   ;;  %v2407_v13 = vld [vmem:[#allocation3 + $0x188] ss:$16 sps:$4 sm:$0xff]  }
  0x31   : > { %1509 = vmatpush1.bf16.msra.mxu0 %v2275_v23  ;;  %v2306_v46 = vld [vmem:[#allocation3 + $0x3a0] ss:$16 sps:$4 sm:$0xff]   ;;  %v2307_v47 = vld [vmem:[#allocation3 + $0x184] ss:$16 sps:$4 sm:$0xff]  }
  0x32   : > { %1550 = vmatpush1.bf16.msra.mxu1 %v2276_v24  ;;  %1510 = vmatprep.subr.bf16.mxu0 %v2277_v25  ;;  %v2309_v50 = vld [vmem:[#allocation3 + $0x384] ss:$16 sps:$4 sm:$0xff]   ;;  %v2311_v51 = vld [vmem:[#allocation3 + $0x180] ss:$16 sps:$4 sm:$0xff]   ;;  %v2659_v24 = vpack.c.bf16 %v315_v9, %v315_v9  ;;  %v2401_v9 = vld [vmem:[#allocation3 + $0x1a8] ss:$16 sps:$4 sm:$0xff]  }
  0x33   : > { %1551 = vmatprep.subr.bf16.mxu1 %v2279_v26  ;;  %v2312_v52 = vld [vmem:[#allocation3 + $0x380] ss:$16 sps:$4 sm:$0xff]   ;;  %v2313_v55 = vld [vmem:[#allocation3 + $0x164] ss:$16 sps:$4 sm:$0xff]   ;;  %v2341_v26 = vld [vmem:[#allocation3 + $0xe8] ss:$16 sps:$4 sm:$0xff]  }
  0x34   : > { %v2315_v56 = vld [vmem:[#allocation3 + $0x364] ss:$16 sps:$4 sm:$0xff]   ;;  %v2317_v63 = vld [vmem:[#allocation3 + $0x160] ss:$16 sps:$4 sm:$0xff]   ;;  %v328_v23 = vld [vmem:[#allocation2 + $0x10] sm:$0xff] }
  0x35   : > { %1511 = vmatpush1.bf16.msra.mxu0 %v2281_v27  ;;  %v2318_v1 = vld [vmem:[#allocation3 + $0x360] ss:$16 sps:$4 sm:$0xff]   ;;  %v2319_v2 = vld [vmem:[#allocation3 + $0x144] ss:$16 sps:$4 sm:$0xff]   ;;  %v334_v25 = vcombine.high %v328_v23, %v328_v23  ;;  %v2661_v27 = vpack.c.bf16 %v328_v23, %v328_v23  ;;  %v2427_v23 = vld [vmem:[#allocation3 + $0x12c] ss:$16 sps:$4 sm:$0xff]  }
  0x36   : > { %1552 = vmatpush1.bf16.msra.mxu1 %v2282_v28  ;;  %1512 = vmatprep.subr.bf16.mxu0 %v2283_v29  ;;  %v2321_v4 = vld [vmem:[#allocation3 + $0x344] ss:$16 sps:$4 sm:$0xff]   ;;  %v2323_v6 = vld [vmem:[#allocation3 + $0x140] ss:$16 sps:$4 sm:$0xff]   ;;  %v2349_v28 = vld [vmem:[#allocation3 + $0xcc] ss:$16 sps:$4 sm:$0xff]  }
  0x37   : > { %1553 = vmatprep.subr.bf16.mxu1 %v2285_v30  ;;  %v2324_v7 = vld [vmem:[#allocation3 + $0x340] ss:$16 sps:$4 sm:$0xff]   ;;  %v2325_v8 = vld [vmem:[#allocation3 + $0x124] ss:$16 sps:$4 sm:$0xff]   ;;  %v341_v29 = vpack.c.bf16 %v334_v25, %v334_v25 }
  0x38   : > { %v2327_v10 = vld [vmem:[#allocation3 + $0x324] ss:$16 sps:$4 sm:$0xff]   ;;  %v2329_v14 = vld [vmem:[#allocation3 + $0x120] ss:$16 sps:$4 sm:$0xff]  }
  0x39   : > { %1513 = vmatpush1.bf16.msra.mxu0 %v2287_v31  ;;  %v2330_v15 = vld [vmem:[#allocation3 + $0x320] ss:$16 sps:$4 sm:$0xff]   ;;  %v2331_v16 = vld [vmem:[#allocation3 + $0x104] ss:$16 sps:$4 sm:$0xff]   ;;  %1530 = vmatprep.mubr.bf16.mxu0 %v341_v29 }
  0x3a   : > { %1554 = vmatpush1.bf16.msra.mxu1 %v2288_v32  ;;  %1514 = vmatprep.subr.bf16.mxu0 %v2289_v33  ;;  %v2333_v18 = vld [vmem:[#allocation3 + $0x304] ss:$16 sps:$4 sm:$0xff]   ;;  %v2335_v19 = vld [vmem:[#allocation3 + $0x100] ss:$16 sps:$4 sm:$0xff]   ;;  %v2347_v32 = vld [vmem:[#allocation3 + $0xc8] ss:$16 sps:$4 sm:$0xff]  }
  0x3b   : > { %1555 = vmatprep.subr.bf16.mxu1 %v2291_v34  ;;  %v2336_v20 = vld [vmem:[#allocation3 + $0x300] ss:$16 sps:$4 sm:$0xff]   ;;  %v2340_v21 = vld [vmem:[#allocation3 + $0x4e4] ss:$16 sps:$4 sm:$0xff]   ;;  %v2355_v33 = vld [vmem:[#allocation3 + $0xac] ss:$16 sps:$4 sm:$0xff]  }
  0x3c   : > { %v2338_v30 = vld [vmem:[#allocation3 + $0x4e0] ss:$16 sps:$4 sm:$0xff]   ;;  %v2346_v31 = vld [vmem:[#allocation3 + $0x4c4] ss:$16 sps:$4 sm:$0xff]  }
  0x3d   : > { %1515 = vmatpush2.bf16.msra.mxu0 %v2293_v35  ;;  %v2344_v34 = vld [vmem:[#allocation3 + $0x4c0] ss:$16 sps:$4 sm:$0xff]   ;;  %v2352_v35 = vld [vmem:[#allocation3 + $0x4a4] ss:$16 sps:$4 sm:$0xff]  }
  0x3e   : > { %1556 = vmatpush2.bf16.msra.mxu1 %v2294_v36  ;;  %1516 = vmatprep.subr.bf16.mxu0 %v2295_v37  ;;  %v2353_v36 = vld [vmem:[#allocation3 + $0xa8] ss:$16 sps:$4 sm:$0xff]   ;;  %v2361_v37 = vld [vmem:[#allocation3 + $0x8c] ss:$16 sps:$4 sm:$0xff]   ;;  %v2362_v48 = vld [vmem:[#allocation3 + $0x460] ss:$16 sps:$4 sm:$0xff]  }
  0x3f   : > { %1557 = vmatprep.subr.bf16.mxu1 %v2297_v39  ;;  %v2350_v39 = vld [vmem:[#allocation3 + $0x4a0] ss:$16 sps:$4 sm:$0xff]   ;;  %v2370_v49 = vld [vmem:[#allocation3 + $0x444] ss:$16 sps:$4 sm:$0xff]  }
  0x40   : > { %v2665_v53 = vld [vmem:[#allocation2 + $0x8] sm:$0xff] }
  0x41   : > { %1517 = vmatpush2.bf16.msra.mxu0 %v2299_v40  ;;  %v2358_v40 = vld [vmem:[#allocation3 + $0x484] ss:$16 sps:$4 sm:$0xff]   ;;  %v2374_v59 = vld [vmem:[#allocation3 + $0x420] ss:$16 sps:$4 sm:$0xff]  }
  0x42   : > { %1558 = vmatpush2.bf16.msra.mxu1 %v2300_v41  ;;  %1518 = vmatprep.subr.bf16.mxu0 %v2301_v42  ;;  %v2359_v41 = vld [vmem:[#allocation3 + $0x88] ss:$16 sps:$4 sm:$0xff]   ;;  %v2367_v42 = vld [vmem:[#allocation3 + $0x6c] ss:$16 sps:$4 sm:$0xff]   ;;  %v2376_v54 = vld [vmem:[#allocation3 + $0x424] ss:$16 sps:$4 sm:$0xff]  }
  0x43   : > { %1559 = vmatprep.subr.bf16.mxu1 %v2303_v44  ;;  %v2356_v44 = vld [vmem:[#allocation3 + $0x480] ss:$16 sps:$4 sm:$0xff]   ;;  %v2382_v60 = vld [vmem:[#allocation3 + $0x404] ss:$16 sps:$4 sm:$0xff]  }
  0x44   : > { %v2388_v0 = vld [vmem:[#allocation3 + $0x5e4] ss:$16 sps:$4 sm:$0xff]   ;;  %v2386_v3 = vld [vmem:[#allocation3 + $0x5e0] ss:$16 sps:$4 sm:$0xff]  }
  0x45   : > { %1519 = vmatpush2.bf16.msra.mxu0 %v2305_v45  ;;  %v2364_v45 = vld [vmem:[#allocation3 + $0x464] ss:$16 sps:$4 sm:$0xff]   ;;  %v2398_v11 = vld [vmem:[#allocation3 + $0x5a0] ss:$16 sps:$4 sm:$0xff]  }
  0x46   : > { %1560 = vmatpush2.bf16.msra.mxu1 %v2306_v46  ;;  %1520 = vmatprep.subr.bf16.mxu0 %v2307_v47  ;;  %v2365_v46 = vld [vmem:[#allocation3 + $0x68] ss:$16 sps:$4 sm:$0xff]   ;;  %v2373_v47 = vld [vmem:[#allocation3 + $0x4c] ss:$16 sps:$4 sm:$0xff]   ;;  %v2406_v12 = vld [vmem:[#allocation3 + $0x584] ss:$16 sps:$4 sm:$0xff]  }
  0x47   : > { %1561 = vmatprep.subr.bf16.mxu1 %v2309_v50  ;;  %v2371_v50 = vld [vmem:[#allocation3 + $0x48] ss:$16 sps:$4 sm:$0xff]   ;;  %v2416_v25 = vld [vmem:[#allocation3 + $0x540] ss:$16 sps:$4 sm:$0xff]  }
  0x49   : > { %1521 = vmatpush2.bf16.msra.mxu0 %v2311_v51  ;;  %v2379_v51 = vld [vmem:[#allocation3 + $0x2c] ss:$16 sps:$4 sm:$0xff]  }
  0x4a   : > { %1562 = vmatpush2.bf16.msra.mxu1 %v2312_v52  ;;  %1522 = vmatprep.subr.bf16.mxu0 %v2313_v55  ;;  %v2368_v52 = vld [vmem:[#allocation3 + $0x440] ss:$16 sps:$4 sm:$0xff]   ;;  %v336_v55 = vcombine.high %v2665_v53, %v2665_v53 }
  0x4b   : > { %1563 = vmatprep.subr.bf16.mxu1 %v2315_v56  ;;  %v2377_v56 = vld [vmem:[#allocation3 + $0x28] ss:$16 sps:$4 sm:$0xff]  }
  0x4c   : > { %v2669_v58 = vpack.c.bf16 %v336_v55, %v336_v55  ;;  %v2459_v55 = vld [vmem:[#allocation3 + $0x268] ss:$16 sps:$4 sm:$0xff]  }
  0x4d   : > { %1523 = vmatpush2.bf16.msra.mxu0 %v2317_v63  ;;  %v2380_v63 = vld [vmem:[#allocation3 + $0x400] ss:$16 sps:$4 sm:$0xff]  }
  0x4e   : > { %1564 = vmatpush2.bf16.msra.mxu1 %v2318_v1  ;;  %1524 = vmatprep.subr.bf16.mxu0 %v2319_v2  ;;  %v2389_v1 = vld [vmem:[#allocation3 + $0x1e8] ss:$16 sps:$4 sm:$0xff]   ;;  %v2397_v2 = vld [vmem:[#allocation3 + $0x1cc] ss:$16 sps:$4 sm:$0xff]  }
  0x4f   : > { %1565 = vmatprep.subr.bf16.mxu1 %v2321_v4  ;;  %v2394_v4 = vld [vmem:[#allocation3 + $0x5c4] ss:$16 sps:$4 sm:$0xff]  }
  0x51   : > { %1525 = vmatpush2.bf16.msra.mxu0 %v2323_v6  ;;  %v2403_v6 = vld [vmem:[#allocation3 + $0x1ac] ss:$16 sps:$4 sm:$0xff]  }
  0x52   : > { %1566 = vmatpush2.bf16.msra.mxu1 %v2324_v7  ;;  %1526 = vmatprep.subr.bf16.mxu0 %v2325_v8  ;;  %v2392_v7 = vld [vmem:[#allocation3 + $0x5c0] ss:$16 sps:$4 sm:$0xff]   ;;  %v2400_v8 = vld [vmem:[#allocation3 + $0x5a4] ss:$16 sps:$4 sm:$0xff]  }
  0x53   : > { %1567 = vmatprep.subr.bf16.mxu1 %v2327_v10  ;;  %v2409_v10 = vld [vmem:[#allocation3 + $0x18c] ss:$16 sps:$4 sm:$0xff]  }
  0x55   : > { %1527 = vmatpush2.bf16.msra.mxu0 %v2329_v14  ;;  %v2415_v14 = vld [vmem:[#allocation3 + $0x16c] ss:$16 sps:$4 sm:$0xff]  }
  0x56   : > { %1568 = vmatpush2.bf16.msra.mxu1 %v2330_v15  ;;  %1528 = vmatprep.subr.bf16.mxu0 %v2331_v16  ;;  %v2404_v15 = vld [vmem:[#allocation3 + $0x580] ss:$16 sps:$4 sm:$0xff]   ;;  %v2412_v16 = vld [vmem:[#allocation3 + $0x564] ss:$16 sps:$4 sm:$0xff]  }
  0x57   : > { %1569 = vmatprep.subr.bf16.mxu1 %v2333_v18  ;;  %v2413_v18 = vld [vmem:[#allocation3 + $0x168] ss:$16 sps:$4 sm:$0xff]  }
  0x59   : > { %1529 = vmatpush2.bf16.msra.mxu0 %v2335_v19  ;;  %v2421_v19 = vld [vmem:[#allocation3 + $0x14c] ss:$16 sps:$4 sm:$0xff]  }
  0x5a   : > { %1570 = vmatpush2.bf16.msra.mxu1 %v2336_v20  ;;  %1580 = vmatprep.subr.bf16.mxu0 %v2340_v21  ;;  %v2410_v20 = vld [vmem:[#allocation3 + $0x560] ss:$16 sps:$4 sm:$0xff]   ;;  %v2418_v21 = vld [vmem:[#allocation3 + $0x544] ss:$16 sps:$4 sm:$0xff]  }
  0x5b   : > { %1621 = vmatprep.subr.bf16.mxu1 %v2343_v22  ;;  %v2419_v22 = vld [vmem:[#allocation3 + $0x148] ss:$16 sps:$4 sm:$0xff]  }
  0x5c   : > { %1531 = vmatmul.mubr.bf16.vlgmr.msra.gmra.mxu0 %v2661_v27 }
  0x5d   : > { %1572 = vmatmul.mubr.bf16.vlgmr.msra.gmra.mxu1 %v2659_v24  ;;  %1581 = vmatpush1.bf16.msra.mxu0 %v2338_v30  ;;  %v2422_v30 = vld [vmem:[#allocation3 + $0x520] ss:$16 sps:$4 sm:$0xff]  }
  0x5e   : > { %1622 = vmatpush1.bf16.msra.mxu1 %v2341_v26  ;;  %1653 = vmatprep.mubr.bf16.mxu1 %v341_v29  ;;  %v2424_v26 = vld [vmem:[#allocation3 + $0x524] ss:$16 sps:$4 sm:$0xff]   ;;  %v2433_v29 = vld [vmem:[#allocation3 + $0x10c] ss:$16 sps:$4 sm:$0xff]  }
  0x5f   : > { %1623 = vmatprep.subr.bf16.mxu1 %v2349_v28  ;;  %1582 = vmatprep.subr.bf16.mxu0 %v2346_v31  ;;  %v2425_v28 = vld [vmem:[#allocation3 + $0x128] ss:$16 sps:$4 sm:$0xff]   ;;  %v2430_v31 = vld [vmem:[#allocation3 + $0x504] ss:$16 sps:$4 sm:$0xff]  }
  0x60   : > { %1612 = vmatprep.mubr.bf16.mxu0 %v2669_v58 }
  0x61   : > { %1583 = vmatpush1.bf16.msra.mxu0 %v2344_v34  ;;  %v2428_v34 = vld [vmem:[#allocation3 + $0x500] ss:$16 sps:$4 sm:$0xff]  }
  0x62   : > { %1624 = vmatpush1.bf16.msra.mxu1 %v2347_v32  ;;  %1584 = vmatprep.subr.bf16.mxu0 %v2352_v35  ;;  %v2431_v32 = vld [vmem:[#allocation3 + $0x108] ss:$16 sps:$4 sm:$0xff]   ;;  %v2437_v35 = vld [vmem:[#allocation3 + $0x2ec] ss:$16 sps:$4 sm:$0xff]  }
  0x63   : > { %1625 = vmatprep.subr.bf16.mxu1 %v2355_v33  ;;  %v2440_v33 = vld [vmem:[#allocation3 + $0x4ec] ss:$16 sps:$4 sm:$0xff]  }
  0x65   : > { %1585 = vmatpush1.bf16.msra.mxu0 %v2350_v39  ;;  %v2446_v39 = vld [vmem:[#allocation3 + $0x4cc] ss:$16 sps:$4 sm:$0xff]  }
  0x66   : > { %1626 = vmatpush1.bf16.msra.mxu1 %v2353_v36  ;;  %1586 = vmatprep.subr.bf16.mxu0 %v2358_v40  ;;  %v2438_v36 = vld [vmem:[#allocation3 + $0x4e8] ss:$16 sps:$4 sm:$0xff]  }
  0x67   : > { %1627 = vmatprep.subr.bf16.mxu1 %v2361_v37  ;;  %v2674_v37 = vpack.c.bf16 %v2665_v53, %v2665_v53  ;;  %v2435_v40 = vld [vmem:[#allocation3 + $0x2e8] ss:$16 sps:$4 sm:$0xff]   ;;  %v2461_v53 = vld [vmem:[#allocation3 + $0x26c] ss:$16 sps:$4 sm:$0xff]  }
  0x69   : > { %1587 = vmatpush1.bf16.msra.mxu0 %v2356_v44  ;;  %v2452_v44 = vld [vmem:[#allocation3 + $0x4ac] ss:$16 sps:$4 sm:$0xff]  }
  0x6a   : > { %1628 = vmatpush1.bf16.msra.mxu1 %v2359_v41  ;;  %1588 = vmatprep.subr.bf16.mxu0 %v2364_v45  ;;  %v2443_v41 = vld [vmem:[#allocation3 + $0x2cc] ss:$16 sps:$4 sm:$0xff]   ;;  %v2441_v45 = vld [vmem:[#allocation3 + $0x2c8] ss:$16 sps:$4 sm:$0xff]  }
  0x6b   : > { %1629 = vmatprep.subr.bf16.mxu1 %v2367_v42  ;;  %v2444_v42 = vld [vmem:[#allocation3 + $0x4c8] ss:$16 sps:$4 sm:$0xff]  }
  0x6d   : > { %1589 = vmatpush1.bf16.msra.mxu0 %v2362_v48  ;;  %v2447_v48 = vld [vmem:[#allocation3 + $0x2a8] ss:$16 sps:$4 sm:$0xff]  }
  0x6e   : > { %1630 = vmatpush1.bf16.msra.mxu1 %v2365_v46  ;;  %1590 = vmatprep.subr.bf16.mxu0 %v2370_v49  ;;  %v2449_v46 = vld [vmem:[#allocation3 + $0x2ac] ss:$16 sps:$4 sm:$0xff]  }
  0x6f   : > { %1631 = vmatprep.subr.bf16.mxu1 %v2373_v47  ;;  %v2450_v47 = vld [vmem:[#allocation3 + $0x4a8] ss:$16 sps:$4 sm:$0xff]   ;;  %v2455_v49 = vld [vmem:[#allocation3 + $0x28c] ss:$16 sps:$4 sm:$0xff]  }
  0x71   : > { %1591 = vmatpush1.bf16.msra.mxu0 %v2368_v52  ;;  %v2453_v52 = vld [vmem:[#allocation3 + $0x288] ss:$16 sps:$4 sm:$0xff]  }
  0x72   : > { %1632 = vmatpush1.bf16.msra.mxu1 %v2371_v50  ;;  %1592 = vmatprep.subr.bf16.mxu0 %v2376_v54  ;;  %v2456_v50 = vld [vmem:[#allocation3 + $0x488] ss:$16 sps:$4 sm:$0xff]   ;;  %v2470_v54 = vld [vmem:[#allocation3 + $0x44c] ss:$16 sps:$4 sm:$0xff]  }
  0x73   : > { %1633 = vmatprep.subr.bf16.mxu1 %v2379_v51  ;;  %v2464_v51 = vld [vmem:[#allocation3 + $0x46c] ss:$16 sps:$4 sm:$0xff]  }
  0x75   : > { %1593 = vmatpush1.bf16.msra.mxu0 %v2374_v59  ;;  %v2465_v59 = vld [vmem:[#allocation3 + $0x248] ss:$16 sps:$4 sm:$0xff]  }
  0x76   : > { %1634 = vmatpush1.bf16.msra.mxu1 %v2377_v56  ;;  %1594 = vmatprep.subr.bf16.mxu0 %v2382_v60  ;;  %v2467_v56 = vld [vmem:[#allocation3 + $0x24c] ss:$16 sps:$4 sm:$0xff]  }
  0x77   : > { %1635 = vmatprep.subr.bf16.mxu1 %v2385_v57  ;;  %v2468_v57 = vld [vmem:[#allocation3 + $0x448] ss:$16 sps:$4 sm:$0xff]   ;;  %v2473_v60 = vld [vmem:[#allocation3 + $0x22c] ss:$16 sps:$4 sm:$0xff]  }
  0x79   : > { %1595 = vmatpush1.bf16.msra.mxu0 %v2380_v63  ;;  %v2471_v63 = vld [vmem:[#allocation3 + $0x228] ss:$16 sps:$4 sm:$0xff]  }
  0x7a   : > { %1636 = vmatpush1.bf16.msra.mxu1 %v2383_v61  ;;  %1596 = vmatprep.subr.bf16.mxu0 %v2388_v0  ;;  %v2474_v61 = vld [vmem:[#allocation3 + $0x428] ss:$16 sps:$4 sm:$0xff]   ;;  %v2479_v0 = vld [vmem:[#allocation3 + $0x20c] ss:$16 sps:$4 sm:$0xff]  }
  0x7b   : > { %1637 = vmatprep.subr.bf16.mxu1 %v2391_v62  ;;  %v2482_v62 = vld [vmem:[#allocation3 + $0x40c] ss:$16 sps:$4 sm:$0xff]  }
  0x7d   : > { %1597 = vmatpush2.bf16.msra.mxu0 %v2386_v3  ;;  %v2477_v3 = vld [vmem:[#allocation3 + $0x208] ss:$16 sps:$4 sm:$0xff]  }
  0x7e   : > { %1638 = vmatpush2.bf16.msra.mxu1 %v2389_v1  ;;  %1598 = vmatprep.subr.bf16.mxu0 %v2394_v4  ;;  %v2480_v1 = vld [vmem:[#allocation3 + $0x408] ss:$16 sps:$4 sm:$0xff]   ;;  %v2485_v4 = vld [vmem:[#allocation3 + $0x3ec] ss:$16 sps:$4 sm:$0xff]  }
  0x7f   : > { %1639 = vmatprep.subr.bf16.mxu1 %v2397_v2  ;;  %v2488_v2 = vld [vmem:[#allocation3 + $0x5ec] ss:$16 sps:$4 sm:$0xff]  }
  0x81   : > { %1599 = vmatpush2.bf16.msra.mxu0 %v2392_v7  ;;  %v2483_v7 = vld [vmem:[#allocation3 + $0x3e8] ss:$16 sps:$4 sm:$0xff]  }
  0x82   : > { %1640 = vmatpush2.bf16.msra.mxu1 %v2395_v5  ;;  %1600 = vmatprep.subr.bf16.mxu0 %v2400_v8  ;;  %v2486_v5 = vld [vmem:[#allocation3 + $0x5e8] ss:$16 sps:$4 sm:$0xff]   ;;  %v2491_v8 = vld [vmem:[#allocation3 + $0x3cc] ss:$16 sps:$4 sm:$0xff]  }
  0x83   : > { %1641 = vmatprep.subr.bf16.mxu1 %v2403_v6  ;;  %v2494_v6 = vld [vmem:[#allocation3 + $0x5cc] ss:$16 sps:$4 sm:$0xff]  }
  0x85   : > { %1601 = vmatpush2.bf16.msra.mxu0 %v2398_v11  ;;  %v2489_v11 = vld [vmem:[#allocation3 + $0x3c8] ss:$16 sps:$4 sm:$0xff]  }
  0x86   : > { %1642 = vmatpush2.bf16.msra.mxu1 %v2401_v9  ;;  %1602 = vmatprep.subr.bf16.mxu0 %v2406_v12  ;;  %v2492_v9 = vld [vmem:[#allocation3 + $0x5c8] ss:$16 sps:$4 sm:$0xff]   ;;  %v2497_v12 = vld [vmem:[#allocation3 + $0x3ac] ss:$16 sps:$4 sm:$0xff]  }
  0x87   : > { %1643 = vmatprep.subr.bf16.mxu1 %v2409_v10  ;;  %v2500_v10 = vld [vmem:[#allocation3 + $0x5ac] ss:$16 sps:$4 sm:$0xff]  }
  0x89   : > { %1603 = vmatpush2.bf16.msra.mxu0 %v2404_v15  ;;  %v2495_v15 = vld [vmem:[#allocation3 + $0x3a8] ss:$16 sps:$4 sm:$0xff]  }
  0x8a   : > { %1644 = vmatpush2.bf16.msra.mxu1 %v2407_v13  ;;  %1604 = vmatprep.subr.bf16.mxu0 %v2412_v16  ;;  %v2498_v13 = vld [vmem:[#allocation3 + $0x5a8] ss:$16 sps:$4 sm:$0xff]   ;;  %v2503_v16 = vld [vmem:[#allocation3 + $0x38c] ss:$16 sps:$4 sm:$0xff]  }
  0x8b   : > { %1645 = vmatprep.subr.bf16.mxu1 %v2415_v14  ;;  %v2506_v14 = vld [vmem:[#allocation3 + $0x58c] ss:$16 sps:$4 sm:$0xff]  }
  0x8d   : > { %1605 = vmatpush2.bf16.msra.mxu0 %v2410_v20  ;;  %v2501_v20 = vld [vmem:[#allocation3 + $0x388] ss:$16 sps:$4 sm:$0xff]  }
  0x8e   : > { %1646 = vmatpush2.bf16.msra.mxu1 %v2413_v18  ;;  %1606 = vmatprep.subr.bf16.mxu0 %v2418_v21  ;;  %v2504_v18 = vld [vmem:[#allocation3 + $0x588] ss:$16 sps:$4 sm:$0xff]   ;;  %v2509_v21 = vld [vmem:[#allocation3 + $0x36c] ss:$16 sps:$4 sm:$0xff]  }
  0x8f   : > { %1647 = vmatprep.subr.bf16.mxu1 %v2421_v19  ;;  %v2512_v19 = vld [vmem:[#allocation3 + $0x56c] ss:$16 sps:$4 sm:$0xff]  }
  0x91   : > { %1607 = vmatpush2.bf16.msra.mxu0 %v2416_v25  ;;  %v2507_v25 = vld [vmem:[#allocation3 + $0x368] ss:$16 sps:$4 sm:$0xff]  }
  0x92   : > { %1648 = vmatpush2.bf16.msra.mxu1 %v2419_v22  ;;  %1608 = vmatprep.subr.bf16.mxu0 %v2424_v26  ;;  %v2510_v22 = vld [vmem:[#allocation3 + $0x568] ss:$16 sps:$4 sm:$0xff]   ;;  %v2515_v26 = vld [vmem:[#allocation3 + $0x34c] ss:$16 sps:$4 sm:$0xff]  }
  0x93   : > { %1649 = vmatprep.subr.bf16.mxu1 %v2427_v23  ;;  %v2518_v23 = vld [vmem:[#allocation3 + $0x54c] ss:$16 sps:$4 sm:$0xff]  }
  0x95   : > { %1609 = vmatpush2.bf16.msra.mxu0 %v2422_v30  ;;  %v2513_v30 = vld [vmem:[#allocation3 + $0x348] ss:$16 sps:$4 sm:$0xff]  }
  0x96   : > { %1650 = vmatpush2.bf16.msra.mxu1 %v2425_v28  ;;  %1610 = vmatprep.subr.bf16.mxu0 %v2430_v31  ;;  %v2516_v28 = vld [vmem:[#allocation3 + $0x548] ss:$16 sps:$4 sm:$0xff]   ;;  %v2521_v31 = vld [vmem:[#allocation3 + $0x32c] ss:$16 sps:$4 sm:$0xff]  }
  0x97   : > { %1651 = vmatprep.subr.bf16.mxu1 %v2433_v29  ;;  %v2524_v29 = vld [vmem:[#allocation3 + $0x52c] ss:$16 sps:$4 sm:$0xff]  }
  0x99   : > { %1611 = vmatpush2.bf16.msra.mxu0 %v2428_v34  ;;  %v2519_v34 = vld [vmem:[#allocation3 + $0x328] ss:$16 sps:$4 sm:$0xff]  }
  0x9a   : > { %1652 = vmatpush2.bf16.msra.mxu1 %v2431_v32  ;;  %1662 = vmatprep.subr.bf16.mxu0 %v2437_v35  ;;  %v2522_v32 = vld [vmem:[#allocation3 + $0x528] ss:$16 sps:$4 sm:$0xff]   ;;  %v2527_v35 = vld [vmem:[#allocation3 + $0x30c] ss:$16 sps:$4 sm:$0xff]  }
  0x9b   : > { %1703 = vmatprep.subr.bf16.mxu1 %v2440_v33  ;;  %v2530_v33 = vld [vmem:[#allocation3 + $0x50c] ss:$16 sps:$4 sm:$0xff]  }
  0x9c   : > { %1613 = vmatmul.mubr.bf16.vlgmr.msra.gmra.mxu0 %v2674_v37 }
  0x9d   : > { %1654 = vmatmul.mubr.bf16.vlgmr.msra.gmra.mxu1 %v2661_v27  ;;  %1663 = vmatpush1.bf16.msra.mxu0 %v2435_v40  ;;  %v2458_v27 = vld [vmem:[#allocation3 + $0x48c] ss:$16 sps:$4 sm:$0xff]  }
  0x9e   : > { %1704 = vmatpush1.bf16.msra.mxu1 %v2438_v36  ;;  %1735 = vmatprep.mubr.bf16.mxu1 %v2669_v58  ;;  %v2476_v58 = vld [vmem:[#allocation3 + $0x42c] ss:$16 sps:$4 sm:$0xff]   ;;  %v2528_v36 = vld [vmem:[#allocation3 + $0x508] ss:$16 sps:$4 sm:$0xff]  }
  0x9f   : > { %1705 = vmatprep.subr.bf16.mxu1 %v2446_v39  ;;  %1694 = vmatprep.mubr.bf16.mxu0 %v2656_v17  ;;  %v2462_v17 = vld [vmem:[#allocation3 + $0x468] ss:$16 sps:$4 sm:$0xff]  }
  0xa0   : > { %1664 = vmatprep.subr.bf16.mxu0 %v2443_v41  ;;  %v2525_v39 = vld [vmem:[#allocation3 + $0x308] ss:$16 sps:$4 sm:$0xff]  }
  0xa1   : > { %1665 = vmatpush1.bf16.msra.mxu0 %v2441_v45 }
  0xa2   : > { %1706 = vmatpush1.bf16.msra.mxu1 %v2444_v42  ;;  %1666 = vmatprep.subr.bf16.mxu0 %v2449_v46 }
  0xa3   : > { %1707 = vmatprep.subr.bf16.mxu1 %v2452_v44 }
  0xa5   : > { %1667 = vmatpush1.bf16.msra.mxu0 %v2447_v48 }
  0xa6   : > { %1708 = vmatpush1.bf16.msra.mxu1 %v2450_v47  ;;  %1668 = vmatprep.subr.bf16.mxu0 %v2455_v49 }
  0xa7   : > { %1709 = vmatprep.subr.bf16.mxu1 %v2458_v27 }
  0xa9   : > { %1669 = vmatpush1.bf16.msra.mxu0 %v2453_v52 }
  0xaa   : > { %1710 = vmatpush1.bf16.msra.mxu1 %v2456_v50  ;;  %1670 = vmatprep.subr.bf16.mxu0 %v2461_v53 }
  0xab   : > { %1711 = vmatprep.subr.bf16.mxu1 %v2464_v51 }
  0xad   : > { %1671 = vmatpush1.bf16.msra.mxu0 %v2459_v55 }
  0xae   : > { %1712 = vmatpush1.bf16.msra.mxu1 %v2462_v17  ;;  %1672 = vmatprep.subr.bf16.mxu0 %v2467_v56 }
  0xaf   : > { %1713 = vmatprep.subr.bf16.mxu1 %v2470_v54 }
  0xb1   : > { %1673 = vmatpush1.bf16.msra.mxu0 %v2465_v59 }
  0xb2   : > { %1714 = vmatpush1.bf16.msra.mxu1 %v2468_v57  ;;  %1674 = vmatprep.subr.bf16.mxu0 %v2473_v60 }
  0xb3   : > { %1715 = vmatprep.subr.bf16.mxu1 %v2476_v58 }
  0xb5   : > { %1675 = vmatpush1.bf16.msra.mxu0 %v2471_v63 }
  0xb6   : > { %1716 = vmatpush1.bf16.msra.mxu1 %v2474_v61  ;;  %1676 = vmatprep.subr.bf16.mxu0 %v2479_v0 }
  0xb7   : > { %1717 = vmatprep.subr.bf16.mxu1 %v2482_v62 }
  0xb9   : > { %1677 = vmatpush1.bf16.msra.mxu0 %v2477_v3 }
  0xba   : > { %1718 = vmatpush1.bf16.msra.mxu1 %v2480_v1  ;;  %1678 = vmatprep.subr.bf16.mxu0 %v2485_v4 }
  0xbb   : > { %1719 = vmatprep.subr.bf16.mxu1 %v2488_v2 }
  0xbd   : > { %1679 = vmatpush2.bf16.msra.mxu0 %v2483_v7 }
  0xbe   : > { %1720 = vmatpush2.bf16.msra.mxu1 %v2486_v5  ;;  %1680 = vmatprep.subr.bf16.mxu0 %v2491_v8 }
  0xbf   : > { %1721 = vmatprep.subr.bf16.mxu1 %v2494_v6 }
  0xc1   : > { %1681 = vmatpush2.bf16.msra.mxu0 %v2489_v11 }
  0xc2   : > { %1722 = vmatpush2.bf16.msra.mxu1 %v2492_v9  ;;  %1682 = vmatprep.subr.bf16.mxu0 %v2497_v12 }
  0xc3   : > { %1723 = vmatprep.subr.bf16.mxu1 %v2500_v10 }
  0xc5   : > { %1683 = vmatpush2.bf16.msra.mxu0 %v2495_v15 }
  0xc6   : > { %1724 = vmatpush2.bf16.msra.mxu1 %v2498_v13  ;;  %1684 = vmatprep.subr.bf16.mxu0 %v2503_v16 }
  0xc7   : > { %1725 = vmatprep.subr.bf16.mxu1 %v2506_v14 }
  0xc9   : > { %1685 = vmatpush2.bf16.msra.mxu0 %v2501_v20 }
  0xca   : > { %1726 = vmatpush2.bf16.msra.mxu1 %v2504_v18  ;;  %1686 = vmatprep.subr.bf16.mxu0 %v2509_v21 }
  0xcb   : > { %1727 = vmatprep.subr.bf16.mxu1 %v2512_v19 }
  0xcd   : > { %1687 = vmatpush2.bf16.msra.mxu0 %v2507_v25 }
  0xce   : > { %1728 = vmatpush2.bf16.msra.mxu1 %v2510_v22  ;;  %1688 = vmatprep.subr.bf16.mxu0 %v2515_v26 }
  0xcf   : > { %1729 = vmatprep.subr.bf16.mxu1 %v2518_v23 }
  0xd1   : > { %1689 = vmatpush2.bf16.msra.mxu0 %v2513_v30 }
  0xd2   : > { %1730 = vmatpush2.bf16.msra.mxu1 %v2516_v28  ;;  %1690 = vmatprep.subr.bf16.mxu0 %v2521_v31 }
  0xd3   : > { %1731 = vmatprep.subr.bf16.mxu1 %v2524_v29 }
  0xd5   : > { %1691 = vmatpush2.bf16.msra.mxu0 %v2519_v34 }
  0xd6   : > { %1732 = vmatpush2.bf16.msra.mxu1 %v2522_v32  ;;  %1692 = vmatprep.subr.bf16.mxu0 %v2527_v35 }
  0xd7   : > { %1733 = vmatprep.subr.bf16.mxu1 %v2530_v33 }
  0xd9   : > { %1693 = vmatpush2.bf16.msra.mxu0 %v2525_v39 }
  0xda   : > { %1734 = vmatpush2.bf16.msra.mxu1 %v2528_v36 }
  0xdc   : > { %1695 = vmatmul.mubr.bf16.vlgmr.msra.gmra.mxu0 %v2659_v24 }
  0xdd   : > { %1736 = vmatmul.mubr.bf16.vlgmr.msra.gmra.mxu1 %v2674_v37 }
 0x11c   : > { %v1532_v41 = vpop.f32.mrf.mxu0 }
 0x11d   : > { %v1573_v40 = vpop.f32.mrf.mxu1 }
 0x11e   : > { %v1574_v44 = vadd.f32 %v1573_v40, %v1532_v41  ;;  %v1534_v45 = vpop.f32.mrf.mxu0 }
 0x11f   : > { %v1575_v42 = vpop.f32.mrf.mxu1 }
 0x120   : > { %v1536_v47 = vpop.f32.mrf.mxu0  ;;  %v1576_v52 = vadd.f32 %v1575_v42, %v1534_v45 }
 0x121   : > { %v1577_v46 = vpop.f32.mrf.mxu1 }
 0x122   : > { %v1537_v48 = vpop.f32.mrf.mxu0 }
 0x123   : > { %v1578_v27 = vpop.f32.mrf.mxu1 }
 0x15c   : > { %v1614_v50 = vpop.f32.mrf.mxu0 }
 0x15d   : > { %v1655_v49 = vpop.f32.mrf.mxu1  ;;  %v1615_v53 = vadd.f32 %v1614_v50, %v1574_v44 }
 0x15e   : > { %v1616_v37 = vpop.f32.mrf.mxu0 }
 0x15f   : > { %v1657_v51 = vpop.f32.mrf.mxu1  ;;  %v1755_v24 = vsel %vm1754_vm0, %v1615_v53, 0.0  ;;  %v1817_v54 = vmul.f32 %v1615_v53, %v1615_v53  ;;  %v1617_v55 = vadd.f32 %v1616_v37, %v1576_v52  ;;  %v2573_v37 = vmov 1966171168  }
 0x160   : > { %v1756_v56 = vrot.slane %v1755_v24, 4  ;;  %v1618_v57 = vpop.f32.mrf.mxu0 }
 0x161   : > { %v1659_v17 = vpop.f32.mrf.mxu1  ;;  %v1821_v59 = vsel %vm1754_vm0, %v1817_v54, 0.0  ;;  %v1748_v60 = vcombine.low %v1615_v53, %v1617_v55  ;;  %v1762_v61 = vsel %vm1754_vm0, %v1617_v55, 0.0  ;;  %v1818_v62 = vmul.f32 %v1617_v55, %v1617_v55 }
 0x162   : > { %v1757_v63 = vadd.f32 %v1756_v56, %v1755_v24  ;;  %v1822_v0 = vrot.slane %v1821_v59, 4  ;;  %v1763_v1 = vrot.slane %v1762_v61, 4  ;;  %v1619_v2 = vpop.f32.mrf.mxu0 }
 0x163   : > { %v1660_v58 = vpop.f32.mrf.mxu1  ;;  %1752 = vst [vmem:[%s2687_s18] sm:$0xff] %v1748_v60  ;;  %v1828_v3 = vsel %vm1754_vm0, %v1818_v62, 0.0 }
 0x164   : > { %v1758_v4 = vrot.slane %v1757_v63, 2  ;;  %v1823_v5 = vadd.f32 %v1822_v0, %v1821_v59  ;;  %v1764_v6 = vadd.f32 %v1763_v1, %v1762_v61  ;;  %v1829_v7 = vrot.slane %v1828_v3, 4 }
 0x166   : > { %v1759_v8 = vadd.f32 %v1758_v4, %v1757_v63  ;;  %v1824_v9 = vrot.slane %v1823_v5, 2  ;;  %v1765_v10 = vrot.slane %v1764_v6, 2  ;;  %v1830_v11 = vadd.f32 %v1829_v7, %v1828_v3 }
 0x168   : > { %v1760_v12 = vrot.slane %v1759_v8, 1  ;;  %v1825_v13 = vadd.f32 %v1824_v9, %v1823_v5  ;;  %v1766_v14 = vadd.f32 %v1765_v10, %v1764_v6  ;;  %v1831_v15 = vrot.slane %v1830_v11, 2 }
 0x16a   : > { %v1826_v16 = vrot.slane %v1825_v13, 1  ;;  %v1767_v18 = vrot.slane %v1766_v14, 1  ;;  %v1832_v19 = vadd.f32 %v1831_v15, %v1830_v11  ;;  %v1761_v20 = vadd.f32 %v1760_v12, %v1759_v8 }
 0x16c   : > { %v1768_v21 = vadd.f32 %v1767_v18, %v1766_v14  ;;  %v1833_v22 = vrot.slane %v1832_v19, 1  ;;  %v1827_v23 = vadd.f32 %v1826_v16, %v1825_v13 }
 0x16e   : > { %v1787_v25 = vcombine.low %v1761_v20, %v1768_v21  ;;  %v1834_v26 = vadd.f32 %v1833_v22, %v1832_v19 }
 0x170   : > { %v1853_v28 = vcombine.low %v1827_v23, %v1834_v26 }
 0x19c   : > { %v1696_v30 = vpop.f32.mrf.mxu0 }
 0x19d   : > { %v1737_v29 = vpop.f32.mrf.mxu1  ;;  %v1697_v32 = vadd.f32 %v1696_v30, %v1655_v49 }
 0x19e   : > { %v1698_v33 = vpop.f32.mrf.mxu0 }
 0x19f   : > { %v1739_v31 = vpop.f32.mrf.mxu1  ;;  %v1738_v35 = vadd.f32 %v1737_v29, %v1697_v32  ;;  %v1699_v36 = vadd.f32 %v1698_v33, %v1657_v51  ;;  %v1790_v51 = vunpack.c.l.s4 %v2573_v37 }
 0x1a0   : > { %v1700_v39 = vpop.f32.mrf.mxu0 }
 0x1a1   : > { %v1741_v34 = vpop.f32.mrf.mxu1  ;;  %v1769_v41 = vsel %vm1754_vm0, %v1738_v35, 0.0  ;;  %v1819_v42 = vmul.f32 %v1738_v35, %v1738_v35  ;;  %v1740_v44 = vadd.f32 %v1739_v31, %v1699_v36  ;;  %v1791_v61 = vunpack.c.0.s8 %v1790_v51 }
 0x1a2   : > { %v1770_v45 = vrot.slane %v1769_v41, 4  ;;  %v1701_v46 = vpop.f32.mrf.mxu0 }
 0x1a3   : > { %v1742_v40 = vpop.f32.mrf.mxu1  ;;  %v1835_v47 = vsel %vm1754_vm0, %v1819_v42, 0.0  ;;  %v1749_v27 = vcombine.low %v1738_v35, %v1740_v44  ;;  %v1776_v48 = vsel %vm1754_vm0, %v1740_v44, 0.0  ;;  %v1820_v50 = vmul.f32 %v1740_v44, %v1740_v44 }
 0x1a4   : > { %v1771_v49 = vadd.f32 %v1770_v45, %v1769_v41  ;;  %v1836_v52 = vrot.slane %v1835_v47, 4  ;;  %v1777_v53 = vrot.slane %v1776_v48, 4  ;;  %v1794_v5 = vsub.s32 %v1791_v61, %v2642_v43 }
 0x1a5   : > { %1753 = vst [vmem:[%s2687_s18 + $0x8] sm:$0xff] %v1749_v27  ;;  %v1842_v17 = vsel %vm1754_vm0, %v1820_v50, 0.0 }
 0x1a6   : > { %v1772_v24 = vrot.slane %v1771_v49, 2  ;;  %v1837_v54 = vadd.f32 %v1836_v52, %v1835_v47  ;;  %v1778_v55 = vadd.f32 %v1777_v53, %v1776_v48  ;;  %v1843_v56 = vrot.slane %v1842_v17, 4 }
 0x1a7   : > { %v1795_v12 = vrot.slane %v1787_v25, %v1794_v5  ;;  %v1861_v15 = vrot.slane %v1853_v28, %v1794_v5 }
 0x1a8   : > { %v1773_v57 = vadd.f32 %v1772_v24, %v1771_v49  ;;  %v1838_v58 = vrot.slane %v1837_v54, 2  ;;  %v1779_v59 = vrot.slane %v1778_v55, 2  ;;  %v1844_v60 = vadd.f32 %v1843_v56, %v1842_v17 }
 0x1aa   : > { %v1774_v62 = vrot.slane %v1773_v57, 1  ;;  %v1839_v63 = vadd.f32 %v1838_v58, %v1837_v54  ;;  %v1780_v0 = vadd.f32 %v1779_v59, %v1778_v55  ;;  %v1845_v1 = vrot.slane %v1844_v60, 2 }
 0x1ac   : > { %v1840_v2 = vrot.slane %v1839_v63, 1  ;;  %v1781_v3 = vrot.slane %v1780_v0, 1  ;;  %v1846_v4 = vadd.f32 %v1845_v1, %v1844_v60  ;;  %v1775_v6 = vadd.f32 %v1774_v62, %v1773_v57 }
 0x1ae   : > { %v1782_v7 = vadd.f32 %v1781_v3, %v1780_v0  ;;  %v1847_v8 = vrot.slane %v1846_v4, 1  ;;  %v1841_v9 = vadd.f32 %v1840_v2, %v1839_v63 }
 0x1b0   : > { %v1788_v10 = vcombine.low %v1775_v6, %v1782_v7  ;;  %v1848_v11 = vadd.f32 %v1847_v8, %v1846_v4 }
 0x1b2   : > { %v1802_v13 = vrot.slane %v1788_v10, %v1794_v5  ;;  %v1854_v14 = vcombine.low %v1841_v9, %v1848_v11 }
 0x1b4   : > { %v1803_v16 = vcombine.low %v1795_v12, %v1802_v13  ;;  %v1868_v18 = vrot.slane %v1854_v14, %v1794_v5 }
 0x1b6   : > { %v1810_v43 = vrot.slane %v1803_v16, %v1794_v5  ;;  %v1869_v19 = vcombine.low %v1861_v15, %v1868_v18 }
 0x1b8   : > { %1816 = vst.msk [vmem:[%s283_s24] sm:$0xf] %vm1814_vm1, %v1810_v43  ;;  %v1876_v20 = vrot.slane %v1869_v19, %v1794_v5 }
 0x1ba   : > { %1878 = vst.msk [vmem:[%s287_s27] sm:$0xf] %vm1814_vm1, %v1876_v20 }
 0x1bb PF: > { %s18_s21 = sadd.s32 1, %s2567_s21  }
 0x1bc   : > { %p15_p1 = scmp.ge.s32.totalorder %s18_s21, 4  }
 0x1be   :  { %17 = sbr.rel (!%p15_p1) target bundleno = 1 (0x1), region = 95 }
 0x1c3   :  { %1928 = vsyncpa [#allocation4], 1 }
 0x1c4   :  { %1930 = vsyncpa [#allocation4 + $0x1], 1 }

// kernel: tile.89
= control target key start
LH: loop header
LB: loop body
LE: loop exit
PB: predicated region body
PF: predicated region fallthrough
CT: control target
= control target key end

     0   :  { %s7_s6 = smov 3  ;;  %s21_s9 = smov 3  ;;  %vm4_vm0 = vcmask 64512   ;;  %vm11_vm1 = vcmask 1048512   ;;  %vm18_vm2 = vcmask 982912   ;;  %vm25_vm3 = vcmask 917312   ;;  %s235_s0 = inlined_call_operand.vmem [shape: f32[32,8], index: 0, kind: input, shape index: {}]   ;;  %s236_s1 = inlined_call_operand.vmem [shape: f32[1,256], index: 1, kind: output, shape index: {}]  }
   0x1   :  { %v125_v0 = vld [vmem:[%s235_s0 + $0xf] ss:$16 sm:%s7_s6]   ;;  %s156_s10 = smov 120   ;;  %v127_v1 = vld [vmem:[%s235_s0 + $0xd] ss:$16 sm:%s21_s9]   ;;  %s14_s13 = smov 3 }
   0x2   :  { %9 = vrot.lane.b32.xlu0 %v125_v0, %s156_s10  ;;  %s157_s14 = smov 104   ;;  %v126_v2 = vld [vmem:[%s235_s0 + $0xe] ss:$16 sm:%s14_s13]   ;;  %s28_s17 = smov 3  ;;  %vm32_vm4 = vcmask 851712   ;;  %vm39_vm5 = vcmask 786112  }
   0x3   :  { %23 = vrot.lane.b32.xlu1 %v127_v1, %s157_s14  ;;  %v128_v3 = vld [vmem:[%s235_s0 + $0xc] ss:$16 sm:%s28_s17]   ;;  %s35_s20 = smov 3  ;;  %s42_s21 = smov 3  ;;  %vm46_vm6 = vcmask 720512   ;;  %vm53_vm7 = vcmask 654912  }
   0x4   :  { %s158_s22 = smov 112   ;;  %s159_s23 = smov 96   ;;  %v129_v4 = vld [vmem:[%s235_s0 + $0xb] ss:$16 sm:%s35_s20]   ;;  %v130_v5 = vld [vmem:[%s235_s0 + $0xa] ss:$16 sm:%s42_s21]  }
   0x5   :  { %s49_s28 = smov 3  ;;  %s56_s29 = smov 3  ;;  %vm60_vm8 = vcmask 589312   ;;  %vm67_vm9 = vcmask 523712   ;;  %vm74_vm10 = vcmask 458112   ;;  %vm81_vm11 = vcmask 392512  }
   0x6   :  { %16 = vrot.lane.b32.xlu0 %v126_v2, %s158_s22  ;;  %s160_s30 = smov 88   ;;  %s161_s2 = smov 80   ;;  %v131_v6 = vld [vmem:[%s235_s0 + $0x9] ss:$16 sm:%s49_s28]   ;;  %vm88_vm12 = vcmask 326912   ;;  %vm95_vm13 = vcmask 261312  }
   0x7   :  { %30 = vrot.lane.b32.xlu1 %v128_v3, %s159_s23  ;;  %v132_v7 = vld [vmem:[%s235_s0 + $0x8] ss:$16 sm:%s56_s29]   ;;  %s63_s7 = smov 3  ;;  %s70_s8 = smov 3  ;;  %vm102_vm14 = vcmask 195712   ;;  %vm109_vm15 = vcmask 130112  }
   0x8   :  { %s162_s9 = smov 72   ;;  %s163_s10 = smov 64   ;;  %v133_v8 = vld [vmem:[%s235_s0 + $0x7] ss:$16 sm:%s63_s7]   ;;  %v134_v9 = vld [vmem:[%s235_s0 + $0x6] ss:$16 sm:%s70_s8]  }
   0x9   :  { %s2_s13 = smov 3  ;;  %s77_s16 = smov 3 }
   0xa   :  { %37 = vrot.lane.b32.xlu0 %v129_v4, %s160_s30  ;;  %v3_v10 = vld [vmem:[%s235_s0] ss:$16 sm:%s2_s13]   ;;  %s84_s19 = smov 3  ;;  %s164_s20 = smov 56  }
   0xb   :  { %44 = vrot.lane.b32.xlu1 %v130_v5, %s161_s2  ;;  %5 = vst.msk [vmem:[#allocation0] ss:$8 sm:$0x3] %vm4_vm0, %v3_v10   ;;  %s165_s21 = smov 48   ;;  %v135_v11 = vld [vmem:[%s235_s0 + $0x5] ss:$16 sm:%s77_s16]  }
   0xc   :  { %v136_v12 = vld [vmem:[%s235_s0 + $0x4] ss:$16 sm:%s84_s19]   ;;  %s91_s26 = smov 3  ;;  %s98_s27 = smov 3 }
   0xd   :  { %s166_s28 = smov 40   ;;  %s167_s29 = smov 32   ;;  %v137_v13 = vld [vmem:[%s235_s0 + $0x3] ss:$16 sm:%s91_s26]   ;;  %v138_v14 = vld [vmem:[%s235_s0 + $0x2] ss:$16 sm:%s98_s27]  }
   0xe   :  { %51 = vrot.lane.b32.xlu0 %v131_v6, %s162_s9  ;;  %s105_s5 = smov 3  ;;  %s168_s6 = smov 24  }
   0xf   :  { %58 = vrot.lane.b32.xlu1 %v132_v7, %s163_s10  ;;  %s169_s7 = smov 16   ;;  %v139_v15 = vld [vmem:[%s235_s0 + $0x1] ss:$16 sm:%s105_s5]   ;;  %s170_s0 = smov 8  }
  0x12   :  { %65 = vrot.lane.b32.xlu0 %v133_v8, %s164_s20 }
  0x13   :  { %72 = vrot.lane.b32.xlu1 %v134_v9, %s165_s21 }
  0x16   :  { %79 = vrot.lane.b32.xlu0 %v135_v11, %s166_s28 }
  0x17   :  { %86 = vrot.lane.b32.xlu1 %v136_v12, %s167_s29 }
  0x1a   :  { %93 = vrot.lane.b32.xlu0 %v137_v13, %s168_s6 }
  0x1b   :  { %100 = vrot.lane.b32.xlu1 %v138_v14, %s169_s7 }
  0x1e   :  { %107 = vrot.lane.b32.xlu0 %v139_v15, %s170_s0 }
  0x74   :  { %v10_v16 = vpop.permute.xlu0 %9  }
  0x75   :  { %12 = vst.msk [vmem:[#allocation0] ss:$8 sm:$0x3] %vm11_vm1, %v10_v16   ;;  %v24_v17 = vpop.permute.xlu1 %23  }
  0x78   :  { %v17_v18 = vpop.permute.xlu0 %16  }
  0x79   :  { %19 = vst.msk [vmem:[#allocation0] ss:$8 sm:$0x3] %vm18_vm2, %v17_v18   ;;  %v31_v19 = vpop.permute.xlu1 %30  }
  0x7a   :  { %26 = vst.msk [vmem:[#allocation0] ss:$8 sm:$0x3] %vm25_vm3, %v24_v17  }
  0x7b   :  { %33 = vst.msk [vmem:[#allocation0] ss:$8 sm:$0x3] %vm32_vm4, %v31_v19  }
  0x7c   :  { %v38_v20 = vpop.permute.xlu0 %37  }
  0x7d   :  { %40 = vst.msk [vmem:[#allocation0] ss:$8 sm:$0x3] %vm39_vm5, %v38_v20   ;;  %v45_v21 = vpop.permute.xlu1 %44  }
  0x7e   :  { %47 = vst.msk [vmem:[#allocation0] ss:$8 sm:$0x3] %vm46_vm6, %v45_v21  }
  0x80   :  { %v52_v22 = vpop.permute.xlu0 %51  }
  0x81   :  { %54 = vst.msk [vmem:[#allocation0] ss:$8 sm:$0x3] %vm53_vm7, %v52_v22   ;;  %v59_v23 = vpop.permute.xlu1 %58  }
  0x82   :  { %61 = vst.msk [vmem:[#allocation0] ss:$8 sm:$0x3] %vm60_vm8, %v59_v23  }
  0x84   :  { %v66_v24 = vpop.permute.xlu0 %65  }
  0x85   :  { %68 = vst.msk [vmem:[#allocation0] ss:$8 sm:$0x3] %vm67_vm9, %v66_v24   ;;  %v73_v25 = vpop.permute.xlu1 %72  }
  0x86   :  { %75 = vst.msk [vmem:[#allocation0] ss:$8 sm:$0x3] %vm74_vm10, %v73_v25  }
  0x88   :  { %v80_v26 = vpop.permute.xlu0 %79  }
  0x89   :  { %82 = vst.msk [vmem:[#allocation0] ss:$8 sm:$0x3] %vm81_vm11, %v80_v26   ;;  %v87_v27 = vpop.permute.xlu1 %86  }
  0x8a   :  { %89 = vst.msk [vmem:[#allocation0] ss:$8 sm:$0x3] %vm88_vm12, %v87_v27  }
  0x8c   :  { %v94_v28 = vpop.permute.xlu0 %93  }
  0x8d   :  { %96 = vst.msk [vmem:[#allocation0] ss:$8 sm:$0x3] %vm95_vm13, %v94_v28   ;;  %v101_v29 = vpop.permute.xlu1 %100  }
  0x8e   :  { %103 = vst.msk [vmem:[#allocation0] ss:$8 sm:$0x3] %vm102_vm14, %v101_v29  }
  0x90   :  { %v108_v30 = vpop.permute.xlu0 %107  }
  0x91   :  { %110 = vst.msk [vmem:[#allocation0] ss:$8 sm:$0x3] %vm109_vm15, %v108_v30  }
  0x98   :  { %v115_v31 = vld [vmem:[#allocation0] sm:$0x1]  ;;  %v120_v32 = vld [vmem:[#allocation0 + $0x8] sm:$0x1] }
  0x99   :  { %118 = vst [vmem:[%s236_s1] sm:$0x1] %v115_v31  ;;  %140 = vst [vmem:[%s236_s1 + $0x1] sm:$0x1] %v120_v32 }

// kernel: decoder_forward.9
= control target key start
LH: loop header
LB: loop body
LE: loop exit
PB: predicated region body
PF: predicated region fallthrough
CT: control target
= control target key end

     0   :  { %s2594_s21 = smov 0   ;;  %s3273_s0 = inlined_call_operand.vmem [shape: f32[2,16,256], index: 0, kind: input, shape index: {}]   ;;  %s3274_s1 = inlined_call_operand.vmem [shape: f32[1,256], index: 1, kind: input, shape index: {}]   ;;  %s3275_s2 = inlined_call_operand.vmem [shape: f32[1,256], index: 2, kind: input, shape index: {}]   ;;  %s3276_s3 = inlined_call_operand.vmem [shape: bf16[768,512], index: 3, kind: input, shape index: {}]   ;;  %s3277_s4 = inlined_call_operand.vmem [shape: f32[2,16,512], index: 4, kind: output, shape index: {0}]   ;;  %s3278_s5 = inlined_call_operand.vmem [shape: f32[2,1,512], index: 5, kind: output, shape index: {1}]   ;;  %s3279_s6 = inlined_call_operand.vmem [shape: f32[2,1,512], index: 6, kind: output, shape index: {2}]  }
   0x1 LB: > { %s2044_s22 = sadd.s32 4294967295, %s2555_s21   ;;  %p2048_p0 = scmp.ge.s32.totalorder %s2555_s21, 1  ;;  %s2555_s21 = sphi %s2594_s21, %s17_s21  }
   0x2   : > { %p217_p1 = scmp.lt.s32.totalorder %s2555_s21, 3 }
   0x4   : > { %p218_p2 = pnand %p2048_p0, %p217_p1 }
   0x5   : > { %p255_p3 = scmp.lt.s32.totalorder (!%p218_p2), %s2044_s22, 1 }
   0x6   : > { %221 = sbr.rel (%p218_p2) target bundleno = 432 (0x1b0), region = 36 }
   0xb   : > { %v2261_v0 = vld [vmem:[%s3276_s3 + $0xe4] ss:$16 sps:$4 sm:$0xff]   ;;  %v2557_v2 = vmov 0.0   ;;  %v2265_v3 = vld [vmem:[%s3276_s3 + $0xe0] ss:$16 sps:$4 sm:$0xff]   ;;  %v279_v37 = vlaneseq  ;;  %s3281_s22 = smov (!%p255_p3, %s2044_s22), 1 }
   0xc   : > { %v2263_v1 = vld [vmem:[%s3276_s3 + $0x2e4] ss:$16 sps:$4 sm:$0xff]   ;;  %314 = vst [vmem:[#allocation2] sm:$0xff] %v2557_v2  ;;  %313 = vst [vmem:[#allocation2 + $0x30] sm:$0xff] %v2557_v2  ;;  %1533 = vmatprep.subr.bf16.mxu0 %v2261_v0  ;;  %v2266_v4 = vld [vmem:[%s3276_s3 + $0x2e0] ss:$16 sps:$4 sm:$0xff]  }
   0xd   : > { %323 = vst [vmem:[#allocation2 + $0x10] sm:$0xff] %v2557_v2  ;;  %324 = vst [vmem:[#allocation2 + $0x40] sm:$0xff] %v2557_v2  ;;  %1576 = vmatprep.subr.bf16.mxu1 %v2263_v1  ;;  %v2267_v5 = vld [vmem:[%s3276_s3 + $0xc4] ss:$16 sps:$4 sm:$0xff]   ;;  %1534 = vmatpush1.bf16.msra.mxu0 %v2265_v3  ;;  %v2271_v7 = vld [vmem:[%s3276_s3 + $0xc0] ss:$16 sps:$4 sm:$0xff]  }
   0xe   : > { %1577 = vmatpush1.bf16.msra.mxu1 %v2266_v4  ;;  %v2269_v6 = vld [vmem:[%s3276_s3 + $0x2c4] ss:$16 sps:$4 sm:$0xff]   ;;  %1535 = vmatprep.subr.bf16.mxu0 %v2267_v5  ;;  %v2272_v8 = vld [vmem:[%s3276_s3 + $0x2c0] ss:$16 sps:$4 sm:$0xff]   ;;  %v2726_v41 = vshrl.u32 %v279_v37, 7  ;;  %s2249_s15 = sshll.u32 %s3281_s22, 5 }
   0xf   : > { %1578 = vmatprep.subr.bf16.mxu1 %v2269_v6  ;;  %v2273_v9 = vld [vmem:[%s3276_s3 + $0xa4] ss:$16 sps:$4 sm:$0xff]   ;;  %v2277_v11 = vld [vmem:[%s3276_s3 + $0xa0] ss:$16 sps:$4 sm:$0xff]   ;;  %s259_s26 = scalar_lea.vmem %s3273_s0, %s2249_s15  ;;  %vm333_vm0 = vcmask 1040384   ;;  %vm348_vm1 = vcmask 1046528  }
  0x10   : > { %v2275_v10 = vld [vmem:[%s3276_s3 + $0x2a4] ss:$16 sps:$4 sm:$0xff]   ;;  %v2278_v12 = vld [vmem:[%s3276_s3 + $0x2a0] ss:$16 sps:$4 sm:$0xff]   ;;  %v281_v48 = vsub.s32 0, %v2726_v41  ;;  %v285_v49 = vsub.s32 1, %v2726_v41 }
  0x11   : > { %1536 = vmatpush1.bf16.msra.mxu0 %v2271_v7  ;;  %v2279_v13 = vld [vmem:[%s3276_s3 + $0x84] ss:$16 sps:$4 sm:$0xff]   ;;  %v2283_v15 = vld [vmem:[%s3276_s3 + $0x80] ss:$16 sps:$4 sm:$0xff]   ;;  %v274_v53 = vld [vmem:[%s259_s26 + $0x8] sm:$0xff]  ;;  %s2250_s17 = sshll.u32 %s3281_s22, 6 }
  0x12   : > { %1579 = vmatpush1.bf16.msra.mxu1 %v2272_v8  ;;  %1537 = vmatprep.subr.bf16.mxu0 %v2273_v9  ;;  %v2281_v14 = vld [vmem:[%s3276_s3 + $0x284] ss:$16 sps:$4 sm:$0xff]   ;;  %v2284_v16 = vld [vmem:[%s3276_s3 + $0x280] ss:$16 sps:$4 sm:$0xff]   ;;  %v276_v54 = vld [vmem:[%s259_s26 + $0x18] sm:$0xff]  ;;  %s3233_s20 = scalar_lea.vmem %s3277_s4, %s2250_s17  ;;  %s2053_s23 = sshll.u32 %s3281_s22, 2 }
  0x13   : > { %1580 = vmatprep.subr.bf16.mxu1 %v2275_v10  ;;  %v2285_v17 = vld [vmem:[%s3276_s3 + $0x64] ss:$16 sps:$4 sm:$0xff]   ;;  %v2289_v19 = vld [vmem:[%s3276_s3 + $0x60] ss:$16 sps:$4 sm:$0xff]   ;;  %vm1858_vm2 = vcmp.lt.s32.totalorder %v279_v37, 512  ;;  %s272_s22 = scalar_lea.vmem %s3279_s6, %s2053_s23 }
  0x14   : > { %v2287_v18 = vld [vmem:[%s3276_s3 + $0x264] ss:$16 sps:$4 sm:$0xff]   ;;  %v2290_v20 = vld [vmem:[%s3276_s3 + $0x260] ss:$16 sps:$4 sm:$0xff]  }
  0x15   : > { %1538 = vmatpush1.bf16.msra.mxu0 %v2277_v11  ;;  %v2291_v21 = vld [vmem:[%s3276_s3 + $0x44] ss:$16 sps:$4 sm:$0xff]   ;;  %v2295_v23 = vld [vmem:[%s3276_s3 + $0x40] ss:$16 sps:$4 sm:$0xff]  }
  0x16   : > { %1581 = vmatpush1.bf16.msra.mxu1 %v2278_v12  ;;  %1539 = vmatprep.subr.bf16.mxu0 %v2279_v13  ;;  %v2293_v22 = vld [vmem:[%s3276_s3 + $0x244] ss:$16 sps:$4 sm:$0xff]   ;;  %v2296_v24 = vld [vmem:[%s3276_s3 + $0x240] ss:$16 sps:$4 sm:$0xff]  }
  0x17   : > { %1582 = vmatprep.subr.bf16.mxu1 %v2281_v14  ;;  %v2297_v25 = vld [vmem:[%s3276_s3 + $0x24] ss:$16 sps:$4 sm:$0xff]   ;;  %v2301_v27 = vld [vmem:[%s3276_s3 + $0x20] ss:$16 sps:$4 sm:$0xff]  }
  0x18   : > { %v2299_v26 = vld [vmem:[%s3276_s3 + $0x224] ss:$16 sps:$4 sm:$0xff]   ;;  %v2302_v28 = vld [vmem:[%s3276_s3 + $0x220] ss:$16 sps:$4 sm:$0xff]  }
  0x19   : > { %1540 = vmatpush1.bf16.msra.mxu0 %v2283_v15  ;;  %v2303_v29 = vld [vmem:[%s3276_s3 + $0x4] ss:$16 sps:$4 sm:$0xff]   ;;  %v2307_v31 = vld [vmem:[%s3276_s3] ss:$16 sps:$4 sm:$0xff]  }
  0x1a   : > { %1583 = vmatpush1.bf16.msra.mxu1 %v2284_v16  ;;  %1541 = vmatprep.subr.bf16.mxu0 %v2285_v17  ;;  %v2305_v30 = vld [vmem:[%s3276_s3 + $0x204] ss:$16 sps:$4 sm:$0xff]   ;;  %v2308_v32 = vld [vmem:[%s3276_s3 + $0x200] ss:$16 sps:$4 sm:$0xff]  }
  0x1b   : > { %1584 = vmatprep.subr.bf16.mxu1 %v2287_v18  ;;  %v2309_v33 = vld [vmem:[%s3276_s3 + $0x1e4] ss:$16 sps:$4 sm:$0xff]   ;;  %v2313_v35 = vld [vmem:[%s3276_s3 + $0x1e0] ss:$16 sps:$4 sm:$0xff]  }
  0x1c   : > { %v2311_v34 = vld [vmem:[%s3276_s3 + $0x3e4] ss:$16 sps:$4 sm:$0xff]   ;;  %v2314_v36 = vld [vmem:[%s3276_s3 + $0x3e0] ss:$16 sps:$4 sm:$0xff]  }
  0x1d   : > { %1542 = vmatpush1.bf16.msra.mxu0 %v2289_v19  ;;  %v2315_v38 = vld [vmem:[%s3276_s3 + $0x1c4] ss:$16 sps:$4 sm:$0xff]   ;;  %v2319_v40 = vld [vmem:[%s3276_s3 + $0x1c0] ss:$16 sps:$4 sm:$0xff]  }
  0x1e   : > { %1585 = vmatpush1.bf16.msra.mxu1 %v2290_v20  ;;  %1543 = vmatprep.subr.bf16.mxu0 %v2291_v21  ;;  %v2317_v39 = vld [vmem:[%s3276_s3 + $0x3c4] ss:$16 sps:$4 sm:$0xff]   ;;  %v2320_v42 = vld [vmem:[%s3276_s3 + $0x3c0] ss:$16 sps:$4 sm:$0xff]  }
  0x1f   : > { %1586 = vmatprep.subr.bf16.mxu1 %v2293_v22  ;;  %v2321_v43 = vld [vmem:[%s3276_s3 + $0x1a4] ss:$16 sps:$4 sm:$0xff]   ;;  %v2325_v45 = vld [vmem:[%s3276_s3 + $0x1a0] ss:$16 sps:$4 sm:$0xff]  }
  0x20   : > { %v2323_v44 = vld [vmem:[%s3276_s3 + $0x3a4] ss:$16 sps:$4 sm:$0xff]   ;;  %v2326_v46 = vld [vmem:[%s3276_s3 + $0x3a0] ss:$16 sps:$4 sm:$0xff]  }
  0x21   : > { %1544 = vmatpush1.bf16.msra.mxu0 %v2295_v23  ;;  %v2327_v47 = vld [vmem:[%s3276_s3 + $0x184] ss:$16 sps:$4 sm:$0xff]   ;;  %v2331_v51 = vld [vmem:[%s3276_s3 + $0x180] ss:$16 sps:$4 sm:$0xff]  }
  0x22   : > { %1587 = vmatpush1.bf16.msra.mxu1 %v2296_v24  ;;  %1545 = vmatprep.subr.bf16.mxu0 %v2297_v25  ;;  %v2329_v50 = vld [vmem:[%s3276_s3 + $0x384] ss:$16 sps:$4 sm:$0xff]   ;;  %v2332_v52 = vld [vmem:[%s3276_s3 + $0x380] ss:$16 sps:$4 sm:$0xff]  }
  0x23   : > { %1588 = vmatprep.subr.bf16.mxu1 %v2299_v26  ;;  %v277_v55 = vld [vmem:[%s3274_s1] sm:$0x3]  ;;  %v275_v61 = vld [vmem:[%s259_s26 + $0x10] sm:$0xff] }
  0x24   : > { %v293_v56 = vld [vmem:[%s3275_s2] sm:$0x3]  ;;  %v282_v57 = vrot.slane %v277_v55, %v281_v48  ;;  %v286_v58 = vrot.slane %v277_v55, %v285_v49  ;;  %v2333_v62 = vld [vmem:[%s3276_s3 + $0x164] ss:$16 sps:$4 sm:$0xff]  }
  0x25   : > { %1546 = vmatpush1.bf16.msra.mxu0 %v2301_v27  ;;  %v298_v59 = vrot.slane %v293_v56, %v281_v48  ;;  %v273_v60 = vld [vmem:[%s259_s26] sm:$0xff]  ;;  %v302_v0 = vrot.slane %v293_v56, %v285_v49  ;;  %v2374_v56 = vld [vmem:[%s3276_s3 + $0xac] ss:$16 sps:$4 sm:$0xff]   ;;  %s268_s26 = scalar_lea.vmem %s3278_s5, %s2053_s23 }
  0x26   : > { %1589 = vmatpush1.bf16.msra.mxu1 %v2302_v28  ;;  %1547 = vmatprep.subr.bf16.mxu0 %v2303_v29  ;;  %v2335_v63 = vld [vmem:[%s3276_s3 + $0x364] ss:$16 sps:$4 sm:$0xff]   ;;  %v290_v1 = vmul.f32 %v286_v58, %v274_v53  ;;  %v292_v2 = vmul.f32 %v286_v58, %v276_v54  ;;  %v289_v3 = vmul.f32 %v282_v57, %v273_v60  ;;  %v2337_v5 = vld [vmem:[%s3276_s3 + $0x160] ss:$16 sps:$4 sm:$0xff]   ;;  %v2366_v54 = vld [vmem:[%s3276_s3 + $0xc8] ss:$16 sps:$4 sm:$0xff]  }
  0x27   : > { %1590 = vmatprep.subr.bf16.mxu1 %v2305_v30  ;;  %v291_v4 = vmul.f32 %v282_v57, %v275_v61  ;;  %v2338_v6 = vld [vmem:[%s3276_s3 + $0x360] ss:$16 sps:$4 sm:$0xff]   ;;  %v2339_v10 = vld [vmem:[%s3276_s3 + $0x144] ss:$16 sps:$4 sm:$0xff]   ;;  %v2372_v58 = vld [vmem:[%s3276_s3 + $0xa8] ss:$16 sps:$4 sm:$0xff]  }
  0x28   : > { %v306_v7 = vadd.f32 %v302_v0, %v290_v1  ;;  %v308_v8 = vadd.f32 %v302_v0, %v292_v2  ;;  %v305_v9 = vadd.f32 %v298_v59, %v289_v3  ;;  %v2341_v11 = vld [vmem:[%s3276_s3 + $0x344] ss:$16 sps:$4 sm:$0xff]   ;;  %v2343_v16 = vld [vmem:[%s3276_s3 + $0x140] ss:$16 sps:$4 sm:$0xff]   ;;  %v2380_v60 = vld [vmem:[%s3276_s3 + $0x8c] ss:$16 sps:$4 sm:$0xff]  }
  0x29   : > { %1548 = vmatpush1.bf16.msra.mxu0 %v2307_v31  ;;  %v307_v12 = vadd.f32 %v298_v59, %v291_v4  ;;  %v2344_v18 = vld [vmem:[%s3276_s3 + $0x340] ss:$16 sps:$4 sm:$0xff]   ;;  %v2345_v23 = vld [vmem:[%s3276_s3 + $0x124] ss:$16 sps:$4 sm:$0xff]   ;;  %v2386_v0 = vld [vmem:[%s3276_s3 + $0x6c] ss:$16 sps:$4 sm:$0xff]  }
  0x2a   : > { %1591 = vmatpush1.bf16.msra.mxu1 %v2308_v32  ;;  %1549 = vmatprep.subr.bf16.mxu0 %v2309_v33  ;;  %v310_v13 = vmax.f32 %v306_v7, 0.0  ;;  %v312_v14 = vmax.f32 %v308_v8, 0.0  ;;  %v309_v15 = vmax.f32 %v305_v9, 0.0  ;;  %v2347_v24 = vld [vmem:[%s3276_s3 + $0x324] ss:$16 sps:$4 sm:$0xff]  }
  0x2b   : > { %1592 = vmatprep.subr.bf16.mxu1 %v2311_v34  ;;  %v311_v17 = vmax.f32 %v307_v12, 0.0  ;;  %v2349_v29 = vld [vmem:[%s3276_s3 + $0x120] ss:$16 sps:$4 sm:$0xff]   ;;  %v2351_v33 = vld [vmem:[%s3276_s3 + $0x104] ss:$16 sps:$4 sm:$0xff]  }
  0x2c   : > { %v335_v19 = vrot.slane %v310_v13, 7  ;;  %v338_v20 = vrot.slane %v312_v14, 7  ;;  %v2791_v21 = vpack.c.bf16 %v312_v14, %v310_v13  ;;  %v334_v22 = vrot.slane %v309_v15, 7  ;;  %v2350_v32 = vld [vmem:[%s3276_s3 + $0x320] ss:$16 sps:$4 sm:$0xff]  }
  0x2d   : > { %1550 = vmatpush2.bf16.msra.mxu0 %v2313_v35  ;;  %v336_v25 = vrot.slane %v311_v17, 7  ;;  %v352_v27 = vrot.slane %v310_v13, 1  ;;  %v353_v28 = vrot.slane %v312_v14, 1  ;;  %v349_v31 = vrot.slane %v309_v15, 1  ;;  %v2357_v49 = vld [vmem:[%s3276_s3 + $0x4e0] ss:$16 sps:$4 sm:$0xff]  }
  0x2e   : > { %1593 = vmatpush2.bf16.msra.mxu1 %v2314_v36  ;;  %1551 = vmatprep.subr.bf16.mxu0 %v2315_v38  ;;  %v339_v26 = vsel %vm333_vm0, %v335_v19, %v338_v20  ;;  %345 = vst [vmem:[#allocation2] sm:$0xfe] %v335_v19  ;;  %344 = vst [vmem:[#allocation2 + $0x30] sm:$0xfe] %v334_v22  ;;  %v350_v35 = vrot.slane %v311_v17, 1  ;;  %v2834_v48 = vpack.c.bf16 %v311_v17, %v309_v15 }
  0x2f   : > { %1594 = vmatprep.subr.bf16.mxu1 %v2317_v39  ;;  %1608 = vmatprep.mubr.bf16.mxu1 %v2791_v21  ;;  %v337_v30 = vsel %vm333_vm0, %v334_v22, %v336_v25  ;;  %v2812_v34 = vsel %vm348_vm1, %v352_v27, %v353_v28  ;;  %362 = vst [vmem:[#allocation2 + $0x40] sm:$0x7f] %v353_v28  ;;  %v2353_v36 = vld [vmem:[%s3276_s3 + $0x304] ss:$16 sps:$4 sm:$0xff]   ;;  %v2355_v39 = vld [vmem:[%s3276_s3 + $0x100] ss:$16 sps:$4 sm:$0xff]  }
  0x30   : > { %v2818_v38 = vsel %vm348_vm1, %v349_v31, %v350_v35  ;;  %361 = vst [vmem:[#allocation2 + $0x10] sm:$0x7f] %v350_v35  ;;  %v2363_v53 = vld [vmem:[%s3276_s3 + $0x4c0] ss:$16 sps:$4 sm:$0xff]   ;;  %v2371_v55 = vld [vmem:[%s3276_s3 + $0x4a4] ss:$16 sps:$4 sm:$0xff]  }
  0x31   : > { %1552 = vmatpush2.bf16.msra.mxu0 %v2319_v40  ;;  %v2356_v40 = vld [vmem:[%s3276_s3 + $0x300] ss:$16 sps:$4 sm:$0xff]   ;;  %v2377_v59 = vld [vmem:[%s3276_s3 + $0x484] ss:$16 sps:$4 sm:$0xff]   ;;  %v2384_v2 = vld [vmem:[%s3276_s3 + $0x68] ss:$16 sps:$4 sm:$0xff]  }
  0x32   : > { %1595 = vmatpush2.bf16.msra.mxu1 %v2320_v42  ;;  %1553 = vmatprep.subr.bf16.mxu0 %v2321_v43  ;;  %v2359_v42 = vld [vmem:[%s3276_s3 + $0x4e4] ss:$16 sps:$4 sm:$0xff]   ;;  %v2369_v57 = vld [vmem:[%s3276_s3 + $0x4a0] ss:$16 sps:$4 sm:$0xff]   ;;  %v2392_v4 = vld [vmem:[%s3276_s3 + $0x4c] ss:$16 sps:$4 sm:$0xff]  }
  0x33   : > { %1596 = vmatprep.subr.bf16.mxu1 %v2323_v44  ;;  %v2375_v61 = vld [vmem:[%s3276_s3 + $0x480] ss:$16 sps:$4 sm:$0xff]   ;;  %v2389_v3 = vld [vmem:[%s3276_s3 + $0x444] ss:$16 sps:$4 sm:$0xff]   ;;  %v2398_v8 = vld [vmem:[%s3276_s3 + $0x2c] ss:$16 sps:$4 sm:$0xff]  }
  0x34   : > { %v2381_v1 = vld [vmem:[%s3276_s3 + $0x460] ss:$16 sps:$4 sm:$0xff]   ;;  %v2395_v7 = vld [vmem:[%s3276_s3 + $0x424] ss:$16 sps:$4 sm:$0xff]   ;;  %v2404_v13 = vld [vmem:[%s3276_s3 + $0xc] ss:$16 sps:$4 sm:$0xff]  }
  0x35   : > { %1554 = vmatpush2.bf16.msra.mxu0 %v2325_v45  ;;  %v364_v43 = vld [vmem:[#allocation2] sm:$0xff]  ;;  %v363_v44 = vld [vmem:[#allocation2 + $0x30] sm:$0xff]  ;;  %v2408_v20 = vld [vmem:[%s3276_s3 + $0x1e8] ss:$16 sps:$4 sm:$0xff]  }
  0x36   : > { %1597 = vmatpush2.bf16.msra.mxu1 %v2326_v46  ;;  %1555 = vmatprep.subr.bf16.mxu0 %v2327_v47  ;;  %v376_v45 = vpack.c.bf16 %v339_v26, %v364_v43  ;;  %v2362_v46 = vld [vmem:[%s3276_s3 + $0xec] ss:$16 sps:$4 sm:$0xff]   ;;  %v2832_v47 = vpack.c.bf16 %v337_v30, %v363_v44  ;;  %v2393_v9 = vld [vmem:[%s3276_s3 + $0x420] ss:$16 sps:$4 sm:$0xff]   ;;  %v2407_v17 = vld [vmem:[%s3276_s3 + $0x5e4] ss:$16 sps:$4 sm:$0xff]  }
  0x37   : > { %1598 = vmatprep.subr.bf16.mxu1 %v2329_v50  ;;  %v2360_v50 = vld [vmem:[%s3276_s3 + $0xe8] ss:$16 sps:$4 sm:$0xff]   ;;  %v374_v12 = vld [vmem:[#allocation2 + $0x40] sm:$0xff]  ;;  %v2422_v27 = vld [vmem:[%s3276_s3 + $0x1ac] ss:$16 sps:$4 sm:$0xff]  }
  0x38   : > { %1565 = vmatprep.mubr.bf16.mxu0 %v376_v45  ;;  %v2923_v14 = vpack.c.bf16 %v374_v12, %v2812_v34  ;;  %v2399_v15 = vld [vmem:[%s3276_s3 + $0x400] ss:$16 sps:$4 sm:$0xff]   ;;  %v2413_v22 = vld [vmem:[%s3276_s3 + $0x5c4] ss:$16 sps:$4 sm:$0xff]   ;;  %v2414_v25 = vld [vmem:[%s3276_s3 + $0x1c8] ss:$16 sps:$4 sm:$0xff]  }
  0x39   : > { %1556 = vmatpush2.bf16.msra.mxu0 %v2331_v51  ;;  %v2365_v51 = vld [vmem:[%s3276_s3 + $0x4c4] ss:$16 sps:$4 sm:$0xff]   ;;  %v2405_v19 = vld [vmem:[%s3276_s3 + $0x5e0] ss:$16 sps:$4 sm:$0xff]   ;;  %v2428_v31 = vld [vmem:[%s3276_s3 + $0x18c] ss:$16 sps:$4 sm:$0xff]  }
  0x3a   : > { %1599 = vmatpush2.bf16.msra.mxu1 %v2332_v52  ;;  %1557 = vmatprep.subr.bf16.mxu0 %v2333_v62  ;;  %v2368_v52 = vld [vmem:[%s3276_s3 + $0xcc] ss:$16 sps:$4 sm:$0xff]   ;;  %v2378_v62 = vld [vmem:[%s3276_s3 + $0x88] ss:$16 sps:$4 sm:$0xff]   ;;  %v2419_v26 = vld [vmem:[%s3276_s3 + $0x5a4] ss:$16 sps:$4 sm:$0xff]  }
  0x3b   : > { %1600 = vmatprep.subr.bf16.mxu1 %v2335_v63  ;;  %v2383_v63 = vld [vmem:[%s3276_s3 + $0x464] ss:$16 sps:$4 sm:$0xff]   ;;  %v2417_v28 = vld [vmem:[%s3276_s3 + $0x5a0] ss:$16 sps:$4 sm:$0xff]   ;;  %v2434_v35 = vld [vmem:[%s3276_s3 + $0x16c] ss:$16 sps:$4 sm:$0xff]  }
  0x3c   : > { %v2425_v30 = vld [vmem:[%s3276_s3 + $0x584] ss:$16 sps:$4 sm:$0xff]   ;;  %v2435_v43 = vld [vmem:[%s3276_s3 + $0x540] ss:$16 sps:$4 sm:$0xff]   ;;  %v2438_v44 = vld [vmem:[%s3276_s3 + $0x148] ss:$16 sps:$4 sm:$0xff]  }
  0x3d   : > { %1558 = vmatpush2.bf16.msra.mxu0 %v2337_v5  ;;  %v2387_v5 = vld [vmem:[%s3276_s3 + $0x440] ss:$16 sps:$4 sm:$0xff]   ;;  %v2431_v34 = vld [vmem:[%s3276_s3 + $0x564] ss:$16 sps:$4 sm:$0xff]   ;;  %v2483_v12 = vld [vmem:[%s3276_s3 + $0x248] ss:$16 sps:$4 sm:$0xff]  }
  0x3e   : > { %1601 = vmatpush2.bf16.msra.mxu1 %v2338_v6  ;;  %1559 = vmatprep.subr.bf16.mxu0 %v2339_v10  ;;  %v2390_v6 = vld [vmem:[%s3276_s3 + $0x48] ss:$16 sps:$4 sm:$0xff]  }
  0x3f   : > { %1602 = vmatprep.subr.bf16.mxu1 %v2341_v11  ;;  %v2396_v10 = vld [vmem:[%s3276_s3 + $0x28] ss:$16 sps:$4 sm:$0xff]   ;;  %v2401_v11 = vld [vmem:[%s3276_s3 + $0x404] ss:$16 sps:$4 sm:$0xff]  }
  0x41   : > { %1560 = vmatpush2.bf16.msra.mxu0 %v2343_v16  ;;  %v2402_v16 = vld [vmem:[%s3276_s3 + $0x8] ss:$16 sps:$4 sm:$0xff]  }
  0x42   : > { %1603 = vmatpush2.bf16.msra.mxu1 %v2344_v18  ;;  %1561 = vmatprep.subr.bf16.mxu0 %v2345_v23  ;;  %v2410_v18 = vld [vmem:[%s3276_s3 + $0x1ec] ss:$16 sps:$4 sm:$0xff]  }
  0x43   : > { %1604 = vmatprep.subr.bf16.mxu1 %v2347_v24  ;;  %v2416_v23 = vld [vmem:[%s3276_s3 + $0x1cc] ss:$16 sps:$4 sm:$0xff]   ;;  %v2411_v24 = vld [vmem:[%s3276_s3 + $0x5c0] ss:$16 sps:$4 sm:$0xff]  }
  0x45   : > { %1562 = vmatpush2.bf16.msra.mxu0 %v2349_v29  ;;  %v2420_v29 = vld [vmem:[%s3276_s3 + $0x1a8] ss:$16 sps:$4 sm:$0xff]  }
  0x46   : > { %1605 = vmatpush2.bf16.msra.mxu1 %v2350_v32  ;;  %1563 = vmatprep.subr.bf16.mxu0 %v2351_v33  ;;  %v2423_v32 = vld [vmem:[%s3276_s3 + $0x580] ss:$16 sps:$4 sm:$0xff]   ;;  %v2426_v33 = vld [vmem:[%s3276_s3 + $0x188] ss:$16 sps:$4 sm:$0xff]  }
  0x47   : > { %1606 = vmatprep.subr.bf16.mxu1 %v2353_v36  ;;  %v2429_v36 = vld [vmem:[%s3276_s3 + $0x560] ss:$16 sps:$4 sm:$0xff]  }
  0x49   : > { %1564 = vmatpush2.bf16.msra.mxu0 %v2355_v39  ;;  %v2432_v39 = vld [vmem:[%s3276_s3 + $0x168] ss:$16 sps:$4 sm:$0xff]  }
  0x4a   : > { %1607 = vmatpush2.bf16.msra.mxu1 %v2356_v40  ;;  %1619 = vmatprep.subr.bf16.mxu0 %v2359_v42  ;;  %v2437_v40 = vld [vmem:[%s3276_s3 + $0x544] ss:$16 sps:$4 sm:$0xff]   ;;  %v2440_v42 = vld [vmem:[%s3276_s3 + $0x14c] ss:$16 sps:$4 sm:$0xff]  }
  0x4b   : > { %1662 = vmatprep.subr.bf16.mxu1 %v2362_v46  ;;  %v2446_v46 = vld [vmem:[%s3276_s3 + $0x12c] ss:$16 sps:$4 sm:$0xff]  }
  0x4c   : > { %1566 = vmatmul.mubr.bf16.vlgmr.msra.gmra.mxu0 %v2832_v47 }
  0x4d   : > { %1609 = vmatmul.mubr.bf16.vlgmr.msra.gmra.mxu1 %v2834_v48  ;;  %1620 = vmatpush1.bf16.msra.mxu0 %v2357_v49  ;;  %v2441_v49 = vld [vmem:[%s3276_s3 + $0x520] ss:$16 sps:$4 sm:$0xff]  }
  0x4e   : > { %1663 = vmatpush1.bf16.msra.mxu1 %v2360_v50  ;;  %1621 = vmatprep.subr.bf16.mxu0 %v2365_v51  ;;  %v2444_v50 = vld [vmem:[%s3276_s3 + $0x128] ss:$16 sps:$4 sm:$0xff]   ;;  %v2449_v51 = vld [vmem:[%s3276_s3 + $0x504] ss:$16 sps:$4 sm:$0xff]  }
  0x4f   : > { %1664 = vmatprep.subr.bf16.mxu1 %v2368_v52  ;;  %1694 = vmatprep.mubr.bf16.mxu1 %v376_v45  ;;  %v2443_v45 = vld [vmem:[%s3276_s3 + $0x524] ss:$16 sps:$4 sm:$0xff]   ;;  %v2452_v52 = vld [vmem:[%s3276_s3 + $0x10c] ss:$16 sps:$4 sm:$0xff]  }
  0x50   : > { %1651 = vmatprep.mubr.bf16.mxu0 %v2923_v14 }
  0x51   : > { %1622 = vmatpush1.bf16.msra.mxu0 %v2363_v53  ;;  %v2447_v53 = vld [vmem:[%s3276_s3 + $0x500] ss:$16 sps:$4 sm:$0xff]  }
  0x52   : > { %1665 = vmatpush1.bf16.msra.mxu1 %v2366_v54  ;;  %1623 = vmatprep.subr.bf16.mxu0 %v2371_v55  ;;  %v2450_v54 = vld [vmem:[%s3276_s3 + $0x108] ss:$16 sps:$4 sm:$0xff]   ;;  %v373_v55 = vld [vmem:[#allocation2 + $0x10] sm:$0xff] }
  0x53   : > { %1666 = vmatprep.subr.bf16.mxu1 %v2374_v56  ;;  %v2455_v56 = vld [vmem:[%s3276_s3 + $0x2ec] ss:$16 sps:$4 sm:$0xff]  }
  0x55   : > { %1624 = vmatpush1.bf16.msra.mxu0 %v2369_v57  ;;  %v2458_v57 = vld [vmem:[%s3276_s3 + $0x4ec] ss:$16 sps:$4 sm:$0xff]  }
  0x56   : > { %1667 = vmatpush1.bf16.msra.mxu1 %v2372_v58  ;;  %1625 = vmatprep.subr.bf16.mxu0 %v2377_v59  ;;  %v3035_v58 = vpack.c.bf16 %v373_v55, %v2818_v38  ;;  %v2453_v59 = vld [vmem:[%s3276_s3 + $0x2e8] ss:$16 sps:$4 sm:$0xff]   ;;  %v2464_v38 = vld [vmem:[%s3276_s3 + $0x4cc] ss:$16 sps:$4 sm:$0xff]  }
  0x57   : > { %1668 = vmatprep.subr.bf16.mxu1 %v2380_v60  ;;  %v2456_v60 = vld [vmem:[%s3276_s3 + $0x4e8] ss:$16 sps:$4 sm:$0xff]  }
  0x58   : > { %v2540_v55 = vld [vmem:[%s3276_s3 + $0x528] ss:$16 sps:$4 sm:$0xff]  }
  0x59   : > { %1626 = vmatpush1.bf16.msra.mxu0 %v2375_v61  ;;  %v2461_v61 = vld [vmem:[%s3276_s3 + $0x2cc] ss:$16 sps:$4 sm:$0xff]  }
  0x5a   : > { %1669 = vmatpush1.bf16.msra.mxu1 %v2378_v62  ;;  %1627 = vmatprep.subr.bf16.mxu0 %v2383_v63  ;;  %v2459_v62 = vld [vmem:[%s3276_s3 + $0x2c8] ss:$16 sps:$4 sm:$0xff]  }
  0x5b   : > { %1670 = vmatprep.subr.bf16.mxu1 %v2386_v0  ;;  %v2462_v63 = vld [vmem:[%s3276_s3 + $0x4c8] ss:$16 sps:$4 sm:$0xff]   ;;  %v2467_v0 = vld [vmem:[%s3276_s3 + $0x2ac] ss:$16 sps:$4 sm:$0xff]  }
  0x5d   : > { %1628 = vmatpush1.bf16.msra.mxu0 %v2381_v1  ;;  %v2465_v1 = vld [vmem:[%s3276_s3 + $0x2a8] ss:$16 sps:$4 sm:$0xff]  }
  0x5e   : > { %1671 = vmatpush1.bf16.msra.mxu1 %v2384_v2  ;;  %1629 = vmatprep.subr.bf16.mxu0 %v2389_v3  ;;  %v2468_v2 = vld [vmem:[%s3276_s3 + $0x4a8] ss:$16 sps:$4 sm:$0xff]   ;;  %v2473_v3 = vld [vmem:[%s3276_s3 + $0x28c] ss:$16 sps:$4 sm:$0xff]  }
  0x5f   : > { %1672 = vmatprep.subr.bf16.mxu1 %v2392_v4  ;;  %v2471_v4 = vld [vmem:[%s3276_s3 + $0x288] ss:$16 sps:$4 sm:$0xff]  }
  0x61   : > { %1630 = vmatpush1.bf16.msra.mxu0 %v2387_v5  ;;  %v2474_v5 = vld [vmem:[%s3276_s3 + $0x488] ss:$16 sps:$4 sm:$0xff]  }
  0x62   : > { %1673 = vmatpush1.bf16.msra.mxu1 %v2390_v6  ;;  %1631 = vmatprep.subr.bf16.mxu0 %v2395_v7  ;;  %v2479_v6 = vld [vmem:[%s3276_s3 + $0x26c] ss:$16 sps:$4 sm:$0xff]  }
  0x63   : > { %1674 = vmatprep.subr.bf16.mxu1 %v2398_v8  ;;  %v2482_v7 = vld [vmem:[%s3276_s3 + $0x46c] ss:$16 sps:$4 sm:$0xff]   ;;  %v2477_v8 = vld [vmem:[%s3276_s3 + $0x268] ss:$16 sps:$4 sm:$0xff]  }
  0x65   : > { %1632 = vmatpush1.bf16.msra.mxu0 %v2393_v9  ;;  %v2480_v9 = vld [vmem:[%s3276_s3 + $0x468] ss:$16 sps:$4 sm:$0xff]  }
  0x66   : > { %1675 = vmatpush1.bf16.msra.mxu1 %v2396_v10  ;;  %1633 = vmatprep.subr.bf16.mxu0 %v2401_v11  ;;  %v2485_v10 = vld [vmem:[%s3276_s3 + $0x24c] ss:$16 sps:$4 sm:$0xff]  }
  0x67   : > { %1676 = vmatprep.subr.bf16.mxu1 %v2404_v13  ;;  %v2488_v11 = vld [vmem:[%s3276_s3 + $0x44c] ss:$16 sps:$4 sm:$0xff]   ;;  %v2486_v13 = vld [vmem:[%s3276_s3 + $0x448] ss:$16 sps:$4 sm:$0xff]  }
  0x69   : > { %1634 = vmatpush1.bf16.msra.mxu0 %v2399_v15  ;;  %v2494_v15 = vld [vmem:[%s3276_s3 + $0x42c] ss:$16 sps:$4 sm:$0xff]  }
  0x6a   : > { %1677 = vmatpush1.bf16.msra.mxu1 %v2402_v16  ;;  %1635 = vmatprep.subr.bf16.mxu0 %v2407_v17  ;;  %v2489_v16 = vld [vmem:[%s3276_s3 + $0x228] ss:$16 sps:$4 sm:$0xff]  }
  0x6b   : > { %1678 = vmatprep.subr.bf16.mxu1 %v2410_v18  ;;  %v2492_v17 = vld [vmem:[%s3276_s3 + $0x428] ss:$16 sps:$4 sm:$0xff]   ;;  %v2497_v18 = vld [vmem:[%s3276_s3 + $0x20c] ss:$16 sps:$4 sm:$0xff]  }
  0x6d   : > { %1636 = vmatpush2.bf16.msra.mxu0 %v2405_v19  ;;  %v2500_v19 = vld [vmem:[%s3276_s3 + $0x40c] ss:$16 sps:$4 sm:$0xff]  }
  0x6e   : > { %1679 = vmatpush2.bf16.msra.mxu1 %v2408_v20  ;;  %1637 = vmatprep.subr.bf16.mxu0 %v2413_v22  ;;  %v2495_v20 = vld [vmem:[%s3276_s3 + $0x208] ss:$16 sps:$4 sm:$0xff]  }
  0x6f   : > { %1680 = vmatprep.subr.bf16.mxu1 %v2416_v23  ;;  %v2498_v22 = vld [vmem:[%s3276_s3 + $0x408] ss:$16 sps:$4 sm:$0xff]   ;;  %v2503_v23 = vld [vmem:[%s3276_s3 + $0x3ec] ss:$16 sps:$4 sm:$0xff]  }
  0x71   : > { %1638 = vmatpush2.bf16.msra.mxu0 %v2411_v24  ;;  %v2506_v24 = vld [vmem:[%s3276_s3 + $0x5ec] ss:$16 sps:$4 sm:$0xff]  }
  0x72   : > { %1681 = vmatpush2.bf16.msra.mxu1 %v2414_v25  ;;  %1639 = vmatprep.subr.bf16.mxu0 %v2419_v26  ;;  %v2501_v25 = vld [vmem:[%s3276_s3 + $0x3e8] ss:$16 sps:$4 sm:$0xff]  }
  0x73   : > { %1682 = vmatprep.subr.bf16.mxu1 %v2422_v27  ;;  %v2504_v26 = vld [vmem:[%s3276_s3 + $0x5e8] ss:$16 sps:$4 sm:$0xff]   ;;  %v2509_v27 = vld [vmem:[%s3276_s3 + $0x3cc] ss:$16 sps:$4 sm:$0xff]  }
  0x75   : > { %1640 = vmatpush2.bf16.msra.mxu0 %v2417_v28  ;;  %v2512_v28 = vld [vmem:[%s3276_s3 + $0x5cc] ss:$16 sps:$4 sm:$0xff]  }
  0x76   : > { %1683 = vmatpush2.bf16.msra.mxu1 %v2420_v29  ;;  %1641 = vmatprep.subr.bf16.mxu0 %v2425_v30  ;;  %v2507_v29 = vld [vmem:[%s3276_s3 + $0x3c8] ss:$16 sps:$4 sm:$0xff]  }
  0x77   : > { %1684 = vmatprep.subr.bf16.mxu1 %v2428_v31  ;;  %v2510_v30 = vld [vmem:[%s3276_s3 + $0x5c8] ss:$16 sps:$4 sm:$0xff]   ;;  %v2515_v31 = vld [vmem:[%s3276_s3 + $0x3ac] ss:$16 sps:$4 sm:$0xff]  }
  0x79   : > { %1642 = vmatpush2.bf16.msra.mxu0 %v2423_v32  ;;  %v2518_v32 = vld [vmem:[%s3276_s3 + $0x5ac] ss:$16 sps:$4 sm:$0xff]  }
  0x7a   : > { %1685 = vmatpush2.bf16.msra.mxu1 %v2426_v33  ;;  %1643 = vmatprep.subr.bf16.mxu0 %v2431_v34  ;;  %v2513_v33 = vld [vmem:[%s3276_s3 + $0x3a8] ss:$16 sps:$4 sm:$0xff]  }
  0x7b   : > { %1686 = vmatprep.subr.bf16.mxu1 %v2434_v35  ;;  %v2516_v34 = vld [vmem:[%s3276_s3 + $0x5a8] ss:$16 sps:$4 sm:$0xff]   ;;  %v2521_v35 = vld [vmem:[%s3276_s3 + $0x38c] ss:$16 sps:$4 sm:$0xff]  }
  0x7d   : > { %1644 = vmatpush2.bf16.msra.mxu0 %v2429_v36  ;;  %v2524_v36 = vld [vmem:[%s3276_s3 + $0x58c] ss:$16 sps:$4 sm:$0xff]  }
  0x7e   : > { %1687 = vmatpush2.bf16.msra.mxu1 %v2432_v39  ;;  %1645 = vmatprep.subr.bf16.mxu0 %v2437_v40  ;;  %v2519_v39 = vld [vmem:[%s3276_s3 + $0x388] ss:$16 sps:$4 sm:$0xff]  }
  0x7f   : > { %1688 = vmatprep.subr.bf16.mxu1 %v2440_v42  ;;  %v2522_v40 = vld [vmem:[%s3276_s3 + $0x588] ss:$16 sps:$4 sm:$0xff]   ;;  %v2527_v42 = vld [vmem:[%s3276_s3 + $0x36c] ss:$16 sps:$4 sm:$0xff]  }
  0x81   : > { %1646 = vmatpush2.bf16.msra.mxu0 %v2435_v43  ;;  %v2530_v43 = vld [vmem:[%s3276_s3 + $0x56c] ss:$16 sps:$4 sm:$0xff]  }
  0x82   : > { %1689 = vmatpush2.bf16.msra.mxu1 %v2438_v44  ;;  %1647 = vmatprep.subr.bf16.mxu0 %v2443_v45  ;;  %v2525_v44 = vld [vmem:[%s3276_s3 + $0x368] ss:$16 sps:$4 sm:$0xff]  }
  0x83   : > { %1690 = vmatprep.subr.bf16.mxu1 %v2446_v46  ;;  %v2528_v45 = vld [vmem:[%s3276_s3 + $0x568] ss:$16 sps:$4 sm:$0xff]   ;;  %v2533_v46 = vld [vmem:[%s3276_s3 + $0x34c] ss:$16 sps:$4 sm:$0xff]  }
  0x85   : > { %1648 = vmatpush2.bf16.msra.mxu0 %v2441_v49  ;;  %v2536_v49 = vld [vmem:[%s3276_s3 + $0x54c] ss:$16 sps:$4 sm:$0xff]  }
  0x86   : > { %1691 = vmatpush2.bf16.msra.mxu1 %v2444_v50  ;;  %1649 = vmatprep.subr.bf16.mxu0 %v2449_v51  ;;  %v2531_v50 = vld [vmem:[%s3276_s3 + $0x348] ss:$16 sps:$4 sm:$0xff]  }
  0x87   : > { %1692 = vmatprep.subr.bf16.mxu1 %v2452_v52  ;;  %v2534_v51 = vld [vmem:[%s3276_s3 + $0x548] ss:$16 sps:$4 sm:$0xff]   ;;  %v2539_v52 = vld [vmem:[%s3276_s3 + $0x32c] ss:$16 sps:$4 sm:$0xff]  }
  0x89   : > { %1650 = vmatpush2.bf16.msra.mxu0 %v2447_v53  ;;  %v2542_v53 = vld [vmem:[%s3276_s3 + $0x52c] ss:$16 sps:$4 sm:$0xff]  }
  0x8a   : > { %1693 = vmatpush2.bf16.msra.mxu1 %v2450_v54  ;;  %1705 = vmatprep.subr.bf16.mxu0 %v2455_v56  ;;  %v2537_v54 = vld [vmem:[%s3276_s3 + $0x328] ss:$16 sps:$4 sm:$0xff]   ;;  %v2545_v56 = vld [vmem:[%s3276_s3 + $0x30c] ss:$16 sps:$4 sm:$0xff]  }
  0x8b   : > { %1748 = vmatprep.subr.bf16.mxu1 %v2458_v57  ;;  %v2548_v57 = vld [vmem:[%s3276_s3 + $0x50c] ss:$16 sps:$4 sm:$0xff]  }
  0x8c   : > { %1652 = vmatmul.mubr.bf16.vlgmr.msra.gmra.mxu0 %v3035_v58 }
  0x8d   : > { %1695 = vmatmul.mubr.bf16.vlgmr.msra.gmra.mxu1 %v2832_v47  ;;  %1706 = vmatpush1.bf16.msra.mxu0 %v2453_v59  ;;  %v2470_v47 = vld [vmem:[%s3276_s3 + $0x4ac] ss:$16 sps:$4 sm:$0xff]   ;;  %v2543_v59 = vld [vmem:[%s3276_s3 + $0x308] ss:$16 sps:$4 sm:$0xff]  }
  0x8e   : > { %1749 = vmatpush1.bf16.msra.mxu1 %v2456_v60  ;;  %1707 = vmatprep.subr.bf16.mxu0 %v2461_v61  ;;  %v2546_v60 = vld [vmem:[%s3276_s3 + $0x508] ss:$16 sps:$4 sm:$0xff]  }
  0x8f   : > { %1750 = vmatprep.subr.bf16.mxu1 %v2464_v38  ;;  %1737 = vmatprep.mubr.bf16.mxu0 %v2791_v21  ;;  %v2476_v21 = vld [vmem:[%s3276_s3 + $0x48c] ss:$16 sps:$4 sm:$0xff]  }
  0x90   : > { %1780 = vmatprep.mubr.bf16.mxu1 %v2923_v14  ;;  %v2491_v14 = vld [vmem:[%s3276_s3 + $0x22c] ss:$16 sps:$4 sm:$0xff]  }
  0x91   : > { %1708 = vmatpush1.bf16.msra.mxu0 %v2459_v62 }
  0x92   : > { %1751 = vmatpush1.bf16.msra.mxu1 %v2462_v63  ;;  %1709 = vmatprep.subr.bf16.mxu0 %v2467_v0 }
  0x93   : > { %1752 = vmatprep.subr.bf16.mxu1 %v2470_v47 }
  0x95   : > { %1710 = vmatpush1.bf16.msra.mxu0 %v2465_v1 }
  0x96   : > { %1753 = vmatpush1.bf16.msra.mxu1 %v2468_v2  ;;  %1711 = vmatprep.subr.bf16.mxu0 %v2473_v3 }
  0x97   : > { %1754 = vmatprep.subr.bf16.mxu1 %v2476_v21 }
  0x99   : > { %1712 = vmatpush1.bf16.msra.mxu0 %v2471_v4 }
  0x9a   : > { %1755 = vmatpush1.bf16.msra.mxu1 %v2474_v5  ;;  %1713 = vmatprep.subr.bf16.mxu0 %v2479_v6 }
  0x9b   : > { %1756 = vmatprep.subr.bf16.mxu1 %v2482_v7 }
  0x9d   : > { %1714 = vmatpush1.bf16.msra.mxu0 %v2477_v8 }
  0x9e   : > { %1757 = vmatpush1.bf16.msra.mxu1 %v2480_v9  ;;  %1715 = vmatprep.subr.bf16.mxu0 %v2485_v10 }
  0x9f   : > { %1758 = vmatprep.subr.bf16.mxu1 %v2488_v11 }
  0xa1   : > { %1716 = vmatpush1.bf16.msra.mxu0 %v2483_v12 }
  0xa2   : > { %1759 = vmatpush1.bf16.msra.mxu1 %v2486_v13  ;;  %1717 = vmatprep.subr.bf16.mxu0 %v2491_v14 }
  0xa3   : > { %1760 = vmatprep.subr.bf16.mxu1 %v2494_v15 }
  0xa5   : > { %1718 = vmatpush1.bf16.msra.mxu0 %v2489_v16 }
  0xa6   : > { %1761 = vmatpush1.bf16.msra.mxu1 %v2492_v17  ;;  %1719 = vmatprep.subr.bf16.mxu0 %v2497_v18 }
  0xa7   : > { %1762 = vmatprep.subr.bf16.mxu1 %v2500_v19 }
  0xa9   : > { %1720 = vmatpush1.bf16.msra.mxu0 %v2495_v20 }
  0xaa   : > { %1763 = vmatpush1.bf16.msra.mxu1 %v2498_v22  ;;  %1721 = vmatprep.subr.bf16.mxu0 %v2503_v23 }
  0xab   : > { %1764 = vmatprep.subr.bf16.mxu1 %v2506_v24 }
  0xad   : > { %1722 = vmatpush2.bf16.msra.mxu0 %v2501_v25 }
  0xae   : > { %1765 = vmatpush2.bf16.msra.mxu1 %v2504_v26  ;;  %1723 = vmatprep.subr.bf16.mxu0 %v2509_v27 }
  0xaf   : > { %1766 = vmatprep.subr.bf16.mxu1 %v2512_v28 }
  0xb1   : > { %1724 = vmatpush2.bf16.msra.mxu0 %v2507_v29 }
  0xb2   : > { %1767 = vmatpush2.bf16.msra.mxu1 %v2510_v30  ;;  %1725 = vmatprep.subr.bf16.mxu0 %v2515_v31 }
  0xb3   : > { %1768 = vmatprep.subr.bf16.mxu1 %v2518_v32 }
  0xb5   : > { %1726 = vmatpush2.bf16.msra.mxu0 %v2513_v33 }
  0xb6   : > { %1769 = vmatpush2.bf16.msra.mxu1 %v2516_v34  ;;  %1727 = vmatprep.subr.bf16.mxu0 %v2521_v35 }
  0xb7   : > { %1770 = vmatprep.subr.bf16.mxu1 %v2524_v36 }
  0xb9   : > { %1728 = vmatpush2.bf16.msra.mxu0 %v2519_v39 }
  0xba   : > { %1771 = vmatpush2.bf16.msra.mxu1 %v2522_v40  ;;  %1729 = vmatprep.subr.bf16.mxu0 %v2527_v42 }
  0xbb   : > { %1772 = vmatprep.subr.bf16.mxu1 %v2530_v43 }
  0xbd   : > { %1730 = vmatpush2.bf16.msra.mxu0 %v2525_v44 }
  0xbe   : > { %1773 = vmatpush2.bf16.msra.mxu1 %v2528_v45  ;;  %1731 = vmatprep.subr.bf16.mxu0 %v2533_v46 }
  0xbf   : > { %1774 = vmatprep.subr.bf16.mxu1 %v2536_v49 }
  0xc1   : > { %1732 = vmatpush2.bf16.msra.mxu0 %v2531_v50 }
  0xc2   : > { %1775 = vmatpush2.bf16.msra.mxu1 %v2534_v51  ;;  %1733 = vmatprep.subr.bf16.mxu0 %v2539_v52 }
  0xc3   : > { %1776 = vmatprep.subr.bf16.mxu1 %v2542_v53 }
  0xc5   : > { %1734 = vmatpush2.bf16.msra.mxu0 %v2537_v54 }
  0xc6   : > { %1777 = vmatpush2.bf16.msra.mxu1 %v2540_v55  ;;  %1735 = vmatprep.subr.bf16.mxu0 %v2545_v56 }
  0xc7   : > { %1778 = vmatprep.subr.bf16.mxu1 %v2548_v57 }
  0xc9   : > { %1736 = vmatpush2.bf16.msra.mxu0 %v2543_v59 }
  0xca   : > { %1779 = vmatpush2.bf16.msra.mxu1 %v2546_v60 }
  0xcc   : > { %1738 = vmatmul.mubr.bf16.vlgmr.msra.gmra.mxu0 %v2834_v48 }
  0xcd   : > { %1781 = vmatmul.mubr.bf16.vlgmr.msra.gmra.mxu1 %v3035_v58 }
 0x10c   : > { %v1567_v61 = vpop.f32.mrf.mxu0 }
 0x10d   : > { %v1610_v38 = vpop.f32.mrf.mxu1 }
 0x10e   : > { %v1569_v62 = vpop.f32.mrf.mxu0  ;;  %v1611_v2 = vadd.f32 %v1610_v38, %v1567_v61 }
 0x10f   : > { %v1612_v63 = vpop.f32.mrf.mxu1 }
 0x110   : > { %v1571_v0 = vpop.f32.mrf.mxu0  ;;  %v1613_v3 = vadd.f32 %v1612_v63, %v1569_v62 }
 0x111   : > { %v1614_v47 = vpop.f32.mrf.mxu1 }
 0x112   : > { %v1573_v1 = vpop.f32.mrf.mxu0  ;;  %v1615_v5 = vadd.f32 %v1614_v47, %v1571_v0 }
 0x113   : > { %v1616_v21 = vpop.f32.mrf.mxu1 }
 0x114   : > { %v1617_v8 = vadd.f32 %v1616_v21, %v1573_v1 }
 0x14c   : > { %v1653_v48 = vpop.f32.mrf.mxu0 }
 0x14d   : > { %v1654_v58 = vadd.f32 %v1653_v48, %v1611_v2  ;;  %v1696_v52 = vpop.f32.mrf.mxu1 }
 0x14e   : > { %v1655_v4 = vpop.f32.mrf.mxu0 }
 0x14f   : > { %1791 = vst [vmem:[%s3233_s20] sm:$0xff] %v1654_v58  ;;  %v1656_v6 = vadd.f32 %v1655_v4, %v1613_v3  ;;  %v1861_v11 = vmul.f32 %v1654_v58, %v1654_v58  ;;  %v1698_v53 = vpop.f32.mrf.mxu1 }
 0x150   : > { %v1657_v7 = vpop.f32.mrf.mxu0 }
 0x151   : > { %1792 = vst [vmem:[%s3233_s20 + $0x8] sm:$0xff] %v1656_v6  ;;  %v1658_v9 = vadd.f32 %v1657_v7, %v1615_v5  ;;  %v1862_v15 = vmul.f32 %v1656_v6, %v1656_v6  ;;  %v1700_v54 = vpop.f32.mrf.mxu1 }
 0x152   : > { %v1659_v10 = vpop.f32.mrf.mxu0 }
 0x153   : > { %1795 = vst [vmem:[%s3233_s20 + $0x20] sm:$0xff] %v1658_v9  ;;  %v1799_v12 = vadd.f32 %v1658_v9, %v1654_v58  ;;  %v1865_v13 = vmul.f32 %v1658_v9, %v1658_v9  ;;  %v1660_v14 = vadd.f32 %v1659_v10, %v1617_v8  ;;  %v1702_v55 = vpop.f32.mrf.mxu1 }
 0x155   : > { %v1800_v16 = vrot.slane %v1799_v12, 4  ;;  %v1869_v17 = vadd.f32 %v1865_v13, %v1861_v11  ;;  %1796 = vst [vmem:[%s3233_s20 + $0x28] sm:$0xff] %v1660_v14  ;;  %v1806_v18 = vadd.f32 %v1660_v14, %v1656_v6  ;;  %v1866_v19 = vmul.f32 %v1660_v14, %v1660_v14 }
 0x157   : > { %v1801_v20 = vadd.f32 %v1800_v16, %v1799_v12  ;;  %v1870_v22 = vrot.slane %v1869_v17, 4  ;;  %v1807_v23 = vrot.slane %v1806_v18, 4  ;;  %v1876_v24 = vadd.f32 %v1866_v19, %v1862_v15 }
 0x158   : > { %v2558_v16 = vmov 1966171168  }
 0x159   : > { %v1802_v25 = vrot.slane %v1801_v20, 2  ;;  %v1871_v26 = vadd.f32 %v1870_v22, %v1869_v17  ;;  %v1808_v27 = vadd.f32 %v1807_v23, %v1806_v18  ;;  %v1877_v28 = vrot.slane %v1876_v24, 4 }
 0x15a   : > { %v1834_v17 = vunpack.c.l.s4 %v2558_v16 }
 0x15b   : > { %v1803_v29 = vadd.f32 %v1802_v25, %v1801_v20  ;;  %v1872_v30 = vrot.slane %v1871_v26, 2  ;;  %v1809_v31 = vrot.slane %v1808_v27, 2  ;;  %v1878_v32 = vadd.f32 %v1877_v28, %v1876_v24 }
 0x15d   : > { %v1804_v33 = vrot.slane %v1803_v29, 1  ;;  %v1873_v34 = vadd.f32 %v1872_v30, %v1871_v26  ;;  %v1810_v35 = vadd.f32 %v1809_v31, %v1808_v27  ;;  %v1879_v36 = vrot.slane %v1878_v32, 2 }
 0x15e   : > { %v1835_v27 = vunpack.c.0.s8 %v1834_v17 }
 0x15f   : > { %v1874_v39 = vrot.slane %v1873_v34, 1  ;;  %v1811_v40 = vrot.slane %v1810_v35, 1  ;;  %v1880_v42 = vadd.f32 %v1879_v36, %v1878_v32  ;;  %v3239_v43 = vadd.f32 %v1804_v33, %v1803_v29 }
 0x161   : > { %v3241_v44 = vadd.f32 %v1811_v40, %v1810_v35  ;;  %v1881_v45 = vrot.slane %v1880_v42, 1  ;;  %v3243_v46 = vadd.f32 %v1874_v39, %v1873_v34  ;;  %v1838_v35 = vsub.s32 %v1835_v27, %v2726_v41 }
 0x163   : > { %v1831_v49 = vcombine.low %v3239_v43, %v3241_v44  ;;  %v3247_v50 = vadd.f32 %v1881_v45, %v1880_v42 }
 0x165   : > { %v1901_v51 = vcombine.low %v3243_v46, %v3247_v50 }
 0x18c   : > { %v1739_v56 = vpop.f32.mrf.mxu0 }
 0x18d   : > { %v1782_v57 = vpop.f32.mrf.mxu1  ;;  %v1740_v59 = vadd.f32 %v1739_v56, %v1696_v52  ;;  %v1909_v56 = vrot.slane %v1901_v51, %v1838_v35 }
 0x18e   : > { %v1741_v60 = vpop.f32.mrf.mxu0 }
 0x18f   : > { %v1784_v61 = vpop.f32.mrf.mxu1  ;;  %v1783_v38 = vadd.f32 %v1782_v57, %v1740_v59  ;;  %v1742_v62 = vadd.f32 %v1741_v60, %v1698_v53  ;;  %v1839_v53 = vrot.slane %v1831_v49, %v1838_v35 }
 0x190   : > { %v1743_v63 = vpop.f32.mrf.mxu0 }
 0x191   : > { %v1786_v0 = vpop.f32.mrf.mxu1  ;;  %1793 = vst [vmem:[%s3233_s20 + $0x10] sm:$0xff] %v1783_v38  ;;  %v1785_v47 = vadd.f32 %v1784_v61, %v1742_v62  ;;  %v1744_v1 = vadd.f32 %v1743_v63, %v1700_v54  ;;  %v1863_v21 = vmul.f32 %v1783_v38, %v1783_v38 }
 0x192   : > { %v1745_v2 = vpop.f32.mrf.mxu0 }
 0x193   : > { %1794 = vst [vmem:[%s3233_s20 + $0x18] sm:$0xff] %v1785_v47  ;;  %v1787_v48 = vadd.f32 %v1786_v0, %v1744_v1  ;;  %v1746_v3 = vadd.f32 %v1745_v2, %v1702_v55  ;;  %v1788_v58 = vpop.f32.mrf.mxu1  ;;  %v1864_v7 = vmul.f32 %v1785_v47, %v1785_v47 }
 0x195   : > { %1797 = vst [vmem:[%s3233_s20 + $0x30] sm:$0xff] %v1787_v48  ;;  %v1813_v4 = vadd.f32 %v1787_v48, %v1783_v38  ;;  %v1867_v5 = vmul.f32 %v1787_v48, %v1787_v48  ;;  %v1789_v6 = vadd.f32 %v1788_v58, %v1746_v3 }
 0x197   : > { %v1814_v8 = vrot.slane %v1813_v4, 4  ;;  %v1883_v9 = vadd.f32 %v1867_v5, %v1863_v21  ;;  %1798 = vst [vmem:[%s3233_s20 + $0x38] sm:$0xff] %v1789_v6  ;;  %v1820_v10 = vadd.f32 %v1789_v6, %v1785_v47  ;;  %v1868_v11 = vmul.f32 %v1789_v6, %v1789_v6 }
 0x199   : > { %v1815_v12 = vadd.f32 %v1814_v8, %v1813_v4  ;;  %v1884_v13 = vrot.slane %v1883_v9, 4  ;;  %v1821_v14 = vrot.slane %v1820_v10, 4  ;;  %v1890_v15 = vadd.f32 %v1868_v11, %v1864_v7 }
 0x19b   : > { %v1816_v18 = vrot.slane %v1815_v12, 2  ;;  %v1885_v19 = vadd.f32 %v1884_v13, %v1883_v9  ;;  %v1822_v20 = vadd.f32 %v1821_v14, %v1820_v10  ;;  %v1891_v22 = vrot.slane %v1890_v15, 4 }
 0x19d   : > { %v1817_v23 = vadd.f32 %v1816_v18, %v1815_v12  ;;  %v1886_v24 = vrot.slane %v1885_v19, 2  ;;  %v1823_v25 = vrot.slane %v1822_v20, 2  ;;  %v1892_v26 = vadd.f32 %v1891_v22, %v1890_v15 }
 0x19f   : > { %v1818_v28 = vrot.slane %v1817_v23, 1  ;;  %v1887_v29 = vadd.f32 %v1886_v24, %v1885_v19  ;;  %v1824_v30 = vadd.f32 %v1823_v25, %v1822_v20  ;;  %v1893_v31 = vrot.slane %v1892_v26, 2 }
 0x1a1   : > { %v1888_v32 = vrot.slane %v1887_v29, 1  ;;  %v1825_v33 = vrot.slane %v1824_v30, 1  ;;  %v1894_v34 = vadd.f32 %v1893_v31, %v1892_v26  ;;  %v1819_v36 = vadd.f32 %v1818_v28, %v1817_v23 }
 0x1a3   : > { %v1826_v39 = vadd.f32 %v1825_v33, %v1824_v30  ;;  %v1895_v40 = vrot.slane %v1894_v34, 1  ;;  %v1889_v42 = vadd.f32 %v1888_v32, %v1887_v29 }
 0x1a5   : > { %v1832_v45 = vcombine.low %v1819_v36, %v1826_v39  ;;  %v1896_v52 = vadd.f32 %v1895_v40, %v1894_v34 }
 0x1a7   : > { %v1846_v54 = vrot.slane %v1832_v45, %v1838_v35  ;;  %v1902_v55 = vcombine.low %v1889_v42, %v1896_v52 }
 0x1a9   : > { %v1847_v57 = vcombine.low %v1839_v53, %v1846_v54  ;;  %v1916_v59 = vrot.slane %v1902_v55, %v1838_v35 }
 0x1ab   : > { %v1854_v41 = vrot.slane %v1847_v57, %v1838_v35  ;;  %v1917_v60 = vcombine.low %v1909_v56, %v1916_v59 }
 0x1ad   : > { %1860 = vst.msk [vmem:[%s268_s26] sm:$0xf] %vm1858_vm2, %v1854_v41  ;;  %v1924_v43 = vrot.slane %v1917_v60, %v1838_v35 }
 0x1af   : > { %1926 = vst.msk [vmem:[%s272_s22] sm:$0xf] %vm1858_vm2, %v1924_v43 }
 0x1b0 PF: > { %s17_s21 = sadd.s32 1, %s2555_s21  }
 0x1b1   : > { %p14_p4 = scmp.ge.s32.totalorder %s17_s21, 4  }
 0x1b3   :  { %16 = sbr.rel (!%p14_p4) target bundleno = 1 (0x1), region = 90 }

// kernel: tile.98
= control target key start
LH: loop header
LB: loop body
LE: loop exit
PB: predicated region body
PF: predicated region fallthrough
CT: control target
= control target key end

     0   :  { %s64_s0 = inlined_call_operand.vmem [shape: f32[4], index: 0, kind: input, shape index: {}]   ;;  %s65_s1 = inlined_call_operand.vmem [shape: f32[64,4], index: 1, kind: output, shape index: {}]  }
   0x1   :  { %v4_v0 = vld [vmem:[%s64_s0] ss:$0 sm:$0xff] }
   0x2   :  { %5 = vst [vmem:[%s65_s1] sm:$0xff] %v4_v0  ;;  %20 = vst [vmem:[%s65_s1 + $0x8] sm:$0xff] %v4_v0 }
   0x3   :  { %21 = vst [vmem:[%s65_s1 + $0x10] sm:$0xff] %v4_v0  ;;  %22 = vst [vmem:[%s65_s1 + $0x18] sm:$0xff] %v4_v0 }
   0x4   :  { %23 = vst [vmem:[%s65_s1 + $0x20] sm:$0xff] %v4_v0  ;;  %24 = vst [vmem:[%s65_s1 + $0x28] sm:$0xff] %v4_v0 }
   0x5   :  { %25 = vst [vmem:[%s65_s1 + $0x30] sm:$0xff] %v4_v0  ;;  %26 = vst [vmem:[%s65_s1 + $0x38] sm:$0xff] %v4_v0 }

// kernel: tile.99
= control target key start
LH: loop header
LB: loop body
LE: loop exit
PB: predicated region body
PF: predicated region fallthrough
CT: control target
= control target key end

     0   :  { %vm5_vm0 = vcmask 1041409   ;;  %s428_s14 = smov 124   ;;  %s429_s21 = smov 116   ;;  %vm7_vm1 = vcmask 31744   ;;  %vm17_vm2 = vcmask 1048544   ;;  %vm27_vm3 = vcmask 1015744   ;;  %s699_s0 = inlined_call_operand.vmem [shape: f32[64,4], index: 0, kind: input, shape index: {}]   ;;  %s700_s1 = inlined_call_operand.vmem [shape: f32[1,256], index: 1, kind: output, shape index: {}]  }
   0x1   :  { %v334_v0 = vld [vmem:[%s699_s0 + $0x1f] sm:$0x1]   ;;  %v338_v3 = vld [vmem:[%s699_s0 + $0x1d] sm:$0x1]   ;;  %v336_v6 = vld [vmem:[%s699_s0 + $0x1e] sm:$0x1]  }
   0x2   :  { %v335_v1 = vld [vmem:[%s699_s0 + $0x3e] sm:$0x2]   ;;  %v339_v4 = vld [vmem:[%s699_s0 + $0x3c] sm:$0x2]   ;;  %v337_v7 = vld [vmem:[%s699_s0 + $0x3d] sm:$0x2]  }
   0x3   :  { %v14_v2 = vsel %vm5_vm0, %v335_v1, %v334_v0  ;;  %v34_v5 = vsel %vm5_vm0, %v339_v4, %v338_v3  ;;  %v340_v8 = vld [vmem:[%s699_s0 + $0x1c] sm:$0x1]   ;;  %v24_v9 = vsel %vm5_vm0, %v337_v7, %v336_v6  ;;  %v342_v12 = vld [vmem:[%s699_s0 + $0x1b] sm:$0x1]   ;;  %v344_v14 = vld [vmem:[%s699_s0 + $0x1a] sm:$0x1]  }
   0x4   :  { %15 = vrot.lane.b32.xlu0 %v14_v2, %s428_s14  ;;  %35 = vrot.lane.b32.xlu1 %v34_v5, %s429_s21  ;;  %v341_v10 = vld [vmem:[%s699_s0 + $0x3b] sm:$0x2]   ;;  %v343_v13 = vld [vmem:[%s699_s0 + $0x3a] sm:$0x2]   ;;  %s430_s3 = smov 120   ;;  %s431_s4 = smov 112  }
   0x5   :  { %v44_v11 = vsel %vm5_vm0, %v341_v10, %v340_v8  ;;  %v345_v15 = vld [vmem:[%s699_s0 + $0x39] sm:$0x2]   ;;  %v54_v16 = vsel %vm5_vm0, %v343_v13, %v342_v12  ;;  %v346_v18 = vld [vmem:[%s699_s0 + $0x19] sm:$0x1]   ;;  %v348_v20 = vld [vmem:[%s699_s0 + $0x18] sm:$0x1]  }
   0x6   :  { %v64_v17 = vsel %vm5_vm0, %v345_v15, %v344_v14  ;;  %v347_v19 = vld [vmem:[%s699_s0 + $0x38] sm:$0x2]   ;;  %v349_v21 = vld [vmem:[%s699_s0 + $0x37] sm:$0x2]   ;;  %s432_s13 = smov 108   ;;  %s433_s14 = smov 104  }
   0x7   :  { %v74_v22 = vsel %vm5_vm0, %v347_v19, %v346_v18  ;;  %v84_v23 = vsel %vm5_vm0, %v349_v21, %v348_v20  ;;  %v350_v24 = vld [vmem:[%s699_s0 + $0x17] sm:$0x1]   ;;  %v352_v26 = vld [vmem:[%s699_s0 + $0x16] sm:$0x1]   ;;  %s434_s23 = smov 100   ;;  %s435_s24 = smov 96  }
   0x8   :  { %25 = vrot.lane.b32.xlu0 %v24_v9, %s430_s3  ;;  %45 = vrot.lane.b32.xlu1 %v44_v11, %s431_s4  ;;  %v351_v25 = vld [vmem:[%s699_s0 + $0x36] sm:$0x2]   ;;  %v353_v27 = vld [vmem:[%s699_s0 + $0x35] sm:$0x2]   ;;  %s436_s4 = smov 92   ;;  %s437_s5 = smov 88  }
   0x9   :  { %v94_v28 = vsel %vm5_vm0, %v351_v25, %v350_v24  ;;  %v104_v29 = vsel %vm5_vm0, %v353_v27, %v352_v26  ;;  %v354_v30 = vld [vmem:[%s699_s0 + $0x15] sm:$0x1]   ;;  %v356_v32 = vld [vmem:[%s699_s0 + $0x14] sm:$0x1]   ;;  %v358_v36 = vld [vmem:[%s699_s0 + $0x13] sm:$0x1]  }
   0xa   :  { %v355_v31 = vld [vmem:[%s699_s0 + $0x34] sm:$0x2]   ;;  %v357_v33 = vld [vmem:[%s699_s0 + $0x33] sm:$0x2]   ;;  %v359_v37 = vld [vmem:[%s699_s0 + $0x32] sm:$0x2]  }
   0xb   :  { %v114_v34 = vsel %vm5_vm0, %v355_v31, %v354_v30  ;;  %v124_v35 = vsel %vm5_vm0, %v357_v33, %v356_v32  ;;  %v360_v38 = vld [vmem:[%s699_s0 + $0x12] sm:$0x1]   ;;  %s439_s15 = smov 80   ;;  %v134_v40 = vsel %vm5_vm0, %v359_v37, %v358_v36  ;;  %v362_v42 = vld [vmem:[%s699_s0 + $0x11] sm:$0x1]   ;;  %s441_s29 = smov 72  }
   0xc   :  { %55 = vrot.lane.b32.xlu0 %v54_v16, %s432_s13  ;;  %65 = vrot.lane.b32.xlu1 %v64_v17, %s433_s14  ;;  %v361_v39 = vld [vmem:[%s699_s0 + $0x31] sm:$0x2]   ;;  %s438_s14 = smov 84   ;;  %v363_v43 = vld [vmem:[%s699_s0 + $0x30] sm:$0x2]   ;;  %s442_s9 = smov 68  }
   0xd   :  { %v144_v41 = vsel %vm5_vm0, %v361_v39, %v360_v38  ;;  %v364_v44 = vld [vmem:[%s699_s0 + $0x10] sm:$0x1]   ;;  %v2_v46 = vld [vmem:[%s699_s0] sm:$0x1]   ;;  %v154_v48 = vsel %vm5_vm0, %v363_v43, %v362_v42  ;;  %v366_v51 = vld [vmem:[%s699_s0 + $0xf] sm:$0x1]  }
   0xe   :  { %v365_v45 = vld [vmem:[%s699_s0 + $0x2f] sm:$0x2]   ;;  %v333_v47 = vld [vmem:[%s699_s0 + $0x1f] sm:$0x2]   ;;  %v367_v52 = vld [vmem:[%s699_s0 + $0x2e] sm:$0x2]  }
   0xf   :  { %v6_v49 = vsel %vm5_vm0, %v333_v47, %v2_v46  ;;  %v164_v50 = vsel %vm5_vm0, %v365_v45, %v364_v44  ;;  %v368_v53 = vld [vmem:[%s699_s0 + $0xe] sm:$0x1]   ;;  %s443_s10 = smov 64   ;;  %v174_v55 = vsel %vm5_vm0, %v367_v52, %v366_v51  ;;  %v370_v57 = vld [vmem:[%s699_s0 + $0xd] sm:$0x1]   ;;  %s444_s19 = smov 60  }
  0x10   :  { %75 = vrot.lane.b32.xlu0 %v74_v22, %s434_s23  ;;  %85 = vrot.lane.b32.xlu1 %v84_v23, %s435_s24  ;;  %s440_s24 = smov 76   ;;  %8 = vst.msk [vmem:[#allocation0] ss:$8 sm:$0x3] %vm7_vm1, %v6_v49   ;;  %v369_v54 = vld [vmem:[%s699_s0 + $0x2d] sm:$0x2]  }
  0x11   :  { %v184_v56 = vsel %vm5_vm0, %v369_v54, %v368_v53  ;;  %v371_v58 = vld [vmem:[%s699_s0 + $0x2c] sm:$0x2]   ;;  %v372_v59 = vld [vmem:[%s699_s0 + $0xc] sm:$0x1]   ;;  %s445_s20 = smov 56   ;;  %s447_s30 = smov 48  }
  0x12   :  { %v373_v60 = vld [vmem:[%s699_s0 + $0x2b] sm:$0x2]   ;;  %v194_v61 = vsel %vm5_vm0, %v371_v58, %v370_v57  ;;  %v374_v63 = vld [vmem:[%s699_s0 + $0xb] sm:$0x1]   ;;  %v376_v1 = vld [vmem:[%s699_s0 + $0xa] sm:$0x1]  }
  0x13   :  { %v204_v62 = vsel %vm5_vm0, %v373_v60, %v372_v59  ;;  %v375_v0 = vld [vmem:[%s699_s0 + $0x2a] sm:$0x2]   ;;  %v377_v2 = vld [vmem:[%s699_s0 + $0x29] sm:$0x2]   ;;  %v378_v5 = vld [vmem:[%s699_s0 + $0x9] sm:$0x1]  }
  0x14   :  { %95 = vrot.lane.b32.xlu0 %v94_v28, %s436_s4  ;;  %105 = vrot.lane.b32.xlu1 %v104_v29, %s437_s5  ;;  %v214_v3 = vsel %vm5_vm0, %v375_v0, %v374_v63  ;;  %v224_v4 = vsel %vm5_vm0, %v377_v2, %v376_v1  ;;  %v379_v6 = vld [vmem:[%s699_s0 + $0x28] sm:$0x2]   ;;  %v380_v7 = vld [vmem:[%s699_s0 + $0x8] sm:$0x1]   ;;  %s449_s11 = smov 40   ;;  %s451_s21 = smov 32  }
  0x15   :  { %v381_v8 = vld [vmem:[%s699_s0 + $0x27] sm:$0x2]   ;;  %v234_v9 = vsel %vm5_vm0, %v379_v6, %v378_v5  ;;  %v382_v11 = vld [vmem:[%s699_s0 + $0x7] sm:$0x1]   ;;  %v384_v13 = vld [vmem:[%s699_s0 + $0x6] sm:$0x1]  }
  0x16   :  { %v244_v10 = vsel %vm5_vm0, %v381_v8, %v380_v7  ;;  %v383_v12 = vld [vmem:[%s699_s0 + $0x26] sm:$0x2]   ;;  %v385_v14 = vld [vmem:[%s699_s0 + $0x25] sm:$0x2]   ;;  %v386_v17 = vld [vmem:[%s699_s0 + $0x5] sm:$0x1]  }
  0x17   :  { %v254_v15 = vsel %vm5_vm0, %v383_v12, %v382_v11  ;;  %v264_v16 = vsel %vm5_vm0, %v385_v14, %v384_v13  ;;  %v387_v18 = vld [vmem:[%s699_s0 + $0x24] sm:$0x2]   ;;  %v388_v19 = vld [vmem:[%s699_s0 + $0x4] sm:$0x1]   ;;  %s453_s2 = smov 24   ;;  %s455_s12 = smov 16  }
  0x18   :  { %115 = vrot.lane.b32.xlu0 %v114_v34, %s438_s14  ;;  %125 = vrot.lane.b32.xlu1 %v124_v35, %s439_s15  ;;  %v389_v20 = vld [vmem:[%s699_s0 + $0x23] sm:$0x2]   ;;  %v274_v21 = vsel %vm5_vm0, %v387_v18, %v386_v17  ;;  %v390_v23 = vld [vmem:[%s699_s0 + $0x3] sm:$0x1]   ;;  %s457_s17 = smov 8   ;;  %s458_s18 = smov 4  }
  0x19   :  { %v284_v22 = vsel %vm5_vm0, %v389_v20, %v388_v19  ;;  %v391_v24 = vld [vmem:[%s699_s0 + $0x22] sm:$0x2]   ;;  %v392_v25 = vld [vmem:[%s699_s0 + $0x2] sm:$0x1]   ;;  %v394_v29 = vld [vmem:[%s699_s0 + $0x1] sm:$0x1]  }
  0x1a   :  { %v393_v26 = vld [vmem:[%s699_s0 + $0x21] sm:$0x2]   ;;  %v294_v27 = vsel %vm5_vm0, %v391_v24, %v390_v23  ;;  %v395_v30 = vld [vmem:[%s699_s0 + $0x20] sm:$0x2]   ;;  %s456_s0 = smov 12   ;;  %vm37_vm4 = vcmask 982944  }
  0x1b   :  { %v304_v28 = vsel %vm5_vm0, %v393_v26, %v392_v25  ;;  %v314_v31 = vsel %vm5_vm0, %v395_v30, %v394_v29  ;;  %vm47_vm5 = vcmask 950144   ;;  %vm57_vm6 = vcmask 917344  }
  0x1c   :  { %135 = vrot.lane.b32.xlu0 %v134_v40, %s440_s24  ;;  %145 = vrot.lane.b32.xlu1 %v144_v41, %s441_s29  ;;  %s446_s29 = smov 52   ;;  %vm67_vm7 = vcmask 884544   ;;  %vm77_vm8 = vcmask 851744   ;;  %vm87_vm9 = vcmask 818944   ;;  %vm97_vm10 = vcmask 786144  }
  0x1d   :  { %vm107_vm11 = vcmask 753344   ;;  %vm117_vm12 = vcmask 720544   ;;  %vm127_vm13 = vcmask 687744   ;;  %vm137_vm14 = vcmask 654944  }
  0x1e   :  { %vm147_vm15 = vcmask 622144   ;;  %vm157_vm0 = vcmask 589344   ;;  %vm167_vm1 = vcmask 556544  }
  0x20   :  { %155 = vrot.lane.b32.xlu0 %v154_v48, %s442_s9  ;;  %165 = vrot.lane.b32.xlu1 %v164_v50, %s443_s10  ;;  %s448_s10 = smov 44  }
  0x24   :  { %175 = vrot.lane.b32.xlu0 %v174_v55, %s444_s19  ;;  %185 = vrot.lane.b32.xlu1 %v184_v56, %s445_s20  ;;  %s450_s20 = smov 36  }
  0x28   :  { %195 = vrot.lane.b32.xlu0 %v194_v61, %s446_s29  ;;  %205 = vrot.lane.b32.xlu1 %v204_v62, %s447_s30  ;;  %s452_s30 = smov 28  }
  0x2c   :  { %215 = vrot.lane.b32.xlu0 %v214_v3, %s448_s10  ;;  %225 = vrot.lane.b32.xlu1 %v224_v4, %s449_s11  ;;  %s454_s11 = smov 20  }
  0x30   :  { %235 = vrot.lane.b32.xlu0 %v234_v9, %s450_s20  ;;  %245 = vrot.lane.b32.xlu1 %v244_v10, %s451_s21 }
  0x34   :  { %255 = vrot.lane.b32.xlu0 %v254_v15, %s452_s30  ;;  %265 = vrot.lane.b32.xlu1 %v264_v16, %s453_s2 }
  0x38   :  { %275 = vrot.lane.b32.xlu0 %v274_v21, %s454_s11  ;;  %285 = vrot.lane.b32.xlu1 %v284_v22, %s455_s12 }
  0x3c   :  { %295 = vrot.lane.b32.xlu0 %v294_v27, %s456_s0  ;;  %305 = vrot.lane.b32.xlu1 %v304_v28, %s457_s17 }
  0x40   :  { %315 = vrot.lane.b32.xlu0 %v314_v31, %s458_s18 }
  0x76   :  { %v16_v32 = vpop.permute.xlu0 %15   ;;  %v36_v33 = vpop.permute.xlu1 %35  }
  0x77   :  { %18 = vst.msk [vmem:[#allocation0] ss:$8 sm:$0x3] %vm17_vm2, %v16_v32   ;;  %vm177_vm2 = vcmask 523744  }
  0x7a   :  { %v26_v34 = vpop.permute.xlu0 %25   ;;  %v46_v35 = vpop.permute.xlu1 %45  }
  0x7b   :  { %28 = vst.msk [vmem:[#allocation0] ss:$8 sm:$0x3] %vm27_vm3, %v26_v34   ;;  %vm187_vm3 = vcmask 490944  }
  0x7c   :  { %38 = vst.msk [vmem:[#allocation0] ss:$8 sm:$0x3] %vm37_vm4, %v36_v33   ;;  %vm197_vm4 = vcmask 458144  }
  0x7d   :  { %48 = vst.msk [vmem:[#allocation0] ss:$8 sm:$0x3] %vm47_vm5, %v46_v35   ;;  %vm207_vm5 = vcmask 425344  }
  0x7e   :  { %v56_v36 = vpop.permute.xlu0 %55   ;;  %v66_v37 = vpop.permute.xlu1 %65  }
  0x7f   :  { %58 = vst.msk [vmem:[#allocation0] ss:$8 sm:$0x3] %vm57_vm6, %v56_v36   ;;  %vm217_vm6 = vcmask 392544  }
  0x80   :  { %68 = vst.msk [vmem:[#allocation0] ss:$8 sm:$0x3] %vm67_vm7, %v66_v37   ;;  %vm227_vm7 = vcmask 359744  }
  0x82   :  { %v76_v38 = vpop.permute.xlu0 %75   ;;  %v86_v39 = vpop.permute.xlu1 %85  }
  0x83   :  { %78 = vst.msk [vmem:[#allocation0] ss:$8 sm:$0x3] %vm77_vm8, %v76_v38   ;;  %vm237_vm8 = vcmask 326944  }
  0x84   :  { %88 = vst.msk [vmem:[#allocation0] ss:$8 sm:$0x3] %vm87_vm9, %v86_v39   ;;  %vm247_vm9 = vcmask 294144  }
  0x86   :  { %v96_v40 = vpop.permute.xlu0 %95   ;;  %v106_v41 = vpop.permute.xlu1 %105  }
  0x87   :  { %98 = vst.msk [vmem:[#allocation0] ss:$8 sm:$0x3] %vm97_vm10, %v96_v40   ;;  %vm257_vm10 = vcmask 261344  }
  0x88   :  { %108 = vst.msk [vmem:[#allocation0] ss:$8 sm:$0x3] %vm107_vm11, %v106_v41   ;;  %vm267_vm11 = vcmask 228544  }
  0x8a   :  { %v116_v42 = vpop.permute.xlu0 %115   ;;  %v126_v43 = vpop.permute.xlu1 %125  }
  0x8b   :  { %118 = vst.msk [vmem:[#allocation0] ss:$8 sm:$0x3] %vm117_vm12, %v116_v42   ;;  %vm277_vm12 = vcmask 195744  }
  0x8c   :  { %128 = vst.msk [vmem:[#allocation0] ss:$8 sm:$0x3] %vm127_vm13, %v126_v43   ;;  %vm287_vm13 = vcmask 162944  }
  0x8e   :  { %v136_v44 = vpop.permute.xlu0 %135   ;;  %v146_v45 = vpop.permute.xlu1 %145  }
  0x8f   :  { %138 = vst.msk [vmem:[#allocation0] ss:$8 sm:$0x3] %vm137_vm14, %v136_v44   ;;  %vm297_vm14 = vcmask 130144  }
  0x90   :  { %148 = vst.msk [vmem:[#allocation0] ss:$8 sm:$0x3] %vm147_vm15, %v146_v45   ;;  %vm307_vm15 = vcmask 97344  }
  0x92   :  { %v156_v46 = vpop.permute.xlu0 %155   ;;  %v166_v47 = vpop.permute.xlu1 %165  }
  0x93   :  { %158 = vst.msk [vmem:[#allocation0] ss:$8 sm:$0x3] %vm157_vm0, %v156_v46   ;;  %vm317_vm0 = vcmask 64544  }
  0x94   :  { %168 = vst.msk [vmem:[#allocation0] ss:$8 sm:$0x3] %vm167_vm1, %v166_v47  }
  0x96   :  { %v176_v48 = vpop.permute.xlu0 %175   ;;  %v186_v49 = vpop.permute.xlu1 %185  }
  0x97   :  { %178 = vst.msk [vmem:[#allocation0] ss:$8 sm:$0x3] %vm177_vm2, %v176_v48  }
  0x98   :  { %188 = vst.msk [vmem:[#allocation0] ss:$8 sm:$0x3] %vm187_vm3, %v186_v49  }
  0x9a   :  { %v196_v50 = vpop.permute.xlu0 %195   ;;  %v206_v51 = vpop.permute.xlu1 %205  }
  0x9b   :  { %198 = vst.msk [vmem:[#allocation0] ss:$8 sm:$0x3] %vm197_vm4, %v196_v50  }
  0x9c   :  { %208 = vst.msk [vmem:[#allocation0] ss:$8 sm:$0x3] %vm207_vm5, %v206_v51  }
  0x9e   :  { %v216_v52 = vpop.permute.xlu0 %215   ;;  %v226_v53 = vpop.permute.xlu1 %225  }
  0x9f   :  { %218 = vst.msk [vmem:[#allocation0] ss:$8 sm:$0x3] %vm217_vm6, %v216_v52  }
  0xa0   :  { %228 = vst.msk [vmem:[#allocation0] ss:$8 sm:$0x3] %vm227_vm7, %v226_v53  }
  0xa2   :  { %v236_v54 = vpop.permute.xlu0 %235   ;;  %v246_v55 = vpop.permute.xlu1 %245  }
  0xa3   :  { %238 = vst.msk [vmem:[#allocation0] ss:$8 sm:$0x3] %vm237_vm8, %v236_v54  }
  0xa4   :  { %248 = vst.msk [vmem:[#allocation0] ss:$8 sm:$0x3] %vm247_vm9, %v246_v55  }
  0xa6   :  { %v256_v56 = vpop.permute.xlu0 %255   ;;  %v266_v57 = vpop.permute.xlu1 %265  }
  0xa7   :  { %258 = vst.msk [vmem:[#allocation0] ss:$8 sm:$0x3] %vm257_vm10, %v256_v56  }
  0xa8   :  { %268 = vst.msk [vmem:[#allocation0] ss:$8 sm:$0x3] %vm267_vm11, %v266_v57  }
  0xaa   :  { %v276_v58 = vpop.permute.xlu0 %275   ;;  %v286_v59 = vpop.permute.xlu1 %285  }
  0xab   :  { %278 = vst.msk [vmem:[#allocation0] ss:$8 sm:$0x3] %vm277_vm12, %v276_v58  }
  0xac   :  { %288 = vst.msk [vmem:[#allocation0] ss:$8 sm:$0x3] %vm287_vm13, %v286_v59  }
  0xae   :  { %v296_v60 = vpop.permute.xlu0 %295   ;;  %v306_v61 = vpop.permute.xlu1 %305  }
  0xaf   :  { %298 = vst.msk [vmem:[#allocation0] ss:$8 sm:$0x3] %vm297_vm14, %v296_v60  }
  0xb0   :  { %308 = vst.msk [vmem:[#allocation0] ss:$8 sm:$0x3] %vm307_vm15, %v306_v61  }
  0xb2   :  { %v316_v62 = vpop.permute.xlu0 %315  }
  0xb3   :  { %318 = vst.msk [vmem:[#allocation0] ss:$8 sm:$0x3] %vm317_vm0, %v316_v62  }
  0xba   :  { %v323_v63 = vld [vmem:[#allocation0] sm:$0x1]  ;;  %v328_v0 = vld [vmem:[#allocation0 + $0x8] sm:$0x1] }
  0xbb   :  { %326 = vst [vmem:[%s700_s1] sm:$0x1] %v323_v63  ;;  %396 = vst [vmem:[%s700_s1 + $0x1] sm:$0x1] %v328_v0 }

// kernel: decoder_forward.10
= control target key start
LH: loop header
LB: loop body
LE: loop exit
PB: predicated region body
PF: predicated region fallthrough
CT: control target
= control target key end

     0   :  { %s2772_s21 = smov 0   ;;  %s3564_s0 = inlined_call_operand.vmem [shape: f32[2,32,256], index: 0, kind: input, shape index: {}]   ;;  %s3565_s1 = inlined_call_operand.vmem [shape: f32[1,256], index: 1, kind: input, shape index: {}]   ;;  %s3566_s2 = inlined_call_operand.vmem [shape: f32[1,256], index: 2, kind: input, shape index: {}]   ;;  %s3567_s3 = inlined_call_operand.vmem [shape: bf16[768,512], index: 3, kind: input, shape index: {}]   ;;  %s3568_s4 = inlined_call_operand.vmem [shape: f32[2,32,512], index: 4, kind: output, shape index: {0}]   ;;  %s3569_s5 = inlined_call_operand.vmem [shape: f32[2,1,512], index: 5, kind: output, shape index: {1}]   ;;  %s3570_s6 = inlined_call_operand.vmem [shape: f32[2,1,512], index: 6, kind: output, shape index: {2}]  }
   0x1 LB: > { %s2222_s22 = sadd.s32 4294967295, %s2733_s21   ;;  %p2226_p0 = scmp.ge.s32.totalorder %s2733_s21, 1  ;;  %s2733_s21 = sphi %s2772_s21, %s17_s21  }
   0x2   : > { %p217_p1 = scmp.lt.s32.totalorder %s2733_s21, 3 }
   0x4   : > { %p218_p2 = pnand %p2226_p0, %p217_p1 }
   0x5   : > { %p255_p3 = scmp.lt.s32.totalorder (!%p218_p2), %s2222_s22, 1 }
   0x6   : > { %221 = sbr.rel (%p218_p2) target bundleno = 440 (0x1b8), region = 36 }
   0xb   : > { %v2439_v0 = vld [vmem:[%s3567_s3 + $0xe4] ss:$16 sps:$4 sm:$0xff]   ;;  %v2735_v2 = vmov 0.0   ;;  %v2443_v3 = vld [vmem:[%s3567_s3 + $0xe0] ss:$16 sps:$4 sm:$0xff]   ;;  %v283_v37 = vlaneseq  ;;  %s3572_s22 = smov (!%p255_p3, %s2222_s22), 1 }
   0xc   : > { %v2441_v1 = vld [vmem:[%s3567_s3 + $0x2e4] ss:$16 sps:$4 sm:$0xff]   ;;  %330 = vst [vmem:[#allocation2] sm:$0xff] %v2735_v2  ;;  %329 = vst [vmem:[#allocation2 + $0xb0] sm:$0xff] %v2735_v2  ;;  %1619 = vmatprep.subr.bf16.mxu0 %v2439_v0  ;;  %v2444_v4 = vld [vmem:[%s3567_s3 + $0x2e0] ss:$16 sps:$4 sm:$0xff]  }
   0xd   : > { %351 = vst [vmem:[#allocation2 + $0x20] sm:$0xff] %v2735_v2  ;;  %352 = vst [vmem:[#allocation2 + $0x8] sm:$0xff] %v2735_v2  ;;  %1672 = vmatprep.subr.bf16.mxu1 %v2441_v1  ;;  %v2445_v5 = vld [vmem:[%s3567_s3 + $0xc4] ss:$16 sps:$4 sm:$0xff]   ;;  %1620 = vmatpush1.bf16.msra.mxu0 %v2443_v3  ;;  %v2449_v7 = vld [vmem:[%s3567_s3 + $0xc0] ss:$16 sps:$4 sm:$0xff]  }
   0xe   : > { %1673 = vmatpush1.bf16.msra.mxu1 %v2444_v4  ;;  %v2447_v6 = vld [vmem:[%s3567_s3 + $0x2c4] ss:$16 sps:$4 sm:$0xff]   ;;  %1621 = vmatprep.subr.bf16.mxu0 %v2445_v5  ;;  %v2450_v8 = vld [vmem:[%s3567_s3 + $0x2c0] ss:$16 sps:$4 sm:$0xff]   ;;  %v2904_v41 = vshrl.u32 %v283_v37, 7  ;;  %s2427_s15 = sshll.u32 %s3572_s22, 6 }
   0xf   : > { %1674 = vmatprep.subr.bf16.mxu1 %v2447_v6  ;;  %v2451_v9 = vld [vmem:[%s3567_s3 + $0xa4] ss:$16 sps:$4 sm:$0xff]   ;;  %v2455_v11 = vld [vmem:[%s3567_s3 + $0xa0] ss:$16 sps:$4 sm:$0xff]   ;;  %s2925_s26 = scalar_lea.vmem %s3564_s0, %s2427_s15  ;;  %vm369_vm0 = vcmask 1040384   ;;  %vm400_vm1 = vcmask 1046528  }
  0x10   : > { %v2453_v10 = vld [vmem:[%s3567_s3 + $0x2a4] ss:$16 sps:$4 sm:$0xff]   ;;  %v2456_v12 = vld [vmem:[%s3567_s3 + $0x2a0] ss:$16 sps:$4 sm:$0xff]   ;;  %v285_v48 = vsub.s32 0, %v2904_v41  ;;  %v289_v49 = vsub.s32 1, %v2904_v41 }
  0x11   : > { %1622 = vmatpush1.bf16.msra.mxu0 %v2449_v7  ;;  %v2457_v13 = vld [vmem:[%s3567_s3 + $0x84] ss:$16 sps:$4 sm:$0xff]   ;;  %v2461_v15 = vld [vmem:[%s3567_s3 + $0x80] ss:$16 sps:$4 sm:$0xff]   ;;  %v274_v53 = vld [vmem:[%s2925_s26 + $0x8] sm:$0xff]  ;;  %s2428_s20 = sshll.u32 %s3572_s22, 7 }
  0x12   : > { %1675 = vmatpush1.bf16.msra.mxu1 %v2450_v8  ;;  %1623 = vmatprep.subr.bf16.mxu0 %v2451_v9  ;;  %v2459_v14 = vld [vmem:[%s3567_s3 + $0x284] ss:$16 sps:$4 sm:$0xff]   ;;  %v2462_v16 = vld [vmem:[%s3567_s3 + $0x280] ss:$16 sps:$4 sm:$0xff]   ;;  %v276_v54 = vld [vmem:[%s2925_s26 + $0x18] sm:$0xff]  ;;  %s3516_s25 = scalar_lea.vmem %s3568_s4, %s2428_s20  ;;  %s2231_s27 = sshll.u32 %s3572_s22, 2 }
  0x13   : > { %1676 = vmatprep.subr.bf16.mxu1 %v2453_v10  ;;  %v2463_v17 = vld [vmem:[%s3567_s3 + $0x64] ss:$16 sps:$4 sm:$0xff]   ;;  %v2467_v19 = vld [vmem:[%s3567_s3 + $0x60] ss:$16 sps:$4 sm:$0xff]   ;;  %s268_s30 = scalar_lea.vmem %s3569_s5, %s2231_s27  ;;  %vm2020_vm2 = vcmp.lt.s32.totalorder %v283_v37, 512  ;;  %s272_s22 = scalar_lea.vmem %s3570_s6, %s2231_s27 }
  0x14   : > { %v2465_v18 = vld [vmem:[%s3567_s3 + $0x264] ss:$16 sps:$4 sm:$0xff]   ;;  %v2468_v20 = vld [vmem:[%s3567_s3 + $0x260] ss:$16 sps:$4 sm:$0xff]  }
  0x15   : > { %1624 = vmatpush1.bf16.msra.mxu0 %v2455_v11  ;;  %v2469_v21 = vld [vmem:[%s3567_s3 + $0x44] ss:$16 sps:$4 sm:$0xff]   ;;  %v2473_v23 = vld [vmem:[%s3567_s3 + $0x40] ss:$16 sps:$4 sm:$0xff]  }
  0x16   : > { %1677 = vmatpush1.bf16.msra.mxu1 %v2456_v12  ;;  %1625 = vmatprep.subr.bf16.mxu0 %v2457_v13  ;;  %v2471_v22 = vld [vmem:[%s3567_s3 + $0x244] ss:$16 sps:$4 sm:$0xff]   ;;  %v2474_v24 = vld [vmem:[%s3567_s3 + $0x240] ss:$16 sps:$4 sm:$0xff]  }
  0x17   : > { %1678 = vmatprep.subr.bf16.mxu1 %v2459_v14  ;;  %v2475_v25 = vld [vmem:[%s3567_s3 + $0x24] ss:$16 sps:$4 sm:$0xff]   ;;  %v2479_v27 = vld [vmem:[%s3567_s3 + $0x20] ss:$16 sps:$4 sm:$0xff]  }
  0x18   : > { %v2477_v26 = vld [vmem:[%s3567_s3 + $0x224] ss:$16 sps:$4 sm:$0xff]   ;;  %v2480_v28 = vld [vmem:[%s3567_s3 + $0x220] ss:$16 sps:$4 sm:$0xff]  }
  0x19   : > { %1626 = vmatpush1.bf16.msra.mxu0 %v2461_v15  ;;  %v2481_v29 = vld [vmem:[%s3567_s3 + $0x4] ss:$16 sps:$4 sm:$0xff]   ;;  %v2485_v31 = vld [vmem:[%s3567_s3] ss:$16 sps:$4 sm:$0xff]  }
  0x1a   : > { %1679 = vmatpush1.bf16.msra.mxu1 %v2462_v16  ;;  %1627 = vmatprep.subr.bf16.mxu0 %v2463_v17  ;;  %v2483_v30 = vld [vmem:[%s3567_s3 + $0x204] ss:$16 sps:$4 sm:$0xff]   ;;  %v2486_v32 = vld [vmem:[%s3567_s3 + $0x200] ss:$16 sps:$4 sm:$0xff]  }
  0x1b   : > { %1680 = vmatprep.subr.bf16.mxu1 %v2465_v18  ;;  %v2487_v33 = vld [vmem:[%s3567_s3 + $0x1e4] ss:$16 sps:$4 sm:$0xff]   ;;  %v2491_v35 = vld [vmem:[%s3567_s3 + $0x1e0] ss:$16 sps:$4 sm:$0xff]  }
  0x1c   : > { %v2489_v34 = vld [vmem:[%s3567_s3 + $0x3e4] ss:$16 sps:$4 sm:$0xff]   ;;  %v2492_v36 = vld [vmem:[%s3567_s3 + $0x3e0] ss:$16 sps:$4 sm:$0xff]  }
  0x1d   : > { %1628 = vmatpush1.bf16.msra.mxu0 %v2467_v19  ;;  %v2493_v38 = vld [vmem:[%s3567_s3 + $0x1c4] ss:$16 sps:$4 sm:$0xff]   ;;  %v2497_v40 = vld [vmem:[%s3567_s3 + $0x1c0] ss:$16 sps:$4 sm:$0xff]  }
  0x1e   : > { %1681 = vmatpush1.bf16.msra.mxu1 %v2468_v20  ;;  %1629 = vmatprep.subr.bf16.mxu0 %v2469_v21  ;;  %v2495_v39 = vld [vmem:[%s3567_s3 + $0x3c4] ss:$16 sps:$4 sm:$0xff]   ;;  %v2498_v42 = vld [vmem:[%s3567_s3 + $0x3c0] ss:$16 sps:$4 sm:$0xff]  }
  0x1f   : > { %1682 = vmatprep.subr.bf16.mxu1 %v2471_v22  ;;  %v2499_v43 = vld [vmem:[%s3567_s3 + $0x1a4] ss:$16 sps:$4 sm:$0xff]   ;;  %v2503_v45 = vld [vmem:[%s3567_s3 + $0x1a0] ss:$16 sps:$4 sm:$0xff]  }
  0x20   : > { %v2501_v44 = vld [vmem:[%s3567_s3 + $0x3a4] ss:$16 sps:$4 sm:$0xff]   ;;  %v2504_v46 = vld [vmem:[%s3567_s3 + $0x3a0] ss:$16 sps:$4 sm:$0xff]  }
  0x21   : > { %1630 = vmatpush1.bf16.msra.mxu0 %v2473_v23  ;;  %v2505_v47 = vld [vmem:[%s3567_s3 + $0x184] ss:$16 sps:$4 sm:$0xff]   ;;  %v2509_v51 = vld [vmem:[%s3567_s3 + $0x180] ss:$16 sps:$4 sm:$0xff]  }
  0x22   : > { %1683 = vmatpush1.bf16.msra.mxu1 %v2474_v24  ;;  %1631 = vmatprep.subr.bf16.mxu0 %v2475_v25  ;;  %v2507_v50 = vld [vmem:[%s3567_s3 + $0x384] ss:$16 sps:$4 sm:$0xff]   ;;  %v2510_v52 = vld [vmem:[%s3567_s3 + $0x380] ss:$16 sps:$4 sm:$0xff]  }
  0x23   : > { %1684 = vmatprep.subr.bf16.mxu1 %v2477_v26  ;;  %v281_v55 = vld [vmem:[%s3565_s1] sm:$0x3]  ;;  %v275_v61 = vld [vmem:[%s2925_s26 + $0x10] sm:$0xff] }
  0x24   : > { %v301_v56 = vld [vmem:[%s3566_s2] sm:$0x3]  ;;  %v2949_v57 = vrot.slane %v281_v55, %v285_v48  ;;  %v2951_v58 = vrot.slane %v281_v55, %v289_v49  ;;  %v2511_v62 = vld [vmem:[%s3567_s3 + $0x164] ss:$16 sps:$4 sm:$0xff]  }
  0x25   : > { %1632 = vmatpush1.bf16.msra.mxu0 %v2479_v27  ;;  %v2953_v59 = vrot.slane %v301_v56, %v285_v48  ;;  %v273_v60 = vld [vmem:[%s2925_s26] sm:$0xff]  ;;  %v2963_v0 = vrot.slane %v301_v56, %v289_v49  ;;  %v2552_v56 = vld [vmem:[%s3567_s3 + $0xac] ss:$16 sps:$4 sm:$0xff]  }
  0x26   : > { %1685 = vmatpush1.bf16.msra.mxu1 %v2480_v28  ;;  %1633 = vmatprep.subr.bf16.mxu0 %v2481_v29  ;;  %v2513_v63 = vld [vmem:[%s3567_s3 + $0x364] ss:$16 sps:$4 sm:$0xff]   ;;  %v294_v1 = vmul.f32 %v2951_v58, %v274_v53  ;;  %v296_v2 = vmul.f32 %v2951_v58, %v276_v54  ;;  %v293_v3 = vmul.f32 %v2949_v57, %v273_v60  ;;  %v2515_v5 = vld [vmem:[%s3567_s3 + $0x160] ss:$16 sps:$4 sm:$0xff]   ;;  %v2544_v54 = vld [vmem:[%s3567_s3 + $0xc8] ss:$16 sps:$4 sm:$0xff]  }
  0x27   : > { %1686 = vmatprep.subr.bf16.mxu1 %v2483_v30  ;;  %v295_v4 = vmul.f32 %v2949_v57, %v275_v61  ;;  %v2516_v6 = vld [vmem:[%s3567_s3 + $0x360] ss:$16 sps:$4 sm:$0xff]   ;;  %v2517_v10 = vld [vmem:[%s3567_s3 + $0x144] ss:$16 sps:$4 sm:$0xff]   ;;  %v2550_v61 = vld [vmem:[%s3567_s3 + $0xa8] ss:$16 sps:$4 sm:$0xff]  }
  0x28   : > { %v314_v7 = vadd.f32 %v2963_v0, %v294_v1  ;;  %v316_v8 = vadd.f32 %v2963_v0, %v296_v2  ;;  %v313_v9 = vadd.f32 %v2953_v59, %v293_v3  ;;  %v2519_v11 = vld [vmem:[%s3567_s3 + $0x344] ss:$16 sps:$4 sm:$0xff]   ;;  %v2521_v16 = vld [vmem:[%s3567_s3 + $0x140] ss:$16 sps:$4 sm:$0xff]   ;;  %v2556_v2 = vld [vmem:[%s3567_s3 + $0x88] ss:$16 sps:$4 sm:$0xff]  }
  0x29   : > { %1634 = vmatpush1.bf16.msra.mxu0 %v2485_v31  ;;  %v315_v12 = vadd.f32 %v2953_v59, %v295_v4  ;;  %v2522_v17 = vld [vmem:[%s3567_s3 + $0x340] ss:$16 sps:$4 sm:$0xff]   ;;  %v2523_v19 = vld [vmem:[%s3567_s3 + $0x124] ss:$16 sps:$4 sm:$0xff]   ;;  %v2564_v4 = vld [vmem:[%s3567_s3 + $0x6c] ss:$16 sps:$4 sm:$0xff]  }
  0x2a   : > { %1687 = vmatpush1.bf16.msra.mxu1 %v2486_v32  ;;  %1635 = vmatprep.subr.bf16.mxu0 %v2487_v33  ;;  %v322_v13 = vmax.f32 %v314_v7, 0.0  ;;  %v2985_v14 = vmax.f32 %v316_v8, 0.0  ;;  %v321_v15 = vmax.f32 %v313_v9, 0.0  ;;  %v2525_v24 = vld [vmem:[%s3567_s3 + $0x324] ss:$16 sps:$4 sm:$0xff]   ;;  %v278_v9 = vld [vmem:[%s2925_s26 + $0x28] sm:$0xff] }
  0x2b   : > { %1688 = vmatprep.subr.bf16.mxu1 %v2489_v34  ;;  %v2993_v18 = vmax.f32 %v315_v12, 0.0  ;;  %v2527_v29 = vld [vmem:[%s3567_s3 + $0x120] ss:$16 sps:$4 sm:$0xff]   ;;  %v2529_v33 = vld [vmem:[%s3567_s3 + $0x104] ss:$16 sps:$4 sm:$0xff]  }
  0x2c   : > { %v371_v20 = vrot.slane %v322_v13, 7  ;;  %v374_v21 = vrot.slane %v2985_v14, 7  ;;  %v3000_v22 = vpack.c.bf16 %v2985_v14, %v322_v13  ;;  %v370_v23 = vrot.slane %v321_v15, 7  ;;  %v2528_v32 = vld [vmem:[%s3567_s3 + $0x320] ss:$16 sps:$4 sm:$0xff]  }
  0x2d   : > { %1636 = vmatpush2.bf16.msra.mxu0 %v2491_v35  ;;  %v372_v25 = vrot.slane %v2993_v18, 7  ;;  %v401_v27 = vrot.slane %v321_v15, 1  ;;  %v404_v28 = vrot.slane %v322_v13, 1  ;;  %v405_v31 = vrot.slane %v2985_v14, 1  ;;  %v2531_v35 = vld [vmem:[%s3567_s3 + $0x304] ss:$16 sps:$4 sm:$0xff]  }
  0x2e   : > { %1689 = vmatpush2.bf16.msra.mxu1 %v2492_v36  ;;  %1637 = vmatprep.subr.bf16.mxu0 %v2493_v38  ;;  %v375_v26 = vsel %vm369_vm0, %v371_v20, %v374_v21  ;;  %393 = vst [vmem:[#allocation2] sm:$0xfe] %v371_v20  ;;  %392 = vst [vmem:[#allocation2 + $0xb0] sm:$0xfe] %v370_v23  ;;  %v402_v34 = vrot.slane %v2993_v18, 1  ;;  %v3054_v48 = vpack.c.bf16 %v2993_v18, %v321_v15  ;;  %v277_v13 = vld [vmem:[%s2925_s26 + $0x20] sm:$0xff] }
  0x2f   : > { %1690 = vmatprep.subr.bf16.mxu1 %v2495_v39  ;;  %1704 = vmatprep.mubr.bf16.mxu1 %v3000_v22  ;;  %v373_v30 = vsel %vm369_vm0, %v370_v23, %v372_v25  ;;  %v3030_v36 = vsel %vm400_vm1, %v404_v28, %v405_v31  ;;  %v2533_v39 = vld [vmem:[%s3567_s3 + $0x100] ss:$16 sps:$4 sm:$0xff]   ;;  %v2549_v55 = vld [vmem:[%s3567_s3 + $0x4a4] ss:$16 sps:$4 sm:$0xff]   ;;  %v2570_v8 = vld [vmem:[%s3567_s3 + $0x4c] ss:$16 sps:$4 sm:$0xff]  }
  0x30   : > { %v3035_v38 = vsel %vm400_vm1, %v401_v27, %v402_v34  ;;  %v2535_v49 = vld [vmem:[%s3567_s3 + $0x4e0] ss:$16 sps:$4 sm:$0xff]   ;;  %v2561_v3 = vld [vmem:[%s3567_s3 + $0x464] ss:$16 sps:$4 sm:$0xff]   ;;  %v2588_v18 = vld [vmem:[%s3567_s3 + $0x1ec] ss:$16 sps:$4 sm:$0xff]  }
  0x31   : > { %1638 = vmatpush2.bf16.msra.mxu0 %v2497_v40  ;;  %v2534_v40 = vld [vmem:[%s3567_s3 + $0x300] ss:$16 sps:$4 sm:$0xff]   ;;  %v2567_v7 = vld [vmem:[%s3567_s3 + $0x444] ss:$16 sps:$4 sm:$0xff]  }
  0x32   : > { %1691 = vmatpush2.bf16.msra.mxu1 %v2498_v42  ;;  %1639 = vmatprep.subr.bf16.mxu0 %v2499_v43  ;;  %v2537_v42 = vld [vmem:[%s3567_s3 + $0x4e4] ss:$16 sps:$4 sm:$0xff]   ;;  %v2541_v53 = vld [vmem:[%s3567_s3 + $0x4c0] ss:$16 sps:$4 sm:$0xff]  }
  0x33   : > { %1692 = vmatprep.subr.bf16.mxu1 %v2501_v44  ;;  %v2547_v60 = vld [vmem:[%s3567_s3 + $0x4a0] ss:$16 sps:$4 sm:$0xff]  }
  0x34   : > { %v2553_v1 = vld [vmem:[%s3567_s3 + $0x480] ss:$16 sps:$4 sm:$0xff]  }
  0x35   : > { %1640 = vmatpush2.bf16.msra.mxu0 %v2503_v45  ;;  %v432_v43 = vld [vmem:[#allocation2] sm:$0xff]  ;;  %v431_v44 = vld [vmem:[#allocation2 + $0xb0] sm:$0xff] }
  0x36   : > { %1693 = vmatpush2.bf16.msra.mxu1 %v2504_v46  ;;  %1641 = vmatprep.subr.bf16.mxu0 %v2505_v47  ;;  %v3046_v45 = vpack.c.bf16 %v375_v26, %v432_v43  ;;  %v2540_v46 = vld [vmem:[%s3567_s3 + $0xec] ss:$16 sps:$4 sm:$0xff]   ;;  %v3051_v47 = vpack.c.bf16 %v373_v30, %v431_v44  ;;  %v279_v15 = vld [vmem:[%s2925_s26 + $0x30] sm:$0xff] }
  0x37   : > { %1694 = vmatprep.subr.bf16.mxu1 %v2507_v50  ;;  %v2538_v50 = vld [vmem:[%s3567_s3 + $0xe8] ss:$16 sps:$4 sm:$0xff]  }
  0x38   : > { %1651 = vmatprep.mubr.bf16.mxu0 %v3046_v45 }
  0x39   : > { %1642 = vmatpush2.bf16.msra.mxu0 %v2509_v51  ;;  %v2543_v51 = vld [vmem:[%s3567_s3 + $0x4c4] ss:$16 sps:$4 sm:$0xff]  }
  0x3a   : > { %1695 = vmatpush2.bf16.msra.mxu1 %v2510_v52  ;;  %1643 = vmatprep.subr.bf16.mxu0 %v2511_v62  ;;  %v2546_v52 = vld [vmem:[%s3567_s3 + $0xcc] ss:$16 sps:$4 sm:$0xff]   ;;  %v2555_v62 = vld [vmem:[%s3567_s3 + $0x484] ss:$16 sps:$4 sm:$0xff]  }
  0x3b   : > { %1696 = vmatprep.subr.bf16.mxu1 %v2513_v63  ;;  %v2558_v63 = vld [vmem:[%s3567_s3 + $0x8c] ss:$16 sps:$4 sm:$0xff]  }
  0x3d   : > { %1644 = vmatpush2.bf16.msra.mxu0 %v2515_v5  ;;  %v2559_v5 = vld [vmem:[%s3567_s3 + $0x460] ss:$16 sps:$4 sm:$0xff]  }
  0x3e   : > { %1697 = vmatpush2.bf16.msra.mxu1 %v2516_v6  ;;  %1645 = vmatprep.subr.bf16.mxu0 %v2517_v10  ;;  %v2562_v6 = vld [vmem:[%s3567_s3 + $0x68] ss:$16 sps:$4 sm:$0xff]  }
  0x3f   : > { %1698 = vmatprep.subr.bf16.mxu1 %v2519_v11  ;;  %v280_v10 = vld [vmem:[%s2925_s26 + $0x38] sm:$0xff]  ;;  %v298_v11 = vmul.f32 %v2951_v58, %v278_v9 }
  0x40   : > { %v300_v12 = vmul.f32 %v2951_v58, %v280_v10  ;;  %v2568_v58 = vld [vmem:[%s3567_s3 + $0x48] ss:$16 sps:$4 sm:$0xff]   ;;  %v2603_v10 = vld [vmem:[%s3567_s3 + $0x584] ss:$16 sps:$4 sm:$0xff]  }
  0x41   : > { %1646 = vmatpush2.bf16.msra.mxu0 %v2521_v16  ;;  %v297_v16 = vmul.f32 %v2949_v57, %v277_v13  ;;  %v318_v20 = vadd.f32 %v2963_v0, %v298_v11  ;;  %v2598_v9 = vld [vmem:[%s3567_s3 + $0x1a8] ss:$16 sps:$4 sm:$0xff]   ;;  %v2606_v11 = vld [vmem:[%s3567_s3 + $0x18c] ss:$16 sps:$4 sm:$0xff]  }
  0x42   : > { %1699 = vmatpush2.bf16.msra.mxu1 %v2522_v17  ;;  %1647 = vmatprep.subr.bf16.mxu0 %v2523_v19  ;;  %v299_v17 = vmul.f32 %v2949_v57, %v279_v15  ;;  %v2565_v19 = vld [vmem:[%s3567_s3 + $0x440] ss:$16 sps:$4 sm:$0xff]   ;;  %v320_v23 = vadd.f32 %v2963_v0, %v300_v12  ;;  %v2573_v57 = vld [vmem:[%s3567_s3 + $0x424] ss:$16 sps:$4 sm:$0xff]   ;;  %v2576_v0 = vld [vmem:[%s3567_s3 + $0x2c] ss:$16 sps:$4 sm:$0xff]  }
  0x43   : > { %1700 = vmatprep.subr.bf16.mxu1 %v2525_v24  ;;  %v317_v24 = vadd.f32 %v2953_v59, %v297_v16  ;;  %v326_v27 = vmax.f32 %v318_v20, 0.0  ;;  %v2601_v12 = vld [vmem:[%s3567_s3 + $0x580] ss:$16 sps:$4 sm:$0xff]   ;;  %v2604_v13 = vld [vmem:[%s3567_s3 + $0x188] ss:$16 sps:$4 sm:$0xff]  }
  0x44   : > { %v319_v26 = vadd.f32 %v2953_v59, %v299_v17  ;;  %v328_v28 = vmax.f32 %v320_v23, 0.0  ;;  %v2609_v15 = vld [vmem:[%s3567_s3 + $0x564] ss:$16 sps:$4 sm:$0xff]   ;;  %v2612_v16 = vld [vmem:[%s3567_s3 + $0x16c] ss:$16 sps:$4 sm:$0xff]  }
  0x45   : > { %1648 = vmatpush2.bf16.msra.mxu0 %v2527_v29  ;;  %v325_v29 = vmax.f32 %v317_v24, 0.0  ;;  %v2607_v17 = vld [vmem:[%s3567_s3 + $0x560] ss:$16 sps:$4 sm:$0xff]   ;;  %v2615_v20 = vld [vmem:[%s3567_s3 + $0x544] ss:$16 sps:$4 sm:$0xff]  }
  0x46   : > { %1701 = vmatpush2.bf16.msra.mxu1 %v2528_v32  ;;  %1649 = vmatprep.subr.bf16.mxu0 %v2529_v33  ;;  %v327_v30 = vmax.f32 %v319_v26, 0.0  ;;  %v2571_v32 = vld [vmem:[%s3567_s3 + $0x420] ss:$16 sps:$4 sm:$0xff]   ;;  %v378_v33 = vrot.slane %v326_v27, 7  ;;  %v382_v59 = vrot.slane %v328_v28, 7 }
  0x47   : > { %1702 = vmatprep.subr.bf16.mxu1 %v2531_v35  ;;  %v3146_v35 = vpack.c.bf16 %v328_v28, %v326_v27  ;;  %v2618_v23 = vld [vmem:[%s3567_s3 + $0x14c] ss:$16 sps:$4 sm:$0xff]   ;;  %v2616_v24 = vld [vmem:[%s3567_s3 + $0x148] ss:$16 sps:$4 sm:$0xff]   ;;  %v2621_v26 = vld [vmem:[%s3567_s3 + $0x524] ss:$16 sps:$4 sm:$0xff]  }
  0x48   : > { %v380_v43 = vrot.slane %v327_v30, 7  ;;  %v3154_v44 = vpack.c.bf16 %v327_v30, %v325_v29 }
  0x49   : > { %1650 = vmatpush2.bf16.msra.mxu0 %v2533_v39  ;;  %v2574_v39 = vld [vmem:[%s3567_s3 + $0x28] ss:$16 sps:$4 sm:$0xff]  }
  0x4a   : > { %1703 = vmatpush2.bf16.msra.mxu1 %v2534_v40  ;;  %1725 = vmatprep.subr.bf16.mxu0 %v2537_v42  ;;  %v2579_v40 = vld [vmem:[%s3567_s3 + $0x404] ss:$16 sps:$4 sm:$0xff]   ;;  %v376_v42 = vrot.slane %v325_v29, 7 }
  0x4b   : > { %1778 = vmatprep.subr.bf16.mxu1 %v2540_v46  ;;  %v2582_v46 = vld [vmem:[%s3567_s3 + $0xc] ss:$16 sps:$4 sm:$0xff]  }
  0x4c   : > { %1652 = vmatmul.mubr.bf16.vlgmr.msra.gmra.mxu0 %v3051_v47 }
  0x4d   : > { %1705 = vmatmul.mubr.bf16.vlgmr.msra.gmra.mxu1 %v3054_v48  ;;  %1726 = vmatpush1.bf16.msra.mxu0 %v2535_v49  ;;  %v379_v49 = vsel %vm369_vm0, %v374_v21, %v378_v33 }
  0x4e   : > { %1779 = vmatpush1.bf16.msra.mxu1 %v2538_v50  ;;  %1727 = vmatprep.subr.bf16.mxu0 %v2543_v51  ;;  %v383_v50 = vsel %vm369_vm0, %v378_v33, %v382_v59  ;;  %v409_v51 = vrot.slane %v326_v27, 1  ;;  %v2622_v27 = vld [vmem:[%s3567_s3 + $0x128] ss:$16 sps:$4 sm:$0xff]   ;;  %v2633_v33 = vld [vmem:[%s3567_s3 + $0x2ec] ss:$16 sps:$4 sm:$0xff]  }
  0x4f   : > { %1780 = vmatprep.subr.bf16.mxu1 %v2546_v52  ;;  %v407_v52 = vrot.slane %v325_v29, 1  ;;  %1714 = vmatprep.mubr.bf16.mxu1 %v3146_v35  ;;  %v2630_v29 = vld [vmem:[%s3567_s3 + $0x10c] ss:$16 sps:$4 sm:$0xff]  }
  0x50   : > { %v2636_v59 = vld [vmem:[%s3567_s3 + $0x4ec] ss:$16 sps:$4 sm:$0xff]  }
  0x51   : > { %1728 = vmatpush1.bf16.msra.mxu0 %v2541_v53  ;;  %v3163_v53 = vpack.c.bf16 %v383_v50, %v379_v49  ;;  %v2642_v49 = vld [vmem:[%s3567_s3 + $0x4cc] ss:$16 sps:$4 sm:$0xff]  }
  0x52   : > { %1781 = vmatpush1.bf16.msra.mxu1 %v2544_v54  ;;  %1729 = vmatprep.subr.bf16.mxu0 %v2549_v55  ;;  %v377_v54 = vsel %vm369_vm0, %v372_v25, %v376_v42  ;;  %v381_v55 = vsel %vm369_vm0, %v376_v42, %v380_v43  ;;  %v411_v25 = vrot.slane %v327_v30, 1  ;;  %v2625_v30 = vld [vmem:[%s3567_s3 + $0x500] ss:$16 sps:$4 sm:$0xff]   ;;  %v2634_v43 = vld [vmem:[%s3567_s3 + $0x4e8] ss:$16 sps:$4 sm:$0xff]  }
  0x53   : > { %1782 = vmatprep.subr.bf16.mxu1 %v2552_v56  ;;  %v413_v56 = vrot.slane %v328_v28, 1  ;;  %v3173_v21 = vpack.c.bf16 %v381_v55, %v377_v54  ;;  %1661 = vmatprep.mubr.bf16.mxu0 %v3163_v53  ;;  %v2627_v28 = vld [vmem:[%s3567_s3 + $0x504] ss:$16 sps:$4 sm:$0xff]   ;;  %v2645_v54 = vld [vmem:[%s3567_s3 + $0x2ac] ss:$16 sps:$4 sm:$0xff]  }
  0x54   : > { %429 = vst [vmem:[#allocation2 + $0x20] sm:$0x7f] %v411_v25  ;;  %v2648_v55 = vld [vmem:[%s3567_s3 + $0x4ac] ss:$16 sps:$4 sm:$0xff]  }
  0x55   : > { %1730 = vmatpush1.bf16.msra.mxu0 %v2547_v60  ;;  %v2577_v60 = vld [vmem:[%s3567_s3 + $0x400] ss:$16 sps:$4 sm:$0xff]   ;;  %1715 = vmatmul.mubr.bf16.gmra.mxu1 %v3154_v44  ;;  %v3191_v14 = vsel %vm400_vm1, %v409_v51, %v413_v56  ;;  %430 = vst [vmem:[#allocation2 + $0x8] sm:$0x7f] %v413_v56  ;;  %v2643_v56 = vld [vmem:[%s3567_s3 + $0x2a8] ss:$16 sps:$4 sm:$0xff]  }
  0x56   : > { %1783 = vmatpush1.bf16.msra.mxu1 %v2550_v61  ;;  %1731 = vmatprep.subr.bf16.mxu0 %v2555_v62  ;;  %v410_v61 = vsel %vm400_vm1, %v405_v31, %v409_v51  ;;  %v3182_v62 = vsel %vm400_vm1, %v402_v34, %v407_v52  ;;  %v3197_v31 = vsel %vm400_vm1, %v407_v52, %v411_v25  ;;  %v2640_v51 = vld [vmem:[%s3567_s3 + $0x4c8] ss:$16 sps:$4 sm:$0xff]  }
  0x57   : > { %1784 = vmatprep.subr.bf16.mxu1 %v2558_v63  ;;  %v2580_v63 = vld [vmem:[%s3567_s3 + $0x8] ss:$16 sps:$4 sm:$0xff]   ;;  %v3201_v34 = vpack.c.bf16 %v410_v61, %v3030_v36  ;;  %1810 = vmatprep.mubr.bf16.mxu1 %v3046_v45  ;;  %v2594_v36 = vld [vmem:[%s3567_s3 + $0x1cc] ss:$16 sps:$4 sm:$0xff]   ;;  %v2589_v45 = vld [vmem:[%s3567_s3 + $0x5c0] ss:$16 sps:$4 sm:$0xff]  }
  0x58   : > { %1662 = vmatmul.mubr.bf16.gmra.mxu0 %v3173_v21  ;;  %v2651_v61 = vld [vmem:[%s3567_s3 + $0x28c] ss:$16 sps:$4 sm:$0xff]   ;;  %v2652_v25 = vld [vmem:[%s3567_s3 + $0x488] ss:$16 sps:$4 sm:$0xff]  }
  0x59   : > { %1732 = vmatpush1.bf16.msra.mxu0 %v2553_v1  ;;  %v2585_v1 = vld [vmem:[%s3567_s3 + $0x5e4] ss:$16 sps:$4 sm:$0xff]   ;;  %1757 = vmatprep.mubr.bf16.mxu0 %v3201_v34 }
  0x5a   : > { %1785 = vmatpush1.bf16.msra.mxu1 %v2556_v2  ;;  %1733 = vmatprep.subr.bf16.mxu0 %v2561_v3  ;;  %v2583_v2 = vld [vmem:[%s3567_s3 + $0x5e0] ss:$16 sps:$4 sm:$0xff]   ;;  %v2586_v3 = vld [vmem:[%s3567_s3 + $0x1e8] ss:$16 sps:$4 sm:$0xff]  }
  0x5b   : > { %1786 = vmatprep.subr.bf16.mxu1 %v2564_v4  ;;  %v2591_v4 = vld [vmem:[%s3567_s3 + $0x5c4] ss:$16 sps:$4 sm:$0xff]  }
  0x5c   : > { %v454_v42 = vld [vmem:[#allocation2 + $0x8] sm:$0xff]  ;;  %v453_v52 = vld [vmem:[#allocation2 + $0x20] sm:$0xff] }
  0x5d   : > { %1734 = vmatpush1.bf16.msra.mxu0 %v2559_v5  ;;  %v2592_v5 = vld [vmem:[%s3567_s3 + $0x1c8] ss:$16 sps:$4 sm:$0xff]   ;;  %v3322_v50 = vpack.c.bf16 %v454_v42, %v3191_v14  ;;  %v2720_v42 = vld [vmem:[%s3567_s3 + $0x52c] ss:$16 sps:$4 sm:$0xff]  }
  0x5e   : > { %1787 = vmatpush1.bf16.msra.mxu1 %v2562_v6  ;;  %1735 = vmatprep.subr.bf16.mxu0 %v2567_v7  ;;  %v2597_v6 = vld [vmem:[%s3567_s3 + $0x5a4] ss:$16 sps:$4 sm:$0xff]   ;;  %v2600_v7 = vld [vmem:[%s3567_s3 + $0x1ac] ss:$16 sps:$4 sm:$0xff]   ;;  %v2658_v14 = vld [vmem:[%s3567_s3 + $0x468] ss:$16 sps:$4 sm:$0xff]  }
  0x5f   : > { %1788 = vmatprep.subr.bf16.mxu1 %v2570_v8  ;;  %v2595_v8 = vld [vmem:[%s3567_s3 + $0x5a0] ss:$16 sps:$4 sm:$0xff]  }
  0x61   : > { %1736 = vmatpush1.bf16.msra.mxu0 %v2565_v19  ;;  %v2610_v19 = vld [vmem:[%s3567_s3 + $0x168] ss:$16 sps:$4 sm:$0xff]  }
  0x62   : > { %1789 = vmatpush1.bf16.msra.mxu1 %v2568_v58  ;;  %1737 = vmatprep.subr.bf16.mxu0 %v2573_v57  ;;  %v2613_v58 = vld [vmem:[%s3567_s3 + $0x540] ss:$16 sps:$4 sm:$0xff]   ;;  %v2624_v57 = vld [vmem:[%s3567_s3 + $0x12c] ss:$16 sps:$4 sm:$0xff]  }
  0x63   : > { %1790 = vmatprep.subr.bf16.mxu1 %v2576_v0  ;;  %v2619_v0 = vld [vmem:[%s3567_s3 + $0x520] ss:$16 sps:$4 sm:$0xff]  }
  0x65   : > { %1738 = vmatpush1.bf16.msra.mxu0 %v2571_v32  ;;  %v2628_v32 = vld [vmem:[%s3567_s3 + $0x108] ss:$16 sps:$4 sm:$0xff]  }
  0x66   : > { %1791 = vmatpush1.bf16.msra.mxu1 %v2574_v39  ;;  %1739 = vmatprep.subr.bf16.mxu0 %v2579_v40  ;;  %v2631_v39 = vld [vmem:[%s3567_s3 + $0x2e8] ss:$16 sps:$4 sm:$0xff]   ;;  %v3307_v40 = vpack.c.bf16 %v3182_v62, %v3035_v38 }
  0x67   : > { %1792 = vmatprep.subr.bf16.mxu1 %v2582_v46  ;;  %v2639_v46 = vld [vmem:[%s3567_s3 + $0x2cc] ss:$16 sps:$4 sm:$0xff]   ;;  %v2637_v38 = vld [vmem:[%s3567_s3 + $0x2c8] ss:$16 sps:$4 sm:$0xff]  }
  0x68   : > { %v2649_v62 = vld [vmem:[%s3567_s3 + $0x288] ss:$16 sps:$4 sm:$0xff]  }
  0x69   : > { %1740 = vmatpush1.bf16.msra.mxu0 %v2577_v60  ;;  %v2646_v60 = vld [vmem:[%s3567_s3 + $0x4a8] ss:$16 sps:$4 sm:$0xff]  }
  0x6a   : > { %1793 = vmatpush1.bf16.msra.mxu1 %v2580_v63  ;;  %1741 = vmatprep.subr.bf16.mxu0 %v2585_v1  ;;  %v2657_v63 = vld [vmem:[%s3567_s3 + $0x26c] ss:$16 sps:$4 sm:$0xff]   ;;  %v2655_v1 = vld [vmem:[%s3567_s3 + $0x268] ss:$16 sps:$4 sm:$0xff]  }
  0x6b   : > { %1794 = vmatprep.subr.bf16.mxu1 %v2588_v18  ;;  %v2663_v18 = vld [vmem:[%s3567_s3 + $0x24c] ss:$16 sps:$4 sm:$0xff]  }
  0x6d   : > { %1742 = vmatpush2.bf16.msra.mxu0 %v2583_v2  ;;  %v2669_v2 = vld [vmem:[%s3567_s3 + $0x22c] ss:$16 sps:$4 sm:$0xff]  }
  0x6e   : > { %1795 = vmatpush2.bf16.msra.mxu1 %v2586_v3  ;;  %1743 = vmatprep.subr.bf16.mxu0 %v2591_v4  ;;  %v2672_v3 = vld [vmem:[%s3567_s3 + $0x42c] ss:$16 sps:$4 sm:$0xff]   ;;  %v2667_v4 = vld [vmem:[%s3567_s3 + $0x228] ss:$16 sps:$4 sm:$0xff]  }
  0x6f   : > { %1796 = vmatprep.subr.bf16.mxu1 %v2594_v36  ;;  %v2670_v36 = vld [vmem:[%s3567_s3 + $0x428] ss:$16 sps:$4 sm:$0xff]  }
  0x71   : > { %1744 = vmatpush2.bf16.msra.mxu0 %v2589_v45  ;;  %v2675_v45 = vld [vmem:[%s3567_s3 + $0x20c] ss:$16 sps:$4 sm:$0xff]  }
  0x72   : > { %1797 = vmatpush2.bf16.msra.mxu1 %v2592_v5  ;;  %1745 = vmatprep.subr.bf16.mxu0 %v2597_v6  ;;  %v2678_v5 = vld [vmem:[%s3567_s3 + $0x40c] ss:$16 sps:$4 sm:$0xff]   ;;  %v2673_v6 = vld [vmem:[%s3567_s3 + $0x208] ss:$16 sps:$4 sm:$0xff]  }
  0x73   : > { %1798 = vmatprep.subr.bf16.mxu1 %v2600_v7  ;;  %v2676_v7 = vld [vmem:[%s3567_s3 + $0x408] ss:$16 sps:$4 sm:$0xff]  }
  0x75   : > { %1746 = vmatpush2.bf16.msra.mxu0 %v2595_v8  ;;  %v2681_v8 = vld [vmem:[%s3567_s3 + $0x3ec] ss:$16 sps:$4 sm:$0xff]  }
  0x76   : > { %1799 = vmatpush2.bf16.msra.mxu1 %v2598_v9  ;;  %1747 = vmatprep.subr.bf16.mxu0 %v2603_v10  ;;  %v2684_v9 = vld [vmem:[%s3567_s3 + $0x5ec] ss:$16 sps:$4 sm:$0xff]   ;;  %v2679_v10 = vld [vmem:[%s3567_s3 + $0x3e8] ss:$16 sps:$4 sm:$0xff]  }
  0x77   : > { %1800 = vmatprep.subr.bf16.mxu1 %v2606_v11  ;;  %v2682_v11 = vld [vmem:[%s3567_s3 + $0x5e8] ss:$16 sps:$4 sm:$0xff]  }
  0x79   : > { %1748 = vmatpush2.bf16.msra.mxu0 %v2601_v12  ;;  %v2687_v12 = vld [vmem:[%s3567_s3 + $0x3cc] ss:$16 sps:$4 sm:$0xff]  }
  0x7a   : > { %1801 = vmatpush2.bf16.msra.mxu1 %v2604_v13  ;;  %1749 = vmatprep.subr.bf16.mxu0 %v2609_v15  ;;  %v2690_v13 = vld [vmem:[%s3567_s3 + $0x5cc] ss:$16 sps:$4 sm:$0xff]   ;;  %v2685_v15 = vld [vmem:[%s3567_s3 + $0x3c8] ss:$16 sps:$4 sm:$0xff]  }
  0x7b   : > { %1802 = vmatprep.subr.bf16.mxu1 %v2612_v16  ;;  %v2688_v16 = vld [vmem:[%s3567_s3 + $0x5c8] ss:$16 sps:$4 sm:$0xff]  }
  0x7d   : > { %1750 = vmatpush2.bf16.msra.mxu0 %v2607_v17  ;;  %v2693_v17 = vld [vmem:[%s3567_s3 + $0x3ac] ss:$16 sps:$4 sm:$0xff]  }
  0x7e   : > { %1803 = vmatpush2.bf16.msra.mxu1 %v2610_v19  ;;  %1751 = vmatprep.subr.bf16.mxu0 %v2615_v20  ;;  %v2696_v19 = vld [vmem:[%s3567_s3 + $0x5ac] ss:$16 sps:$4 sm:$0xff]   ;;  %v2691_v20 = vld [vmem:[%s3567_s3 + $0x3a8] ss:$16 sps:$4 sm:$0xff]  }
  0x7f   : > { %1804 = vmatprep.subr.bf16.mxu1 %v2618_v23  ;;  %v2694_v23 = vld [vmem:[%s3567_s3 + $0x5a8] ss:$16 sps:$4 sm:$0xff]  }
  0x81   : > { %1752 = vmatpush2.bf16.msra.mxu0 %v2613_v58  ;;  %v2699_v58 = vld [vmem:[%s3567_s3 + $0x38c] ss:$16 sps:$4 sm:$0xff]  }
  0x82   : > { %1805 = vmatpush2.bf16.msra.mxu1 %v2616_v24  ;;  %1753 = vmatprep.subr.bf16.mxu0 %v2621_v26  ;;  %v2702_v24 = vld [vmem:[%s3567_s3 + $0x58c] ss:$16 sps:$4 sm:$0xff]   ;;  %v2697_v26 = vld [vmem:[%s3567_s3 + $0x388] ss:$16 sps:$4 sm:$0xff]  }
  0x83   : > { %1806 = vmatprep.subr.bf16.mxu1 %v2624_v57  ;;  %v2700_v57 = vld [vmem:[%s3567_s3 + $0x588] ss:$16 sps:$4 sm:$0xff]  }
  0x85   : > { %1754 = vmatpush2.bf16.msra.mxu0 %v2619_v0  ;;  %v2705_v0 = vld [vmem:[%s3567_s3 + $0x36c] ss:$16 sps:$4 sm:$0xff]  }
  0x86   : > { %1807 = vmatpush2.bf16.msra.mxu1 %v2622_v27  ;;  %1755 = vmatprep.subr.bf16.mxu0 %v2627_v28  ;;  %v2708_v27 = vld [vmem:[%s3567_s3 + $0x56c] ss:$16 sps:$4 sm:$0xff]   ;;  %v2703_v28 = vld [vmem:[%s3567_s3 + $0x368] ss:$16 sps:$4 sm:$0xff]  }
  0x87   : > { %1808 = vmatprep.subr.bf16.mxu1 %v2630_v29  ;;  %v2706_v29 = vld [vmem:[%s3567_s3 + $0x568] ss:$16 sps:$4 sm:$0xff]  }
  0x89   : > { %1756 = vmatpush2.bf16.msra.mxu0 %v2625_v30  ;;  %v2711_v30 = vld [vmem:[%s3567_s3 + $0x34c] ss:$16 sps:$4 sm:$0xff]  }
  0x8a   : > { %1809 = vmatpush2.bf16.msra.mxu1 %v2628_v32  ;;  %1831 = vmatprep.subr.bf16.mxu0 %v2633_v33  ;;  %v2714_v32 = vld [vmem:[%s3567_s3 + $0x54c] ss:$16 sps:$4 sm:$0xff]   ;;  %v2709_v33 = vld [vmem:[%s3567_s3 + $0x348] ss:$16 sps:$4 sm:$0xff]  }
  0x8b   : > { %1884 = vmatprep.subr.bf16.mxu1 %v2636_v59  ;;  %v2712_v59 = vld [vmem:[%s3567_s3 + $0x548] ss:$16 sps:$4 sm:$0xff]  }
  0x8c   : > { %1758 = vmatmul.mubr.bf16.vlgmr.msra.gmra.mxu0 %v3307_v40 }
  0x8d   : > { %1811 = vmatmul.mubr.bf16.vlgmr.msra.gmra.mxu1 %v3051_v47  ;;  %1832 = vmatpush1.bf16.msra.mxu0 %v2631_v39  ;;  %v3338_v47 = vpack.c.bf16 %v453_v52, %v3197_v31  ;;  %v2661_v31 = vld [vmem:[%s3567_s3 + $0x248] ss:$16 sps:$4 sm:$0xff]   ;;  %v2717_v39 = vld [vmem:[%s3567_s3 + $0x32c] ss:$16 sps:$4 sm:$0xff]  }
  0x8e   : > { %1885 = vmatpush1.bf16.msra.mxu1 %v2634_v43  ;;  %1833 = vmatprep.subr.bf16.mxu0 %v2639_v46  ;;  %v2715_v43 = vld [vmem:[%s3567_s3 + $0x328] ss:$16 sps:$4 sm:$0xff]  }
  0x8f   : > { %1886 = vmatprep.subr.bf16.mxu1 %v2642_v49  ;;  %1767 = vmatprep.mubr.bf16.mxu0 %v3322_v50  ;;  %v2718_v46 = vld [vmem:[%s3567_s3 + $0x528] ss:$16 sps:$4 sm:$0xff]   ;;  %v2723_v49 = vld [vmem:[%s3567_s3 + $0x30c] ss:$16 sps:$4 sm:$0xff]  }
  0x90   : > { %1820 = vmatprep.mubr.bf16.mxu1 %v3163_v53  ;;  %v2654_v53 = vld [vmem:[%s3567_s3 + $0x48c] ss:$16 sps:$4 sm:$0xff]   ;;  %v2724_v52 = vld [vmem:[%s3567_s3 + $0x508] ss:$16 sps:$4 sm:$0xff]  }
  0x91   : > { %1834 = vmatpush1.bf16.msra.mxu0 %v2637_v38  ;;  %v2726_v38 = vld [vmem:[%s3567_s3 + $0x50c] ss:$16 sps:$4 sm:$0xff]  }
  0x92   : > { %1887 = vmatpush1.bf16.msra.mxu1 %v2640_v51  ;;  %1835 = vmatprep.subr.bf16.mxu0 %v2645_v54  ;;  %v2721_v51 = vld [vmem:[%s3567_s3 + $0x308] ss:$16 sps:$4 sm:$0xff]  }
  0x93   : > { %1888 = vmatprep.subr.bf16.mxu1 %v2648_v55 }
  0x94   : > { %1768 = vmatmul.mubr.bf16.gmra.mxu0 %v3338_v47 }
  0x95   : > { %1821 = vmatmul.mubr.bf16.gmra.mxu1 %v3173_v21  ;;  %1836 = vmatpush1.bf16.msra.mxu0 %v2643_v56  ;;  %v2660_v21 = vld [vmem:[%s3567_s3 + $0x46c] ss:$16 sps:$4 sm:$0xff]  }
  0x96   : > { %1889 = vmatpush1.bf16.msra.mxu1 %v2646_v60  ;;  %1837 = vmatprep.subr.bf16.mxu0 %v2651_v61 }
  0x97   : > { %1890 = vmatprep.subr.bf16.mxu1 %v2654_v53  ;;  %1863 = vmatprep.mubr.bf16.mxu0 %v3000_v22  ;;  %v2666_v22 = vld [vmem:[%s3567_s3 + $0x44c] ss:$16 sps:$4 sm:$0xff]  }
  0x98   : > { %1916 = vmatprep.mubr.bf16.mxu1 %v3201_v34  ;;  %v2664_v34 = vld [vmem:[%s3567_s3 + $0x448] ss:$16 sps:$4 sm:$0xff]  }
  0x99   : > { %1838 = vmatpush1.bf16.msra.mxu0 %v2649_v62 }
  0x9a   : > { %1891 = vmatpush1.bf16.msra.mxu1 %v2652_v25  ;;  %1839 = vmatprep.subr.bf16.mxu0 %v2657_v63 }
  0x9b   : > { %1892 = vmatprep.subr.bf16.mxu1 %v2660_v21 }
  0x9d   : > { %1840 = vmatpush1.bf16.msra.mxu0 %v2655_v1 }
  0x9e   : > { %1893 = vmatpush1.bf16.msra.mxu1 %v2658_v14  ;;  %1841 = vmatprep.subr.bf16.mxu0 %v2663_v18 }
  0x9f   : > { %1894 = vmatprep.subr.bf16.mxu1 %v2666_v22 }
  0xa1   : > { %1842 = vmatpush1.bf16.msra.mxu0 %v2661_v31 }
  0xa2   : > { %1895 = vmatpush1.bf16.msra.mxu1 %v2664_v34  ;;  %1843 = vmatprep.subr.bf16.mxu0 %v2669_v2 }
  0xa3   : > { %1896 = vmatprep.subr.bf16.mxu1 %v2672_v3 }
  0xa5   : > { %1844 = vmatpush1.bf16.msra.mxu0 %v2667_v4 }
  0xa6   : > { %1897 = vmatpush1.bf16.msra.mxu1 %v2670_v36  ;;  %1845 = vmatprep.subr.bf16.mxu0 %v2675_v45 }
  0xa7   : > { %1898 = vmatprep.subr.bf16.mxu1 %v2678_v5 }
  0xa9   : > { %1846 = vmatpush1.bf16.msra.mxu0 %v2673_v6 }
  0xaa   : > { %1899 = vmatpush1.bf16.msra.mxu1 %v2676_v7  ;;  %1847 = vmatprep.subr.bf16.mxu0 %v2681_v8 }
  0xab   : > { %1900 = vmatprep.subr.bf16.mxu1 %v2684_v9 }
  0xad   : > { %1848 = vmatpush2.bf16.msra.mxu0 %v2679_v10 }
  0xae   : > { %1901 = vmatpush2.bf16.msra.mxu1 %v2682_v11  ;;  %1849 = vmatprep.subr.bf16.mxu0 %v2687_v12 }
  0xaf   : > { %1902 = vmatprep.subr.bf16.mxu1 %v2690_v13 }
  0xb1   : > { %1850 = vmatpush2.bf16.msra.mxu0 %v2685_v15 }
  0xb2   : > { %1903 = vmatpush2.bf16.msra.mxu1 %v2688_v16  ;;  %1851 = vmatprep.subr.bf16.mxu0 %v2693_v17 }
  0xb3   : > { %1904 = vmatprep.subr.bf16.mxu1 %v2696_v19 }
  0xb5   : > { %1852 = vmatpush2.bf16.msra.mxu0 %v2691_v20 }
  0xb6   : > { %1905 = vmatpush2.bf16.msra.mxu1 %v2694_v23  ;;  %1853 = vmatprep.subr.bf16.mxu0 %v2699_v58 }
  0xb7   : > { %1906 = vmatprep.subr.bf16.mxu1 %v2702_v24 }
  0xb9   : > { %1854 = vmatpush2.bf16.msra.mxu0 %v2697_v26 }
  0xba   : > { %1907 = vmatpush2.bf16.msra.mxu1 %v2700_v57  ;;  %1855 = vmatprep.subr.bf16.mxu0 %v2705_v0 }
  0xbb   : > { %1908 = vmatprep.subr.bf16.mxu1 %v2708_v27 }
  0xbd   : > { %1856 = vmatpush2.bf16.msra.mxu0 %v2703_v28 }
  0xbe   : > { %1909 = vmatpush2.bf16.msra.mxu1 %v2706_v29  ;;  %1857 = vmatprep.subr.bf16.mxu0 %v2711_v30 }
  0xbf   : > { %1910 = vmatprep.subr.bf16.mxu1 %v2714_v32 }
  0xc1   : > { %1858 = vmatpush2.bf16.msra.mxu0 %v2709_v33 }
  0xc2   : > { %1911 = vmatpush2.bf16.msra.mxu1 %v2712_v59  ;;  %1859 = vmatprep.subr.bf16.mxu0 %v2717_v39 }
  0xc3   : > { %1912 = vmatprep.subr.bf16.mxu1 %v2720_v42 }
  0xc5   : > { %1860 = vmatpush2.bf16.msra.mxu0 %v2715_v43 }
  0xc6   : > { %1913 = vmatpush2.bf16.msra.mxu1 %v2718_v46  ;;  %1861 = vmatprep.subr.bf16.mxu0 %v2723_v49 }
  0xc7   : > { %1914 = vmatprep.subr.bf16.mxu1 %v2726_v38 }
  0xc9   : > { %1862 = vmatpush2.bf16.msra.mxu0 %v2721_v51 }
  0xca   : > { %1915 = vmatpush2.bf16.msra.mxu1 %v2724_v52 }
  0xcc   : > { %1864 = vmatmul.mubr.bf16.vlgmr.msra.gmra.mxu0 %v3054_v48 }
  0xcd   : > { %1917 = vmatmul.mubr.bf16.vlgmr.msra.gmra.mxu1 %v3307_v40  ;;  %1873 = vmatprep.mubr.bf16.mxu0 %v3146_v35 }
  0xce   : > { %1926 = vmatprep.mubr.bf16.mxu1 %v3322_v50 }
  0xd4   : > { %1874 = vmatmul.mubr.bf16.gmra.mxu0 %v3154_v44 }
  0xd5   : > { %1927 = vmatmul.mubr.bf16.gmra.mxu1 %v3338_v47 }
 0x10c   : > { %v1653_v54 = vpop.f32.mrf.mxu0 }
 0x10d   : > { %v1706_v60 = vpop.f32.mrf.mxu1 }
 0x10e   : > { %v1655_v55 = vpop.f32.mrf.mxu0  ;;  %v1707_v1 = vadd.f32 %v1706_v60, %v1653_v54 }
 0x10f   : > { %v1708_v62 = vpop.f32.mrf.mxu1 }
 0x110   : > { %v1657_v56 = vpop.f32.mrf.mxu0  ;;  %v1709_v50 = vadd.f32 %v1708_v62, %v1655_v55 }
 0x111   : > { %v1710_v48 = vpop.f32.mrf.mxu1 }
 0x112   : > { %v1659_v61 = vpop.f32.mrf.mxu0  ;;  %v1711_v22 = vadd.f32 %v1710_v48, %v1657_v56 }
 0x113   : > { %v1712_v40 = vpop.f32.mrf.mxu1 }
 0x114   : > { %v1713_v2 = vadd.f32 %v1712_v40, %v1659_v61 }
 0x115   : > { %v1716_v21 = vpop.f32.mrf.mxu1 }
 0x117   : > { %v1718_v47 = vpop.f32.mrf.mxu1 }
 0x118   : > { %v1663_v53 = vpop.f32.mrf.mxu0 }
 0x119   : > { %v1720_v3 = vpop.f32.mrf.mxu1  ;;  %v1717_v36 = vadd.f32 %v1716_v21, %v1663_v53 }
 0x11a   : > { %v1665_v25 = vpop.f32.mrf.mxu0 }
 0x11b   : > { %v1719_v9 = vadd.f32 %v1718_v47, %v1665_v25  ;;  %v1722_v12 = vpop.f32.mrf.mxu1 }
 0x11c   : > { %v1667_v63 = vpop.f32.mrf.mxu0 }
 0x11d   : > { %v1721_v19 = vadd.f32 %v1720_v3, %v1667_v63 }
 0x11e   : > { %v1669_v35 = vpop.f32.mrf.mxu0 }
 0x11f   : > { %v1723_v57 = vadd.f32 %v1722_v12, %v1669_v35 }
 0x14c   : > { %v1759_v44 = vpop.f32.mrf.mxu0 }
 0x14d   : > { %v1760_v14 = vadd.f32 %v1759_v44, %v1707_v1 }
 0x14e   : > { %v1761_v18 = vpop.f32.mrf.mxu0 }
 0x14f   : > { %1937 = vst [vmem:[%s3516_s25] sm:$0xff] %v1760_v14  ;;  %v1762_v31 = vadd.f32 %v1761_v18, %v1709_v50  ;;  %v2023_v5 = vmul.f32 %v1760_v14, %v1760_v14 }
 0x150   : > { %v1763_v34 = vpop.f32.mrf.mxu0 }
 0x151   : > { %1938 = vst [vmem:[%s3516_s25 + $0x8] sm:$0xff] %v1762_v31  ;;  %v1764_v4 = vadd.f32 %v1763_v34, %v1711_v22  ;;  %v2024_v10 = vmul.f32 %v1762_v31, %v1762_v31 }
 0x152   : > { %v1765_v45 = vpop.f32.mrf.mxu0 }
 0x153   : > { %1941 = vst [vmem:[%s3516_s25 + $0x20] sm:$0xff] %v1764_v4  ;;  %v1953_v6 = vadd.f32 %v1764_v4, %v1760_v14  ;;  %v2027_v7 = vmul.f32 %v1764_v4, %v1764_v4  ;;  %v1766_v8 = vadd.f32 %v1765_v45, %v1713_v2  ;;  %v1812_v4 = vpop.f32.mrf.mxu1 }
 0x154   : > { %v1769_v11 = vpop.f32.mrf.mxu0 }
 0x155   : > { %v2039_v13 = vadd.f32 %v2027_v7, %v2023_v5  ;;  %1942 = vst [vmem:[%s3516_s25 + $0x28] sm:$0xff] %v1766_v8  ;;  %v1962_v15 = vadd.f32 %v1766_v8, %v1762_v31  ;;  %v2028_v16 = vmul.f32 %v1766_v8, %v1766_v8  ;;  %v1770_v17 = vadd.f32 %v1769_v11, %v1717_v36  ;;  %v1814_v36 = vpop.f32.mrf.mxu1 }
 0x156   : > { %v1771_v20 = vpop.f32.mrf.mxu0 }
 0x157   : > { %v2048_v23 = vadd.f32 %v2028_v16, %v2024_v10  ;;  %1945 = vst [vmem:[%s3516_s25 + $0x40] sm:$0xff] %v1770_v17  ;;  %v1954_v58 = vadd.f32 %v1953_v6, %v1770_v17  ;;  %v2031_v24 = vmul.f32 %v1770_v17, %v1770_v17  ;;  %v1772_v26 = vadd.f32 %v1771_v20, %v1719_v9  ;;  %v1816_v45 = vpop.f32.mrf.mxu1 }
 0x158   : > { %v1773_v0 = vpop.f32.mrf.mxu0 }
 0x159   : > { %v2040_v27 = vadd.f32 %v2039_v13, %v2031_v24  ;;  %1946 = vst [vmem:[%s3516_s25 + $0x48] sm:$0xff] %v1772_v26  ;;  %v1963_v28 = vadd.f32 %v1962_v15, %v1772_v26  ;;  %v2032_v29 = vmul.f32 %v1772_v26, %v1772_v26  ;;  %v1774_v30 = vadd.f32 %v1773_v0, %v1721_v19  ;;  %v1818_v5 = vpop.f32.mrf.mxu1 }
 0x15a   : > { %v1775_v32 = vpop.f32.mrf.mxu0 }
 0x15b   : > { %v2049_v33 = vadd.f32 %v2048_v23, %v2032_v29  ;;  %1949 = vst [vmem:[%s3516_s25 + $0x60] sm:$0xff] %v1774_v30  ;;  %v1955_v59 = vadd.f32 %v1954_v58, %v1774_v30  ;;  %v2035_v39 = vmul.f32 %v1774_v30, %v1774_v30  ;;  %v1776_v42 = vadd.f32 %v1775_v32, %v1723_v57  ;;  %v1822_v6 = vpop.f32.mrf.mxu1 }
 0x15d   : > { %v1956_v43 = vrot.slane %v1955_v59, 4  ;;  %v2041_v46 = vadd.f32 %v2040_v27, %v2035_v39  ;;  %1950 = vst [vmem:[%s3516_s25 + $0x68] sm:$0xff] %v1776_v42  ;;  %v1964_v49 = vadd.f32 %v1963_v28, %v1776_v42  ;;  %v2036_v38 = vmul.f32 %v1776_v42, %v1776_v42  ;;  %v1824_v7 = vpop.f32.mrf.mxu1 }
 0x15f   : > { %v1957_v51 = vadd.f32 %v1956_v43, %v1955_v59  ;;  %v2042_v52 = vrot.slane %v2041_v46, 4  ;;  %v1965_v54 = vrot.slane %v1964_v49, 4  ;;  %v2050_v55 = vadd.f32 %v2049_v33, %v2036_v38  ;;  %v1826_v8 = vpop.f32.mrf.mxu1 }
 0x161   : > { %v1958_v56 = vrot.slane %v1957_v51, 2  ;;  %v2043_v60 = vadd.f32 %v2042_v52, %v2041_v46  ;;  %v1966_v61 = vadd.f32 %v1965_v54, %v1964_v49  ;;  %v2051_v53 = vrot.slane %v2050_v55, 4  ;;  %v1828_v9 = vpop.f32.mrf.mxu1 }
 0x163   : > { %v1959_v62 = vadd.f32 %v1958_v56, %v1957_v51  ;;  %v2044_v25 = vrot.slane %v2043_v60, 2  ;;  %v1967_v48 = vrot.slane %v1966_v61, 2  ;;  %v2052_v63 = vadd.f32 %v2051_v53, %v2050_v55 }
 0x165   : > { %v1960_v40 = vrot.slane %v1959_v62, 1  ;;  %v2045_v21 = vadd.f32 %v2044_v25, %v2043_v60  ;;  %v1968_v35 = vadd.f32 %v1967_v48, %v1966_v61  ;;  %v2053_v1 = vrot.slane %v2052_v63, 2 }
 0x167   : > { %v2046_v44 = vrot.slane %v2045_v21, 1  ;;  %v1969_v50 = vrot.slane %v1968_v35, 1  ;;  %v2054_v47 = vadd.f32 %v2053_v1, %v2052_v63  ;;  %v3526_v14 = vadd.f32 %v1960_v40, %v1959_v62 }
 0x169   : > { %v3528_v18 = vadd.f32 %v1969_v50, %v1968_v35  ;;  %v2055_v22 = vrot.slane %v2054_v47, 1  ;;  %v3530_v31 = vadd.f32 %v2046_v44, %v2045_v21 }
 0x16b   : > { %v1993_v34 = vcombine.low %v3526_v14, %v3528_v18  ;;  %v3534_v2 = vadd.f32 %v2055_v22, %v2054_v47 }
 0x16d   : > { %v2079_v3 = vcombine.low %v3530_v31, %v3534_v2 }
 0x18c   : > { %v1865_v10 = vpop.f32.mrf.mxu0 }
 0x18d   : > { %v1918_v11 = vpop.f32.mrf.mxu1  ;;  %v1866_v12 = vadd.f32 %v1865_v10, %v1812_v4  ;;  %v2736_v10 = vmov 1966171168  }
 0x18e   : > { %v1867_v13 = vpop.f32.mrf.mxu0 }
 0x18f   : > { %v1920_v15 = vpop.f32.mrf.mxu1  ;;  %v1919_v16 = vadd.f32 %v1918_v11, %v1866_v12  ;;  %v1868_v17 = vadd.f32 %v1867_v13, %v1814_v36  ;;  %v1996_v11 = vunpack.c.l.s4 %v2736_v10 }
 0x190   : > { %v1869_v19 = vpop.f32.mrf.mxu0 }
 0x191   : > { %v1922_v20 = vpop.f32.mrf.mxu1  ;;  %1939 = vst [vmem:[%s3516_s25 + $0x10] sm:$0xff] %v1919_v16  ;;  %v1921_v23 = vadd.f32 %v1920_v15, %v1868_v17  ;;  %v1870_v58 = vadd.f32 %v1869_v19, %v1816_v45  ;;  %v2025_v42 = vmul.f32 %v1919_v16, %v1919_v16 }
 0x192   : > { %v1871_v24 = vpop.f32.mrf.mxu0 }
 0x193   : > { %v1924_v26 = vpop.f32.mrf.mxu1  ;;  %1940 = vst [vmem:[%s3516_s25 + $0x18] sm:$0xff] %v1921_v23  ;;  %v1923_v57 = vadd.f32 %v1922_v20, %v1870_v58  ;;  %v1872_v0 = vadd.f32 %v1871_v24, %v1818_v5  ;;  %v2026_v55 = vmul.f32 %v1921_v23, %v1921_v23  ;;  %v1997_v58 = vunpack.c.0.s8 %v1996_v11 }
 0x194   : > { %v1875_v27 = vpop.f32.mrf.mxu0 }
 0x195   : > { %v1928_v28 = vpop.f32.mrf.mxu1  ;;  %1943 = vst [vmem:[%s3516_s25 + $0x30] sm:$0xff] %v1923_v57  ;;  %v1925_v29 = vadd.f32 %v1924_v26, %v1872_v0  ;;  %v1876_v30 = vadd.f32 %v1875_v27, %v1822_v6  ;;  %v2029_v32 = vmul.f32 %v1923_v57, %v1923_v57  ;;  %v1971_v51 = vadd.f32 %v1923_v57, %v1919_v16 }
 0x196   : > { %v1877_v33 = vpop.f32.mrf.mxu0 }
 0x197   : > { %v1930_v59 = vpop.f32.mrf.mxu1  ;;  %1944 = vst [vmem:[%s3516_s25 + $0x38] sm:$0xff] %v1925_v29  ;;  %v1929_v39 = vadd.f32 %v1928_v28, %v1876_v30  ;;  %v2030_v43 = vmul.f32 %v1925_v29, %v1925_v29  ;;  %v1878_v46 = vadd.f32 %v1877_v33, %v1824_v7  ;;  %v2057_v56 = vadd.f32 %v2029_v32, %v2025_v42 }
 0x198   : > { %v1879_v49 = vpop.f32.mrf.mxu0  ;;  %v1980_v53 = vadd.f32 %v1925_v29, %v1921_v23  ;;  %v2000_v30 = vsub.s32 %v1997_v58, %v2904_v41 }
 0x199   : > { %v1932_v38 = vpop.f32.mrf.mxu1  ;;  %1947 = vst [vmem:[%s3516_s25 + $0x50] sm:$0xff] %v1929_v39  ;;  %v2033_v52 = vmul.f32 %v1929_v39, %v1929_v39  ;;  %v1880_v54 = vadd.f32 %v1879_v49, %v1826_v8  ;;  %v1931_v60 = vadd.f32 %v1930_v59, %v1878_v46  ;;  %v1972_v62 = vadd.f32 %v1971_v51, %v1929_v39 }
 0x19a   : > { %v1881_v61 = vpop.f32.mrf.mxu0  ;;  %v2066_v63 = vadd.f32 %v2030_v43, %v2026_v55  ;;  %v2001_v46 = vrot.slane %v1993_v34, %v2000_v30  ;;  %v2087_v51 = vrot.slane %v2079_v3, %v2000_v30 }
 0x19b   : > { %v1933_v25 = vadd.f32 %v1932_v38, %v1880_v54  ;;  %v1882_v48 = vadd.f32 %v1881_v61, %v1828_v9  ;;  %v2058_v40 = vadd.f32 %v2057_v56, %v2033_v52  ;;  %1948 = vst [vmem:[%s3516_s25 + $0x58] sm:$0xff] %v1931_v60  ;;  %v2034_v21 = vmul.f32 %v1931_v60, %v1931_v60  ;;  %v1934_v35 = vpop.f32.mrf.mxu1 }
 0x19c   : > { %v1981_v1 = vadd.f32 %v1980_v53, %v1931_v60 }
 0x19d   : > { %1951 = vst [vmem:[%s3516_s25 + $0x70] sm:$0xff] %v1933_v25  ;;  %v1973_v44 = vadd.f32 %v1972_v62, %v1933_v25  ;;  %v2037_v50 = vmul.f32 %v1933_v25, %v1933_v25  ;;  %v1935_v47 = vadd.f32 %v1934_v35, %v1882_v48  ;;  %v2067_v22 = vadd.f32 %v2066_v63, %v2034_v21 }
 0x19f   : > { %v1974_v4 = vrot.slane %v1973_v44, 4  ;;  %v2059_v36 = vadd.f32 %v2058_v40, %v2037_v50  ;;  %1952 = vst [vmem:[%s3516_s25 + $0x78] sm:$0xff] %v1935_v47  ;;  %v1982_v45 = vadd.f32 %v1981_v1, %v1935_v47  ;;  %v2038_v5 = vmul.f32 %v1935_v47, %v1935_v47 }
 0x1a1   : > { %v1975_v6 = vadd.f32 %v1974_v4, %v1973_v44  ;;  %v2060_v7 = vrot.slane %v2059_v36, 4  ;;  %v1983_v8 = vrot.slane %v1982_v45, 4  ;;  %v2068_v9 = vadd.f32 %v2067_v22, %v2038_v5 }
 0x1a3   : > { %v1976_v12 = vrot.slane %v1975_v6, 2  ;;  %v2061_v13 = vadd.f32 %v2060_v7, %v2059_v36  ;;  %v1984_v15 = vadd.f32 %v1983_v8, %v1982_v45  ;;  %v2069_v16 = vrot.slane %v2068_v9, 4 }
 0x1a5   : > { %v1977_v17 = vadd.f32 %v1976_v12, %v1975_v6  ;;  %v2062_v19 = vrot.slane %v2061_v13, 2  ;;  %v1985_v20 = vrot.slane %v1984_v15, 2  ;;  %v2070_v23 = vadd.f32 %v2069_v16, %v2068_v9 }
 0x1a7   : > { %v1978_v24 = vrot.slane %v1977_v17, 1  ;;  %v2063_v26 = vadd.f32 %v2062_v19, %v2061_v13  ;;  %v1986_v57 = vadd.f32 %v1985_v20, %v1984_v15  ;;  %v2071_v0 = vrot.slane %v2070_v23, 2 }
 0x1a9   : > { %v2064_v27 = vrot.slane %v2063_v26, 1  ;;  %v1987_v28 = vrot.slane %v1986_v57, 1  ;;  %v2072_v29 = vadd.f32 %v2071_v0, %v2070_v23  ;;  %v1979_v32 = vadd.f32 %v1978_v24, %v1977_v17 }
 0x1ab   : > { %v1988_v33 = vadd.f32 %v1987_v28, %v1986_v57  ;;  %v2073_v59 = vrot.slane %v2072_v29, 1  ;;  %v2065_v39 = vadd.f32 %v2064_v27, %v2063_v26 }
 0x1ad   : > { %v1994_v42 = vcombine.low %v1979_v32, %v1988_v33  ;;  %v2074_v43 = vadd.f32 %v2073_v59, %v2072_v29 }
 0x1af   : > { %v2008_v49 = vrot.slane %v1994_v42, %v2000_v30  ;;  %v2080_v38 = vcombine.low %v2065_v39, %v2074_v43 }
 0x1b1   : > { %v2009_v52 = vcombine.low %v2001_v46, %v2008_v49  ;;  %v2094_v54 = vrot.slane %v2080_v38, %v2000_v30 }
 0x1b3   : > { %v2016_v41 = vrot.slane %v2009_v52, %v2000_v30  ;;  %v2095_v55 = vcombine.low %v2087_v51, %v2094_v54 }
 0x1b5   : > { %2022 = vst.msk [vmem:[%s268_s30] sm:$0xf] %vm2020_vm2, %v2016_v41  ;;  %v2102_v14 = vrot.slane %v2095_v55, %v2000_v30 }
 0x1b7   : > { %2104 = vst.msk [vmem:[%s272_s22] sm:$0xf] %vm2020_vm2, %v2102_v14 }
 0x1b8 PF: > { %s17_s21 = sadd.s32 1, %s2733_s21  }
 0x1b9   : > { %p14_p4 = scmp.ge.s32.totalorder %s17_s21, 4  }
 0x1bb   :  { %16 = sbr.rel (!%p14_p4) target bundleno = 1 (0x1), region = 90 }

// kernel: decoder_forward.11
= control target key start
LH: loop header
LB: loop body
LE: loop exit
PB: predicated region body
PF: predicated region fallthrough
CT: control target
= control target key end

     0   :  { %s4037_s15 = smov 0   ;;  %s5461_s0 = inlined_call_operand.vmem [shape: f32[2,64,256], index: 0, kind: input, shape index: {}]   ;;  %s5462_s1 = inlined_call_operand.vmem [shape: f32[1,256], index: 1, kind: input, shape index: {}]   ;;  %s5463_s2 = inlined_call_operand.vmem [shape: f32[1,256], index: 2, kind: input, shape index: {}]   ;;  %s5464_s3 = inlined_call_operand.vmem [shape: bf16[768,768], index: 3, kind: input, shape index: {}]   ;;  %s5465_s4 = inlined_call_operand.vmem [shape: f32[2,3,64,256], index: 4, kind: output, shape index: {}]  }
   0x1 LB: > { %s3102_s16 = sadd.s32 4294967295, %s4009_s15   ;;  %p3106_p0 = scmp.ge.s32.totalorder %s4009_s15, 1  ;;  %s4009_s15 = sphi %s4037_s15, %s14_s15  }
   0x2   : > { %p162_p1 = scmp.lt.s32.totalorder %s4009_s15, 3 }
   0x4   : > { %p163_p2 = pnand %p3106_p0, %p162_p1 }
   0x5   : > { %p188_p3 = scmp.lt.s32.totalorder (!%p163_p2), %s3102_s16, 1 }
   0x6   : > { %166 = sbr.rel (%p163_p2) target bundleno = 557 (0x22d), region = 36 }
   0xb   : > { %v3475_v0 = vld [vmem:[%s5464_s3 + $0x154] ss:$24 sps:$4 sm:$0xff]   ;;  %v4011_v2 = vmov 0.0   ;;  %v3479_v3 = vld [vmem:[%s5464_s3 + $0x150] ss:$24 sps:$4 sm:$0xff]   ;;  %v216_v37 = vlaneseq  ;;  %s5467_s16 = smov (!%p188_p3, %s3102_s16), 1 }
   0xc   : > { %v3477_v1 = vld [vmem:[%s5464_s3 + $0x454] ss:$24 sps:$4 sm:$0xff]   ;;  %287 = vst [vmem:[#allocation2 + $0xd0] sm:$0xff] %v4011_v2  ;;  %286 = vst [vmem:[#allocation2 + $0xb0] sm:$0xff] %v4011_v2  ;;  %2292 = vmatprep.subr.bf16.mxu0 %v3475_v0  ;;  %v3480_v4 = vld [vmem:[%s5464_s3 + $0x450] ss:$24 sps:$4 sm:$0xff]  }
   0xd   : > { %332 = vst [vmem:[#allocation2 + $0x158] sm:$0xff] %v4011_v2  ;;  %333 = vst [vmem:[#allocation2 + $0x150] sm:$0xff] %v4011_v2  ;;  %2365 = vmatprep.subr.bf16.mxu1 %v3477_v1  ;;  %v3481_v5 = vld [vmem:[%s5464_s3 + $0x124] ss:$24 sps:$4 sm:$0xff]   ;;  %2293 = vmatpush1.bf16.msra.mxu0 %v3479_v3  ;;  %v3485_v7 = vld [vmem:[%s5464_s3 + $0x120] ss:$24 sps:$4 sm:$0xff]  }
   0xe   : > { %2366 = vmatpush1.bf16.msra.mxu1 %v3480_v4  ;;  %v3483_v6 = vld [vmem:[%s5464_s3 + $0x424] ss:$24 sps:$4 sm:$0xff]   ;;  %2294 = vmatprep.subr.bf16.mxu0 %v3481_v5  ;;  %v3486_v8 = vld [vmem:[%s5464_s3 + $0x420] ss:$24 sps:$4 sm:$0xff]   ;;  %v3487_v9 = vld [vmem:[%s5464_s3 + $0xf4] ss:$24 sps:$4 sm:$0xff]  }
   0xf   : > { %2367 = vmatprep.subr.bf16.mxu1 %v3483_v6  ;;  %v3489_v10 = vld [vmem:[%s5464_s3 + $0x3f4] ss:$24 sps:$4 sm:$0xff]   ;;  %v3491_v11 = vld [vmem:[%s5464_s3 + $0xf0] ss:$24 sps:$4 sm:$0xff]   ;;  %v3493_v13 = vld [vmem:[%s5464_s3 + $0xc4] ss:$24 sps:$4 sm:$0xff]  }
  0x10   : > { %v3492_v12 = vld [vmem:[%s5464_s3 + $0x3f0] ss:$24 sps:$4 sm:$0xff]   ;;  %v3495_v14 = vld [vmem:[%s5464_s3 + $0x3c4] ss:$24 sps:$4 sm:$0xff]   ;;  %v3497_v15 = vld [vmem:[%s5464_s3 + $0xc0] ss:$24 sps:$4 sm:$0xff]  }
  0x11   : > { %2295 = vmatpush1.bf16.msra.mxu0 %v3485_v7  ;;  %v3498_v16 = vld [vmem:[%s5464_s3 + $0x3c0] ss:$24 sps:$4 sm:$0xff]   ;;  %v3499_v17 = vld [vmem:[%s5464_s3 + $0x94] ss:$24 sps:$4 sm:$0xff]   ;;  %v3503_v19 = vld [vmem:[%s5464_s3 + $0x90] ss:$24 sps:$4 sm:$0xff]  }
  0x12   : > { %2368 = vmatpush1.bf16.msra.mxu1 %v3486_v8  ;;  %2296 = vmatprep.subr.bf16.mxu0 %v3487_v9  ;;  %v3501_v18 = vld [vmem:[%s5464_s3 + $0x394] ss:$24 sps:$4 sm:$0xff]   ;;  %v3504_v20 = vld [vmem:[%s5464_s3 + $0x390] ss:$24 sps:$4 sm:$0xff]   ;;  %v3505_v21 = vld [vmem:[%s5464_s3 + $0x64] ss:$24 sps:$4 sm:$0xff]  }
  0x13   : > { %2369 = vmatprep.subr.bf16.mxu1 %v3489_v10  ;;  %v3507_v22 = vld [vmem:[%s5464_s3 + $0x364] ss:$24 sps:$4 sm:$0xff]   ;;  %v3509_v23 = vld [vmem:[%s5464_s3 + $0x60] ss:$24 sps:$4 sm:$0xff]   ;;  %v3511_v25 = vld [vmem:[%s5464_s3 + $0x34] ss:$24 sps:$4 sm:$0xff]  }
  0x14   : > { %v3510_v24 = vld [vmem:[%s5464_s3 + $0x360] ss:$24 sps:$4 sm:$0xff]   ;;  %v3513_v26 = vld [vmem:[%s5464_s3 + $0x334] ss:$24 sps:$4 sm:$0xff]   ;;  %v3515_v27 = vld [vmem:[%s5464_s3 + $0x30] ss:$24 sps:$4 sm:$0xff]  }
  0x15   : > { %2297 = vmatpush1.bf16.msra.mxu0 %v3491_v11  ;;  %v3516_v28 = vld [vmem:[%s5464_s3 + $0x330] ss:$24 sps:$4 sm:$0xff]   ;;  %v3517_v29 = vld [vmem:[%s5464_s3 + $0x4] ss:$24 sps:$4 sm:$0xff]   ;;  %v3521_v31 = vld [vmem:[%s5464_s3] ss:$24 sps:$4 sm:$0xff]  }
  0x16   : > { %2370 = vmatpush1.bf16.msra.mxu1 %v3492_v12  ;;  %2298 = vmatprep.subr.bf16.mxu0 %v3493_v13  ;;  %v3519_v30 = vld [vmem:[%s5464_s3 + $0x304] ss:$24 sps:$4 sm:$0xff]   ;;  %v3522_v32 = vld [vmem:[%s5464_s3 + $0x300] ss:$24 sps:$4 sm:$0xff]   ;;  %v3523_v33 = vld [vmem:[%s5464_s3 + $0x2d4] ss:$24 sps:$4 sm:$0xff]  }
  0x17   : > { %2371 = vmatprep.subr.bf16.mxu1 %v3495_v14  ;;  %v3525_v34 = vld [vmem:[%s5464_s3 + $0x5d4] ss:$24 sps:$4 sm:$0xff]   ;;  %v3527_v35 = vld [vmem:[%s5464_s3 + $0x2d0] ss:$24 sps:$4 sm:$0xff]   ;;  %v3529_v38 = vld [vmem:[%s5464_s3 + $0x2a4] ss:$24 sps:$4 sm:$0xff]  }
  0x18   : > { %v3528_v36 = vld [vmem:[%s5464_s3 + $0x5d0] ss:$24 sps:$4 sm:$0xff]   ;;  %v3531_v39 = vld [vmem:[%s5464_s3 + $0x5a4] ss:$24 sps:$4 sm:$0xff]   ;;  %v3533_v40 = vld [vmem:[%s5464_s3 + $0x2a0] ss:$24 sps:$4 sm:$0xff]  }
  0x19   : > { %2299 = vmatpush1.bf16.msra.mxu0 %v3497_v15  ;;  %v217_v41 = vshrl.u32 %v216_v37, 7  ;;  %v3534_v42 = vld [vmem:[%s5464_s3 + $0x5a0] ss:$24 sps:$4 sm:$0xff]   ;;  %v3535_v43 = vld [vmem:[%s5464_s3 + $0x274] ss:$24 sps:$4 sm:$0xff]   ;;  %s3432_s27 = sshll.u32 %s5467_s16, 7 }
  0x1a   : > { %2372 = vmatpush1.bf16.msra.mxu1 %v3498_v16  ;;  %2300 = vmatprep.subr.bf16.mxu0 %v3499_v17  ;;  %v3537_v44 = vld [vmem:[%s5464_s3 + $0x574] ss:$24 sps:$4 sm:$0xff]   ;;  %v3539_v45 = vld [vmem:[%s5464_s3 + $0x270] ss:$24 sps:$4 sm:$0xff]   ;;  %s4187_s10 = scalar_lea.vmem %s5461_s0, %s3432_s27  ;;  %v3541_v47 = vld [vmem:[%s5464_s3 + $0x244] ss:$24 sps:$4 sm:$0xff]  }
  0x1b   : > { %2373 = vmatprep.subr.bf16.mxu1 %v3501_v18  ;;  %v3540_v46 = vld [vmem:[%s5464_s3 + $0x570] ss:$24 sps:$4 sm:$0xff]   ;;  %v222_v48 = vsub.s32 1, %v217_v41  ;;  %v218_v49 = vsub.s32 0, %v217_v41  ;;  %v3543_v50 = vld [vmem:[%s5464_s3 + $0x544] ss:$24 sps:$4 sm:$0xff]  }
  0x1c   : > { %v3545_v51 = vld [vmem:[%s5464_s3 + $0x240] ss:$24 sps:$4 sm:$0xff]   ;;  %v199_v53 = vld [vmem:[%s4187_s10 + $0x8] sm:$0xff]  ;;  %v200_v60 = vld [vmem:[%s4187_s10 + $0x10] sm:$0xff]  ;;  %vm366_vm0 = vcmask 1040384   ;;  %vm429_vm1 = vcmask 1046528  }
  0x1d   : > { %2301 = vmatpush1.bf16.msra.mxu0 %v3503_v19  ;;  %v3546_v52 = vld [vmem:[%s5464_s3 + $0x540] ss:$24 sps:$4 sm:$0xff]   ;;  %v3547_v62 = vld [vmem:[%s5464_s3 + $0x214] ss:$24 sps:$4 sm:$0xff]   ;;  %v3551_v5 = vld [vmem:[%s5464_s3 + $0x210] ss:$24 sps:$4 sm:$0xff]  }
  0x1e   : > { %2374 = vmatpush1.bf16.msra.mxu1 %v3504_v20  ;;  %2302 = vmatprep.subr.bf16.mxu0 %v3505_v21  ;;  %v201_v54 = vld [vmem:[%s4187_s10 + $0x18] sm:$0xff]  ;;  %v214_v55 = vld [vmem:[%s5462_s1] sm:$0x3]  ;;  %v3549_v63 = vld [vmem:[%s5464_s3 + $0x514] ss:$24 sps:$4 sm:$0xff]   ;;  %s3465_s28 = smul.u32 384, %s5467_s16 }
  0x1f   : > { %2375 = vmatprep.subr.bf16.mxu1 %v3507_v22  ;;  %v242_v56 = vld [vmem:[%s5463_s2] sm:$0x3]  ;;  %v4209_v57 = vrot.slane %v214_v55, %v222_v48  ;;  %v4215_v61 = vrot.slane %v214_v55, %v218_v49  ;;  %v3552_v6 = vld [vmem:[%s5464_s3 + $0x510] ss:$24 sps:$4 sm:$0xff]   ;;  %v3553_v10 = vld [vmem:[%s5464_s3 + $0x1e4] ss:$24 sps:$4 sm:$0xff]  }
  0x20   : > { %v4211_v58 = vrot.slane %v242_v56, %v222_v48  ;;  %v198_v59 = vld [vmem:[%s4187_s10] sm:$0xff]  ;;  %v4223_v0 = vrot.slane %v242_v56, %v218_v49  ;;  %v3559_v19 = vld [vmem:[%s5464_s3 + $0x1b4] ss:$24 sps:$4 sm:$0xff]   ;;  %v3574_v48 = vld [vmem:[%s5464_s3 + $0x158] ss:$24 sps:$4 sm:$0xff]   ;;  %s5347_s5 = scalar_lea.vmem %s5465_s4, %s3465_s28 }
  0x21   : > { %2303 = vmatpush1.bf16.msra.mxu0 %v3509_v23  ;;  %v227_v1 = vmul.f32 %v4209_v57, %v199_v53  ;;  %v229_v2 = vmul.f32 %v4209_v57, %v201_v54  ;;  %v226_v3 = vmul.f32 %v4215_v61, %v198_v59  ;;  %v228_v4 = vmul.f32 %v4215_v61, %v200_v60  ;;  %v3555_v11 = vld [vmem:[%s5464_s3 + $0x4e4] ss:$24 sps:$4 sm:$0xff]   ;;  %v3557_v16 = vld [vmem:[%s5464_s3 + $0x1e0] ss:$24 sps:$4 sm:$0xff]   ;;  %v3585_v53 = vld [vmem:[%s5464_s3 + $0x6f4] ss:$24 sps:$4 sm:$0xff]  }
  0x22   : > { %2376 = vmatpush1.bf16.msra.mxu1 %v3510_v24  ;;  %2304 = vmatprep.subr.bf16.mxu0 %v3511_v25  ;;  %v3558_v17 = vld [vmem:[%s5464_s3 + $0x4e0] ss:$24 sps:$4 sm:$0xff]   ;;  %v3561_v24 = vld [vmem:[%s5464_s3 + $0x4b4] ss:$24 sps:$4 sm:$0xff]   ;;  %v3579_v49 = vld [vmem:[%s5464_s3 + $0x724] ss:$24 sps:$4 sm:$0xff]  }
  0x23   : > { %2377 = vmatprep.subr.bf16.mxu1 %v3513_v26  ;;  %v255_v7 = vadd.f32 %v4211_v58, %v227_v1  ;;  %v257_v8 = vadd.f32 %v4211_v58, %v229_v2  ;;  %v254_v9 = vadd.f32 %v4223_v0, %v226_v3  ;;  %v256_v12 = vadd.f32 %v4223_v0, %v228_v4  ;;  %v3588_v54 = vld [vmem:[%s5464_s3 + $0xfc] ss:$24 sps:$4 sm:$0xff]   ;;  %v203_v55 = vld [vmem:[%s4187_s10 + $0x28] sm:$0xff]  ;;  %v202_v60 = vld [vmem:[%s4187_s10 + $0x20] sm:$0xff] }
  0x24   : > { %v205_v56 = vld [vmem:[%s4187_s10 + $0x38] sm:$0xff]  ;;  %v231_v59 = vmul.f32 %v4209_v57, %v203_v55  ;;  %v230_v2 = vmul.f32 %v4215_v61, %v202_v60 }
  0x25   : > { %2305 = vmatpush1.bf16.msra.mxu0 %v3515_v27  ;;  %v271_v13 = vmax.f32 %v255_v7, 0.0  ;;  %v4245_v14 = vmax.f32 %v257_v8, 0.0  ;;  %v270_v15 = vmax.f32 %v254_v9, 0.0  ;;  %v4253_v18 = vmax.f32 %v256_v12, 0.0  ;;  %v3586_v4 = vld [vmem:[%s5464_s3 + $0xf8] ss:$24 sps:$4 sm:$0xff]  }
  0x26   : > { %2378 = vmatpush1.bf16.msra.mxu1 %v3516_v28  ;;  %2306 = vmatprep.subr.bf16.mxu0 %v3517_v29  ;;  %v3563_v29 = vld [vmem:[%s5464_s3 + $0x1b0] ss:$24 sps:$4 sm:$0xff]   ;;  %v233_v1 = vmul.f32 %v4209_v57, %v205_v56  ;;  %v3594_v7 = vld [vmem:[%s5464_s3 + $0xcc] ss:$24 sps:$4 sm:$0xff]   ;;  %v258_v9 = vadd.f32 %v4223_v0, %v230_v2  ;;  %v3601_v60 = vld [vmem:[%s5464_s3 + $0x660] ss:$24 sps:$4 sm:$0xff]  }
  0x27   : > { %2379 = vmatprep.subr.bf16.mxu1 %v3519_v30  ;;  %v368_v20 = vrot.slane %v271_v13, 7  ;;  %v371_v21 = vrot.slane %v4245_v14, 7  ;;  %v4260_v22 = vpack.c.bf16 %v4245_v14, %v271_v13  ;;  %v367_v23 = vrot.slane %v270_v15, 7  ;;  %v3592_v12 = vld [vmem:[%s5464_s3 + $0xc8] ss:$24 sps:$4 sm:$0xff]  }
  0x28   : > { %v369_v25 = vrot.slane %v4253_v18, 7  ;;  %v430_v27 = vrot.slane %v270_v15, 1  ;;  %v433_v28 = vrot.slane %v271_v13, 1  ;;  %v261_v8 = vadd.f32 %v4211_v58, %v233_v1  ;;  %v211_v1 = vld [vmem:[%s4187_s10 + $0x68] sm:$0xff] }
  0x29   : > { %2307 = vmatpush1.bf16.msra.mxu0 %v3521_v31  ;;  %v372_v26 = vsel %vm366_vm0, %v368_v20, %v371_v21  ;;  %414 = vst [vmem:[#allocation2 + $0xd0] sm:$0xfe] %v368_v20  ;;  %2397 = vmatprep.mubr.bf16.mxu1 %v4260_v22  ;;  %413 = vst [vmem:[#allocation2 + $0xb0] sm:$0xfe] %v367_v23  ;;  %v434_v31 = vrot.slane %v4245_v14, 1 }
  0x2a   : > { %2380 = vmatpush1.bf16.msra.mxu1 %v3522_v32  ;;  %2308 = vmatprep.subr.bf16.mxu0 %v3523_v33  ;;  %v370_v30 = vsel %vm366_vm0, %v367_v23, %v369_v25  ;;  %v3564_v32 = vld [vmem:[%s5464_s3 + $0x4b0] ss:$24 sps:$4 sm:$0xff]   ;;  %v3565_v33 = vld [vmem:[%s5464_s3 + $0x184] ss:$24 sps:$4 sm:$0xff]   ;;  %v3597_v20 = vld [vmem:[%s5464_s3 + $0x694] ss:$24 sps:$4 sm:$0xff]  }
  0x2b   : > { %2381 = vmatprep.subr.bf16.mxu1 %v3525_v34  ;;  %v431_v34 = vrot.slane %v4253_v18, 1  ;;  %v3600_v23 = vld [vmem:[%s5464_s3 + $0x9c] ss:$24 sps:$4 sm:$0xff]   ;;  %v3604_v2 = vld [vmem:[%s5464_s3 + $0x68] ss:$24 sps:$4 sm:$0xff]  }
  0x2c   : > { %v3609_v14 = vld [vmem:[%s5464_s3 + $0x634] ss:$24 sps:$4 sm:$0xff]  }
  0x2d   : > { %2309 = vmatpush2.bf16.msra.mxu0 %v3527_v35  ;;  %v3567_v35 = vld [vmem:[%s5464_s3 + $0x484] ss:$24 sps:$4 sm:$0xff]   ;;  %v4295_v37 = vsel %vm429_vm1, %v430_v27, %v431_v34 }
  0x2e   : > { %2382 = vmatpush2.bf16.msra.mxu1 %v3528_v36  ;;  %2310 = vmatprep.subr.bf16.mxu0 %v3529_v38  ;;  %v4290_v36 = vsel %vm429_vm1, %v433_v28, %v434_v31  ;;  %v3569_v38 = vld [vmem:[%s5464_s3 + $0x180] ss:$24 sps:$4 sm:$0xff]  }
  0x2f   : > { %2383 = vmatprep.subr.bf16.mxu1 %v3531_v39  ;;  %v3570_v39 = vld [vmem:[%s5464_s3 + $0x480] ss:$24 sps:$4 sm:$0xff]  }
  0x30   : > { %v493_v41 = vld [vmem:[#allocation2 + $0xd0] sm:$0xff] }
  0x31   : > { %2311 = vmatpush2.bf16.msra.mxu0 %v3533_v40  ;;  %v3573_v40 = vld [vmem:[%s5464_s3 + $0x754] ss:$24 sps:$4 sm:$0xff]  }
  0x32   : > { %2384 = vmatpush2.bf16.msra.mxu1 %v3534_v42  ;;  %2312 = vmatprep.subr.bf16.mxu0 %v3535_v43  ;;  %v492_v42 = vld [vmem:[#allocation2 + $0xb0] sm:$0xff]  ;;  %v4306_v43 = vpack.c.bf16 %v372_v26, %v493_v41  ;;  %v209_v26 = vld [vmem:[%s4187_s10 + $0x58] sm:$0xff] }
  0x33   : > { %2385 = vmatprep.subr.bf16.mxu1 %v3537_v44  ;;  %v3576_v44 = vld [vmem:[%s5464_s3 + $0x15c] ss:$24 sps:$4 sm:$0xff]  }
  0x34   : > { %2324 = vmatprep.mubr.bf16.mxu0 %v4306_v43  ;;  %v208_v41 = vld [vmem:[%s4187_s10 + $0x50] sm:$0xff] }
  0x35   : > { %2313 = vmatpush2.bf16.msra.mxu0 %v3539_v45  ;;  %v4311_v45 = vpack.c.bf16 %v370_v30, %v492_v42  ;;  %v3595_v42 = vld [vmem:[%s5464_s3 + $0x690] ss:$24 sps:$4 sm:$0xff]   ;;  %v236_v55 = vmul.f32 %v4215_v61, %v208_v41 }
  0x36   : > { %2386 = vmatpush2.bf16.msra.mxu1 %v3540_v46  ;;  %2314 = vmatprep.subr.bf16.mxu0 %v3541_v47  ;;  %v4314_v46 = vpack.c.bf16 %v4253_v18, %v270_v15  ;;  %v3571_v47 = vld [vmem:[%s5464_s3 + $0x750] ss:$24 sps:$4 sm:$0xff]   ;;  %v4375_v15 = vmax.f32 %v261_v8, 0.0 }
  0x37   : > { %2387 = vmatprep.subr.bf16.mxu1 %v3543_v50  ;;  %v3582_v50 = vld [vmem:[%s5464_s3 + $0x12c] ss:$24 sps:$4 sm:$0xff]  }
  0x38   : > { %v379_v28 = vrot.slane %v4375_v15, 7 }
  0x39   : > { %2315 = vmatpush2.bf16.msra.mxu0 %v3545_v51  ;;  %v3577_v51 = vld [vmem:[%s5464_s3 + $0x720] ss:$24 sps:$4 sm:$0xff]  }
  0x3a   : > { %2388 = vmatpush2.bf16.msra.mxu1 %v3546_v52  ;;  %2316 = vmatprep.subr.bf16.mxu0 %v3547_v62  ;;  %v3580_v52 = vld [vmem:[%s5464_s3 + $0x128] ss:$24 sps:$4 sm:$0xff]   ;;  %v204_v62 = vld [vmem:[%s4187_s10 + $0x30] sm:$0xff] }
  0x3b   : > { %2389 = vmatprep.subr.bf16.mxu1 %v3549_v63  ;;  %v3583_v63 = vld [vmem:[%s5464_s3 + $0x6f0] ss:$24 sps:$4 sm:$0xff]   ;;  %v232_v3 = vmul.f32 %v4215_v61, %v204_v62 }
  0x3d   : > { %2317 = vmatpush2.bf16.msra.mxu0 %v3551_v5  ;;  %v259_v5 = vadd.f32 %v4211_v58, %v231_v59 }
  0x3e   : > { %2390 = vmatpush2.bf16.msra.mxu1 %v3552_v6  ;;  %2318 = vmatprep.subr.bf16.mxu0 %v3553_v10  ;;  %v3591_v6 = vld [vmem:[%s5464_s3 + $0x6c4] ss:$24 sps:$4 sm:$0xff]   ;;  %v260_v10 = vadd.f32 %v4223_v0, %v232_v3  ;;  %v264_v3 = vadd.f32 %v4223_v0, %v236_v55 }
  0x3f   : > { %2391 = vmatprep.subr.bf16.mxu1 %v3555_v11  ;;  %v3589_v11 = vld [vmem:[%s5464_s3 + $0x6c0] ss:$24 sps:$4 sm:$0xff]   ;;  %v4373_v13 = vmax.f32 %v259_v5, 0.0 }
  0x40   : > { %v213_v5 = vld [vmem:[%s4187_s10 + $0x78] sm:$0xff] }
  0x41   : > { %2319 = vmatpush2.bf16.msra.mxu0 %v3557_v16  ;;  %v4377_v16 = vmax.f32 %v258_v9, 0.0  ;;  %v438_v59 = vrot.slane %v4373_v13, 1 }
  0x42   : > { %2392 = vmatpush2.bf16.msra.mxu1 %v3558_v17  ;;  %2320 = vmatprep.subr.bf16.mxu0 %v3559_v19  ;;  %v4379_v17 = vmax.f32 %v260_v10, 0.0  ;;  %v207_v19 = vld [vmem:[%s4187_s10 + $0x48] sm:$0xff] }
  0x43   : > { %2393 = vmatprep.subr.bf16.mxu1 %v3561_v24  ;;  %v375_v24 = vrot.slane %v4373_v13, 7  ;;  %v235_v27 = vmul.f32 %v4209_v57, %v207_v19  ;;  %v373_v30 = vrot.slane %v4377_v16, 7  ;;  %v4464_v8 = vsel %vm429_vm1, %v434_v31, %v438_v59  ;;  %v212_v19 = vld [vmem:[%s4187_s10 + $0x70] sm:$0xff] }
  0x44   : > { %v3612_v31 = vld [vmem:[%s5464_s3 + $0x3c] ss:$24 sps:$4 sm:$0xff]  }
  0x45   : > { %2321 = vmatpush2.bf16.msra.mxu0 %v3563_v29  ;;  %v4394_v29 = vpack.c.bf16 %v4375_v15, %v4373_v13 }
  0x46   : > { %2394 = vmatpush2.bf16.msra.mxu1 %v3564_v32  ;;  %2322 = vmatprep.subr.bf16.mxu0 %v3565_v33  ;;  %v377_v32 = vrot.slane %v4379_v17, 7  ;;  %v206_v33 = vld [vmem:[%s4187_s10 + $0x40] sm:$0xff] }
  0x47   : > { %2395 = vmatprep.subr.bf16.mxu1 %v3567_v35  ;;  %v376_v35 = vsel %vm366_vm0, %v371_v21, %v375_v24  ;;  %v374_v21 = vsel %vm366_vm0, %v369_v25, %v373_v30 }
  0x49   : > { %2323 = vmatpush2.bf16.msra.mxu0 %v3569_v38  ;;  %v4404_v38 = vpack.c.bf16 %v4379_v17, %v4377_v16 }
  0x4a   : > { %2396 = vmatpush2.bf16.msra.mxu1 %v3570_v39  ;;  %2438 = vmatprep.subr.bf16.mxu0 %v3573_v40  ;;  %v237_v39 = vmul.f32 %v4209_v57, %v209_v26  ;;  %v263_v40 = vadd.f32 %v4211_v58, %v235_v27 }
  0x4b   : > { %2511 = vmatprep.subr.bf16.mxu1 %v3576_v44  ;;  %v380_v44 = vsel %vm366_vm0, %v375_v24, %v379_v28 }
  0x4c   : > { %2325 = vmatmul.mubr.bf16.vlgmr.msra.gmra.mxu0 %v4311_v45  ;;  %v4429_v25 = vmax.f32 %v263_v40, 0.0 }
  0x4d   : > { %2398 = vmatmul.mubr.bf16.vlgmr.msra.gmra.mxu1 %v4314_v46  ;;  %2439 = vmatpush1.bf16.msra.mxu0 %v3571_v47  ;;  %v378_v47 = vsel %vm366_vm0, %v373_v30, %v377_v32  ;;  %v3607_v30 = vld [vmem:[%s5464_s3 + $0x630] ss:$24 sps:$4 sm:$0xff]  }
  0x4e   : > { %2512 = vmatpush1.bf16.msra.mxu1 %v3574_v48  ;;  %2440 = vmatprep.subr.bf16.mxu0 %v3579_v49  ;;  %v234_v48 = vmul.f32 %v4215_v61, %v206_v33  ;;  %v3598_v49 = vld [vmem:[%s5464_s3 + $0x98] ss:$24 sps:$4 sm:$0xff]   ;;  %v446_v18 = vrot.slane %v4429_v25, 1 }
  0x4f   : > { %2513 = vmatprep.subr.bf16.mxu1 %v3582_v50  ;;  %2407 = vmatprep.mubr.bf16.mxu1 %v4394_v29  ;;  %v4424_v50 = vpack.c.bf16 %v380_v44, %v376_v35 }
  0x50   : > { %v262_v56 = vadd.f32 %v4223_v0, %v234_v48  ;;  %v436_v48 = vrot.slane %v4377_v16, 1  ;;  %v3613_v16 = vld [vmem:[%s5464_s3 + $0x600] ss:$24 sps:$4 sm:$0xff]  }
  0x51   : > { %2441 = vmatpush1.bf16.msra.mxu0 %v3577_v51  ;;  %v4426_v51 = vpack.c.bf16 %v378_v47, %v374_v21  ;;  %2334 = vmatprep.mubr.bf16.mxu0 %v4424_v50  ;;  %v3618_v21 = vld [vmem:[%s5464_s3 + $0xc] ss:$24 sps:$4 sm:$0xff]  }
  0x52   : > { %2514 = vmatpush1.bf16.msra.mxu1 %v3580_v52  ;;  %2442 = vmatprep.subr.bf16.mxu0 %v3585_v53  ;;  %v265_v52 = vadd.f32 %v4211_v58, %v237_v39  ;;  %v3603_v53 = vld [vmem:[%s5464_s3 + $0x664] ss:$24 sps:$4 sm:$0xff]  }
  0x53   : > { %2515 = vmatprep.subr.bf16.mxu1 %v3588_v54  ;;  %v3606_v54 = vld [vmem:[%s5464_s3 + $0x6c] ss:$24 sps:$4 sm:$0xff]  }
  0x54   : > { %v4445_v62 = vmax.f32 %v265_v52, 0.0  ;;  %2335 = vmatmul.mubr.bf16.gmra.mxu0 %v4426_v51 }
  0x55   : > { %2443 = vmatpush1.bf16.msra.mxu0 %v3583_v63  ;;  %2408 = vmatmul.mubr.bf16.gmra.mxu1 %v4404_v38  ;;  %v383_v63 = vrot.slane %v4429_v25, 7 }
  0x56   : > { %2516 = vmatpush1.bf16.msra.mxu1 %v3586_v4  ;;  %2444 = vmatprep.subr.bf16.mxu0 %v3591_v6  ;;  %v4454_v4 = vmax.f32 %v262_v56, 0.0  ;;  %v239_v6 = vmul.f32 %v4209_v57, %v211_v1  ;;  %v387_v10 = vrot.slane %v4445_v62, 7  ;;  %v3621_v1 = vld [vmem:[%s5464_s3 + $0x8d4] ss:$24 sps:$4 sm:$0xff]  }
  0x57   : > { %2517 = vmatprep.subr.bf16.mxu1 %v3594_v7  ;;  %v210_v7 = vld [vmem:[%s4187_s10 + $0x60] sm:$0xff]  ;;  %v384_v9 = vsel %vm366_vm0, %v379_v28, %v383_v63  ;;  %v240_v28 = vmul.f32 %v4215_v61, %v212_v19 }
  0x58   : > { %v267_v24 = vadd.f32 %v4211_v58, %v239_v6  ;;  %v238_v26 = vmul.f32 %v4215_v61, %v210_v7  ;;  %v3615_v61 = vld [vmem:[%s5464_s3 + $0x604] ss:$24 sps:$4 sm:$0xff]  }
  0x59   : > { %2445 = vmatpush1.bf16.msra.mxu0 %v3589_v11  ;;  %v4470_v11 = vpack.c.bf16 %v4445_v62, %v4429_v25  ;;  %v268_v44 = vadd.f32 %v4223_v0, %v240_v28  ;;  %v440_v25 = vrot.slane %v4379_v17, 1  ;;  %v3627_v17 = vld [vmem:[%s5464_s3 + $0x8a4] ss:$24 sps:$4 sm:$0xff]  }
  0x5a   : > { %2518 = vmatpush1.bf16.msra.mxu1 %v3592_v12  ;;  %2446 = vmatprep.subr.bf16.mxu0 %v3597_v20  ;;  %v241_v12 = vmul.f32 %v4209_v57, %v213_v5  ;;  %v4480_v20 = vmax.f32 %v264_v3, 0.0  ;;  %v388_v57 = vsel %vm366_vm0, %v383_v63, %v387_v10  ;;  %v4508_v41 = vmax.f32 %v267_v24, 0.0 }
  0x5b   : > { %2519 = vmatprep.subr.bf16.mxu1 %v3600_v23  ;;  %v381_v23 = vrot.slane %v4454_v4, 7  ;;  %2417 = vmatprep.mubr.bf16.mxu1 %v4470_v11  ;;  %v4492_v33 = vpack.c.bf16 %v388_v57, %v384_v9  ;;  %v284_v56 = vmax.f32 %v268_v44, 0.0  ;;  %v3619_v9 = vld [vmem:[%s5464_s3 + $0x8d0] ss:$24 sps:$4 sm:$0xff]  }
  0x5c   : > { %v269_v27 = vadd.f32 %v4211_v58, %v241_v12  ;;  %v385_v39 = vrot.slane %v4480_v20, 7  ;;  %v4500_v40 = vpack.c.bf16 %v4480_v20, %v4454_v4  ;;  %v3610_v58 = vld [vmem:[%s5464_s3 + $0x38] ss:$24 sps:$4 sm:$0xff]   ;;  %v454_v24 = vrot.slane %v4508_v41, 1 }
  0x5d   : > { %2447 = vmatpush1.bf16.msra.mxu0 %v3595_v42  ;;  %v382_v35 = vsel %vm366_vm0, %v377_v32, %v381_v23  ;;  %v266_v32 = vadd.f32 %v4223_v0, %v238_v26  ;;  %2344 = vmatprep.mubr.bf16.mxu0 %v4492_v33  ;;  %v391_v0 = vrot.slane %v4508_v41, 7  ;;  %v393_v5 = vrot.slane %v284_v56, 7  ;;  %v3630_v26 = vld [vmem:[%s5464_s3 + $0x2ac] ss:$24 sps:$4 sm:$0xff]  }
  0x5e   : > { %2520 = vmatpush1.bf16.msra.mxu1 %v3598_v49  ;;  %2448 = vmatprep.subr.bf16.mxu0 %v3603_v53  ;;  %v4510_v42 = vmax.f32 %v269_v27, 0.0  ;;  %v386_v47 = vsel %vm366_vm0, %v381_v23, %v385_v39  ;;  %v442_v49 = vrot.slane %v4375_v15, 1  ;;  %v3616_v15 = vld [vmem:[%s5464_s3 + $0x8] ss:$24 sps:$4 sm:$0xff]   ;;  %v450_v23 = vrot.slane %v4445_v62, 1 }
  0x5f   : > { %2521 = vmatprep.subr.bf16.mxu1 %v3606_v54  ;;  %v4521_v52 = vpack.c.bf16 %v386_v47, %v382_v35  ;;  %2418 = vmatmul.mubr.bf16.gmra.mxu1 %v4500_v40  ;;  %v282_v55 = vmax.f32 %v266_v32, 0.0  ;;  %v448_v57 = vrot.slane %v4480_v20, 1  ;;  %v3628_v20 = vld [vmem:[%s5464_s3 + $0x2a8] ss:$24 sps:$4 sm:$0xff]   ;;  %v3633_v32 = vld [vmem:[%s5464_s3 + $0x874] ss:$24 sps:$4 sm:$0xff]  }
  0x60   : > { %v395_v53 = vrot.slane %v4510_v42, 7  ;;  %v4528_v54 = vpack.c.bf16 %v4510_v42, %v4508_v41  ;;  %v4544_v63 = vsel %vm429_vm1, %v438_v59, %v442_v49  ;;  %v4562_v7 = vsel %vm429_vm1, %v442_v49, %v446_v18  ;;  %v3634_v47 = vld [vmem:[%s5464_s3 + $0x278] ss:$24 sps:$4 sm:$0xff]   ;;  %v3642_v49 = vld [vmem:[%s5464_s3 + $0x24c] ss:$24 sps:$4 sm:$0xff]  }
  0x61   : > { %2449 = vmatpush1.bf16.msra.mxu0 %v3601_v60  ;;  %v4539_v60 = vsel %vm429_vm1, %v431_v34, %v436_v48  ;;  %v3624_v34 = vld [vmem:[%s5464_s3 + $0x2dc] ss:$24 sps:$4 sm:$0xff]   ;;  %v389_v59 = vrot.slane %v282_v55, 7  ;;  %v4559_v6 = vpack.c.bf16 %v284_v56, %v282_v55  ;;  %v452_v27 = vrot.slane %v282_v55, 1  ;;  %v3643_v55 = vld [vmem:[%s5464_s3 + $0x810] ss:$24 sps:$4 sm:$0xff]  }
  0x62   : > { %2522 = vmatpush1.bf16.msra.mxu1 %v3604_v2  ;;  %2450 = vmatprep.subr.bf16.mxu0 %v3609_v14  ;;  %v392_v2 = vsel %vm366_vm0, %v387_v10, %v391_v0  ;;  %v396_v3 = vsel %vm366_vm0, %v391_v0, %v395_v53  ;;  %v3622_v10 = vld [vmem:[%s5464_s3 + $0x2d8] ss:$24 sps:$4 sm:$0xff]   ;;  %v444_v14 = vrot.slane %v4454_v4, 1  ;;  %v4594_v62 = vsel %vm429_vm1, %v446_v18, %v450_v23  ;;  %v3640_v53 = vld [vmem:[%s5464_s3 + $0x248] ss:$24 sps:$4 sm:$0xff]  }
  0x63   : > { %2523 = vmatprep.subr.bf16.mxu1 %v3612_v31  ;;  %v4555_v13 = vpack.c.bf16 %v396_v3, %v392_v2  ;;  %2345 = vmatmul.mubr.bf16.gmra.mxu0 %v4521_v52  ;;  %v390_v12 = vsel %vm366_vm0, %v385_v39, %v389_v59  ;;  %v394_v19 = vsel %vm366_vm0, %v389_v59, %v393_v5  ;;  %v458_v35 = vrot.slane %v4510_v42, 1  ;;  %v3625_v39 = vld [vmem:[%s5464_s3 + $0x8a0] ss:$24 sps:$4 sm:$0xff]   ;;  %v3654_v2 = vld [vmem:[%s5464_s3 + $0x1ec] ss:$24 sps:$4 sm:$0xff]  }
  0x64   : > { %2427 = vmatprep.mubr.bf16.mxu1 %v4528_v54  ;;  %v4579_v31 = vsel %vm429_vm1, %v436_v48, %v440_v25  ;;  %v4587_v4 = vsel %vm429_vm1, %v440_v25, %v444_v14  ;;  %v4590_v28 = vpack.c.bf16 %v394_v19, %v390_v12  ;;  %v4615_v41 = vsel %vm429_vm1, %v448_v57, %v452_v27  ;;  %v3639_v48 = vld [vmem:[%s5464_s3 + $0x844] ss:$24 sps:$4 sm:$0xff]   ;;  %v3637_v0 = vld [vmem:[%s5464_s3 + $0x840] ss:$24 sps:$4 sm:$0xff]   ;;  %v3655_v5 = vld [vmem:[%s5464_s3 + $0x7b0] ss:$24 sps:$4 sm:$0xff]  }
  0x65   : > { %2451 = vmatpush1.bf16.msra.mxu0 %v3607_v30  ;;  %2354 = vmatprep.mubr.bf16.mxu0 %v4555_v13  ;;  %v4597_v30 = vsel %vm429_vm1, %v450_v23, %v454_v24  ;;  %v456_v42 = vrot.slane %v284_v56, 1  ;;  %v4621_v44 = vsel %vm429_vm1, %v454_v24, %v458_v35  ;;  %491 = vst [vmem:[#allocation2 + $0x150] sm:$0x7f] %v458_v35  ;;  %v3646_v56 = vld [vmem:[%s5464_s3 + $0x218] ss:$24 sps:$4 sm:$0xff]  }
  0x66   : > { %2524 = vmatpush1.bf16.msra.mxu1 %v3610_v58  ;;  %2452 = vmatprep.subr.bf16.mxu0 %v3615_v61  ;;  %v4608_v58 = vpack.c.bf16 %v4464_v8, %v4290_v36  ;;  %v4612_v61 = vsel %vm429_vm1, %v444_v14, %v448_v57  ;;  %v3636_v36 = vld [vmem:[%s5464_s3 + $0x27c] ss:$24 sps:$4 sm:$0xff]   ;;  %v3649_v3 = vld [vmem:[%s5464_s3 + $0x7e0] ss:$24 sps:$4 sm:$0xff]   ;;  %v4705_v23 = vpack.c.bf16 %v4539_v60, %v4295_v37  ;;  %v3675_v57 = vld [vmem:[%s5464_s3 + $0x42c] ss:$24 sps:$4 sm:$0xff]  }
  0x67   : > { %2525 = vmatprep.subr.bf16.mxu1 %v3618_v21  ;;  %2428 = vmatmul.mubr.bf16.gmra.mxu1 %v4559_v6  ;;  %v4627_v8 = vsel %vm429_vm1, %v452_v27, %v456_v42  ;;  %490 = vst [vmem:[#allocation2 + $0x158] sm:$0x7f] %v456_v42  ;;  %v3631_v21 = vld [vmem:[%s5464_s3 + $0x870] ss:$24 sps:$4 sm:$0xff]   ;;  %v3660_v59 = vld [vmem:[%s5464_s3 + $0x1bc] ss:$24 sps:$4 sm:$0xff]   ;;  %v4721_v60 = vpack.c.bf16 %v4562_v7, %v4544_v63 }
  0x68   : > { %2543 = vmatprep.mubr.bf16.mxu1 %v4306_v43  ;;  %v3652_v18 = vld [vmem:[%s5464_s3 + $0x1e8] ss:$24 sps:$4 sm:$0xff]   ;;  %v3658_v25 = vld [vmem:[%s5464_s3 + $0x1b8] ss:$24 sps:$4 sm:$0xff]   ;;  %v3669_v14 = vld [vmem:[%s5464_s3 + $0x45c] ss:$24 sps:$4 sm:$0xff]  }
  0x69   : > { %2453 = vmatpush1.bf16.msra.mxu0 %v3613_v16  ;;  %v3645_v16 = vld [vmem:[%s5464_s3 + $0x814] ss:$24 sps:$4 sm:$0xff]   ;;  %v3661_v12 = vld [vmem:[%s5464_s3 + $0x780] ss:$24 sps:$4 sm:$0xff]  }
  0x6a   : > { %2526 = vmatpush1.bf16.msra.mxu1 %v3616_v15  ;;  %2454 = vmatprep.subr.bf16.mxu0 %v3621_v1  ;;  %v3648_v15 = vld [vmem:[%s5464_s3 + $0x21c] ss:$24 sps:$4 sm:$0xff]   ;;  %v3664_v19 = vld [vmem:[%s5464_s3 + $0x188] ss:$24 sps:$4 sm:$0xff]   ;;  %v3667_v24 = vld [vmem:[%s5464_s3 + $0x458] ss:$24 sps:$4 sm:$0xff]  }
  0x6b   : > { %2527 = vmatprep.subr.bf16.mxu1 %v3624_v34  ;;  %2355 = vmatmul.mubr.bf16.gmra.mxu0 %v4590_v28  ;;  %v3651_v1 = vld [vmem:[%s5464_s3 + $0x7e4] ss:$24 sps:$4 sm:$0xff]   ;;  %v3657_v34 = vld [vmem:[%s5464_s3 + $0x7b4] ss:$24 sps:$4 sm:$0xff]   ;;  %v3673_v27 = vld [vmem:[%s5464_s3 + $0x428] ss:$24 sps:$4 sm:$0xff]  }
  0x6c   : > { %2470 = vmatprep.mubr.bf16.mxu0 %v4608_v58  ;;  %v3678_v37 = vld [vmem:[%s5464_s3 + $0x72c] ss:$24 sps:$4 sm:$0xff]   ;;  %v3676_v35 = vld [vmem:[%s5464_s3 + $0x728] ss:$24 sps:$4 sm:$0xff]   ;;  %v3681_v63 = vld [vmem:[%s5464_s3 + $0x3fc] ss:$24 sps:$4 sm:$0xff]  }
  0x6d   : > { %2455 = vmatpush2.bf16.msra.mxu0 %v3619_v9  ;;  %v3663_v9 = vld [vmem:[%s5464_s3 + $0x784] ss:$24 sps:$4 sm:$0xff]   ;;  %v3682_v42 = vld [vmem:[%s5464_s3 + $0x6f8] ss:$24 sps:$4 sm:$0xff]  }
  0x6e   : > { %2528 = vmatpush2.bf16.msra.mxu1 %v3622_v10  ;;  %2456 = vmatprep.subr.bf16.mxu0 %v3627_v17  ;;  %v3666_v10 = vld [vmem:[%s5464_s3 + $0x18c] ss:$24 sps:$4 sm:$0xff]   ;;  %v3672_v17 = vld [vmem:[%s5464_s3 + $0x75c] ss:$24 sps:$4 sm:$0xff]  }
  0x6f   : > { %2529 = vmatprep.subr.bf16.mxu1 %v3630_v26  ;;  %v3670_v26 = vld [vmem:[%s5464_s3 + $0x758] ss:$24 sps:$4 sm:$0xff]   ;;  %v3684_v7 = vld [vmem:[%s5464_s3 + $0x6fc] ss:$24 sps:$4 sm:$0xff]  }
  0x71   : > { %2457 = vmatpush2.bf16.msra.mxu0 %v3625_v39  ;;  %v4741_v39 = vpack.c.bf16 %v4587_v4, %v4579_v31  ;;  %v3690_v31 = vld [vmem:[%s5464_s3 + $0x6cc] ss:$24 sps:$4 sm:$0xff]   ;;  %v4757_v4 = vpack.c.bf16 %v4597_v30, %v4594_v62  ;;  %v3693_v62 = vld [vmem:[%s5464_s3 + $0x39c] ss:$24 sps:$4 sm:$0xff]  }
  0x72   : > { %2530 = vmatpush2.bf16.msra.mxu1 %v3628_v20  ;;  %2458 = vmatprep.subr.bf16.mxu0 %v3633_v32  ;;  %v3679_v20 = vld [vmem:[%s5464_s3 + $0x3f8] ss:$24 sps:$4 sm:$0xff]   ;;  %v3687_v32 = vld [vmem:[%s5464_s3 + $0x3cc] ss:$24 sps:$4 sm:$0xff]   ;;  %v3696_v30 = vld [vmem:[%s5464_s3 + $0x69c] ss:$24 sps:$4 sm:$0xff]  }
  0x73   : > { %2531 = vmatprep.subr.bf16.mxu1 %v3636_v36  ;;  %v3685_v36 = vld [vmem:[%s5464_s3 + $0x3c8] ss:$24 sps:$4 sm:$0xff]  }
  0x75   : > { %2459 = vmatpush2.bf16.msra.mxu0 %v3631_v21  ;;  %v3688_v21 = vld [vmem:[%s5464_s3 + $0x6c8] ss:$24 sps:$4 sm:$0xff]  }
  0x76   : > { %2532 = vmatpush2.bf16.msra.mxu1 %v3634_v47  ;;  %2460 = vmatprep.subr.bf16.mxu0 %v3639_v48  ;;  %v4777_v47 = vpack.c.bf16 %v4615_v41, %v4612_v61  ;;  %v539_v48 = vld [vmem:[#allocation2 + $0x150] sm:$0xff]  ;;  %v3702_v61 = vld [vmem:[%s5464_s3 + $0x66c] ss:$24 sps:$4 sm:$0xff]  }
  0x77   : > { %2533 = vmatprep.subr.bf16.mxu1 %v3642_v49  ;;  %v3691_v49 = vld [vmem:[%s5464_s3 + $0x398] ss:$24 sps:$4 sm:$0xff]   ;;  %v4792_v41 = vpack.c.bf16 %v539_v48, %v4621_v44  ;;  %v3705_v44 = vld [vmem:[%s5464_s3 + $0x33c] ss:$24 sps:$4 sm:$0xff]  }
  0x78   : > { %v3753_v48 = vld [vmem:[%s5464_s3 + $0x4bc] ss:$24 sps:$4 sm:$0xff]  }
  0x79   : > { %2461 = vmatpush2.bf16.msra.mxu0 %v3637_v0  ;;  %v3694_v0 = vld [vmem:[%s5464_s3 + $0x698] ss:$24 sps:$4 sm:$0xff]  }
  0x7a   : > { %2534 = vmatpush2.bf16.msra.mxu1 %v3640_v53  ;;  %2462 = vmatprep.subr.bf16.mxu0 %v3645_v16  ;;  %v3699_v53 = vld [vmem:[%s5464_s3 + $0x36c] ss:$24 sps:$4 sm:$0xff]   ;;  %v3697_v16 = vld [vmem:[%s5464_s3 + $0x368] ss:$24 sps:$4 sm:$0xff]  }
  0x7b   : > { %2535 = vmatprep.subr.bf16.mxu1 %v3648_v15  ;;  %v3700_v15 = vld [vmem:[%s5464_s3 + $0x668] ss:$24 sps:$4 sm:$0xff]  }
  0x7d   : > { %2463 = vmatpush2.bf16.msra.mxu0 %v3643_v55  ;;  %v538_v55 = vld [vmem:[#allocation2 + $0x158] sm:$0xff] }
  0x7e   : > { %2536 = vmatpush2.bf16.msra.mxu1 %v3646_v56  ;;  %2464 = vmatprep.subr.bf16.mxu0 %v3651_v1  ;;  %v3708_v56 = vld [vmem:[%s5464_s3 + $0x63c] ss:$24 sps:$4 sm:$0xff]   ;;  %v4811_v1 = vpack.c.bf16 %v538_v55, %v4627_v8  ;;  %v3714_v8 = vld [vmem:[%s5464_s3 + $0x60c] ss:$24 sps:$4 sm:$0xff]   ;;  %v3760_v55 = vld [vmem:[%s5464_s3 + $0x788] ss:$24 sps:$4 sm:$0xff]  }
  0x7f   : > { %2537 = vmatprep.subr.bf16.mxu1 %v3654_v2  ;;  %v3703_v2 = vld [vmem:[%s5464_s3 + $0x338] ss:$24 sps:$4 sm:$0xff]  }
  0x81   : > { %2465 = vmatpush2.bf16.msra.mxu0 %v3649_v3  ;;  %v3706_v3 = vld [vmem:[%s5464_s3 + $0x638] ss:$24 sps:$4 sm:$0xff]  }
  0x82   : > { %2538 = vmatpush2.bf16.msra.mxu1 %v3652_v18  ;;  %2466 = vmatprep.subr.bf16.mxu0 %v3657_v34  ;;  %v3711_v18 = vld [vmem:[%s5464_s3 + $0x30c] ss:$24 sps:$4 sm:$0xff]   ;;  %v3709_v34 = vld [vmem:[%s5464_s3 + $0x308] ss:$24 sps:$4 sm:$0xff]  }
  0x83   : > { %2539 = vmatprep.subr.bf16.mxu1 %v3660_v59  ;;  %v3712_v59 = vld [vmem:[%s5464_s3 + $0x608] ss:$24 sps:$4 sm:$0xff]  }
  0x85   : > { %2467 = vmatpush2.bf16.msra.mxu0 %v3655_v5  ;;  %v3717_v5 = vld [vmem:[%s5464_s3 + $0x5dc] ss:$24 sps:$4 sm:$0xff]  }
  0x86   : > { %2540 = vmatpush2.bf16.msra.mxu1 %v3658_v25  ;;  %2468 = vmatprep.subr.bf16.mxu0 %v3663_v9  ;;  %v3720_v25 = vld [vmem:[%s5464_s3 + $0x8dc] ss:$24 sps:$4 sm:$0xff]   ;;  %v3715_v9 = vld [vmem:[%s5464_s3 + $0x5d8] ss:$24 sps:$4 sm:$0xff]  }
  0x87   : > { %2541 = vmatprep.subr.bf16.mxu1 %v3666_v10  ;;  %v3718_v10 = vld [vmem:[%s5464_s3 + $0x8d8] ss:$24 sps:$4 sm:$0xff]  }
  0x89   : > { %2469 = vmatpush2.bf16.msra.mxu0 %v3661_v12  ;;  %v3723_v12 = vld [vmem:[%s5464_s3 + $0x5ac] ss:$24 sps:$4 sm:$0xff]  }
  0x8a   : > { %2542 = vmatpush2.bf16.msra.mxu1 %v3664_v19  ;;  %2584 = vmatprep.subr.bf16.mxu0 %v3669_v14  ;;  %v3726_v19 = vld [vmem:[%s5464_s3 + $0x8ac] ss:$24 sps:$4 sm:$0xff]   ;;  %v3721_v14 = vld [vmem:[%s5464_s3 + $0x5a8] ss:$24 sps:$4 sm:$0xff]  }
  0x8b   : > { %2657 = vmatprep.subr.bf16.mxu1 %v3672_v17  ;;  %v3724_v17 = vld [vmem:[%s5464_s3 + $0x8a8] ss:$24 sps:$4 sm:$0xff]  }
  0x8c   : > { %2471 = vmatmul.mubr.bf16.vlgmr.msra.gmra.mxu0 %v4705_v23 }
  0x8d   : > { %2544 = vmatmul.mubr.bf16.vlgmr.msra.gmra.mxu1 %v4311_v45  ;;  %2585 = vmatpush1.bf16.msra.mxu0 %v3667_v24  ;;  %v3729_v24 = vld [vmem:[%s5464_s3 + $0x57c] ss:$24 sps:$4 sm:$0xff]  }
  0x8e   : > { %2658 = vmatpush1.bf16.msra.mxu1 %v3670_v26  ;;  %2586 = vmatprep.subr.bf16.mxu0 %v3675_v57  ;;  %v3732_v26 = vld [vmem:[%s5464_s3 + $0x87c] ss:$24 sps:$4 sm:$0xff]   ;;  %v3727_v57 = vld [vmem:[%s5464_s3 + $0x578] ss:$24 sps:$4 sm:$0xff]  }
  0x8f   : > { %2659 = vmatprep.subr.bf16.mxu1 %v3678_v37  ;;  %2480 = vmatprep.mubr.bf16.mxu0 %v4721_v60  ;;  %v3730_v37 = vld [vmem:[%s5464_s3 + $0x878] ss:$24 sps:$4 sm:$0xff]  }
  0x90   : > { %2553 = vmatprep.mubr.bf16.mxu1 %v4424_v50 }
  0x91   : > { %2587 = vmatpush1.bf16.msra.mxu0 %v3673_v27  ;;  %v3735_v27 = vld [vmem:[%s5464_s3 + $0x54c] ss:$24 sps:$4 sm:$0xff]  }
  0x92   : > { %2660 = vmatpush1.bf16.msra.mxu1 %v3676_v35  ;;  %2588 = vmatprep.subr.bf16.mxu0 %v3681_v63  ;;  %v3738_v35 = vld [vmem:[%s5464_s3 + $0x84c] ss:$24 sps:$4 sm:$0xff]   ;;  %v3733_v63 = vld [vmem:[%s5464_s3 + $0x548] ss:$24 sps:$4 sm:$0xff]  }
  0x93   : > { %2661 = vmatprep.subr.bf16.mxu1 %v3684_v7  ;;  %v3736_v7 = vld [vmem:[%s5464_s3 + $0x848] ss:$24 sps:$4 sm:$0xff]  }
  0x94   : > { %2481 = vmatmul.mubr.bf16.gmra.mxu0 %v4741_v39 }
  0x95   : > { %2554 = vmatmul.mubr.bf16.gmra.mxu1 %v4426_v51  ;;  %2589 = vmatpush1.bf16.msra.mxu0 %v3679_v20  ;;  %v3741_v20 = vld [vmem:[%s5464_s3 + $0x51c] ss:$24 sps:$4 sm:$0xff]  }
  0x96   : > { %2662 = vmatpush1.bf16.msra.mxu1 %v3682_v42  ;;  %2590 = vmatprep.subr.bf16.mxu0 %v3687_v32  ;;  %v3744_v42 = vld [vmem:[%s5464_s3 + $0x81c] ss:$24 sps:$4 sm:$0xff]   ;;  %v3739_v32 = vld [vmem:[%s5464_s3 + $0x518] ss:$24 sps:$4 sm:$0xff]  }
  0x97   : > { %2663 = vmatprep.subr.bf16.mxu1 %v3690_v31  ;;  %2490 = vmatprep.mubr.bf16.mxu0 %v4757_v4  ;;  %v3742_v31 = vld [vmem:[%s5464_s3 + $0x818] ss:$24 sps:$4 sm:$0xff]  }
  0x98   : > { %2563 = vmatprep.mubr.bf16.mxu1 %v4492_v33 }
  0x99   : > { %2591 = vmatpush1.bf16.msra.mxu0 %v3685_v36  ;;  %v3747_v36 = vld [vmem:[%s5464_s3 + $0x4ec] ss:$24 sps:$4 sm:$0xff]  }
  0x9a   : > { %2664 = vmatpush1.bf16.msra.mxu1 %v3688_v21  ;;  %2592 = vmatprep.subr.bf16.mxu0 %v3693_v62  ;;  %v3750_v21 = vld [vmem:[%s5464_s3 + $0x7ec] ss:$24 sps:$4 sm:$0xff]   ;;  %v3745_v62 = vld [vmem:[%s5464_s3 + $0x4e8] ss:$24 sps:$4 sm:$0xff]  }
  0x9b   : > { %2665 = vmatprep.subr.bf16.mxu1 %v3696_v30  ;;  %v3748_v30 = vld [vmem:[%s5464_s3 + $0x7e8] ss:$24 sps:$4 sm:$0xff]  }
  0x9c   : > { %2491 = vmatmul.mubr.bf16.gmra.mxu0 %v4777_v47 }
  0x9d   : > { %2564 = vmatmul.mubr.bf16.gmra.mxu1 %v4521_v52  ;;  %2593 = vmatpush1.bf16.msra.mxu0 %v3691_v49  ;;  %v3756_v49 = vld [vmem:[%s5464_s3 + $0x7bc] ss:$24 sps:$4 sm:$0xff]  }
  0x9e   : > { %2666 = vmatpush1.bf16.msra.mxu1 %v3694_v0  ;;  %2594 = vmatprep.subr.bf16.mxu0 %v3699_v53  ;;  %v3751_v0 = vld [vmem:[%s5464_s3 + $0x4b8] ss:$24 sps:$4 sm:$0xff]  }
  0x9f   : > { %2667 = vmatprep.subr.bf16.mxu1 %v3702_v61  ;;  %2500 = vmatprep.mubr.bf16.mxu0 %v4792_v41  ;;  %v3754_v53 = vld [vmem:[%s5464_s3 + $0x7b8] ss:$24 sps:$4 sm:$0xff]   ;;  %v3759_v61 = vld [vmem:[%s5464_s3 + $0x48c] ss:$24 sps:$4 sm:$0xff]  }
  0xa0   : > { %2573 = vmatprep.mubr.bf16.mxu1 %v4555_v13 }
  0xa1   : > { %2595 = vmatpush1.bf16.msra.mxu0 %v3697_v16  ;;  %v3762_v16 = vld [vmem:[%s5464_s3 + $0x78c] ss:$24 sps:$4 sm:$0xff]  }
  0xa2   : > { %2668 = vmatpush1.bf16.msra.mxu1 %v3700_v15  ;;  %2596 = vmatprep.subr.bf16.mxu0 %v3705_v44  ;;  %v3757_v15 = vld [vmem:[%s5464_s3 + $0x488] ss:$24 sps:$4 sm:$0xff]   ;;  %v3765_v44 = vld [vmem:[%s5464_s3 + $0x164] ss:$24 sps:$4 sm:$0xff]  }
  0xa3   : > { %2669 = vmatprep.subr.bf16.mxu1 %v3708_v56  ;;  %v3768_v56 = vld [vmem:[%s5464_s3 + $0x464] ss:$24 sps:$4 sm:$0xff]  }
  0xa4   : > { %2501 = vmatmul.mubr.bf16.gmra.mxu0 %v4811_v1 }
  0xa5   : > { %2574 = vmatmul.mubr.bf16.gmra.mxu1 %v4590_v28  ;;  %2597 = vmatpush1.bf16.msra.mxu0 %v3703_v2  ;;  %v3763_v2 = vld [vmem:[%s5464_s3 + $0x160] ss:$24 sps:$4 sm:$0xff]  }
  0xa6   : > { %2670 = vmatpush1.bf16.msra.mxu1 %v3706_v3  ;;  %2598 = vmatprep.subr.bf16.mxu0 %v3711_v18  ;;  %v3766_v3 = vld [vmem:[%s5464_s3 + $0x460] ss:$24 sps:$4 sm:$0xff]   ;;  %v3771_v18 = vld [vmem:[%s5464_s3 + $0x134] ss:$24 sps:$4 sm:$0xff]  }
  0xa7   : > { %2671 = vmatprep.subr.bf16.mxu1 %v3714_v8  ;;  %2616 = vmatprep.mubr.bf16.mxu0 %v4260_v22  ;;  %v3774_v8 = vld [vmem:[%s5464_s3 + $0x434] ss:$24 sps:$4 sm:$0xff]  }
  0xa8   : > { %2689 = vmatprep.mubr.bf16.mxu1 %v4608_v58 }
  0xa9   : > { %2599 = vmatpush1.bf16.msra.mxu0 %v3709_v34  ;;  %v3769_v34 = vld [vmem:[%s5464_s3 + $0x130] ss:$24 sps:$4 sm:$0xff]  }
  0xaa   : > { %2672 = vmatpush1.bf16.msra.mxu1 %v3712_v59  ;;  %2600 = vmatprep.subr.bf16.mxu0 %v3717_v5  ;;  %v3772_v59 = vld [vmem:[%s5464_s3 + $0x430] ss:$24 sps:$4 sm:$0xff]   ;;  %v3777_v5 = vld [vmem:[%s5464_s3 + $0x104] ss:$24 sps:$4 sm:$0xff]  }
  0xab   : > { %2673 = vmatprep.subr.bf16.mxu1 %v3720_v25  ;;  %v3780_v25 = vld [vmem:[%s5464_s3 + $0x404] ss:$24 sps:$4 sm:$0xff]  }
  0xad   : > { %2601 = vmatpush2.bf16.msra.mxu0 %v3715_v9  ;;  %v3775_v9 = vld [vmem:[%s5464_s3 + $0x100] ss:$24 sps:$4 sm:$0xff]  }
  0xae   : > { %2674 = vmatpush2.bf16.msra.mxu1 %v3718_v10  ;;  %2602 = vmatprep.subr.bf16.mxu0 %v3723_v12  ;;  %v3778_v10 = vld [vmem:[%s5464_s3 + $0x400] ss:$24 sps:$4 sm:$0xff]   ;;  %v3783_v12 = vld [vmem:[%s5464_s3 + $0xd4] ss:$24 sps:$4 sm:$0xff]  }
  0xaf   : > { %2675 = vmatprep.subr.bf16.mxu1 %v3726_v19  ;;  %v3786_v19 = vld [vmem:[%s5464_s3 + $0x3d4] ss:$24 sps:$4 sm:$0xff]  }
  0xb1   : > { %2603 = vmatpush2.bf16.msra.mxu0 %v3721_v14  ;;  %v3781_v14 = vld [vmem:[%s5464_s3 + $0xd0] ss:$24 sps:$4 sm:$0xff]  }
  0xb2   : > { %2676 = vmatpush2.bf16.msra.mxu1 %v3724_v17  ;;  %2604 = vmatprep.subr.bf16.mxu0 %v3729_v24  ;;  %v3784_v17 = vld [vmem:[%s5464_s3 + $0x3d0] ss:$24 sps:$4 sm:$0xff]   ;;  %v3789_v24 = vld [vmem:[%s5464_s3 + $0xa4] ss:$24 sps:$4 sm:$0xff]  }
  0xb3   : > { %2677 = vmatprep.subr.bf16.mxu1 %v3732_v26  ;;  %v3792_v26 = vld [vmem:[%s5464_s3 + $0x3a4] ss:$24 sps:$4 sm:$0xff]  }
  0xb5   : > { %2605 = vmatpush2.bf16.msra.mxu0 %v3727_v57  ;;  %v3787_v57 = vld [vmem:[%s5464_s3 + $0xa0] ss:$24 sps:$4 sm:$0xff]  }
  0xb6   : > { %2678 = vmatpush2.bf16.msra.mxu1 %v3730_v37  ;;  %2606 = vmatprep.subr.bf16.mxu0 %v3735_v27  ;;  %v3790_v37 = vld [vmem:[%s5464_s3 + $0x3a0] ss:$24 sps:$4 sm:$0xff]   ;;  %v3795_v27 = vld [vmem:[%s5464_s3 + $0x74] ss:$24 sps:$4 sm:$0xff]  }
  0xb7   : > { %2679 = vmatprep.subr.bf16.mxu1 %v3738_v35  ;;  %v3798_v35 = vld [vmem:[%s5464_s3 + $0x374] ss:$24 sps:$4 sm:$0xff]  }
  0xb9   : > { %2607 = vmatpush2.bf16.msra.mxu0 %v3733_v63  ;;  %v3793_v63 = vld [vmem:[%s5464_s3 + $0x70] ss:$24 sps:$4 sm:$0xff]  }
  0xba   : > { %2680 = vmatpush2.bf16.msra.mxu1 %v3736_v7  ;;  %2608 = vmatprep.subr.bf16.mxu0 %v3741_v20  ;;  %v3796_v7 = vld [vmem:[%s5464_s3 + $0x370] ss:$24 sps:$4 sm:$0xff]   ;;  %v3801_v20 = vld [vmem:[%s5464_s3 + $0x44] ss:$24 sps:$4 sm:$0xff]  }
  0xbb   : > { %2681 = vmatprep.subr.bf16.mxu1 %v3744_v42  ;;  %v3804_v42 = vld [vmem:[%s5464_s3 + $0x344] ss:$24 sps:$4 sm:$0xff]  }
  0xbd   : > { %2609 = vmatpush2.bf16.msra.mxu0 %v3739_v32  ;;  %v3799_v32 = vld [vmem:[%s5464_s3 + $0x40] ss:$24 sps:$4 sm:$0xff]  }
  0xbe   : > { %2682 = vmatpush2.bf16.msra.mxu1 %v3742_v31  ;;  %2610 = vmatprep.subr.bf16.mxu0 %v3747_v36  ;;  %v3802_v31 = vld [vmem:[%s5464_s3 + $0x340] ss:$24 sps:$4 sm:$0xff]   ;;  %v3807_v36 = vld [vmem:[%s5464_s3 + $0x14] ss:$24 sps:$4 sm:$0xff]  }
  0xbf   : > { %2683 = vmatprep.subr.bf16.mxu1 %v3750_v21  ;;  %v3810_v21 = vld [vmem:[%s5464_s3 + $0x314] ss:$24 sps:$4 sm:$0xff]  }
  0xc1   : > { %2611 = vmatpush2.bf16.msra.mxu0 %v3745_v62  ;;  %v3805_v62 = vld [vmem:[%s5464_s3 + $0x10] ss:$24 sps:$4 sm:$0xff]  }
  0xc2   : > { %2684 = vmatpush2.bf16.msra.mxu1 %v3748_v30  ;;  %2612 = vmatprep.subr.bf16.mxu0 %v3753_v48  ;;  %v3808_v30 = vld [vmem:[%s5464_s3 + $0x310] ss:$24 sps:$4 sm:$0xff]   ;;  %v3813_v48 = vld [vmem:[%s5464_s3 + $0x2e4] ss:$24 sps:$4 sm:$0xff]  }
  0xc3   : > { %2685 = vmatprep.subr.bf16.mxu1 %v3756_v49  ;;  %v3816_v49 = vld [vmem:[%s5464_s3 + $0x5e4] ss:$24 sps:$4 sm:$0xff]  }
  0xc5   : > { %2613 = vmatpush2.bf16.msra.mxu0 %v3751_v0  ;;  %v3811_v0 = vld [vmem:[%s5464_s3 + $0x2e0] ss:$24 sps:$4 sm:$0xff]  }
  0xc6   : > { %2686 = vmatpush2.bf16.msra.mxu1 %v3754_v53  ;;  %2614 = vmatprep.subr.bf16.mxu0 %v3759_v61  ;;  %v3814_v53 = vld [vmem:[%s5464_s3 + $0x5e0] ss:$24 sps:$4 sm:$0xff]   ;;  %v3819_v61 = vld [vmem:[%s5464_s3 + $0x2b4] ss:$24 sps:$4 sm:$0xff]  }
  0xc7   : > { %2687 = vmatprep.subr.bf16.mxu1 %v3762_v16  ;;  %v3820_v16 = vld [vmem:[%s5464_s3 + $0x5b0] ss:$24 sps:$4 sm:$0xff]  }
  0xc9   : > { %2615 = vmatpush2.bf16.msra.mxu0 %v3757_v15  ;;  %v3825_v15 = vld [vmem:[%s5464_s3 + $0x284] ss:$24 sps:$4 sm:$0xff]  }
  0xca   : > { %2688 = vmatpush2.bf16.msra.mxu1 %v3760_v55  ;;  %2730 = vmatprep.subr.bf16.mxu0 %v3765_v44  ;;  %v3828_v55 = vld [vmem:[%s5464_s3 + $0x584] ss:$24 sps:$4 sm:$0xff]   ;;  %v3823_v44 = vld [vmem:[%s5464_s3 + $0x280] ss:$24 sps:$4 sm:$0xff]  }
  0xcb   : > { %2803 = vmatprep.subr.bf16.mxu1 %v3768_v56  ;;  %v3826_v56 = vld [vmem:[%s5464_s3 + $0x580] ss:$24 sps:$4 sm:$0xff]  }
  0xcc   : > { %2617 = vmatmul.mubr.bf16.vlgmr.msra.gmra.mxu0 %v4314_v46 }
  0xcd   : > { %2690 = vmatmul.mubr.bf16.vlgmr.msra.gmra.mxu1 %v4705_v23  ;;  %2731 = vmatpush1.bf16.msra.mxu0 %v3763_v2  ;;  %v3831_v2 = vld [vmem:[%s5464_s3 + $0x254] ss:$24 sps:$4 sm:$0xff]  }
  0xce   : > { %2804 = vmatpush1.bf16.msra.mxu1 %v3766_v3  ;;  %2732 = vmatprep.subr.bf16.mxu0 %v3771_v18  ;;  %v3834_v3 = vld [vmem:[%s5464_s3 + $0x554] ss:$24 sps:$4 sm:$0xff]   ;;  %v3829_v18 = vld [vmem:[%s5464_s3 + $0x250] ss:$24 sps:$4 sm:$0xff]  }
  0xcf   : > { %2805 = vmatprep.subr.bf16.mxu1 %v3774_v8  ;;  %2626 = vmatprep.mubr.bf16.mxu0 %v4394_v29  ;;  %v3832_v8 = vld [vmem:[%s5464_s3 + $0x550] ss:$24 sps:$4 sm:$0xff]  }
  0xd0   : > { %2699 = vmatprep.mubr.bf16.mxu1 %v4721_v60 }
  0xd1   : > { %2733 = vmatpush1.bf16.msra.mxu0 %v3769_v34  ;;  %v3837_v34 = vld [vmem:[%s5464_s3 + $0x224] ss:$24 sps:$4 sm:$0xff]  }
  0xd2   : > { %2806 = vmatpush1.bf16.msra.mxu1 %v3772_v59  ;;  %2734 = vmatprep.subr.bf16.mxu0 %v3777_v5  ;;  %v3840_v59 = vld [vmem:[%s5464_s3 + $0x524] ss:$24 sps:$4 sm:$0xff]   ;;  %v3835_v5 = vld [vmem:[%s5464_s3 + $0x220] ss:$24 sps:$4 sm:$0xff]  }
  0xd3   : > { %2807 = vmatprep.subr.bf16.mxu1 %v3780_v25  ;;  %v3838_v25 = vld [vmem:[%s5464_s3 + $0x520] ss:$24 sps:$4 sm:$0xff]  }
  0xd4   : > { %2627 = vmatmul.mubr.bf16.gmra.mxu0 %v4404_v38 }
  0xd5   : > { %2700 = vmatmul.mubr.bf16.gmra.mxu1 %v4741_v39  ;;  %2735 = vmatpush1.bf16.msra.mxu0 %v3775_v9  ;;  %v3843_v9 = vld [vmem:[%s5464_s3 + $0x1f4] ss:$24 sps:$4 sm:$0xff]  }
  0xd6   : > { %2808 = vmatpush1.bf16.msra.mxu1 %v3778_v10  ;;  %2736 = vmatprep.subr.bf16.mxu0 %v3783_v12  ;;  %v3846_v10 = vld [vmem:[%s5464_s3 + $0x4f4] ss:$24 sps:$4 sm:$0xff]   ;;  %v3841_v12 = vld [vmem:[%s5464_s3 + $0x1f0] ss:$24 sps:$4 sm:$0xff]  }
  0xd7   : > { %2809 = vmatprep.subr.bf16.mxu1 %v3786_v19  ;;  %2636 = vmatprep.mubr.bf16.mxu0 %v4470_v11  ;;  %v3844_v19 = vld [vmem:[%s5464_s3 + $0x4f0] ss:$24 sps:$4 sm:$0xff]  }
  0xd8   : > { %2709 = vmatprep.mubr.bf16.mxu1 %v4757_v4 }
  0xd9   : > { %2737 = vmatpush1.bf16.msra.mxu0 %v3781_v14  ;;  %v3849_v14 = vld [vmem:[%s5464_s3 + $0x1c4] ss:$24 sps:$4 sm:$0xff]  }
  0xda   : > { %2810 = vmatpush1.bf16.msra.mxu1 %v3784_v17  ;;  %2738 = vmatprep.subr.bf16.mxu0 %v3789_v24  ;;  %v3852_v17 = vld [vmem:[%s5464_s3 + $0x4c4] ss:$24 sps:$4 sm:$0xff]   ;;  %v3847_v24 = vld [vmem:[%s5464_s3 + $0x1c0] ss:$24 sps:$4 sm:$0xff]  }
  0xdb   : > { %2811 = vmatprep.subr.bf16.mxu1 %v3792_v26  ;;  %v3850_v26 = vld [vmem:[%s5464_s3 + $0x4c0] ss:$24 sps:$4 sm:$0xff]  }
  0xdc   : > { %2637 = vmatmul.mubr.bf16.gmra.mxu0 %v4500_v40 }
  0xdd   : > { %2710 = vmatmul.mubr.bf16.gmra.mxu1 %v4777_v47  ;;  %2739 = vmatpush1.bf16.msra.mxu0 %v3787_v57  ;;  %v3855_v57 = vld [vmem:[%s5464_s3 + $0x194] ss:$24 sps:$4 sm:$0xff]  }
  0xde   : > { %2812 = vmatpush1.bf16.msra.mxu1 %v3790_v37  ;;  %2740 = vmatprep.subr.bf16.mxu0 %v3795_v27  ;;  %v3858_v37 = vld [vmem:[%s5464_s3 + $0x494] ss:$24 sps:$4 sm:$0xff]   ;;  %v3853_v27 = vld [vmem:[%s5464_s3 + $0x190] ss:$24 sps:$4 sm:$0xff]  }
  0xdf   : > { %2813 = vmatprep.subr.bf16.mxu1 %v3798_v35  ;;  %2646 = vmatprep.mubr.bf16.mxu0 %v4528_v54  ;;  %v3856_v35 = vld [vmem:[%s5464_s3 + $0x490] ss:$24 sps:$4 sm:$0xff]  }
  0xe0   : > { %2719 = vmatprep.mubr.bf16.mxu1 %v4792_v41 }
  0xe1   : > { %2741 = vmatpush1.bf16.msra.mxu0 %v3793_v63  ;;  %v3861_v63 = vld [vmem:[%s5464_s3 + $0x764] ss:$24 sps:$4 sm:$0xff]  }
  0xe2   : > { %2814 = vmatpush1.bf16.msra.mxu1 %v3796_v7  ;;  %2742 = vmatprep.subr.bf16.mxu0 %v3801_v20  ;;  %v3859_v7 = vld [vmem:[%s5464_s3 + $0x760] ss:$24 sps:$4 sm:$0xff]   ;;  %v3864_v20 = vld [vmem:[%s5464_s3 + $0x734] ss:$24 sps:$4 sm:$0xff]  }
  0xe3   : > { %2815 = vmatprep.subr.bf16.mxu1 %v3804_v42  ;;  %v3862_v42 = vld [vmem:[%s5464_s3 + $0x730] ss:$24 sps:$4 sm:$0xff]  }
  0xe4   : > { %2647 = vmatmul.mubr.bf16.gmra.mxu0 %v4559_v6 }
  0xe5   : > { %2720 = vmatmul.mubr.bf16.gmra.mxu1 %v4811_v1  ;;  %2743 = vmatpush1.bf16.msra.mxu0 %v3799_v32  ;;  %v3867_v32 = vld [vmem:[%s5464_s3 + $0x704] ss:$24 sps:$4 sm:$0xff]  }
  0xe6   : > { %2816 = vmatpush1.bf16.msra.mxu1 %v3802_v31  ;;  %2744 = vmatprep.subr.bf16.mxu0 %v3807_v36 }
  0xe7   : > { %2817 = vmatprep.subr.bf16.mxu1 %v3810_v21  ;;  %2762 = vmatprep.mubr.bf16.mxu0 %v4306_v43  ;;  %v3817_v43 = vld [vmem:[%s5464_s3 + $0x2b0] ss:$24 sps:$4 sm:$0xff]  }
  0xe8   : > { %2835 = vmatprep.mubr.bf16.mxu1 %v4260_v22  ;;  %v3822_v22 = vld [vmem:[%s5464_s3 + $0x5b4] ss:$24 sps:$4 sm:$0xff]  }
  0xe9   : > { %2745 = vmatpush1.bf16.msra.mxu0 %v3805_v62 }
  0xea   : > { %2818 = vmatpush1.bf16.msra.mxu1 %v3808_v30  ;;  %2746 = vmatprep.subr.bf16.mxu0 %v3813_v48  ;;  %v3876_v30 = vld [vmem:[%s5464_s3 + $0x674] ss:$24 sps:$4 sm:$0xff]  }
  0xeb   : > { %2819 = vmatprep.subr.bf16.mxu1 %v3816_v49  ;;  %v3879_v49 = vld [vmem:[%s5464_s3 + $0x644] ss:$24 sps:$4 sm:$0xff]  }
  0xed   : > { %2747 = vmatpush2.bf16.msra.mxu0 %v3811_v0 }
  0xee   : > { %2820 = vmatpush2.bf16.msra.mxu1 %v3814_v53  ;;  %2748 = vmatprep.subr.bf16.mxu0 %v3819_v61  ;;  %v3882_v53 = vld [vmem:[%s5464_s3 + $0x614] ss:$24 sps:$4 sm:$0xff]  }
  0xef   : > { %2821 = vmatprep.subr.bf16.mxu1 %v3822_v22 }
  0xf1   : > { %2749 = vmatpush2.bf16.msra.mxu0 %v3817_v43 }
  0xf2   : > { %2822 = vmatpush2.bf16.msra.mxu1 %v3820_v16  ;;  %2750 = vmatprep.subr.bf16.mxu0 %v3825_v15 }
  0xf3   : > { %2823 = vmatprep.subr.bf16.mxu1 %v3828_v55 }
  0xf5   : > { %2751 = vmatpush2.bf16.msra.mxu0 %v3823_v44 }
  0xf6   : > { %2824 = vmatpush2.bf16.msra.mxu1 %v3826_v56  ;;  %2752 = vmatprep.subr.bf16.mxu0 %v3831_v2  ;;  %v3889_v2 = vld [vmem:[%s5464_s3 + $0x880] ss:$24 sps:$4 sm:$0xff]  }
  0xf7   : > { %2825 = vmatprep.subr.bf16.mxu1 %v3834_v3 }
  0xf9   : > { %2753 = vmatpush2.bf16.msra.mxu0 %v3829_v18  ;;  %v3894_v18 = vld [vmem:[%s5464_s3 + $0x854] ss:$24 sps:$4 sm:$0xff]  }
  0xfa   : > { %2826 = vmatpush2.bf16.msra.mxu1 %v3832_v8  ;;  %2754 = vmatprep.subr.bf16.mxu0 %v3837_v34  ;;  %v3892_v34 = vld [vmem:[%s5464_s3 + $0x850] ss:$24 sps:$4 sm:$0xff]  }
  0xfb   : > { %2827 = vmatprep.subr.bf16.mxu1 %v3840_v59 }
  0xfd   : > { %2755 = vmatpush2.bf16.msra.mxu0 %v3835_v5 }
  0xfe   : > { %2828 = vmatpush2.bf16.msra.mxu1 %v3838_v25  ;;  %2756 = vmatprep.subr.bf16.mxu0 %v3843_v9  ;;  %v3897_v25 = vld [vmem:[%s5464_s3 + $0x824] ss:$24 sps:$4 sm:$0xff]   ;;  %v3895_v9 = vld [vmem:[%s5464_s3 + $0x820] ss:$24 sps:$4 sm:$0xff]  }
  0xff   : > { %2829 = vmatprep.subr.bf16.mxu1 %v3846_v10 }
 0x101   : > { %2757 = vmatpush2.bf16.msra.mxu0 %v3841_v12 }
 0x102   : > { %2830 = vmatpush2.bf16.msra.mxu1 %v3844_v19  ;;  %2758 = vmatprep.subr.bf16.mxu0 %v3849_v14  ;;  %v3900_v19 = vld [vmem:[%s5464_s3 + $0x7f4] ss:$24 sps:$4 sm:$0xff]   ;;  %v3898_v14 = vld [vmem:[%s5464_s3 + $0x7f0] ss:$24 sps:$4 sm:$0xff]  }
 0x103   : > { %2831 = vmatprep.subr.bf16.mxu1 %v3852_v17 }
 0x105   : > { %2759 = vmatpush2.bf16.msra.mxu0 %v3847_v24 }
 0x106   : > { %2832 = vmatpush2.bf16.msra.mxu1 %v3850_v26  ;;  %2760 = vmatprep.subr.bf16.mxu0 %v3855_v57  ;;  %v3903_v26 = vld [vmem:[%s5464_s3 + $0x7c4] ss:$24 sps:$4 sm:$0xff]   ;;  %v3901_v57 = vld [vmem:[%s5464_s3 + $0x7c0] ss:$24 sps:$4 sm:$0xff]  }
 0x107   : > { %2833 = vmatprep.subr.bf16.mxu1 %v3858_v37 }
 0x109   : > { %2761 = vmatpush2.bf16.msra.mxu0 %v3853_v27 }
 0x10a   : > { %2834 = vmatpush2.bf16.msra.mxu1 %v3856_v35  ;;  %2876 = vmatprep.subr.bf16.mxu0 %v3861_v63  ;;  %v3906_v35 = vld [vmem:[%s5464_s3 + $0x794] ss:$24 sps:$4 sm:$0xff]  }
 0x10b   : > { %3433 = vmatprep.subr.bf16.mxu1 %v3861_v63  ;;  %v3904_v63 = vld [vmem:[%s5464_s3 + $0x790] ss:$24 sps:$4 sm:$0xff]  }
 0x10c   : > { %2763 = vmatmul.mubr.bf16.vlgmr.msra.gmra.mxu0 %v4311_v45  ;;  %v5158_v31 = vpop.f32.mrf.mxu0  ;;  %v3865_v45 = vld [vmem:[%s5464_s3 + $0x700] ss:$24 sps:$4 sm:$0xff]  }
 0x10d   : > { %2836 = vmatmul.mubr.bf16.vlgmr.msra.gmra.mxu1 %v4314_v46  ;;  %2877 = vmatpush1.bf16.msra.mxu0 %v3859_v7  ;;  %v3870_v46 = vld [vmem:[%s5464_s3 + $0x6d4] ss:$24 sps:$4 sm:$0xff]   ;;  %v5166_v36 = vpop.f32.mrf.mxu1 }
 0x10e   : > { %3449 = vmatpush1.bf16.msra.mxu1 %v3859_v7  ;;  %2878 = vmatprep.subr.bf16.mxu0 %v3864_v20  ;;  %v5168_v21 = vpop.f32.mrf.mxu0 }
 0x10f   : > { %3434 = vmatprep.subr.bf16.mxu1 %v3864_v20  ;;  %2772 = vmatprep.mubr.bf16.mxu0 %v4424_v50  ;;  %v3873_v50 = vld [vmem:[%s5464_s3 + $0x6a4] ss:$24 sps:$4 sm:$0xff]   ;;  %v5180_v62 = vpop.f32.mrf.mxu1 }
 0x110   : > { %2845 = vmatprep.mubr.bf16.mxu1 %v4394_v29  ;;  %v3868_v29 = vld [vmem:[%s5464_s3 + $0x6d0] ss:$24 sps:$4 sm:$0xff]  }
 0x111   : > { %2879 = vmatpush1.bf16.msra.mxu0 %v3862_v42  ;;  %v5190_v48 = vpop.f32.mrf.mxu1 }
 0x112   : > { %3450 = vmatpush1.bf16.msra.mxu1 %v3862_v42  ;;  %2880 = vmatprep.subr.bf16.mxu0 %v3867_v32 }
 0x113   : > { %3435 = vmatprep.subr.bf16.mxu1 %v3867_v32 }
 0x114   : > { %2773 = vmatmul.mubr.bf16.gmra.mxu0 %v4426_v51  ;;  %v5182_v51 = vpop.f32.mrf.mxu0 }
 0x115   : > { %2846 = vmatmul.mubr.bf16.gmra.mxu1 %v4404_v38  ;;  %2881 = vmatpush1.bf16.msra.mxu0 %v3865_v45  ;;  %v3871_v38 = vld [vmem:[%s5464_s3 + $0x6a0] ss:$24 sps:$4 sm:$0xff]  }
 0x116   : > { %3451 = vmatpush1.bf16.msra.mxu1 %v3865_v45  ;;  %2882 = vmatprep.subr.bf16.mxu0 %v3870_v46  ;;  %v2400_v45 = vadd.f32 %v5166_v36, %v5158_v31 }
 0x117   : > { %3436 = vmatprep.subr.bf16.mxu1 %v3870_v46  ;;  %2782 = vmatprep.mubr.bf16.mxu0 %v4492_v33  ;;  %v5192_v33 = vpop.f32.mrf.mxu0 }
 0x118   : > { %2855 = vmatprep.mubr.bf16.mxu1 %v4470_v11  ;;  %v3874_v11 = vld [vmem:[%s5464_s3 + $0x670] ss:$24 sps:$4 sm:$0xff]  }
 0x119   : > { %2883 = vmatpush1.bf16.msra.mxu0 %v3868_v29  ;;  %v5202_v0 = vpop.f32.mrf.mxu0 }
 0x11a   : > { %3452 = vmatpush1.bf16.msra.mxu1 %v3868_v29  ;;  %2884 = vmatprep.subr.bf16.mxu0 %v3873_v50  ;;  %v2402_v29 = vadd.f32 %v5180_v62, %v5168_v21 }
 0x11b   : > { %3437 = vmatprep.subr.bf16.mxu1 %v3873_v50  ;;  %v5216_v22 = vpop.f32.mrf.mxu0 }
 0x11c   : > { %2783 = vmatmul.mubr.bf16.gmra.mxu0 %v4521_v52  ;;  %v5206_v52 = vpop.f32.mrf.mxu1 }
 0x11d   : > { %2856 = vmatmul.mubr.bf16.gmra.mxu1 %v4500_v40  ;;  %2885 = vmatpush1.bf16.msra.mxu0 %v3871_v38  ;;  %v3877_v40 = vld [vmem:[%s5464_s3 + $0x640] ss:$24 sps:$4 sm:$0xff]   ;;  %v5228_v16 = vpop.f32.mrf.mxu0 }
 0x11e   : > { %3453 = vmatpush1.bf16.msra.mxu1 %v3871_v38  ;;  %2886 = vmatprep.subr.bf16.mxu0 %v3876_v30  ;;  %v5214_v61 = vpop.f32.mrf.mxu1 }
 0x11f   : > { %3438 = vmatprep.subr.bf16.mxu1 %v3876_v30  ;;  %2792 = vmatprep.mubr.bf16.mxu0 %v4555_v13  ;;  %v3885_v13 = vld [vmem:[%s5464_s3 + $0x8e4] ss:$24 sps:$4 sm:$0xff]   ;;  %v5240_v55 = vpop.f32.mrf.mxu0 }
 0x120   : > { %2865 = vmatprep.mubr.bf16.mxu1 %v4528_v54  ;;  %v3880_v54 = vld [vmem:[%s5464_s3 + $0x610] ss:$24 sps:$4 sm:$0xff]   ;;  %v5226_v43 = vpop.f32.mrf.mxu1 }
 0x121   : > { %2887 = vmatpush1.bf16.msra.mxu0 %v3874_v11 }
 0x122   : > { %3454 = vmatpush1.bf16.msra.mxu1 %v3874_v11  ;;  %2888 = vmatprep.subr.bf16.mxu0 %v3879_v49  ;;  %v5238_v15 = vpop.f32.mrf.mxu1  ;;  %v2404_v11 = vadd.f32 %v5190_v48, %v5182_v51  ;;  %v2412_v48 = vadd.f32 %v5226_v43, %v5216_v22 }
 0x123   : > { %3439 = vmatprep.subr.bf16.mxu1 %v3879_v49  ;;  %v5250_v56 = vpop.f32.mrf.mxu0 }
 0x124   : > { %2793 = vmatmul.mubr.bf16.gmra.mxu0 %v4590_v28  ;;  %v3888_v28 = vld [vmem:[%s5464_s3 + $0x8b4] ss:$24 sps:$4 sm:$0xff]   ;;  %v5248_v44 = vpop.f32.mrf.mxu1 }
 0x125   : > { %2866 = vmatmul.mubr.bf16.gmra.mxu1 %v4559_v6  ;;  %2889 = vmatpush1.bf16.msra.mxu0 %v3877_v40  ;;  %v3883_v6 = vld [vmem:[%s5464_s3 + $0x8e0] ss:$24 sps:$4 sm:$0xff]   ;;  %v5260_v8 = vpop.f32.mrf.mxu0 }
 0x126   : > { %3455 = vmatpush1.bf16.msra.mxu1 %v3877_v40  ;;  %2890 = vmatprep.subr.bf16.mxu0 %v3882_v53  ;;  %v5255_v3 = vpop.f32.mrf.mxu1  ;;  %v2414_v40 = vadd.f32 %v5238_v15, %v5228_v16 }
 0x127   : > { %3440 = vmatprep.subr.bf16.mxu1 %v3882_v53  ;;  %2908 = vmatprep.mubr.bf16.mxu0 %v4608_v58  ;;  %v3886_v58 = vld [vmem:[%s5464_s3 + $0x8b0] ss:$24 sps:$4 sm:$0xff]   ;;  %v5267_v5 = vpop.f32.mrf.mxu0 }
 0x128   : > { %2928 = vmatprep.mubr.bf16.mxu1 %v4757_v4  ;;  %v3891_v4 = vld [vmem:[%s5464_s3 + $0x884] ss:$24 sps:$4 sm:$0xff]   ;;  %v5265_v59 = vpop.f32.mrf.mxu1 }
 0x129   : > { %2891 = vmatpush1.bf16.msra.mxu0 %v3880_v54  ;;  %v5277_v12 = vpop.f32.mrf.mxu0 }
 0x12a   : > { %3456 = vmatpush1.bf16.msra.mxu1 %v3880_v54  ;;  %2892 = vmatprep.subr.bf16.mxu0 %v3885_v13  ;;  %v5275_v10 = vpop.f32.mrf.mxu1  ;;  %v2420_v54 = vadd.f32 %v5255_v3, %v5250_v56 }
 0x12b   : > { %3441 = vmatprep.subr.bf16.mxu1 %v3885_v13  ;;  %v5287_v24 = vpop.f32.mrf.mxu0 }
 0x12c   : > { %v5285_v17 = vpop.f32.mrf.mxu1 }
 0x12d   : > { %2893 = vmatpush2.bf16.msra.mxu0 %v3883_v6  ;;  %v5297_v27 = vpop.f32.mrf.mxu0 }
 0x12e   : > { %3457 = vmatpush2.bf16.msra.mxu1 %v3883_v6  ;;  %2894 = vmatprep.subr.bf16.mxu0 %v3888_v28  ;;  %v5295_v37 = vpop.f32.mrf.mxu1 }
 0x12f   : > { %3442 = vmatprep.subr.bf16.mxu1 %v3888_v28  ;;  %v5307_v20 = vpop.f32.mrf.mxu0  ;;  %v2422_v28 = vadd.f32 %v5265_v59, %v5260_v8 }
 0x130   : > { %v5305_v7 = vpop.f32.mrf.mxu1 }
 0x131   : > { %2895 = vmatpush2.bf16.msra.mxu0 %v3886_v58  ;;  %v5311_v32 = vpop.f32.mrf.mxu0 }
 0x132   : > { %3458 = vmatpush2.bf16.msra.mxu1 %v3886_v58  ;;  %2896 = vmatprep.subr.bf16.mxu0 %v3891_v4  ;;  %v5309_v42 = vpop.f32.mrf.mxu1 }
 0x133   : > { %3443 = vmatprep.subr.bf16.mxu1 %v3891_v4 }
 0x134   : > { %v5321_v38 = vpop.f32.mrf.mxu1 }
 0x135   : > { %2897 = vmatpush2.bf16.msra.mxu0 %v3889_v2 }
 0x136   : > { %3459 = vmatpush2.bf16.msra.mxu1 %v3889_v2  ;;  %2898 = vmatprep.subr.bf16.mxu0 %v3894_v18 }
 0x137   : > { %3444 = vmatprep.subr.bf16.mxu1 %v3894_v18  ;;  %v2426_v18 = vadd.f32 %v5285_v17, %v5277_v12  ;;  %v2432_v12 = vadd.f32 %v5305_v7, %v5297_v27  ;;  %v2436_v27 = vadd.f32 %v5321_v38, %v5311_v32 }
 0x139   : > { %2899 = vmatpush2.bf16.msra.mxu0 %v3892_v34 }
 0x13a   : > { %3460 = vmatpush2.bf16.msra.mxu1 %v3892_v34  ;;  %2900 = vmatprep.subr.bf16.mxu0 %v3897_v25 }
 0x13b   : > { %3445 = vmatprep.subr.bf16.mxu1 %v3897_v25 }
 0x13d   : > { %2901 = vmatpush2.bf16.msra.mxu0 %v3895_v9 }
 0x13e   : > { %3461 = vmatpush2.bf16.msra.mxu1 %v3895_v9  ;;  %2902 = vmatprep.subr.bf16.mxu0 %v3900_v19 }
 0x13f   : > { %3446 = vmatprep.subr.bf16.mxu1 %v3900_v19 }
 0x141   : > { %2903 = vmatpush2.bf16.msra.mxu0 %v3898_v14 }
 0x142   : > { %3462 = vmatpush2.bf16.msra.mxu1 %v3898_v14  ;;  %2904 = vmatprep.subr.bf16.mxu0 %v3903_v26 }
 0x143   : > { %3447 = vmatprep.subr.bf16.mxu1 %v3903_v26 }
 0x145   : > { %2905 = vmatpush2.bf16.msra.mxu0 %v3901_v57 }
 0x146   : > { %3463 = vmatpush2.bf16.msra.mxu1 %v3901_v57  ;;  %2906 = vmatprep.subr.bf16.mxu0 %v3906_v35 }
 0x147   : > { %3448 = vmatprep.subr.bf16.mxu1 %v3906_v35 }
 0x149   : > { %2907 = vmatpush2.bf16.msra.mxu0 %v3904_v63 }
 0x14a   : > { %3464 = vmatpush2.bf16.msra.mxu1 %v3904_v63 }
 0x14c   : > { %v2472_v46 = vpop.f32.mrf.mxu0  ;;  %2909 = vmatmul.mubr.bf16.vlgmr.msra.gmra.mxu0 %v4705_v23 }
 0x14d   : > { %2929 = vmatmul.mubr.bf16.vlgmr.msra.gmra.mxu1 %v4777_v47  ;;  %v2473_v50 = vadd.f32 %v2472_v46, %v2400_v45  ;;  %2918 = vmatprep.mubr.bf16.mxu0 %v4721_v60  ;;  %v5325_v36 = vpop.f32.mrf.mxu1  ;;  %v2406_v47 = vadd.f32 %v5206_v52, %v5192_v33 }
 0x14e   : > { %2938 = vmatprep.mubr.bf16.mxu1 %v4792_v41  ;;  %v2474_v30 = vpop.f32.mrf.mxu0  ;;  %v2410_v41 = vadd.f32 %v5214_v61, %v5202_v0 }
 0x14f   : > { %3907 = vtanh.f32 %v2473_v50  ;;  %v2475_v31 = vadd.f32 %v2474_v30, %v2402_v29  ;;  %v5331_v49 = vpop.f32.mrf.mxu1 }
 0x150   : > { %v2476_v23 = vpop.f32.mrf.mxu0 }
 0x151   : > { %3909 = vtanh.f32 %v2475_v31  ;;  %v2477_v21 = vadd.f32 %v2476_v23, %v2404_v11  ;;  %v5340_v53 = vpop.f32.mrf.mxu1 }
 0x152   : > { %v2478_v60 = vpop.f32.mrf.mxu0 }
 0x153   : > { %3911 = vtanh.f32 %v2477_v21  ;;  %v2479_v62 = vadd.f32 %v2478_v60, %v2406_v47  ;;  %v5351_v16 = vpop.f32.mrf.mxu1 }
 0x154   : > { %v2482_v51 = vpop.f32.mrf.mxu0  ;;  %2919 = vmatmul.mubr.bf16.gmra.mxu0 %v4741_v39  ;;  %v2416_v39 = vadd.f32 %v5248_v44, %v5240_v55  ;;  %v2424_v44 = vadd.f32 %v5275_v10, %v5267_v5  ;;  %v2430_v5 = vadd.f32 %v5295_v37, %v5287_v24  ;;  %v2434_v24 = vadd.f32 %v5309_v42, %v5307_v20 }
 0x155   : > { %2939 = vmatmul.mubr.bf16.gmra.mxu1 %v4811_v1  ;;  %3913 = vtanh.f32 %v2479_v62  ;;  %v2483_v33 = vadd.f32 %v2482_v51, %v2410_v41  ;;  %v5356_v4 = vpop.f32.mrf.mxu1 }
 0x156   : > { %v2484_v52 = vpop.f32.mrf.mxu0 }
 0x157   : > { %3915 = vtanh.f32 %v2483_v33  ;;  %v2485_v0 = vadd.f32 %v2484_v52, %v2412_v48  ;;  %v5364_v25 = vpop.f32.mrf.mxu1 }
 0x158   : > { %v2486_v61 = vpop.f32.mrf.mxu0 }
 0x159   : > { %3917 = vtanh.f32 %v2485_v0  ;;  %v2487_v1 = vadd.f32 %v2486_v61, %v2414_v40  ;;  %v5372_v57 = vpop.f32.mrf.mxu1 }
 0x15a   : > { %v2488_v22 = vpop.f32.mrf.mxu0 }
 0x15b   : > { %3919 = vtanh.f32 %v2487_v1  ;;  %v2489_v13 = vadd.f32 %v2488_v22, %v2416_v39  ;;  %v5380_v29 = vpop.f32.mrf.mxu1 }
 0x15c   : > { %v3908_v43 = vpop.eup %3907  ;;  %v2492_v6 = vpop.f32.mrf.mxu0 }
 0x15d   : > { %2997 = vst [vmem:[%s5347_s5] sm:$0xff] %v3908_v43  ;;  %3921 = vtanh.f32 %v2489_v13  ;;  %v2493_v15 = vadd.f32 %v2492_v6, %v2420_v54  ;;  %v2565_v32 = vpop.f32.mrf.mxu1 }
 0x15e   : > { %v3910_v55 = vpop.eup %3909  ;;  %v2494_v58 = vpop.f32.mrf.mxu0 }
 0x15f   : > { %2998 = vst [vmem:[%s5347_s5 + $0x8] sm:$0xff] %v3910_v55  ;;  %3923 = vtanh.f32 %v2493_v15  ;;  %v2495_v56 = vadd.f32 %v2494_v58, %v2422_v28  ;;  %v5386_v11 = vpop.f32.mrf.mxu1 }
 0x160   : > { %v3912_v2 = vpop.eup %3911  ;;  %v2496_v3 = vpop.f32.mrf.mxu0 }
 0x161   : > { %2999 = vst [vmem:[%s5347_s5 + $0x10] sm:$0xff] %v3912_v2  ;;  %3925 = vtanh.f32 %v2495_v56  ;;  %v2497_v8 = vadd.f32 %v2496_v3, %v2424_v44  ;;  %v5390_v47 = vpop.f32.mrf.mxu1 }
 0x162   : > { %v3914_v34 = vpop.eup %3913  ;;  %v2498_v59 = vpop.f32.mrf.mxu0 }
 0x163   : > { %3000 = vst [vmem:[%s5347_s5 + $0x18] sm:$0xff] %v3914_v34  ;;  %3927 = vtanh.f32 %v2497_v8  ;;  %v2499_v9 = vadd.f32 %v2498_v59, %v2426_v18  ;;  %v5394_v41 = vpop.f32.mrf.mxu1 }
 0x164   : > { %v3916_v10 = vpop.eup %3915  ;;  %v2502_v19 = vpop.f32.mrf.mxu0 }
 0x165   : > { %3001 = vst [vmem:[%s5347_s5 + $0x20] sm:$0xff] %v3916_v10  ;;  %3929 = vtanh.f32 %v2499_v9  ;;  %v2503_v14 = vadd.f32 %v2502_v19, %v2430_v5  ;;  %v5397_v62 = vpop.f32.mrf.mxu1 }
 0x166   : > { %v3918_v17 = vpop.eup %3917  ;;  %v2504_v26 = vpop.f32.mrf.mxu0 }
 0x167   : > { %3002 = vst [vmem:[%s5347_s5 + $0x28] sm:$0xff] %v3918_v17  ;;  %3931 = vtanh.f32 %v2503_v14  ;;  %v2505_v37 = vadd.f32 %v2504_v26, %v2432_v12  ;;  %v5399_v51 = vpop.f32.mrf.mxu1 }
 0x168   : > { %v3920_v35 = vpop.eup %3919  ;;  %v2506_v63 = vpop.f32.mrf.mxu0 }
 0x169   : > { %3003 = vst [vmem:[%s5347_s5 + $0x30] sm:$0xff] %v3920_v35  ;;  %3933 = vtanh.f32 %v2505_v37  ;;  %v2507_v7 = vadd.f32 %v2506_v63, %v2434_v24  ;;  %v5401_v48 = vpop.f32.mrf.mxu1 }
 0x16a   : > { %v3922_v45 = vpop.eup %3921  ;;  %v2508_v46 = vpop.f32.mrf.mxu0 }
 0x16b   : > { %3004 = vst [vmem:[%s5347_s5 + $0x38] sm:$0xff] %v3922_v45  ;;  %3935 = vtanh.f32 %v2507_v7  ;;  %v2509_v20 = vadd.f32 %v2508_v46, %v2436_v27  ;;  %v5403_v33 = vpop.f32.mrf.mxu1 }
 0x16c   : > { %v3924_v42 = vpop.eup %3923 }
 0x16d   : > { %3005 = vst [vmem:[%s5347_s5 + $0x40] sm:$0xff] %v3924_v42  ;;  %3937 = vtanh.f32 %v2509_v20 }
 0x16e   : > { %v3926_v50 = vpop.eup %3925 }
 0x16f   : > { %3006 = vst [vmem:[%s5347_s5 + $0x48] sm:$0xff] %v3926_v50 }
 0x170   : > { %v3928_v38 = vpop.eup %3927 }
 0x171   : > { %3007 = vst [vmem:[%s5347_s5 + $0x50] sm:$0xff] %v3928_v38 }
 0x172   : > { %v3930_v30 = vpop.eup %3929 }
 0x173   : > { %3008 = vst [vmem:[%s5347_s5 + $0x58] sm:$0xff] %v3930_v30 }
 0x174   : > { %v3932_v31 = vpop.eup %3931 }
 0x175   : > { %3009 = vst [vmem:[%s5347_s5 + $0x60] sm:$0xff] %v3932_v31 }
 0x176   : > { %v3934_v23 = vpop.eup %3933 }
 0x177   : > { %3010 = vst [vmem:[%s5347_s5 + $0x68] sm:$0xff] %v3934_v23 }
 0x178   : > { %v3936_v21 = vpop.eup %3935 }
 0x179   : > { %3011 = vst [vmem:[%s5347_s5 + $0x70] sm:$0xff] %v3936_v21 }
 0x17a   : > { %v3938_v60 = vpop.eup %3937 }
 0x17b   : > { %3012 = vst [vmem:[%s5347_s5 + $0x78] sm:$0xff] %v3938_v60 }
 0x18c   : > { %v2618_v52 = vpop.f32.mrf.mxu0 }
 0x18d   : > { %v2691_v40 = vpop.f32.mrf.mxu1  ;;  %v2619_v0 = vadd.f32 %v2618_v52, %v5325_v36 }
 0x18e   : > { %v2620_v61 = vpop.f32.mrf.mxu0 }
 0x18f   : > { %v2693_v39 = vpop.f32.mrf.mxu1  ;;  %v2692_v1 = vadd.f32 %v2691_v40, %v2619_v0  ;;  %v2621_v22 = vadd.f32 %v2620_v61, %v5331_v49 }
 0x190   : > { %v2622_v54 = vpop.f32.mrf.mxu0 }
 0x191   : > { %v2695_v13 = vpop.f32.mrf.mxu1  ;;  %3939 = vtanh.f32 %v2692_v1  ;;  %v2694_v43 = vadd.f32 %v2693_v39, %v2621_v22  ;;  %v2623_v6 = vadd.f32 %v2622_v54, %v5340_v53 }
 0x192   : > { %v2624_v28 = vpop.f32.mrf.mxu0 }
 0x193   : > { %v2697_v15 = vpop.f32.mrf.mxu1  ;;  %3941 = vtanh.f32 %v2694_v43  ;;  %v2696_v55 = vadd.f32 %v2695_v13, %v2623_v6  ;;  %v2625_v58 = vadd.f32 %v2624_v28, %v5351_v16 }
 0x194   : > { %v2628_v44 = vpop.f32.mrf.mxu0 }
 0x195   : > { %v2701_v56 = vpop.f32.mrf.mxu1  ;;  %3943 = vtanh.f32 %v2696_v55  ;;  %v2698_v36 = vadd.f32 %v2697_v15, %v2625_v58  ;;  %v2629_v2 = vadd.f32 %v2628_v44, %v5356_v4 }
 0x196   : > { %v2630_v3 = vpop.f32.mrf.mxu0 }
 0x197   : > { %v2703_v49 = vpop.f32.mrf.mxu1  ;;  %3945 = vtanh.f32 %v2698_v36  ;;  %v2631_v18 = vadd.f32 %v2630_v3, %v5364_v25  ;;  %v2702_v8 = vadd.f32 %v2701_v56, %v2629_v2 }
 0x198   : > { %v2632_v34 = vpop.f32.mrf.mxu0 }
 0x199   : > { %v2705_v53 = vpop.f32.mrf.mxu1  ;;  %3947 = vtanh.f32 %v2702_v8  ;;  %v2633_v59 = vadd.f32 %v2632_v34, %v5372_v57  ;;  %v2704_v5 = vadd.f32 %v2703_v49, %v2631_v18 }
 0x19a   : > { %v2634_v16 = vpop.f32.mrf.mxu0 }
 0x19b   : > { %v2707_v9 = vpop.f32.mrf.mxu1  ;;  %3949 = vtanh.f32 %v2704_v5  ;;  %v2635_v10 = vadd.f32 %v2634_v16, %v5380_v29  ;;  %v2706_v19 = vadd.f32 %v2705_v53, %v2633_v59 }
 0x19c   : > { %v2638_v4 = vpop.f32.mrf.mxu0 }
 0x19d   : > { %v2711_v12 = vpop.f32.mrf.mxu1  ;;  %3951 = vtanh.f32 %v2706_v19  ;;  %v2639_v14 = vadd.f32 %v2638_v4, %v2565_v32  ;;  %v2708_v25 = vadd.f32 %v2707_v9, %v2635_v10 }
 0x19e   : > { %v3940_v17 = vpop.eup %3939  ;;  %v2640_v26 = vpop.f32.mrf.mxu0 }
 0x19f   : > { %v2713_v24 = vpop.f32.mrf.mxu1  ;;  %3398 = vst [vmem:[%s5347_s5 + $0x80] sm:$0xff] %v3940_v17  ;;  %3953 = vtanh.f32 %v2708_v25  ;;  %v2641_v57 = vadd.f32 %v2640_v26, %v5386_v11  ;;  %v2712_v37 = vadd.f32 %v2711_v12, %v2639_v14 }
 0x1a0   : > { %v3942_v35 = vpop.eup %3941  ;;  %v2642_v63 = vpop.f32.mrf.mxu0 }
 0x1a1   : > { %v2715_v27 = vpop.f32.mrf.mxu1  ;;  %3399 = vst [vmem:[%s5347_s5 + $0x88] sm:$0xff] %v3942_v35  ;;  %3955 = vtanh.f32 %v2712_v37  ;;  %v2643_v7 = vadd.f32 %v2642_v63, %v5390_v47  ;;  %v2714_v45 = vadd.f32 %v2713_v24, %v2641_v57 }
 0x1a2   : > { %v3944_v46 = vpop.eup %3943  ;;  %v2644_v29 = vpop.f32.mrf.mxu0 }
 0x1a3   : > { %v2717_v20 = vpop.f32.mrf.mxu1  ;;  %3400 = vst [vmem:[%s5347_s5 + $0x90] sm:$0xff] %v3944_v46  ;;  %3957 = vtanh.f32 %v2714_v45  ;;  %v2645_v42 = vadd.f32 %v2644_v29, %v5394_v41  ;;  %v2716_v50 = vadd.f32 %v2715_v27, %v2643_v7 }
 0x1a4   : > { %v3946_v32 = vpop.eup %3945  ;;  %v2648_v38 = vpop.f32.mrf.mxu0 }
 0x1a5   : > { %v2721_v30 = vpop.f32.mrf.mxu1  ;;  %3401 = vst [vmem:[%s5347_s5 + $0x98] sm:$0xff] %v3946_v32  ;;  %3959 = vtanh.f32 %v2716_v50  ;;  %v2649_v11 = vadd.f32 %v2648_v38, %v5397_v62  ;;  %v2718_v31 = vadd.f32 %v2717_v20, %v2645_v42 }
 0x1a6   : > { %v3948_v23 = vpop.eup %3947  ;;  %v2650_v47 = vpop.f32.mrf.mxu0 }
 0x1a7   : > { %v2723_v21 = vpop.f32.mrf.mxu1  ;;  %3402 = vst [vmem:[%s5347_s5 + $0xa0] sm:$0xff] %v3948_v23  ;;  %3961 = vtanh.f32 %v2718_v31  ;;  %v2651_v60 = vadd.f32 %v2650_v47, %v5399_v51  ;;  %v2722_v52 = vadd.f32 %v2721_v30, %v2649_v11 }
 0x1a8   : > { %v3950_v41 = vpop.eup %3949  ;;  %v2652_v40 = vpop.f32.mrf.mxu0 }
 0x1a9   : > { %v2725_v0 = vpop.f32.mrf.mxu1  ;;  %3403 = vst [vmem:[%s5347_s5 + $0xa8] sm:$0xff] %v3950_v41  ;;  %3963 = vtanh.f32 %v2722_v52  ;;  %v2653_v61 = vadd.f32 %v2652_v40, %v5401_v48  ;;  %v2724_v62 = vadd.f32 %v2723_v21, %v2651_v60 }
 0x1aa   : > { %v3952_v39 = vpop.eup %3951  ;;  %v2654_v1 = vpop.f32.mrf.mxu0 }
 0x1ab   : > { %v2727_v22 = vpop.f32.mrf.mxu1  ;;  %3404 = vst [vmem:[%s5347_s5 + $0xb0] sm:$0xff] %v3952_v39  ;;  %3965 = vtanh.f32 %v2724_v62  ;;  %v2655_v51 = vadd.f32 %v2654_v1, %v5403_v33  ;;  %v2726_v54 = vadd.f32 %v2725_v0, %v2653_v61 }
 0x1ac   : > { %v3954_v13 = vpop.eup %3953 }
 0x1ad   : > { %3405 = vst [vmem:[%s5347_s5 + $0xb8] sm:$0xff] %v3954_v13  ;;  %3967 = vtanh.f32 %v2726_v54  ;;  %v2728_v43 = vadd.f32 %v2727_v22, %v2655_v51 }
 0x1ae   : > { %v3956_v48 = vpop.eup %3955 }
 0x1af   : > { %3406 = vst [vmem:[%s5347_s5 + $0xc0] sm:$0xff] %v3956_v48  ;;  %3969 = vtanh.f32 %v2728_v43 }
 0x1b0   : > { %v3958_v6 = vpop.eup %3957 }
 0x1b1   : > { %3407 = vst [vmem:[%s5347_s5 + $0xc8] sm:$0xff] %v3958_v6 }
 0x1b2   : > { %v3960_v28 = vpop.eup %3959 }
 0x1b3   : > { %3408 = vst [vmem:[%s5347_s5 + $0xd0] sm:$0xff] %v3960_v28 }
 0x1b4   : > { %v3962_v15 = vpop.eup %3961 }
 0x1b5   : > { %3409 = vst [vmem:[%s5347_s5 + $0xd8] sm:$0xff] %v3962_v15 }
 0x1b6   : > { %v3964_v55 = vpop.eup %3963 }
 0x1b7   : > { %3410 = vst [vmem:[%s5347_s5 + $0xe0] sm:$0xff] %v3964_v55 }
 0x1b8   : > { %v3966_v33 = vpop.eup %3965 }
 0x1b9   : > { %3411 = vst [vmem:[%s5347_s5 + $0xe8] sm:$0xff] %v3966_v33 }
 0x1ba   : > { %v3968_v58 = vpop.eup %3967 }
 0x1bb   : > { %3412 = vst [vmem:[%s5347_s5 + $0xf0] sm:$0xff] %v3968_v58 }
 0x1bc   : > { %v3970_v44 = vpop.eup %3969 }
 0x1bd   : > { %3413 = vst [vmem:[%s5347_s5 + $0xf8] sm:$0xff] %v3970_v44 }
 0x1cc   : > { %v2764_v56 = vpop.f32.mrf.mxu0 }
 0x1cd   : > { %v2837_v36 = vpop.f32.mrf.mxu1 }
 0x1ce   : > { %v2766_v2 = vpop.f32.mrf.mxu0  ;;  %v2838_v42 = vadd.f32 %v2837_v36, %v2764_v56 }
 0x1cf   : > { %v2839_v3 = vpop.f32.mrf.mxu1 }
 0x1d0   : > { %v2768_v49 = vpop.f32.mrf.mxu0  ;;  %v2840_v30 = vadd.f32 %v2839_v3, %v2766_v2 }
 0x1d1   : > { %v2841_v18 = vpop.f32.mrf.mxu1 }
 0x1d2   : > { %v2770_v8 = vpop.f32.mrf.mxu0  ;;  %v2842_v47 = vadd.f32 %v2841_v18, %v2768_v49 }
 0x1d3   : > { %v2843_v34 = vpop.f32.mrf.mxu1 }
 0x1d4   : > { %v2774_v53 = vpop.f32.mrf.mxu0  ;;  %v2844_v0 = vadd.f32 %v2843_v34, %v2770_v8 }
 0x1d5   : > { %v2847_v59 = vpop.f32.mrf.mxu1 }
 0x1d6   : > { %v2776_v5 = vpop.f32.mrf.mxu0  ;;  %v2848_v51 = vadd.f32 %v2847_v59, %v2774_v53 }
 0x1d7   : > { %v2849_v16 = vpop.f32.mrf.mxu1 }
 0x1d8   : > { %v2778_v9 = vpop.f32.mrf.mxu0  ;;  %v2850_v28 = vadd.f32 %v2849_v16, %v2776_v5 }
 0x1d9   : > { %v2851_v10 = vpop.f32.mrf.mxu1 }
 0x1da   : > { %v5436_v19 = vpop.f32.mrf.mxu0  ;;  %v2852_v56 = vadd.f32 %v2851_v10, %v2778_v9 }
 0x1db   : > { %v5438_v4 = vpop.f32.mrf.mxu1 }
 0x1dc   : > { %v2784_v12 = vpop.f32.mrf.mxu0  ;;  %v2854_v8 = vadd.f32 %v5438_v4, %v5436_v19 }
 0x1dd   : > { %v2857_v14 = vpop.f32.mrf.mxu1 }
 0x1de   : > { %v2786_v25 = vpop.f32.mrf.mxu0  ;;  %v2858_v50 = vadd.f32 %v2857_v14, %v2784_v12 }
 0x1df   : > { %v2859_v17 = vpop.f32.mrf.mxu1 }
 0x1e0   : > { %v2788_v26 = vpop.f32.mrf.mxu0  ;;  %v2860_v11 = vadd.f32 %v2859_v17, %v2786_v25 }
 0x1e1   : > { %v2861_v24 = vpop.f32.mrf.mxu1 }
 0x1e2   : > { %v2790_v57 = vpop.f32.mrf.mxu0  ;;  %v2862_v52 = vadd.f32 %v2861_v24, %v2788_v26 }
 0x1e3   : > { %v2863_v37 = vpop.f32.mrf.mxu1 }
 0x1e4   : > { %v2794_v35 = vpop.f32.mrf.mxu0  ;;  %v2864_v39 = vadd.f32 %v2863_v37, %v2790_v57 }
 0x1e5   : > { %v2867_v63 = vpop.f32.mrf.mxu1 }
 0x1e6   : > { %v2796_v27 = vpop.f32.mrf.mxu0  ;;  %v2868_v43 = vadd.f32 %v2867_v63, %v2794_v35 }
 0x1e7   : > { %v2869_v7 = vpop.f32.mrf.mxu1 }
 0x1e8   : > { %v2798_v45 = vpop.f32.mrf.mxu0  ;;  %v2870_v33 = vadd.f32 %v2869_v7, %v2796_v27 }
 0x1e9   : > { %v2871_v46 = vpop.f32.mrf.mxu1 }
 0x1ea   : > { %v2800_v29 = vpop.f32.mrf.mxu0  ;;  %v2872_v3 = vadd.f32 %v2871_v46, %v2798_v45 }
 0x1eb   : > { %v2873_v20 = vpop.f32.mrf.mxu1 }
 0x1ec   : > { %v2874_v59 = vadd.f32 %v2873_v20, %v2800_v29 }
 0x20c   : > { %v2910_v32 = vpop.f32.mrf.mxu0 }
 0x20d   : > { %v2930_v38 = vpop.f32.mrf.mxu1  ;;  %v2911_v31 = vadd.f32 %v2910_v32, %v2838_v42 }
 0x20e   : > { %v2931_v23 = vadd.f32 %v2930_v38, %v2858_v50  ;;  %v2912_v21 = vpop.f32.mrf.mxu0 }
 0x20f   : > { %v2932_v60 = vpop.f32.mrf.mxu1  ;;  %3971 = vtanh.f32 %v2911_v31  ;;  %v2913_v41 = vadd.f32 %v2912_v21, %v2840_v30 }
 0x210   : > { %v2933_v40 = vadd.f32 %v2932_v60, %v2860_v11  ;;  %3973 = vtanh.f32 %v2931_v23  ;;  %v2914_v61 = vpop.f32.mrf.mxu0 }
 0x211   : > { %v2934_v62 = vpop.f32.mrf.mxu1  ;;  %3975 = vtanh.f32 %v2913_v41  ;;  %v2915_v1 = vadd.f32 %v2914_v61, %v2842_v47 }
 0x212   : > { %v2935_v22 = vadd.f32 %v2934_v62, %v2862_v52  ;;  %3977 = vtanh.f32 %v2933_v40  ;;  %v2916_v54 = vpop.f32.mrf.mxu0 }
 0x213   : > { %v2936_v13 = vpop.f32.mrf.mxu1  ;;  %3979 = vtanh.f32 %v2915_v1  ;;  %v2917_v48 = vadd.f32 %v2916_v54, %v2844_v0 }
 0x214   : > { %v2937_v6 = vadd.f32 %v2936_v13, %v2864_v39  ;;  %3981 = vtanh.f32 %v2935_v22  ;;  %v2920_v15 = vpop.f32.mrf.mxu0 }
 0x215   : > { %v2940_v55 = vpop.f32.mrf.mxu1  ;;  %3983 = vtanh.f32 %v2917_v48  ;;  %v2921_v58 = vadd.f32 %v2920_v15, %v2848_v51 }
 0x216   : > { %v2941_v44 = vadd.f32 %v2940_v55, %v2868_v43  ;;  %3985 = vtanh.f32 %v2937_v6  ;;  %v2922_v36 = vpop.f32.mrf.mxu0 }
 0x217   : > { %v2942_v2 = vpop.f32.mrf.mxu1  ;;  %3987 = vtanh.f32 %v2921_v58  ;;  %v2923_v49 = vadd.f32 %v2922_v36, %v2850_v28 }
 0x218   : > { %v2943_v18 = vadd.f32 %v2942_v2, %v2870_v33  ;;  %3989 = vtanh.f32 %v2941_v44  ;;  %v2924_v34 = vpop.f32.mrf.mxu0 }
 0x219   : > { %v2944_v53 = vpop.f32.mrf.mxu1  ;;  %3991 = vtanh.f32 %v2923_v49  ;;  %v2925_v5 = vadd.f32 %v2924_v34, %v2852_v56 }
 0x21a   : > { %v2945_v16 = vadd.f32 %v2944_v53, %v2872_v3  ;;  %3993 = vtanh.f32 %v2943_v18  ;;  %v2926_v9 = vpop.f32.mrf.mxu0 }
 0x21b   : > { %v2946_v10 = vpop.f32.mrf.mxu1  ;;  %3995 = vtanh.f32 %v2925_v5  ;;  %v2927_v12 = vadd.f32 %v2926_v9, %v2854_v8 }
 0x21c   : > { %v2947_v14 = vadd.f32 %v2946_v10, %v2874_v59  ;;  %v3972_v19 = vpop.eup %3971  ;;  %3997 = vtanh.f32 %v2945_v16 }
 0x21d   : > { %v3974_v4 = vpop.eup %3973  ;;  %3414 = vst [vmem:[%s5347_s5 + $0x100] sm:$0xff] %v3972_v19  ;;  %3999 = vtanh.f32 %v2927_v12 }
 0x21e   : > { %v3976_v25 = vpop.eup %3975  ;;  %3422 = vst [vmem:[%s5347_s5 + $0x140] sm:$0xff] %v3974_v4  ;;  %4001 = vtanh.f32 %v2947_v14 }
 0x21f   : > { %v3978_v17 = vpop.eup %3977  ;;  %3415 = vst [vmem:[%s5347_s5 + $0x108] sm:$0xff] %v3976_v25 }
 0x220   : > { %v3980_v26 = vpop.eup %3979  ;;  %3423 = vst [vmem:[%s5347_s5 + $0x148] sm:$0xff] %v3978_v17 }
 0x221   : > { %v3982_v24 = vpop.eup %3981  ;;  %3416 = vst [vmem:[%s5347_s5 + $0x110] sm:$0xff] %v3980_v26 }
 0x222   : > { %v3984_v57 = vpop.eup %3983  ;;  %3424 = vst [vmem:[%s5347_s5 + $0x150] sm:$0xff] %v3982_v24 }
 0x223   : > { %v3986_v37 = vpop.eup %3985  ;;  %3417 = vst [vmem:[%s5347_s5 + $0x118] sm:$0xff] %v3984_v57 }
 0x224   : > { %v3988_v35 = vpop.eup %3987  ;;  %3425 = vst [vmem:[%s5347_s5 + $0x158] sm:$0xff] %v3986_v37 }
 0x225   : > { %v3990_v63 = vpop.eup %3989  ;;  %3418 = vst [vmem:[%s5347_s5 + $0x120] sm:$0xff] %v3988_v35 }
 0x226   : > { %v3992_v27 = vpop.eup %3991  ;;  %3426 = vst [vmem:[%s5347_s5 + $0x160] sm:$0xff] %v3990_v63 }
 0x227   : > { %v3994_v7 = vpop.eup %3993  ;;  %3419 = vst [vmem:[%s5347_s5 + $0x128] sm:$0xff] %v3992_v27 }
 0x228   : > { %v3996_v45 = vpop.eup %3995  ;;  %3427 = vst [vmem:[%s5347_s5 + $0x168] sm:$0xff] %v3994_v7 }
 0x229   : > { %v3998_v46 = vpop.eup %3997  ;;  %3420 = vst [vmem:[%s5347_s5 + $0x130] sm:$0xff] %v3996_v45 }
 0x22a   : > { %v4000_v29 = vpop.eup %3999  ;;  %3428 = vst [vmem:[%s5347_s5 + $0x170] sm:$0xff] %v3998_v46 }
 0x22b   : > { %v4002_v20 = vpop.eup %4001  ;;  %3421 = vst [vmem:[%s5347_s5 + $0x138] sm:$0xff] %v4000_v29 }
 0x22c   : > { %3429 = vst [vmem:[%s5347_s5 + $0x178] sm:$0xff] %v4002_v20 }
 0x22d PF: > { %s14_s15 = sadd.s32 1, %s4009_s15  }
 0x22e   : > { %p11_p4 = scmp.ge.s32.totalorder %s14_s15, 4  }
 0x230   :  { %13 = sbr.rel (!%p11_p4) target bundleno = 1 (0x1), region = 68 }

</bundles_post_ra>
